<compile_context>
chip_gen: v7x
topology: tpu7x:2x2x1
jax: 0.10.0
libtpu: 0.0.40
codegen_flags: <defaults>
</compile_context>

<pallas_src>
import math
import jax
import jax.numpy as jnp
from jax.experimental import pallas as pl
from jax.experimental.pallas import tpu as pltpu

EMB_VOCAB = 30      # nn.Embedding(30, 8)
EMB_DIM = 8
SEQ = 69            # state length -> flat feature dim 8*69
D_IN = EMB_DIM * SEQ            # 552
H = 1024
V_OUT = 128         # output_rep.width()
N_TOWER = 9         # first linear (K padded to 1024) + 8x 1024->1024


# ----------------------------- Pallas kernels -----------------------------

def tower_pallas(x, w_stack, b_stack):
    """9 fused Linear+ReLU layers, all 1024->1024 (first layer zero-padded).

    x:       (Bp, H)  f32
    w_stack: (L, H, H) bf16
    b_stack: (L, 1, H) f32
    """
    Bp, K = x.shape
    L, _, Hn = w_stack.shape
    assert K == Hn

    def kernel(x_ref, w_ref, b_ref, o_ref):
        l = pl.program_id(0)

        @pl.when(l == 0)
        def _():
            o_ref[...] = x_ref[...]          # seed the carried activation

        h = o_ref[...]
        acc = jnp.dot(h.astype(jnp.bfloat16), w_ref[0],
                      preferred_element_type=jnp.float32)
        o_ref[...] = jnp.maximum(acc + b_ref[0], 0.0)

    return pl.pallas_call(
        kernel,
        out_shape=jax.ShapeDtypeStruct((Bp, Hn), jnp.float32),
        grid=(L,),
        in_specs=[pl.BlockSpec((Bp, K), lambda l: (0, 0)),
                  pl.BlockSpec((1, K, Hn), lambda l: (l, 0, 0)),
                  pl.BlockSpec((1, 1, Hn), lambda l: (l, 0, 0))],
        out_specs=pl.BlockSpec((Bp, Hn), lambda l: (0, 0)),
        compiler_params=pltpu.CompilerParams(
            dimension_semantics=("arbitrary",)),
    )(x, w_stack, b_stack)


def linear_pallas(x, w, b, relu=False, tn=512, tk=1024):
    """y = x @ w + b (optional fused ReLU), tiled over N (parallel) and K (reduction).

    x: (Bp, K) f32, w: (K, N) bf16, b: (N,) f32.  Output tiles are lane-dense.
    """
    Bp, K = x.shape
    N = w.shape[1]
    tn = min(tn, N)
    tk = min(tk, K)
    assert N % tn == 0 and K % tk == 0
    nN, nK = N // tn, K // tk
    b2 = b.reshape(1, N).astype(jnp.float32)

    def kernel(x_ref, w_ref, b_ref, o_ref, acc_ref):
        k = pl.program_id(1)

        @pl.when(k == 0)
        def _():
            acc_ref[...] = jnp.zeros_like(acc_ref)

        acc_ref[...] += jnp.dot(x_ref[...].astype(jnp.bfloat16), w_ref[...],
                                preferred_element_type=jnp.float32)

        @pl.when(k == nK - 1)
        def _():
            r = acc_ref[...] + b_ref[...]
            if relu:
                r = jnp.maximum(r, 0.0)
            o_ref[...] = r

    return pl.pallas_call(
        kernel,
        out_shape=jax.ShapeDtypeStruct((Bp, N), jnp.float32),
        grid=(nN, nK),
        in_specs=[pl.BlockSpec((Bp, tk), lambda j, k: (0, k)),
                  pl.BlockSpec((tk, tn), lambda j, k: (k, j)),
                  pl.BlockSpec((1, tn), lambda j, k: (0, j))],
        out_specs=pl.BlockSpec((Bp, tn), lambda j, k: (0, j)),
        scratch_shapes=[pltpu.VMEM((Bp, tn), jnp.float32)],
        compiler_params=pltpu.CompilerParams(
            dimension_semantics=("parallel", "arbitrary")),
    )(x, w, b2)


def head_pallas(p_pre, mask, v_pre, idx):
    """Fused: masked log-softmax over policy logits, gather(action), value slice.

    p_pre/mask/v_pre: (Bp, V) f32;  idx: (Bp, A) int32.
    Returns (gathered_logits (Bp, A), values (Bp, 1)).
    """
    Bp, V = p_pre.shape
    A = idx.shape[1]

    def kernel(p_ref, m_ref, v_ref, i_ref, g_ref, val_ref):
        x = p_ref[...]
        m = m_ref[...]
        z = x * m + (1.0 - m) * (-1e8)                       # matches -100000000.0
        zmax = jnp.max(z, axis=-1, keepdims=True)
        lse = jnp.log(jnp.sum(jnp.exp(z - zmax), axis=-1, keepdims=True)) + zmax
        logp = z - lse                                       # (Bp, V)

        ids = i_ref[...]                                     # (Bp, A) int32
        col = jax.lax.broadcasted_iota(jnp.int32, (Bp, V), 1)
        for a in range(A):                                   # A is tiny & static
            onehot = (col == ids[:, a:a + 1]).astype(jnp.float32)
            g_ref[:, a:a + 1] = jnp.sum(logp * onehot, axis=-1, keepdims=True)

        val_ref[...] = v_ref[:, 0:1]

    return pl.pallas_call(
        kernel,
        out_shape=(jax.ShapeDtypeStruct((Bp, A), jnp.float32),
                   jax.ShapeDtypeStruct((Bp, 1), jnp.float32)),
        grid=(1,),
        in_specs=[pl.BlockSpec((Bp, V), lambda i: (0, 0)),
                  pl.BlockSpec((Bp, V), lambda i: (0, 0)),
                  pl.BlockSpec((Bp, V), lambda i: (0, 0)),
                  pl.BlockSpec((Bp, A), lambda i: (0, 0))],
        out_specs=(pl.BlockSpec((Bp, A), lambda i: (0, 0)),
                   pl.BlockSpec((Bp, 1), lambda i: (0, 0))),
    )(p_pre, mask, v_pre, idx)


# ----------------------------- parameters -----------------------------

class ParamGen:
    def __init__(self, seed):
        self.key = jax.random.PRNGKey(seed)

    def _normal(self, shape, scale):
        self.key, sub = jax.random.split(self.key)
        return scale * jax.random.normal(sub, shape, dtype=jnp.float32)

    def w(self, fan_in, fan_out):
        # He init, stored in bf16 (MXU/HBM-friendly).
        return self._normal((fan_in, fan_out),
                            math.sqrt(2.0 / fan_in)).astype(jnp.bfloat16)

    def embed(self, vocab, dim):
        return self._normal((vocab, dim), 1.0)


def make_class_model_params(g):
    w0 = g.w(D_IN, H)                                  # (552, 1024)
    w0p = jnp.zeros((H, H), jnp.bfloat16).at[:D_IN, :].set(w0)
    mids = [g.w(H, H) for _ in range(8)]
    return dict(
        embed=g.embed(EMB_VOCAB, EMB_DIM),
        w_tower=jnp.stack([w0p] + mids, axis=0),       # (9, 1024, 1024) bf16
        b_tower=jnp.zeros((N_TOWER, 1, H), jnp.float32),
        w9=g.w(H, 2048), b9=jnp.zeros((2048,), jnp.float32),
        w10=g.w(2048, 4096), b10=jnp.zeros((4096,), jnp.float32),
        w11=g.w(4096, V_OUT), b11=jnp.zeros((V_OUT,), jnp.float32),
    )


def make_params(seed=0):
    g = ParamGen(seed)
    return dict(policy=make_class_model_params(g),
                V=make_class_model_params(g))


# ----------------------------- model (glue) -----------------------------

def embed_and_pad(embed_tbl, state, Bp):
    """Embedding gather + flatten + zero-pad rows to Bp and features to H."""
    B, S = state.shape
    x = embed_tbl[state].reshape(B, S * embed_tbl.shape[1])   # (B, 552), XLA gather
    xp = jnp.zeros((Bp, H), jnp.float32)
    return xp.at[:B, :x.shape[1]].set(x)


def class_model_forward(mp, x_pad):
    """ClassModel MLP: (Bp, 1024-padded input) -> (Bp, V_OUT) pre-logits."""
    h = tower_pallas(x_pad, mp['w_tower'], mp['b_tower'])     # 9x (1024->1024, ReLU)
    h = linear_pallas(h, mp['w9'], mp['b9'], relu=True)       # 1024 -> 2048
    h = linear_pallas(h, mp['w10'], mp['b10'], relu=True)     # 2048 -> 4096
    return linear_pallas(h, mp['w11'], mp['b11'], relu=False) # 4096 -> V_OUT


def acbase_forward(params, state, action, logit_mask):
    """ACBase.forward: returns (gathered log-probs (B, A), values (B, 1))."""
    B = state.shape[0]
    A = action.shape[1]
    Bp = max(8, ((B + 7) // 8) * 8)

    x_pol = embed_and_pad(params['policy']['embed'], state, Bp)
    x_val = embed_and_pad(params['V']['embed'], state, Bp)

    p_pre = class_model_forward(params['policy'], x_pol)      # (Bp, V_OUT)
    v_pre = class_model_forward(params['V'], x_val)           # (Bp, V_OUT)

    maskp = jnp.zeros((Bp, V_OUT), jnp.float32).at[:B].set(
        logit_mask.astype(jnp.float32))
    idxp = jnp.zeros((Bp, A), jnp.int32).at[:B].set(action.astype(jnp.int32))

    g, vals = head_pallas(p_pre, maskp, v_pre, idxp)
    return g[:B], vals[:B]


if __name__ == "__main__":
    B, A = 2, 4
    params = make_params(0)

    key = jax.random.PRNGKey(0)
    k1, k2, k3 = jax.random.split(key, 3)
    state = jax.random.randint(k1, (B, SEQ), 0, EMB_VOCAB, dtype=jnp.int32)
    action = jax.random.randint(k2, (B, A), 0, V_OUT, dtype=jnp.int32)
    bern = (jax.random.uniform(k3, (B, V_OUT)) < 0.5).astype(jnp.float32)
    onehot = jnp.max(jax.nn.one_hot(action, V_OUT, dtype=jnp.float32), axis=1)
    logit_mask = jnp.maximum(bern, onehot)      # selected actions stay unmasked

    fwd = jax.jit(acbase_forward)
    logits, values = fwd(params, state, action, logit_mask)
    jax.block_until_ready((logits, values))

    assert logits.shape == (B, A) and values.shape == (B, 1)
    assert bool(jnp.all(jnp.isfinite(logits))) and bool(jnp.all(jnp.isfinite(values)))
    print("KERNEL_OK")
</pallas_src>

<mosaic_0001>
module attributes {stable_mosaic.version = 11 : i64} {
  func.func @kernel(%arg0: i32, %arg1: memref<8x1024xf32, #tpu.memory_space<vmem>>, %arg2: memref<1x1024x1024xbf16, #tpu.memory_space<vmem>>, %arg3: memref<1x1x1024xf32, #tpu.memory_space<vmem>>, %arg4: memref<8x1024xf32, #tpu.memory_space<vmem>>) attributes {dimension_semantics = [#tpu.dimension_semantics<arbitrary>], iteration_bounds = array<i64: 9>, scalar_prefetch = 0 : i64, scratch_operands = 0 : i64, tpu.core_type = #tpu.core_type<tc>, window_params = [{pipeline_mode = #tpu.pipeline_mode<synchronous>, transform_indices = @transform_0, window_bounds = array<i64: 8, 1024>}, {transform_indices = @transform_1, window_bounds = array<i64: 1, 1024, 1024>}, {transform_indices = @transform_2, window_bounds = array<i64: 1, 1, 1024>}, {pipeline_mode = #tpu.pipeline_mode<synchronous>, transform_indices = @transform_3, window_bounds = array<i64: 8, 1024>}]} {
    %c0_i32 = arith.constant 0 : i32
    %0 = arith.cmpi eq, %arg0, %c0_i32 : i32
    %1 = arith.extui %0 : i1 to i32
    %c0_i32_0 = arith.constant 0 : i32
    %2 = arith.cmpi ne, %1, %c0_i32_0 : i32
    scf.if %2 {
      %c0_11 = arith.constant 0 : index
      %c0_12 = arith.constant 0 : index
      %15 = vector.load %arg1[%c0_11, %c0_12] : memref<8x1024xf32, #tpu.memory_space<vmem>>, vector<8x1024xf32>
      %c0_13 = arith.constant 0 : index
      %c0_14 = arith.constant 0 : index
      %16 = vector.load %arg4[%c0_13, %c0_14] : memref<8x1024xf32, #tpu.memory_space<vmem>>, vector<8x1024xf32>
      tpu.vector_store %arg4[%c0_13, %c0_14], %15 {strides = array<i32>} : memref<8x1024xf32, #tpu.memory_space<vmem>>, vector<8x1024xf32>,
    } else {
    }
    %c0 = arith.constant 0 : index
    %c0_1 = arith.constant 0 : index
    %3 = vector.load %arg4[%c0, %c0_1] : memref<8x1024xf32, #tpu.memory_space<vmem>>, vector<8x1024xf32>
    %4 = arith.truncf %3 : vector<8x1024xf32> to vector<8x1024xbf16>
    %c0_2 = arith.constant 0 : index
    %c0_3 = arith.constant 0 : index
    %c0_4 = arith.constant 0 : index
    %5 = vector.load %arg2[%c0_2, %c0_3, %c0_4] : memref<1x1024x1024xbf16, #tpu.memory_space<vmem>>, vector<1x1024x1024xbf16>
    %6 = vector.shape_cast %5 : vector<1x1024x1024xbf16> to vector<1024x1024xbf16>
    %cst = arith.constant dense<0.000000e+00> : vector<8x1024xf32>
    %7 = tpu.matmul %4, %6, %cst {dimension_numbers = #tpu.dot_dimension_numbers<[1], [0], [0], [1], [0, 0, 1, 1], [], []>} : vector<8x1024xbf16>, vector<1024x1024xbf16>, vector<8x1024xf32> -> vector<8x1024xf32>
    %c0_5 = arith.constant 0 : index
    %c0_6 = arith.constant 0 : index
    %c0_7 = arith.constant 0 : index
    %8 = vector.load %arg3[%c0_5, %c0_6, %c0_7] : memref<1x1x1024xf32, #tpu.memory_space<vmem>>, vector<1x1x1024xf32>
    %9 = vector.shape_cast %8 : vector<1x1x1024xf32> to vector<1x1024xf32>
    %10 = vector.broadcast %9 : vector<1x1024xf32> to vector<8x1024xf32>
    %11 = arith.addf %7, %10 : vector<8x1024xf32>
    %cst_8 = arith.constant 0.000000e+00 : f32
    %12 = vector.broadcast %cst_8 : f32 to vector<8x1024xf32>
    %13 = arith.maximumf %11, %12 : vector<8x1024xf32>
    %c0_9 = arith.constant 0 : index
    %c0_10 = arith.constant 0 : index
    %14 = vector.load %arg4[%c0_9, %c0_10] : memref<8x1024xf32, #tpu.memory_space<vmem>>, vector<8x1024xf32>
    tpu.vector_store %arg4[%c0_9, %c0_10], %13 {strides = array<i32>} : memref<8x1024xf32, #tpu.memory_space<vmem>>, vector<8x1024xf32>,
    return
  }
  func.func @transform_0(%arg0: i32) -> (i32, i32) {
    %c0_i32 = arith.constant 0 : i32
    %c0_i32_0 = arith.constant 0 : i32
    %c0_i32_1 = arith.constant 0 : i32
    return %c0_i32, %c0_i32_0 : i32, i32
  }
  func.func @transform_1(%arg0: i32) -> (i32, i32, i32) {
    %c0_i32 = arith.constant 0 : i32
    %c0_i32_0 = arith.constant 0 : i32
    %c0_i32_1 = arith.constant 0 : i32
    return %arg0, %c0_i32, %c0_i32_0 : i32, i32, i32
  }
  func.func @transform_2(%arg0: i32) -> (i32, i32, i32) {
    %c0_i32 = arith.constant 0 : i32
    %c0_i32_0 = arith.constant 0 : i32
    %c0_i32_1 = arith.constant 0 : i32
    return %arg0, %c0_i32, %c0_i32_0 : i32, i32, i32
  }
  func.func @transform_3(%arg0: i32) -> (i32, i32) {
    %c0_i32 = arith.constant 0 : i32
    %c0_i32_0 = arith.constant 0 : i32
    %c0_i32_1 = arith.constant 0 : i32
    return %c0_i32, %c0_i32_0 : i32, i32
  }
}

module attributes {stable_mosaic.version = 11 : i64} {
  func.func @kernel(%arg0: i32, %arg1: i32, %arg2: memref<8x1024xf32, #tpu.memory_space<vmem>>, %arg3: memref<1024x512xbf16, #tpu.memory_space<vmem>>, %arg4: memref<1x512xf32, #tpu.memory_space<vmem>>, %arg5: memref<8x512xf32, #tpu.memory_space<vmem>>, %arg6: memref<8x512xf32, #tpu.memory_space<vmem>>) attributes {dimension_semantics = [#tpu.dimension_semantics<parallel>, #tpu.dimension_semantics<arbitrary>], iteration_bounds = array<i64: 4, 1>, scalar_prefetch = 0 : i64, scratch_operands = 1 : i64, tpu.core_type = #tpu.core_type<tc>, window_params = [{transform_indices = @transform_0, window_bounds = array<i64: 8, 1024>}, {transform_indices = @transform_1, window_bounds = array<i64: 1024, 512>}, {transform_indices = @transform_2, window_bounds = array<i64: 1, 512>}, {transform_indices = @transform_3, window_bounds = array<i64: 8, 512>}]} {
    %c0_i32 = arith.constant 0 : i32
    %0 = arith.cmpi eq, %arg1, %c0_i32 : i32
    %1 = arith.extui %0 : i1 to i32
    %c0_i32_0 = arith.constant 0 : i32
    %2 = arith.cmpi ne, %1, %c0_i32_0 : i32
    scf.if %2 {
      %cst_10 = arith.constant 0.000000e+00 : f32
      %13 = vector.broadcast %cst_10 : f32 to vector<8x512xf32>
      %c0_11 = arith.constant 0 : index
      %c0_12 = arith.constant 0 : index
      %14 = vector.load %arg6[%c0_11, %c0_12] : memref<8x512xf32, #tpu.memory_space<vmem>>, vector<8x512xf32>
      tpu.vector_store %arg6[%c0_11, %c0_12], %13 {strides = array<i32>} : memref<8x512xf32, #tpu.memory_space<vmem>>, vector<8x512xf32>,
    } else {
    }
    %c0 = arith.constant 0 : index
    %c0_1 = arith.constant 0 : index
    %3 = vector.load %arg6[%c0, %c0_1] : memref<8x512xf32, #tpu.memory_space<vmem>>, vector<8x512xf32>
    %c0_2 = arith.constant 0 : index
    %c0_3 = arith.constant 0 : index
    %4 = vector.load %arg2[%c0_2, %c0_3] : memref<8x1024xf32, #tpu.memory_space<vmem>>, vector<8x1024xf32>
    %5 = arith.truncf %4 : vector<8x1024xf32> to vector<8x1024xbf16>
    %c0_4 = arith.constant 0 : index
    %c0_5 = arith.constant 0 : index
    %6 = vector.load %arg3[%c0_4, %c0_5] : memref<1024x512xbf16, #tpu.memory_space<vmem>>, vector<1024x512xbf16>
    %cst = arith.constant dense<0.000000e+00> : vector<8x512xf32>
    %7 = tpu.matmul %5, %6, %cst {dimension_numbers = #tpu.dot_dimension_numbers<[1], [0], [0], [1], [0, 0, 1, 1], [], []>} : vector<8x1024xbf16>, vector<1024x512xbf16>, vector<8x512xf32> -> vector<8x512xf32>
    %8 = arith.addf %3, %7 : vector<8x512xf32>
    %c0_6 = arith.constant 0 : index
    %c0_7 = arith.constant 0 : index
    %9 = vector.load %arg6[%c0_6, %c0_7] : memref<8x512xf32, #tpu.memory_space<vmem>>, vector<8x512xf32>
    tpu.vector_store %arg6[%c0_6, %c0_7], %8 {strides = array<i32>} : memref<8x512xf32, #tpu.memory_space<vmem>>, vector<8x512xf32>,
    %c0_i32_8 = arith.constant 0 : i32
    %10 = arith.cmpi eq, %arg1, %c0_i32_8 : i32
    %11 = arith.extui %10 : i1 to i32
    %c0_i32_9 = arith.constant 0 : i32
    %12 = arith.cmpi ne, %11, %c0_i32_9 : i32
    scf.if %12 {
      %c0_10 = arith.constant 0 : index
      %c0_11 = arith.constant 0 : index
      %13 = vector.load %arg6[%c0_10, %c0_11] : memref<8x512xf32, #tpu.memory_space<vmem>>, vector<8x512xf32>
      %c0_12 = arith.constant 0 : index
      %c0_13 = arith.constant 0 : index
      %14 = vector.load %arg4[%c0_12, %c0_13] : memref<1x512xf32, #tpu.memory_space<vmem>>, vector<1x512xf32>
      %15 = vector.broadcast %14 : vector<1x512xf32> to vector<8x512xf32>
      %16 = arith.addf %13, %15 : vector<8x512xf32>
      %cst_14 = arith.constant 0.000000e+00 : f32
      %17 = vector.broadcast %cst_14 : f32 to vector<8x512xf32>
      %18 = arith.maximumf %16, %17 : vector<8x512xf32>
      %c0_15 = arith.constant 0 : index
      %c0_16 = arith.constant 0 : index
      %19 = vector.load %arg5[%c0_15, %c0_16] : memref<8x512xf32, #tpu.memory_space<vmem>>, vector<8x512xf32>
      tpu.vector_store %arg5[%c0_15, %c0_16], %18 {strides = array<i32>} : memref<8x512xf32, #tpu.memory_space<vmem>>, vector<8x512xf32>,
    } else {
    }
    return
  }
  func.func @transform_0(%arg0: i32, %arg1: i32) -> (i32, i32) {
    %c0_i32 = arith.constant 0 : i32
    %c0_i32_0 = arith.constant 0 : i32
    return %c0_i32, %arg1 : i32, i32
  }
  func.func @transform_1(%arg0: i32, %arg1: i32) -> (i32, i32) {
    %c0_i32 = arith.constant 0 : i32
    return %arg1, %arg0 : i32, i32
  }
  func.func @transform_2(%arg0: i32, %arg1: i32) -> (i32, i32) {
    %c0_i32 = arith.constant 0 : i32
    %c0_i32_0 = arith.constant 0 : i32
    return %c0_i32, %arg0 : i32, i32
  }
  func.func @transform_3(%arg0: i32, %arg1: i32) -> (i32, i32) {
    %c0_i32 = arith.constant 0 : i32
    %c0_i32_0 = arith.constant 0 : i32
    return %c0_i32, %arg0 : i32, i32
  }
}

module attributes {stable_mosaic.version = 11 : i64} {
  func.func @kernel(%arg0: i32, %arg1: i32, %arg2: memref<8x1024xf32, #tpu.memory_space<vmem>>, %arg3: memref<1024x128xbf16, #tpu.memory_space<vmem>>, %arg4: memref<1x128xf32, #tpu.memory_space<vmem>>, %arg5: memref<8x128xf32, #tpu.memory_space<vmem>>, %arg6: memref<8x128xf32, #tpu.memory_space<vmem>>) attributes {dimension_semantics = [#tpu.dimension_semantics<parallel>, #tpu.dimension_semantics<arbitrary>], iteration_bounds = array<i64: 1, 4>, scalar_prefetch = 0 : i64, scratch_operands = 1 : i64, tpu.core_type = #tpu.core_type<tc>, window_params = [{transform_indices = @transform_0, window_bounds = array<i64: 8, 1024>}, {transform_indices = @transform_1, window_bounds = array<i64: 1024, 128>}, {transform_indices = @transform_2, window_bounds = array<i64: 1, 128>}, {transform_indices = @transform_3, window_bounds = array<i64: 8, 128>}]} {
    %c0_i32 = arith.constant 0 : i32
    %0 = arith.cmpi eq, %arg1, %c0_i32 : i32
    %1 = arith.extui %0 : i1 to i32
    %c0_i32_0 = arith.constant 0 : i32
    %2 = arith.cmpi ne, %1, %c0_i32_0 : i32
    scf.if %2 {
      %cst_9 = arith.constant 0.000000e+00 : f32
      %13 = vector.broadcast %cst_9 : f32 to vector<8x128xf32>
      %c0_10 = arith.constant 0 : index
      %c0_11 = arith.constant 0 : index
      %14 = vector.load %arg6[%c0_10, %c0_11] : memref<8x128xf32, #tpu.memory_space<vmem>>, vector<8x128xf32>
      tpu.vector_store %arg6[%c0_10, %c0_11], %13 {strides = array<i32>} : memref<8x128xf32, #tpu.memory_space<vmem>>, vector<8x128xf32>,
    } else {
    }
    %c0 = arith.constant 0 : index
    %c0_1 = arith.constant 0 : index
    %3 = vector.load %arg6[%c0, %c0_1] : memref<8x128xf32, #tpu.memory_space<vmem>>, vector<8x128xf32>
    %c0_2 = arith.constant 0 : index
    %c0_3 = arith.constant 0 : index
    %4 = vector.load %arg2[%c0_2, %c0_3] : memref<8x1024xf32, #tpu.memory_space<vmem>>, vector<8x1024xf32>
    %5 = arith.truncf %4 : vector<8x1024xf32> to vector<8x1024xbf16>
    %c0_4 = arith.constant 0 : index
    %c0_5 = arith.constant 0 : index
    %6 = vector.load %arg3[%c0_4, %c0_5] : memref<1024x128xbf16, #tpu.memory_space<vmem>>, vector<1024x128xbf16>
    %cst = arith.constant dense<0.000000e+00> : vector<8x128xf32>
    %7 = tpu.matmul %5, %6, %cst {dimension_numbers = #tpu.dot_dimension_numbers<[1], [0], [0], [1], [0, 0, 1, 1], [], []>} : vector<8x1024xbf16>, vector<1024x128xbf16>, vector<8x128xf32> -> vector<8x128xf32>
    %8 = arith.addf %3, %7 : vector<8x128xf32>
    %c0_6 = arith.constant 0 : index
    %c0_7 = arith.constant 0 : index
    %9 = vector.load %arg6[%c0_6, %c0_7] : memref<8x128xf32, #tpu.memory_space<vmem>>, vector<8x128xf32>
    tpu.vector_store %arg6[%c0_6, %c0_7], %8 {strides = array<i32>} : memref<8x128xf32, #tpu.memory_space<vmem>>, vector<8x128xf32>,
    %c3_i32 = arith.constant 3 : i32
    %10 = arith.cmpi eq, %arg1, %c3_i32 : i32
    %11 = arith.extui %10 : i1 to i32
    %c0_i32_8 = arith.constant 0 : i32
    %12 = arith.cmpi ne, %11, %c0_i32_8 : i32
    scf.if %12 {
      %c0_9 = arith.constant 0 : index
      %c0_10 = arith.constant 0 : index
      %13 = vector.load %arg6[%c0_9, %c0_10] : memref<8x128xf32, #tpu.memory_space<vmem>>, vector<8x128xf32>
      %c0_11 = arith.constant 0 : index
      %c0_12 = arith.constant 0 : index
      %14 = vector.load %arg4[%c0_11, %c0_12] : memref<1x128xf32, #tpu.memory_space<vmem>>, vector<1x128xf32>
      %15 = vector.broadcast %14 : vector<1x128xf32> to vector<8x128xf32>
      %16 = arith.addf %13, %15 : vector<8x128xf32>
      %c0_13 = arith.constant 0 : index
      %c0_14 = arith.constant 0 : index
      %17 = vector.load %arg5[%c0_13, %c0_14] : memref<8x128xf32, #tpu.memory_space<vmem>>, vector<8x128xf32>
      tpu.vector_store %arg5[%c0_13, %c0_14], %16 {strides = array<i32>} : memref<8x128xf32, #tpu.memory_space<vmem>>, vector<8x128xf32>,
    } else {
    }
    return
  }
  func.func @transform_0(%arg0: i32, %arg1: i32) -> (i32, i32) {
    %c0_i32 = arith.constant 0 : i32
    %c0_i32_0 = arith.constant 0 : i32
    return %c0_i32, %arg1 : i32, i32
  }
  func.func @transform_1(%arg0: i32, %arg1: i32) -> (i32, i32) {
    %c0_i32 = arith.constant 0 : i32
    return %arg1, %arg0 : i32, i32
  }
  func.func @transform_2(%arg0: i32, %arg1: i32) -> (i32, i32) {
    %c0_i32 = arith.constant 0 : i32
    %c0_i32_0 = arith.constant 0 : i32
    return %c0_i32, %arg0 : i32, i32
  }
  func.func @transform_3(%arg0: i32, %arg1: i32) -> (i32, i32) {
    %c0_i32 = arith.constant 0 : i32
    %c0_i32_0 = arith.constant 0 : i32
    return %c0_i32, %arg0 : i32, i32
  }
}

module attributes {stable_mosaic.version = 11 : i64} {
  func.func @kernel(%arg0: i32, %arg1: i32, %arg2: memref<8x1024xf32, #tpu.memory_space<vmem>>, %arg3: memref<1024x512xbf16, #tpu.memory_space<vmem>>, %arg4: memref<1x512xf32, #tpu.memory_space<vmem>>, %arg5: memref<8x512xf32, #tpu.memory_space<vmem>>, %arg6: memref<8x512xf32, #tpu.memory_space<vmem>>) attributes {dimension_semantics = [#tpu.dimension_semantics<parallel>, #tpu.dimension_semantics<arbitrary>], iteration_bounds = array<i64: 8, 2>, scalar_prefetch = 0 : i64, scratch_operands = 1 : i64, tpu.core_type = #tpu.core_type<tc>, window_params = [{transform_indices = @transform_0, window_bounds = array<i64: 8, 1024>}, {transform_indices = @transform_1, window_bounds = array<i64: 1024, 512>}, {transform_indices = @transform_2, window_bounds = array<i64: 1, 512>}, {transform_indices = @transform_3, window_bounds = array<i64: 8, 512>}]} {
    %c0_i32 = arith.constant 0 : i32
    %0 = arith.cmpi eq, %arg1, %c0_i32 : i32
    %1 = arith.extui %0 : i1 to i32
    %c0_i32_0 = arith.constant 0 : i32
    %2 = arith.cmpi ne, %1, %c0_i32_0 : i32
    scf.if %2 {
      %cst_9 = arith.constant 0.000000e+00 : f32
      %13 = vector.broadcast %cst_9 : f32 to vector<8x512xf32>
      %c0_10 = arith.constant 0 : index
      %c0_11 = arith.constant 0 : index
      %14 = vector.load %arg6[%c0_10, %c0_11] : memref<8x512xf32, #tpu.memory_space<vmem>>, vector<8x512xf32>
      tpu.vector_store %arg6[%c0_10, %c0_11], %13 {strides = array<i32>} : memref<8x512xf32, #tpu.memory_space<vmem>>, vector<8x512xf32>,
    } else {
    }
    %c0 = arith.constant 0 : index
    %c0_1 = arith.constant 0 : index
    %3 = vector.load %arg6[%c0, %c0_1] : memref<8x512xf32, #tpu.memory_space<vmem>>, vector<8x512xf32>
    %c0_2 = arith.constant 0 : index
    %c0_3 = arith.constant 0 : index
    %4 = vector.load %arg2[%c0_2, %c0_3] : memref<8x1024xf32, #tpu.memory_space<vmem>>, vector<8x1024xf32>
    %5 = arith.truncf %4 : vector<8x1024xf32> to vector<8x1024xbf16>
    %c0_4 = arith.constant 0 : index
    %c0_5 = arith.constant 0 : index
    %6 = vector.load %arg3[%c0_4, %c0_5] : memref<1024x512xbf16, #tpu.memory_space<vmem>>, vector<1024x512xbf16>
    %cst = arith.constant dense<0.000000e+00> : vector<8x512xf32>
    %7 = tpu.matmul %5, %6, %cst {dimension_numbers = #tpu.dot_dimension_numbers<[1], [0], [0], [1], [0, 0, 1, 1], [], []>} : vector<8x1024xbf16>, vector<1024x512xbf16>, vector<8x512xf32> -> vector<8x512xf32>
    %8 = arith.addf %3, %7 : vector<8x512xf32>
    %c0_6 = arith.constant 0 : index
    %c0_7 = arith.constant 0 : index
    %9 = vector.load %arg6[%c0_6, %c0_7] : memref<8x512xf32, #tpu.memory_space<vmem>>, vector<8x512xf32>
    tpu.vector_store %arg6[%c0_6, %c0_7], %8 {strides = array<i32>} : memref<8x512xf32, #tpu.memory_space<vmem>>, vector<8x512xf32>,
    %c1_i32 = arith.constant 1 : i32
    %10 = arith.cmpi eq, %arg1, %c1_i32 : i32
    %11 = arith.extui %10 : i1 to i32
    %c0_i32_8 = arith.constant 0 : i32
    %12 = arith.cmpi ne, %11, %c0_i32_8 : i32
    scf.if %12 {
      %c0_9 = arith.constant 0 : index
      %c0_10 = arith.constant 0 : index
      %13 = vector.load %arg6[%c0_9, %c0_10] : memref<8x512xf32, #tpu.memory_space<vmem>>, vector<8x512xf32>
      %c0_11 = arith.constant 0 : index
      %c0_12 = arith.constant 0 : index
      %14 = vector.load %arg4[%c0_11, %c0_12] : memref<1x512xf32, #tpu.memory_space<vmem>>, vector<1x512xf32>
      %15 = vector.broadcast %14 : vector<1x512xf32> to vector<8x512xf32>
      %16 = arith.addf %13, %15 : vector<8x512xf32>
      %cst_13 = arith.constant 0.000000e+00 : f32
      %17 = vector.broadcast %cst_13 : f32 to vector<8x512xf32>
      %18 = arith.maximumf %16, %17 : vector<8x512xf32>
      %c0_14 = arith.constant 0 : index
      %c0_15 = arith.constant 0 : index
      %19 = vector.load %arg5[%c0_14, %c0_15] : memref<8x512xf32, #tpu.memory_space<vmem>>, vector<8x512xf32>
      tpu.vector_store %arg5[%c0_14, %c0_15], %18 {strides = array<i32>} : memref<8x512xf32, #tpu.memory_space<vmem>>, vector<8x512xf32>,
    } else {
    }
    return
  }
  func.func @transform_0(%arg0: i32, %arg1: i32) -> (i32, i32) {
    %c0_i32 = arith.constant 0 : i32
    %c0_i32_0 = arith.constant 0 : i32
    return %c0_i32, %arg1 : i32, i32
  }
  func.func @transform_1(%arg0: i32, %arg1: i32) -> (i32, i32) {
    %c0_i32 = arith.constant 0 : i32
    return %arg1, %arg0 : i32, i32
  }
  func.func @transform_2(%arg0: i32, %arg1: i32) -> (i32, i32) {
    %c0_i32 = arith.constant 0 : i32
    %c0_i32_0 = arith.constant 0 : i32
    return %c0_i32, %arg0 : i32, i32
  }
  func.func @transform_3(%arg0: i32, %arg1: i32) -> (i32, i32) {
    %c0_i32 = arith.constant 0 : i32
    %c0_i32_0 = arith.constant 0 : i32
    return %c0_i32, %arg0 : i32, i32
  }
}

module attributes {stable_mosaic.version = 11 : i64} {
  func.func @kernel(%arg0: i32, %arg1: memref<8x1024xf32, #tpu.memory_space<vmem>>, %arg2: memref<1x1024x1024xbf16, #tpu.memory_space<vmem>>, %arg3: memref<1x1x1024xf32, #tpu.memory_space<vmem>>, %arg4: memref<8x1024xf32, #tpu.memory_space<vmem>>) attributes {dimension_semantics = [#tpu.dimension_semantics<arbitrary>], iteration_bounds = array<i64: 9>, scalar_prefetch = 0 : i64, scratch_operands = 0 : i64, tpu.core_type = #tpu.core_type<tc>, window_params = [{pipeline_mode = #tpu.pipeline_mode<synchronous>, transform_indices = @transform_0, window_bounds = array<i64: 8, 1024>}, {transform_indices = @transform_1, window_bounds = array<i64: 1, 1024, 1024>}, {transform_indices = @transform_2, window_bounds = array<i64: 1, 1, 1024>}, {pipeline_mode = #tpu.pipeline_mode<synchronous>, transform_indices = @transform_3, window_bounds = array<i64: 8, 1024>}]} {
    %c0_i32 = arith.constant 0 : i32
    %0 = arith.cmpi eq, %arg0, %c0_i32 : i32
    %1 = arith.extui %0 : i1 to i32
    %c0_i32_0 = arith.constant 0 : i32
    %2 = arith.cmpi ne, %1, %c0_i32_0 : i32
    scf.if %2 {
      %c0_11 = arith.constant 0 : index
      %c0_12 = arith.constant 0 : index
      %15 = vector.load %arg1[%c0_11, %c0_12] : memref<8x1024xf32, #tpu.memory_space<vmem>>, vector<8x1024xf32>
      %c0_13 = arith.constant 0 : index
      %c0_14 = arith.constant 0 : index
      %16 = vector.load %arg4[%c0_13, %c0_14] : memref<8x1024xf32, #tpu.memory_space<vmem>>, vector<8x1024xf32>
      tpu.vector_store %arg4[%c0_13, %c0_14], %15 {strides = array<i32>} : memref<8x1024xf32, #tpu.memory_space<vmem>>, vector<8x1024xf32>,
    } else {
    }
    %c0 = arith.constant 0 : index
    %c0_1 = arith.constant 0 : index
    %3 = vector.load %arg4[%c0, %c0_1] : memref<8x1024xf32, #tpu.memory_space<vmem>>, vector<8x1024xf32>
    %4 = arith.truncf %3 : vector<8x1024xf32> to vector<8x1024xbf16>
    %c0_2 = arith.constant 0 : index
    %c0_3 = arith.constant 0 : index
    %c0_4 = arith.constant 0 : index
    %5 = vector.load %arg2[%c0_2, %c0_3, %c0_4] : memref<1x1024x1024xbf16, #tpu.memory_space<vmem>>, vector<1x1024x1024xbf16>
    %6 = vector.shape_cast %5 : vector<1x1024x1024xbf16> to vector<1024x1024xbf16>
    %cst = arith.constant dense<0.000000e+00> : vector<8x1024xf32>
    %7 = tpu.matmul %4, %6, %cst {dimension_numbers = #tpu.dot_dimension_numbers<[1], [0], [0], [1], [0, 0, 1, 1], [], []>} : vector<8x1024xbf16>, vector<1024x1024xbf16>, vector<8x1024xf32> -> vector<8x1024xf32>
    %c0_5 = arith.constant 0 : index
    %c0_6 = arith.constant 0 : index
    %c0_7 = arith.constant 0 : index
    %8 = vector.load %arg3[%c0_5, %c0_6, %c0_7] : memref<1x1x1024xf32, #tpu.memory_space<vmem>>, vector<1x1x1024xf32>
    %9 = vector.shape_cast %8 : vector<1x1x1024xf32> to vector<1x1024xf32>
    %10 = vector.broadcast %9 : vector<1x1024xf32> to vector<8x1024xf32>
    %11 = arith.addf %7, %10 : vector<8x1024xf32>
    %cst_8 = arith.constant 0.000000e+00 : f32
    %12 = vector.broadcast %cst_8 : f32 to vector<8x1024xf32>
    %13 = arith.maximumf %11, %12 : vector<8x1024xf32>
    %c0_9 = arith.constant 0 : index
    %c0_10 = arith.constant 0 : index
    %14 = vector.load %arg4[%c0_9, %c0_10] : memref<8x1024xf32, #tpu.memory_space<vmem>>, vector<8x1024xf32>
    tpu.vector_store %arg4[%c0_9, %c0_10], %13 {strides = array<i32>} : memref<8x1024xf32, #tpu.memory_space<vmem>>, vector<8x1024xf32>,
    return
  }
  func.func @transform_0(%arg0: i32) -> (i32, i32) {
    %c0_i32 = arith.constant 0 : i32
    %c0_i32_0 = arith.constant 0 : i32
    %c0_i32_1 = arith.constant 0 : i32
    return %c0_i32, %c0_i32_0 : i32, i32
  }
  func.func @transform_1(%arg0: i32) -> (i32, i32, i32) {
    %c0_i32 = arith.constant 0 : i32
    %c0_i32_0 = arith.constant 0 : i32
    %c0_i32_1 = arith.constant 0 : i32
    return %arg0, %c0_i32, %c0_i32_0 : i32, i32, i32
  }
  func.func @transform_2(%arg0: i32) -> (i32, i32, i32) {
    %c0_i32 = arith.constant 0 : i32
    %c0_i32_0 = arith.constant 0 : i32
    %c0_i32_1 = arith.constant 0 : i32
    return %arg0, %c0_i32, %c0_i32_0 : i32, i32, i32
  }
  func.func @transform_3(%arg0: i32) -> (i32, i32) {
    %c0_i32 = arith.constant 0 : i32
    %c0_i32_0 = arith.constant 0 : i32
    %c0_i32_1 = arith.constant 0 : i32
    return %c0_i32, %c0_i32_0 : i32, i32
  }
}

module attributes {stable_mosaic.version = 11 : i64} {
  func.func @kernel(%arg0: i32, %arg1: memref<8x128xf32, #tpu.memory_space<vmem>>, %arg2: memref<8x128xf32, #tpu.memory_space<vmem>>, %arg3: memref<8x128xf32, #tpu.memory_space<vmem>>, %arg4: memref<8x4xi32, #tpu.memory_space<vmem>>, %arg5: memref<8x4xf32, #tpu.memory_space<vmem>>, %arg6: memref<8x1xf32, #tpu.memory_space<vmem>>) attributes {dimension_semantics = [#tpu.dimension_semantics<arbitrary>], iteration_bounds = array<i64: 1>, scalar_prefetch = 0 : i64, scratch_operands = 0 : i64, tpu.core_type = #tpu.core_type<tc>, window_params = [{pipeline_mode = #tpu.pipeline_mode<synchronous>, transform_indices = @transform_0, window_bounds = array<i64: 8, 128>}, {pipeline_mode = #tpu.pipeline_mode<synchronous>, transform_indices = @transform_1, window_bounds = array<i64: 8, 128>}, {pipeline_mode = #tpu.pipeline_mode<synchronous>, transform_indices = @transform_2, window_bounds = array<i64: 8, 128>}, {pipeline_mode = #tpu.pipeline_mode<synchronous>, transform_indices = @transform_3, window_bounds = array<i64: 8, 4>}, {pipeline_mode = #tpu.pipeline_mode<synchronous>, transform_indices = @transform_4, window_bounds = array<i64: 8, 4>}, {pipeline_mode = #tpu.pipeline_mode<synchronous>, transform_indices = @transform_5, window_bounds = array<i64: 8, 1>}]} {
    %c0 = arith.constant 0 : index
    %c0_0 = arith.constant 0 : index
    %0 = vector.load %arg1[%c0, %c0_0] : memref<8x128xf32, #tpu.memory_space<vmem>>, vector<8x128xf32>
    %c0_1 = arith.constant 0 : index
    %c0_2 = arith.constant 0 : index
    %1 = vector.load %arg2[%c0_1, %c0_2] : memref<8x128xf32, #tpu.memory_space<vmem>>, vector<8x128xf32>
    %2 = arith.mulf %0, %1 : vector<8x128xf32>
    %cst = arith.constant 1.000000e+00 : f32
    %3 = vector.broadcast %cst : f32 to vector<8x128xf32>
    %4 = arith.subf %3, %1 : vector<8x128xf32>
    %cst_3 = arith.constant -1.000000e+08 : f32
    %5 = vector.broadcast %cst_3 : f32 to vector<8x128xf32>
    %6 = arith.mulf %4, %5 : vector<8x128xf32>
    %7 = arith.addf %2, %6 : vector<8x128xf32>
    %cst_4 = arith.constant dense<0xFF800000> : vector<8xf32>
    %8 = vector.multi_reduction <maximumf>, %7, %cst_4 [1] : vector<8x128xf32> to vector<8xf32>
    %9 = vector.shape_cast %8 : vector<8xf32> to vector<8x1xf32>
    %10 = vector.broadcast %9 : vector<8x1xf32> to vector<8x128xf32>
    %11 = arith.subf %7, %10 : vector<8x128xf32>
    %12 = math.exp %11 : vector<8x128xf32>
    %cst_5 = arith.constant dense<0.000000e+00> : vector<8xf32>
    %13 = vector.multi_reduction <add>, %12, %cst_5 [1] : vector<8x128xf32> to vector<8xf32>
    %14 = vector.shape_cast %13 : vector<8xf32> to vector<8x1xf32>
    %15 = math.log %14 : vector<8x1xf32>
    %16 = arith.addf %15, %9 : vector<8x1xf32>
    %17 = vector.broadcast %16 : vector<8x1xf32> to vector<8x128xf32>
    %18 = arith.subf %7, %17 : vector<8x128xf32>
    %c0_6 = arith.constant 0 : index
    %c0_7 = arith.constant 0 : index
    %19 = vector.load %arg4[%c0_6, %c0_7] : memref<8x4xi32, #tpu.memory_space<vmem>>, vector<8x4xi32>
    %20 = tpu.iota {dimensions = array<i32: 1>} : vector<8x128xi32>
    %21 = vector.extract_strided_slice %19 {offsets = [0, 0], sizes = [8, 1], strides = [1, 1]} : vector<8x4xi32> to vector<8x1xi32>
    %22 = vector.broadcast %21 : vector<8x1xi32> to vector<8x128xi32>
    %23 = arith.cmpi eq, %20, %22 : vector<8x128xi32>
    %24 = arith.extui %23 : vector<8x128xi1> to vector<8x128xi32>
    %25 = arith.sitofp %24 : vector<8x128xi32> to vector<8x128xf32>
    %26 = arith.mulf %18, %25 : vector<8x128xf32>
    %cst_8 = arith.constant dense<0.000000e+00> : vector<8xf32>
    %27 = vector.multi_reduction <add>, %26, %cst_8 [1] : vector<8x128xf32> to vector<8xf32>
    %28 = vector.shape_cast %27 : vector<8xf32> to vector<8x1xf32>
    %c0_9 = arith.constant 0 : index
    %c0_10 = arith.constant 0 : index
    %29 = vector.load %arg5[%c0_9, %c0_10] : memref<8x4xf32, #tpu.memory_space<vmem>>, vector<8x1xf32>
    tpu.vector_store %arg5[%c0_9, %c0_10], %28 {strides = array<i32>} : memref<8x4xf32, #tpu.memory_space<vmem>>, vector<8x1xf32>,
    %30 = vector.extract_strided_slice %19 {offsets = [0, 1], sizes = [8, 1], strides = [1, 1]} : vector<8x4xi32> to vector<8x1xi32>
    %31 = vector.broadcast %30 : vector<8x1xi32> to vector<8x128xi32>
    %32 = arith.cmpi eq, %20, %31 : vector<8x128xi32>
    %33 = arith.extui %32 : vector<8x128xi1> to vector<8x128xi32>
    %34 = arith.sitofp %33 : vector<8x128xi32> to vector<8x128xf32>
    %35 = arith.mulf %18, %34 : vector<8x128xf32>
    %cst_11 = arith.constant dense<0.000000e+00> : vector<8xf32>
    %36 = vector.multi_reduction <add>, %35, %cst_11 [1] : vector<8x128xf32> to vector<8xf32>
    %37 = vector.shape_cast %36 : vector<8xf32> to vector<8x1xf32>
    %c0_12 = arith.constant 0 : index
    %c1 = arith.constant 1 : index
    %38 = vector.load %arg5[%c0_12, %c1] : memref<8x4xf32, #tpu.memory_space<vmem>>, vector<8x1xf32>
    tpu.vector_store %arg5[%c0_12, %c1], %37 {strides = array<i32>} : memref<8x4xf32, #tpu.memory_space<vmem>>, vector<8x1xf32>,
    %39 = vector.extract_strided_slice %19 {offsets = [0, 2], sizes = [8, 1], strides = [1, 1]} : vector<8x4xi32> to vector<8x1xi32>
    %40 = vector.broadcast %39 : vector<8x1xi32> to vector<8x128xi32>
    %41 = arith.cmpi eq, %20, %40 : vector<8x128xi32>
    %42 = arith.extui %41 : vector<8x128xi1> to vector<8x128xi32>
    %43 = arith.sitofp %42 : vector<8x128xi32> to vector<8x128xf32>
    %44 = arith.mulf %18, %43 : vector<8x128xf32>
    %cst_13 = arith.constant dense<0.000000e+00> : vector<8xf32>
    %45 = vector.multi_reduction <add>, %44, %cst_13 [1] : vector<8x128xf32> to vector<8xf32>
    %46 = vector.shape_cast %45 : vector<8xf32> to vector<8x1xf32>
    %c0_14 = arith.constant 0 : index
    %c2 = arith.constant 2 : index
    %47 = vector.load %arg5[%c0_14, %c2] : memref<8x4xf32, #tpu.memory_space<vmem>>, vector<8x1xf32>
    tpu.vector_store %arg5[%c0_14, %c2], %46 {strides = array<i32>} : memref<8x4xf32, #tpu.memory_space<vmem>>, vector<8x1xf32>,
    %48 = vector.extract_strided_slice %19 {offsets = [0, 3], sizes = [8, 1], strides = [1, 1]} : vector<8x4xi32> to vector<8x1xi32>
    %49 = vector.broadcast %48 : vector<8x1xi32> to vector<8x128xi32>
    %50 = arith.cmpi eq, %20, %49 : vector<8x128xi32>
    %51 = arith.extui %50 : vector<8x128xi1> to vector<8x128xi32>
    %52 = arith.sitofp %51 : vector<8x128xi32> to vector<8x128xf32>
    %53 = arith.mulf %18, %52 : vector<8x128xf32>
    %cst_15 = arith.constant dense<0.000000e+00> : vector<8xf32>
    %54 = vector.multi_reduction <add>, %53, %cst_15 [1] : vector<8x128xf32> to vector<8xf32>
    %55 = vector.shape_cast %54 : vector<8xf32> to vector<8x1xf32>
    %c0_16 = arith.constant 0 : index
    %c3 = arith.constant 3 : index
    %56 = vector.load %arg5[%c0_16, %c3] : memref<8x4xf32, #tpu.memory_space<vmem>>, vector<8x1xf32>
    tpu.vector_store %arg5[%c0_16, %c3], %55 {strides = array<i32>} : memref<8x4xf32, #tpu.memory_space<vmem>>, vector<8x1xf32>,
    %c0_17 = arith.constant 0 : index
    %c0_18 = arith.constant 0 : index
    %57 = vector.load %arg3[%c0_17, %c0_18] : memref<8x128xf32, #tpu.memory_space<vmem>>, vector<8x1xf32>
    %c0_19 = arith.constant 0 : index
    %c0_20 = arith.constant 0 : index
    %58 = vector.load %arg6[%c0_19, %c0_20] : memref<8x1xf32, #tpu.memory_space<vmem>>, vector<8x1xf32>
    tpu.vector_store %arg6[%c0_19, %c0_20], %57 {strides = array<i32>} : memref<8x1xf32, #tpu.memory_space<vmem>>, vector<8x1xf32>,
    return
  }
  func.func @transform_0(%arg0: i32) -> (i32, i32) {
    %c0_i32 = arith.constant 0 : i32
    %c0_i32_0 = arith.constant 0 : i32
    %c0_i32_1 = arith.constant 0 : i32
    return %c0_i32, %c0_i32_0 : i32, i32
  }
  func.func @transform_1(%arg0: i32) -> (i32, i32) {
    %c0_i32 = arith.constant 0 : i32
    %c0_i32_0 = arith.constant 0 : i32
    %c0_i32_1 = arith.constant 0 : i32
    return %c0_i32, %c0_i32_0 : i32, i32
  }
  func.func @transform_2(%arg0: i32) -> (i32, i32) {
    %c0_i32 = arith.constant 0 : i32
    %c0_i32_0 = arith.constant 0 : i32
    %c0_i32_1 = arith.constant 0 : i32
    return %c0_i32, %c0_i32_0 : i32, i32
  }
  func.func @transform_3(%arg0: i32) -> (i32, i32) {
    %c0_i32 = arith.constant 0 : i32
    %c0_i32_0 = arith.constant 0 : i32
    %c0_i32_1 = arith.constant 0 : i32
    return %c0_i32, %c0_i32_0 : i32, i32
  }
  func.func @transform_4(%arg0: i32) -> (i32, i32) {
    %c0_i32 = arith.constant 0 : i32
    %c0_i32_0 = arith.constant 0 : i32
    %c0_i32_1 = arith.constant 0 : i32
    return %c0_i32, %c0_i32_0 : i32, i32
  }
  func.func @transform_5(%arg0: i32) -> (i32, i32) {
    %c0_i32 = arith.constant 0 : i32
    %c0_i32_0 = arith.constant 0 : i32
    %c0_i32_1 = arith.constant 0 : i32
    return %c0_i32, %c0_i32_0 : i32, i32
  }
}

</mosaic_0001>

<bundles_post_ra>
// kernel: acbase_forward.12
= control target key start
LH: loop header
LB: loop body
LE: loop exit
PB: predicated region body
PF: predicated region fallthrough
CT: control target
= control target key end

     0   :  { %s1328_s12 = smov 0   ;;  %s1330_s13 = smov 0   ;;  %s1449_s0 = inlined_call_operand.vmem [shape: f32[8,4096], index: 0, kind: input, shape index: {}]   ;;  %s1450_s1 = inlined_call_operand.vmem [shape: bf16[4096,128], index: 1, kind: input, shape index: {}]   ;;  %s1451_s2 = inlined_call_operand.vmem [shape: f32[1,128], index: 2, kind: input, shape index: {}]   ;;  %s1452_s3 = inlined_call_operand.vmem [shape: f32[8,128], index: 3, kind: output, shape index: {}]  }
   0x1   :  { %s1332_s14 = smov 0  }
   0x2 LB: > { %s22_s15 = sadd.s32 1, %s1301_s13  ;;  %p1031_p0 = scmp.ge.s32.totalorder %s1305_s14, 1  ;;  %s1305_s14 = sphi %s1332_s14, %s13_s14   ;;  %s1301_s13 = sphi %s1330_s13, %s1454_s13   ;;  %s1297_s12 = sphi %s1328_s12, %s1453_s12  }
   0x3   : > { %p23_p1 = scmp.ge.s32.totalorder %s22_s15, 4  ;;  %p174_p2 = scmp.lt.s32.totalorder %s1305_s14, 5 }
   0x5   : > { %s1456_s15 = smov (%p23_p1, %s22_s15), 0  ;;  %p175_p3 = pnand %p1031_p0, %p174_p2 }
   0x6   : > { %s1032_s16 = sshll.u32 (!%p175_p3), %s1297_s12, 3  ;;  %s1034_s17 = sshll.u32 (!%p175_p3), %s1297_s12, 7 }
   0x7   : > { %178 = sbr.rel (%p175_p3) target bundleno = 322 (0x142), region = 32  ;;  %p209_p4 = scmp.lt.s32.totalorder (!%p175_p3), %s1032_s16, 31 }
   0x8   : > { %p215_p5 = scmp.lt.s32.totalorder (!%p175_p3), %s1034_s17, 511  ;;  %p1036_p6 = scmp.ne.s32.totalorder (!%p175_p3), %s1297_s12, 0 }
   0xe   : > { %s1458_s16 = smov (!%p209_p4, %s1032_s16), 31  ;;  %s1460_s17 = smov (!%p215_p5, %s1034_s17), 511 }
   0xf   : > { %s1033_s18 = sshll.u32 %s1458_s16, 3  ;;  %s1035_s22 = sshll.u32 %s1460_s17, 2  ;;  %v1307_v0 = vmov (!%p1036_p6), 0.0  }
  0x10   : > { %s1353_s21 = scalar_lea.vmem %s1449_s0, %s1033_s18  ;;  %s1358_s25 = scalar_lea.vmem %s1450_s1, %s1035_s22  ;;  %235 = vst [vmem:[#allocation2] sm:$0xff] (!%p1036_p6), %v1307_v0 }
  0x11   : > { %234 = sbr.rel (%p1036_p6) target bundleno = 24 (0x18), region = 36 }
  0x18 PF: > { %v1219_v1 = vld [vmem:[%s1358_s25 + $0x40] sm:$0xff]   ;;  %v1223_v5 = vld [vmem:[%s1358_s25 + $0x48] sm:$0xff]   ;;  %v1227_v9 = vld [vmem:[%s1358_s25 + $0x50] sm:$0xff]   ;;  %p1101_p7 = scmp.ne.s32.totalorder %s1297_s12, 3 }
  0x19   : > { %v1220_v2 = vld [vmem:[%s1358_s25 + $0xc0] sm:$0xff]   ;;  %1106 = vmatprep.subr.bf16.mxu0 %v1219_v1  ;;  %v1224_v6 = vld [vmem:[%s1358_s25 + $0xc8] sm:$0xff]   ;;  %v1228_v10 = vld [vmem:[%s1358_s25 + $0xd0] sm:$0xff]  }
  0x1a   : > { %v1221_v3 = vld [vmem:[%s1358_s25] sm:$0xff]   ;;  %1128 = vmatprep.subr.bf16.mxu1 %v1220_v2  ;;  %v1225_v7 = vld [vmem:[%s1358_s25 + $0x8] sm:$0xff]   ;;  %v1229_v11 = vld [vmem:[%s1358_s25 + $0x10] sm:$0xff]  }
  0x1b   : > { %v1222_v4 = vld [vmem:[%s1358_s25 + $0x80] sm:$0xff]   ;;  %1107 = vmatpush3.bf16.msra.mxu0 %v1221_v3  ;;  %v1226_v8 = vld [vmem:[%s1358_s25 + $0x88] sm:$0xff]   ;;  %v1230_v12 = vld [vmem:[%s1358_s25 + $0x90] sm:$0xff]  }
  0x1c   : > { %1129 = vmatpush3.bf16.msra.mxu1 %v1222_v4  ;;  %1108 = vmatprep.subr.bf16.mxu0 %v1223_v5  ;;  %v1231_v13 = vld [vmem:[%s1358_s25 + $0x58] sm:$0xff]   ;;  %v1235_v17 = vld [vmem:[%s1358_s25 + $0x60] sm:$0xff]   ;;  %v1239_v21 = vld [vmem:[%s1358_s25 + $0x68] sm:$0xff]  }
  0x1d   : > { %1130 = vmatprep.subr.bf16.mxu1 %v1224_v6  ;;  %v1232_v14 = vld [vmem:[%s1358_s25 + $0xd8] sm:$0xff]   ;;  %v1236_v18 = vld [vmem:[%s1358_s25 + $0xe0] sm:$0xff]   ;;  %v1240_v22 = vld [vmem:[%s1358_s25 + $0xe8] sm:$0xff]  }
  0x1e   : > { %v1233_v15 = vld [vmem:[%s1358_s25 + $0x18] sm:$0xff]   ;;  %v1237_v19 = vld [vmem:[%s1358_s25 + $0x20] sm:$0xff]   ;;  %v1241_v23 = vld [vmem:[%s1358_s25 + $0x28] sm:$0xff]  }
  0x1f   : > { %1109 = vmatpush3.bf16.msra.mxu0 %v1225_v7  ;;  %v1234_v16 = vld [vmem:[%s1358_s25 + $0x98] sm:$0xff]   ;;  %v1238_v20 = vld [vmem:[%s1358_s25 + $0xa0] sm:$0xff]   ;;  %v1242_v24 = vld [vmem:[%s1358_s25 + $0xa8] sm:$0xff]  }
  0x20   : > { %1131 = vmatpush3.bf16.msra.mxu1 %v1226_v8  ;;  %1110 = vmatprep.subr.bf16.mxu0 %v1227_v9  ;;  %v1243_v25 = vld [vmem:[%s1358_s25 + $0x70] sm:$0xff]   ;;  %v1247_v29 = vld [vmem:[%s1358_s25 + $0x78] sm:$0xff]   ;;  %v238_v33 = vld [vmem:[%s1353_s21 + $0x8] sm:$0xff] }
  0x21   : > { %1132 = vmatprep.subr.bf16.mxu1 %v1228_v10  ;;  %v1244_v26 = vld [vmem:[%s1358_s25 + $0xf0] sm:$0xff]   ;;  %v1248_v30 = vld [vmem:[%s1358_s25 + $0xf8] sm:$0xff]   ;;  %v237_v35 = vld [vmem:[%s1353_s21] sm:$0xff]  ;;  %v246_v36 = vpack.c.bf16 %v238_v33, %v238_v33 }
  0x22   : > { %v1245_v27 = vld [vmem:[%s1358_s25 + $0x30] sm:$0xff]   ;;  %v1249_v31 = vld [vmem:[%s1358_s25 + $0x38] sm:$0xff]   ;;  %v245_v38 = vpack.c.bf16 %v237_v35, %v237_v35  ;;  %v1251_v41 = vld [vmem:[%s1358_s25 + $0x140] sm:$0xff]  }
  0x23   : > { %1111 = vmatpush3.bf16.msra.mxu0 %v1229_v11  ;;  %v1246_v28 = vld [vmem:[%s1358_s25 + $0xb0] sm:$0xff]   ;;  %v1250_v32 = vld [vmem:[%s1358_s25 + $0xb8] sm:$0xff]   ;;  %797 = vmatprep.mubr.bf16.mxu0 %v246_v36  ;;  %v1252_v42 = vld [vmem:[%s1358_s25 + $0x1c0] sm:$0xff]  }
  0x24   : > { %1133 = vmatpush3.bf16.msra.mxu1 %v1230_v12  ;;  %1112 = vmatprep.subr.bf16.mxu0 %v1231_v13  ;;  %v240_v34 = vld [vmem:[%s1353_s21 + $0x18] sm:$0xff]  ;;  %v239_v39 = vld [vmem:[%s1353_s21 + $0x10] sm:$0xff]  ;;  %v1253_v43 = vld [vmem:[%s1358_s25 + $0x100] sm:$0xff]  }
  0x25   : > { %1134 = vmatprep.subr.bf16.mxu1 %v1232_v14  ;;  %v248_v37 = vpack.c.bf16 %v240_v34, %v240_v34  ;;  %v247_v40 = vpack.c.bf16 %v239_v39, %v239_v39  ;;  %v1254_v44 = vld [vmem:[%s1358_s25 + $0x180] sm:$0xff]   ;;  %v1255_v45 = vld [vmem:[%s1358_s25 + $0x148] sm:$0xff]   ;;  %v1259_v49 = vld [vmem:[%s1358_s25 + $0x150] sm:$0xff]  }
  0x26   : > { %v1256_v46 = vld [vmem:[%s1358_s25 + $0x1c8] sm:$0xff]   ;;  %v1260_v50 = vld [vmem:[%s1358_s25 + $0x1d0] sm:$0xff]   ;;  %v1263_v53 = vld [vmem:[%s1358_s25 + $0x158] sm:$0xff]  }
  0x27   : > { %1113 = vmatpush3.bf16.msra.mxu0 %v1233_v15  ;;  %837 = vmatprep.mubr.bf16.mxu1 %v248_v37  ;;  %v1257_v47 = vld [vmem:[%s1358_s25 + $0x108] sm:$0xff]   ;;  %v1261_v51 = vld [vmem:[%s1358_s25 + $0x110] sm:$0xff]   ;;  %v1264_v54 = vld [vmem:[%s1358_s25 + $0x1d8] sm:$0xff]  }
  0x28   : > { %1135 = vmatpush3.bf16.msra.mxu1 %v1234_v16  ;;  %1114 = vmatprep.subr.bf16.mxu0 %v1235_v17  ;;  %v1258_v48 = vld [vmem:[%s1358_s25 + $0x188] sm:$0xff]   ;;  %v1262_v52 = vld [vmem:[%s1358_s25 + $0x190] sm:$0xff]   ;;  %v1265_v55 = vld [vmem:[%s1358_s25 + $0x118] sm:$0xff]  }
  0x29   : > { %1136 = vmatprep.subr.bf16.mxu1 %v1236_v18  ;;  %v1266_v56 = vld [vmem:[%s1358_s25 + $0x198] sm:$0xff]   ;;  %v1267_v57 = vld [vmem:[%s1358_s25 + $0x160] sm:$0xff]   ;;  %v1271_v61 = vld [vmem:[%s1358_s25 + $0x168] sm:$0xff]  }
  0x2a   : > { %v1268_v58 = vld [vmem:[%s1358_s25 + $0x1e0] sm:$0xff]   ;;  %v1272_v62 = vld [vmem:[%s1358_s25 + $0x1e8] sm:$0xff]   ;;  %v1275_v1 = vld [vmem:[%s1358_s25 + $0x170] sm:$0xff]  }
  0x2b   : > { %1115 = vmatpush3.bf16.msra.mxu0 %v1237_v19  ;;  %v1269_v59 = vld [vmem:[%s1358_s25 + $0x120] sm:$0xff]   ;;  %v1273_v63 = vld [vmem:[%s1358_s25 + $0x128] sm:$0xff]   ;;  %v1276_v2 = vld [vmem:[%s1358_s25 + $0x1f0] sm:$0xff]  }
  0x2c   : > { %1137 = vmatpush3.bf16.msra.mxu1 %v1238_v20  ;;  %1116 = vmatprep.subr.bf16.mxu0 %v1239_v21  ;;  %v1270_v60 = vld [vmem:[%s1358_s25 + $0x1a0] sm:$0xff]   ;;  %v1274_v0 = vld [vmem:[%s1358_s25 + $0x1a8] sm:$0xff]   ;;  %v1277_v3 = vld [vmem:[%s1358_s25 + $0x130] sm:$0xff]  }
  0x2d   : > { %1138 = vmatprep.subr.bf16.mxu1 %v1240_v22  ;;  %v1278_v4 = vld [vmem:[%s1358_s25 + $0x1b0] sm:$0xff]   ;;  %v1279_v5 = vld [vmem:[%s1358_s25 + $0x178] sm:$0xff]   ;;  %v242_v9 = vld [vmem:[%s1353_s21 + $0x28] sm:$0xff] }
  0x2e   : > { %v1280_v6 = vld [vmem:[%s1358_s25 + $0x1f8] sm:$0xff]   ;;  %v250_v11 = vpack.c.bf16 %v242_v9, %v242_v9  ;;  %v241_v13 = vld [vmem:[%s1353_s21 + $0x20] sm:$0xff]  ;;  %v243_v14 = vld [vmem:[%s1353_s21 + $0x30] sm:$0xff] }
  0x2f   : > { %1117 = vmatpush3.bf16.msra.mxu0 %v1241_v23  ;;  %v1281_v7 = vld [vmem:[%s1358_s25 + $0x138] sm:$0xff]   ;;  %v249_v15 = vpack.c.bf16 %v241_v13, %v241_v13  ;;  %v251_v16 = vpack.c.bf16 %v243_v14, %v243_v14  ;;  %v236_v39 = vld [vmem:[#allocation2] sm:$0xff] }
  0x30   : > { %1139 = vmatpush3.bf16.msra.mxu1 %v1242_v24  ;;  %1118 = vmatprep.subr.bf16.mxu0 %v1243_v25  ;;  %v1282_v8 = vld [vmem:[%s1358_s25 + $0x1b8] sm:$0xff]  }
  0x31   : > { %1140 = vmatprep.subr.bf16.mxu1 %v1244_v26  ;;  %v244_v10 = vld [vmem:[%s1353_s21 + $0x38] sm:$0xff] }
  0x32   : > { %v252_v12 = vpack.c.bf16 %v244_v10, %v244_v10 }
  0x33   : > { %1119 = vmatpush3.bf16.msra.mxu0 %v1245_v27 }
  0x34   : > { %1141 = vmatpush3.bf16.msra.mxu1 %v1246_v28  ;;  %1120 = vmatprep.subr.bf16.mxu0 %v1247_v29 }
  0x35   : > { %1142 = vmatprep.subr.bf16.mxu1 %v1248_v30 }
  0x37   : > { %1121 = vmatpush3.bf16.msra.mxu0 %v1249_v31 }
  0x38   : > { %1143 = vmatpush3.bf16.msra.mxu1 %v1250_v32  ;;  %1150 = vmatprep.subr.bf16.mxu0 %v1251_v41 }
  0x39   : > { %1172 = vmatprep.subr.bf16.mxu1 %v1252_v42 }
  0x3a   : > { %798 = vmatmul.mubr.bf16.vlgmr.msra.gmra.mrb[0].mxu0 %v245_v38 }
  0x3b   : > { %838 = vmatmul.mubr.bf16.vlgmr.msra.gmra.mrb[0].mxu1 %v247_v40  ;;  %1151 = vmatpush3.bf16.msra.mxu0 %v1253_v43  ;;  %v1102_v43 = vld [vmem:[%s1451_s2] ss:$0 sm:$0xff] (!%p1101_p7) }
  0x3c   : > { %1173 = vmatpush3.bf16.msra.mxu1 %v1254_v44  ;;  %1152 = vmatprep.subr.bf16.mxu0 %v1255_v45 }
  0x3d   : > { %1174 = vmatprep.subr.bf16.mxu1 %v1256_v46  ;;  %877 = vmatprep.mubr.bf16.mxu0 %v250_v11 }
  0x3e   : > { %917 = vmatprep.mubr.bf16.mxu1 %v252_v12 }
  0x3f   : > { %1153 = vmatpush3.bf16.msra.mxu0 %v1257_v47 }
  0x40   : > { %1175 = vmatpush3.bf16.msra.mxu1 %v1258_v48  ;;  %1154 = vmatprep.subr.bf16.mxu0 %v1259_v49 }
  0x41   : > { %1176 = vmatprep.subr.bf16.mxu1 %v1260_v50 }
  0x43   : > { %1155 = vmatpush3.bf16.msra.mxu0 %v1261_v51 }
  0x44   : > { %1177 = vmatpush3.bf16.msra.mxu1 %v1262_v52  ;;  %1156 = vmatprep.subr.bf16.mxu0 %v1263_v53 }
  0x45   : > { %1178 = vmatprep.subr.bf16.mxu1 %v1264_v54 }
  0x47   : > { %1157 = vmatpush3.bf16.msra.mxu0 %v1265_v55 }
  0x48   : > { %1179 = vmatpush3.bf16.msra.mxu1 %v1266_v56  ;;  %1158 = vmatprep.subr.bf16.mxu0 %v1267_v57 }
  0x49   : > { %1180 = vmatprep.subr.bf16.mxu1 %v1268_v58 }
  0x4b   : > { %1159 = vmatpush3.bf16.msra.mxu0 %v1269_v59 }
  0x4c   : > { %1181 = vmatpush3.bf16.msra.mxu1 %v1270_v60  ;;  %1160 = vmatprep.subr.bf16.mxu0 %v1271_v61 }
  0x4d   : > { %1182 = vmatprep.subr.bf16.mxu1 %v1272_v62 }
  0x4f   : > { %1161 = vmatpush3.bf16.msra.mxu0 %v1273_v63 }
  0x50   : > { %1183 = vmatpush3.bf16.msra.mxu1 %v1274_v0  ;;  %1162 = vmatprep.subr.bf16.mxu0 %v1275_v1 }
  0x51   : > { %1184 = vmatprep.subr.bf16.mxu1 %v1276_v2 }
  0x53   : > { %1163 = vmatpush3.bf16.msra.mxu0 %v1277_v3 }
  0x54   : > { %1185 = vmatpush3.bf16.msra.mxu1 %v1278_v4  ;;  %1164 = vmatprep.subr.bf16.mxu0 %v1279_v5 }
  0x55   : > { %1186 = vmatprep.subr.bf16.mxu1 %v1280_v6 }
  0x57   : > { %1165 = vmatpush3.bf16.msra.mxu0 %v1281_v7 }
  0x58   : > { %1187 = vmatpush3.bf16.msra.mxu1 %v1282_v8 }
  0x5a   : > { %878 = vmatmul.mubr.bf16.vlgmr.msra.gmra.mrb[4].mxu0 %v249_v15 }
  0x5b   : > { %918 = vmatmul.mubr.bf16.vlgmr.msra.gmra.mrb[4].mxu1 %v251_v16 }
 0x10d   : > { %v1122_v17 = vpop.f32.mrb[0].mxu0 }
 0x10e   : > { %v1144_v18 = vpop.f32.mrb[0].mxu1  ;;  %v1123_v19 = vpop.f32.mrb[1].mxu0 }
 0x10f   : > { %v1145_v20 = vpop.f32.mrb[1].mxu1  ;;  %v1124_v21 = vadd.f32 %v1123_v19, %v1122_v17  ;;  %v1125_v23 = vpop.f32.mrb[2].mxu0 }
 0x110   : > { %v1146_v22 = vadd.f32 %v1145_v20, %v1144_v18  ;;  %v1147_v24 = vpop.f32.mrb[2].mxu1  ;;  %v1126_v25 = vpop.f32.mrb[3].mxu0 }
 0x111   : > { %v1148_v26 = vpop.f32.mrb[3].mxu1 }
 0x112   : > { %v840_v27 = vadd.f32 %v1146_v22, %v1124_v21 }
 0x12d   : > { %v1166_v28 = vpop.f32.mrb[4].mxu0 }
 0x12e   : > { %v1188_v29 = vpop.f32.mrb[4].mxu1  ;;  %v1167_v30 = vpop.f32.mrb[5].mxu0 }
 0x12f   : > { %v1168_v31 = vadd.f32 %v1167_v30, %v1166_v28  ;;  %v1189_v32 = vpop.f32.mrb[5].mxu1  ;;  %v1169_v33 = vpop.f32.mrb[6].mxu0 }
 0x130   : > { %v1190_v34 = vadd.f32 %v1189_v32, %v1188_v29  ;;  %v1191_v35 = vpop.f32.mrb[6].mxu1  ;;  %v1170_v36 = vpop.f32.mrb[7].mxu0 }
 0x131   : > { %v880_v37 = vadd.f32 %v1168_v31, %v840_v27  ;;  %v1192_v38 = vpop.f32.mrb[7].mxu1  ;;  %930 = sbr.rel (%p1101_p7) target bundleno = 322 (0x142), region = 40 }
 0x133   : > { %v920_v40 = vadd.f32 %v1190_v34, %v880_v37 }
 0x135   : > { %v925_v41 = vadd.f32 %v920_v40, %v236_v39 }
 0x137   : > { %926 = vst [vmem:[#allocation2] sm:$0xff] %v925_v41 }
 0x13e   : > { %v931_v42 = vld [vmem:[#allocation2] sm:$0xff] }
 0x13f   : > { %v939_v44 = vadd.f32 %v1102_v43, %v931_v42 }
 0x141   : > { %940 = vst [vmem:[%s1452_s3] sm:$0xff] %v939_v44 }
 0x142 PF: > { %s13_s14 = sadd.s32 1, %s1305_s14   ;;  %s1453_s12 = smov %s1301_s13 }
 0x143   : > { %p10_p8 = scmp.ge.s32.totalorder %s13_s14, 6   ;;  %s1454_s13 = smov %s1456_s15 }
 0x145   :  { %12 = sbr.rel (!%p10_p8) target bundleno = 2 (0x2), region = 76 }

// kernel: acbase_forward.9
= control target key start
LH: loop header
LB: loop body
LE: loop exit
PB: predicated region body
PF: predicated region fallthrough
CT: control target
= control target key end

     0   :  { %8 = vsyncpa [#allocation3], 0  ;;  %s5678_s0 = inlined_call_operand.vmem [shape: f32[8,1024], index: 0, kind: input, shape index: {}]   ;;  %s5679_s1 = inlined_call_operand.hbm [shape: bf16[9,1024,1024], index: 1, kind: input, shape index: {}]   ;;  %s5680_s2 = inlined_call_operand.hbm [shape: f32[9,1,1024], index: 2, kind: input, shape index: {}]   ;;  %s5681_s3 = inlined_call_operand.vmem [shape: f32[8,1024], index: 3, kind: output, shape index: {}]  }
   0x1   :  { %10 = vsyncpa [#allocation3 + $0x1], 0 }
   0x2   :  { %11 = vsyncpa [#allocation5], 0 }
   0x3   :  { %13 = vsyncpa [#allocation5 + $0x1], 0  ;;  %s4853_s12 = smov 0   ;;  %s4855_s13 = smov 0  }
   0x4   :  { %s4857_s14 = smov 0   ;;  %s4859_s15 = smov 0  }
   0x5 LB: > { %s4098_s16 = sadd.s32 4294967295, %s4827_s15   ;;  %s4873_s17 = sadd.s32 1, %s4827_s15   ;;  %s4827_s15 = sphi %s4859_s15, %s5692_s15   ;;  %s4823_s14 = sphi %s4857_s14, %s5691_s14   ;;  %s4819_s13 = sphi %s4855_s13, %s5690_s13   ;;  %s4815_s12 = sphi %s4853_s12, %s5689_s12  }
   0x6   : > { %s44_s18 = ssub.s32 %s4827_s15, %s4873_s17  ;;  %s47_s19 = sadd.s32 1, %s4823_s14 }
   0x7   : > { %p45_p0 = scmp.eq.s32.totalorder %s44_s18, 0  ;;  %p54_p1 = scmp.ne.s32.totalorder %s4823_s14, %s4819_s13 }
   0x8   : > { %p55_p2 = scmp.eq.s32.totalorder %s4827_s15, 0  ;;  %p60_p3 = scmp.ne.s32.totalorder %s4819_s13, %s4815_s12 }
   0x9   : > { %s4883_s20 = scalar_select %p45_p0, %s4823_s14, %s47_s19  }
   0xa   : > { %p56_p4 = por %p55_p2, %p54_p1  ;;  %p61_p5 = scmp.eq.s32.totalorder %s4098_s16, 0 }
   0xb   : > { %p4694_p6 = scmp.lt.s32.totalorder %s4827_s15, 9  ;;  %s4893_s22 = sand.u32 1, %s4823_s14  }
   0xc   : > { %p4888_p7 = por %p61_p5, %p60_p3  ;;  %s4101_s23 = sshll.u32 %s4893_s22, 12 }
   0xd   : > { %s4625_s24 = sshll.u32 %s4827_s15, 16  ;;  %s138_s28 = scalar_lea.vmem [#allocation2], %s4101_s23 }
   0xe   : > { %s5683_s21 = scalar_select %p4888_p7, 1, 0 }
   0xf   : > { %s4900_s27 = scalar_lea.hbm %s5679_s1, %s4625_s24  ;;  %s145_s29 = sshll.u32 %s138_s28, 4  ;;  %s4902_s29 = int_to_ptr.vmem [resolvable:$true] %s145_s29 }
  0x10   : > { %p4904_p8 = pnand %p4694_p6, %p56_p4  ;;  %s135_s4 = scalar_lea.sflag [#allocation3], %s4893_s22 }
  0x11   : > { %s4729_s5 = scalar_lea.hbm %s4900_s27, 65536  ;;  %s4734_s8 = scalar_lea.hbm %s5679_s1, 589824 }
  0x12   : > { %p4730_p10 = scmp.ne.s32.totalorder %s4900_s27, %s4729_s5  ;;  %p4731_p11 = pneg %p4904_p8 }
  0x13   : > { %p4735_p0 = scmp.lt.u32.totalorder %s4900_s27, %s5679_s1  ;;  %p4736_p1 = scmp.lt.u32.totalorder %s4734_s8, %s4729_s5 }
  0x14   : > { %p4732_p12 = pnand %p4731_p11, %p4730_p10  ;;  %p4738_p3 = scmp.lt.u32.totalorder %s4729_s5, %s4900_s27 }
  0x15   : > { %p4737_p2 = por %p4736_p1, %p4735_p0 }
  0x16   : > { %p4733_p13 = pneg %p4732_p12 }
  0x17   : > { %p4739_p4 = por %p4738_p3, %p4737_p2 }
  0x19   : > { %p4740_p5 = pnand %p4739_p4, %p4733_p13 }
  0x1b   : > { %4743 = shalt.err (!%p4740_p5)
}
  0x1c   : > { %s4744_s11 = scalar_lea.vmem %s4902_s29, 65536  ;;  %s4829_s12 = smov [#allocation2]  }
  0x1d   : > { %p4745_p6 = scmp.ne.s32.totalorder %s4902_s29, %s4744_s11  ;;  %s4749_s18 = sshll.u32 %s4829_s12, 4  ;;  %s4750_s18 = int_to_ptr.vmem [resolvable:$false] %s4749_s18 }
  0x1e   : > { %s4751_s19 = scalar_lea.vmem %s4750_s18, 131072  ;;  %p4752_p9 = scmp.lt.s32.totalorder %s4902_s29, %s4750_s18 }
  0x1f   : > { %p4747_p10 = pnand %p4745_p6, %p4731_p11  ;;  %p4753_p0 = scmp.lt.s32.totalorder %s4751_s19, %s4744_s11 }
  0x21   : > { %p4748_p12 = pneg %p4747_p10  ;;  %p4754_p1 = por %p4753_p0, %p4752_p9 }
  0x23   : > { %p4755_p2 = pnand %p4754_p1, %p4748_p12 }
  0x25   : > { %4758 = shalt.err (!%p4755_p2)
}
  0x26   : > { %s4830_s23 = smov 512   ;;  %s4831_s24 = smov 32  }
  0x27   : > { %4690 = dma.hbm_to_vmem [thread:$0]  (!%p4904_p8), %s4900_s27, 65536, %s4902_s29, %s135_s4, %s4830_s23, %s4830_s23, %s4831_s24  }
  0x28   : > { %p172_p13 = scmp.lt.s32.totalorder %s4827_s15, 10  ;;  %s4104_s25 = sshll.u32 %s4893_s22, 3 }
  0x29   : > { %s4626_s26 = sshll.u32 %s4827_s15, 7  ;;  %p5685_p9 = scmp.ge.s32.totalorder %s4827_s15, 1 }
  0x2a   : > { %s4949_s7 = scalar_lea.hbm %s5680_s2, %s4626_s26  ;;  %s159_s8 = scalar_lea.vmem [#allocation4], %s4104_s25 }
  0x2b   : > { %p4942_p3 = pnand %p5685_p9, %p172_p13  ;;  %s167_s9 = sshll.u32 %s159_s8, 4  ;;  %s168_s9 = int_to_ptr.vmem [resolvable:$true] %s167_s9 }
  0x2c   : > { %s156_s27 = scalar_lea.sflag [#allocation5], %s4893_s22  ;;  %s4759_s29 = scalar_lea.hbm %s4949_s7, 128 }
  0x2d   : > { %s5686_s28 = scalar_select %p4942_p3, 1, 0 }
  0x2e   : > { %p4760_p4 = scmp.ne.s32.totalorder %s4949_s7, %s4759_s29  ;;  %s4764_s11 = scalar_lea.hbm %s5680_s2, 1152 }
  0x2f   : > { %p4765_p10 = scmp.lt.u32.totalorder %s4949_s7, %s5680_s2  ;;  %p4766_p12 = scmp.lt.u32.totalorder %s4764_s11, %s4759_s29 }
  0x30   : > { %p4762_p5 = pnand %p4760_p4, %p4731_p11  ;;  %p4768_p1 = scmp.lt.u32.totalorder %s4759_s29, %s4949_s7 }
  0x31   : > { %p4767_p0 = por %p4766_p12, %p4765_p10 }
  0x32   : > { %p4763_p6 = pneg %p4762_p5 }
  0x33   : > { %p4769_p2 = por %p4768_p1, %p4767_p0 }
  0x35   : > { %p4770_p13 = pnand %p4769_p2, %p4763_p6 }
  0x37   : > { %4773 = shalt.err (!%p4770_p13)
}
  0x38   : > { %s4774_s22 = scalar_lea.vmem %s168_s9, 128  ;;  %s4832_s19 = smov [#allocation4]  }
  0x39   : > { %p4775_p9 = scmp.ne.s32.totalorder %s168_s9, %s4774_s22  ;;  %s4779_s23 = sshll.u32 %s4832_s19, 4  ;;  %s4780_s23 = int_to_ptr.vmem [resolvable:$false] %s4779_s23 }
  0x3a   : > { %s4781_s24 = scalar_lea.vmem %s4780_s23, 256  ;;  %p4782_p7 = scmp.lt.s32.totalorder %s168_s9, %s4780_s23 }
  0x3b   : > { %p4777_p4 = pnand %p4775_p9, %p4731_p11  ;;  %p4783_p3 = scmp.lt.s32.totalorder %s4781_s24, %s4774_s22 }
  0x3d   : > { %p4778_p5 = pneg %p4777_p4  ;;  %p4784_p10 = por %p4783_p3, %p4782_p7 }
  0x3f   : > { %p4785_p12 = pnand %p4784_p10, %p4778_p5 }
  0x41   : > { %4788 = shalt.err (!%p4785_p12)
}
  0x42   : > { %4693 = dma.hbm_to_vmem [thread:$0]  (!%p4904_p8), %s4949_s7, 128, %s168_s9, %s156_s27  }
  0x43   : > { %p5687_p6 = scmp.ne.s32.totalorder %s5686_s28, 0 }
  0x44   : > { %s178_s25 = sand.u32 (!%p5687_p6), 1, %s4819_s13   ;;  %p5688_p11 = scmp.ne.s32.totalorder (!%p5687_p6), %s5683_s21, 0 }
  0x45   : > { %176 = sbr.rel (%p5687_p6) target bundleno = 823 (0x337), region = 32  ;;  %s4108_s26 = sshll.u32 (!%p5687_p6), %s178_s25, 12 }
  0x46   : > { %s179_s5 = scalar_lea.sflag (!%p5687_p6), [#allocation3], %s178_s25  ;;  %s4974_s6 = scalar_lea.vmem (!%p5687_p6), [#allocation2], %s4108_s26 }
  0x4c   : > { %4806 = dma.done.wait (%p5688_p11), %s179_s5, 65536  }
  0x4d   : > { %4808 = vsyncadd (%p5688_p11), %s179_s5, 4294901760  ;;  %s4109_s8 = sshll.u32 %s178_s25, 3  ;;  %s188_s30 = scalar_lea.sflag [#allocation5], %s178_s25 }
  0x4e   : > { %s4980_s29 = scalar_lea.vmem [#allocation4], %s4109_s8 }
  0x4f   : > { %4810 = dma.done.wait (%p5688_p11), %s188_s30, 128  }
  0x50   : > { %4812 = vsyncadd (%p5688_p11), %s188_s30, 4294967168  ;;  %p4110_p7 = scmp.ne.s32.totalorder %s4098_s16, 0 }
  0x51   : > { %v218_v0 = vld [vmem:[%s5678_s0] sm:$0xff] (!%p4110_p7)  ;;  %v219_v1 = vld [vmem:[%s5678_s0 + $0x8] sm:$0xff] (!%p4110_p7)  ;;  %v220_v2 = vld [vmem:[%s5678_s0 + $0x10] sm:$0xff] (!%p4110_p7) }
  0x52   : > { %217 = sbr.rel (%p4110_p7) target bundleno = 89 (0x59), region = 44  ;;  %226 = vst [vmem:[%s5681_s3] sm:$0xff] (!%p4110_p7), %v218_v0  ;;  %227 = vst [vmem:[%s5681_s3 + $0x8] sm:$0xff] (!%p4110_p7), %v219_v1  ;;  %v221_v3 = vld [vmem:[%s5678_s0 + $0x18] sm:$0xff] (!%p4110_p7)  ;;  %v222_v4 = vld [vmem:[%s5678_s0 + $0x20] sm:$0xff] (!%p4110_p7) }
  0x53   : > { %228 = vst [vmem:[%s5681_s3 + $0x10] sm:$0xff] (!%p4110_p7), %v220_v2  ;;  %v223_v5 = vld [vmem:[%s5678_s0 + $0x28] sm:$0xff] (!%p4110_p7)  ;;  %229 = vst [vmem:[%s5681_s3 + $0x18] sm:$0xff] (!%p4110_p7), %v221_v3  ;;  %v224_v6 = vld [vmem:[%s5678_s0 + $0x30] sm:$0xff] (!%p4110_p7) }
  0x54   : > { %230 = vst [vmem:[%s5681_s3 + $0x20] sm:$0xff] (!%p4110_p7), %v222_v4  ;;  %231 = vst [vmem:[%s5681_s3 + $0x28] sm:$0xff] (!%p4110_p7), %v223_v5  ;;  %v225_v7 = vld [vmem:[%s5678_s0 + $0x38] sm:$0xff] (!%p4110_p7) }
  0x55   : > { %232 = vst [vmem:[%s5681_s3 + $0x30] sm:$0xff] (!%p4110_p7), %v224_v6  ;;  %233 = vst [vmem:[%s5681_s3 + $0x38] sm:$0xff] (!%p4110_p7), %v225_v7 }
  0x59 PF: > { %v250_v8 = vld [vmem:[%s4974_s6] sm:$0xff]  ;;  %v251_v10 = vld [vmem:[%s4974_s6 + $0x8] sm:$0xff] }
  0x5a   : > { %v254_v9 = vld [vmem:[%s4974_s6 + $0x20] sm:$0xff]  ;;  %v255_v12 = vld [vmem:[%s4974_s6 + $0x28] sm:$0xff] }
  0x5b   : > { %v4112_v11 = vcombine.high %v250_v8, %v254_v9  ;;  %v4111_v13 = vcombine.low %v250_v8, %v254_v9  ;;  %v258_v14 = vld [vmem:[%s4974_s6 + $0x40] sm:$0xff]  ;;  %v4114_v16 = vcombine.high %v251_v10, %v255_v12  ;;  %v4113_v17 = vcombine.low %v251_v10, %v255_v12  ;;  %v259_v19 = vld [vmem:[%s4974_s6 + $0x48] sm:$0xff] }
  0x5c   : > { %v262_v15 = vld [vmem:[%s4974_s6 + $0x60] sm:$0xff]  ;;  %v263_v20 = vld [vmem:[%s4974_s6 + $0x68] sm:$0xff] }
  0x5d   : > { %v4120_v18 = vcombine.high %v258_v14, %v262_v15  ;;  %v266_v21 = vld [vmem:[%s4974_s6 + $0x80] sm:$0xff]  ;;  %3364 = vmatprep.subr.bf16.mxu0 %v4112_v11  ;;  %v4122_v22 = vcombine.high %v259_v19, %v263_v20  ;;  %v267_v24 = vld [vmem:[%s4974_s6 + $0x88] sm:$0xff]  ;;  %3528 = vmatprep.subr.bf16.mxu1 %v4114_v16  ;;  %v4119_v26 = vcombine.low %v258_v14, %v262_v15 }
  0x5e   : > { %v270_v23 = vld [vmem:[%s4974_s6 + $0xa0] sm:$0xff]  ;;  %v271_v25 = vld [vmem:[%s4974_s6 + $0xa8] sm:$0xff]  ;;  %3365 = vmatpush1.bf16.msra.mxu0 %v4111_v13  ;;  %3529 = vmatpush1.bf16.msra.mxu1 %v4113_v17  ;;  %v4121_v27 = vcombine.low %v259_v19, %v263_v20 }
  0x5f   : > { %3366 = vmatprep.subr.bf16.mxu0 %v4120_v18  ;;  %v4128_v28 = vcombine.high %v266_v21, %v270_v23  ;;  %3530 = vmatprep.subr.bf16.mxu1 %v4122_v22  ;;  %v4130_v29 = vcombine.high %v267_v24, %v271_v25  ;;  %v274_v30 = vld [vmem:[%s4974_s6 + $0xc0] sm:$0xff]  ;;  %v275_v32 = vld [vmem:[%s4974_s6 + $0xc8] sm:$0xff]  ;;  %v4127_v34 = vcombine.low %v266_v21, %v270_v23 }
  0x60   : > { %v278_v31 = vld [vmem:[%s4974_s6 + $0xe0] sm:$0xff]  ;;  %v279_v33 = vld [vmem:[%s4974_s6 + $0xe8] sm:$0xff]  ;;  %v4129_v35 = vcombine.low %v267_v24, %v271_v25 }
  0x61   : > { %v4136_v36 = vcombine.high %v274_v30, %v278_v31  ;;  %v4138_v37 = vcombine.high %v275_v32, %v279_v33  ;;  %v282_v38 = vld [vmem:[%s4974_s6 + $0x100] sm:$0xff]  ;;  %v283_v40 = vld [vmem:[%s4974_s6 + $0x108] sm:$0xff]  ;;  %v4135_v42 = vcombine.low %v274_v30, %v278_v31  ;;  %v4137_v43 = vcombine.low %v275_v32, %v279_v33 }
  0x62   : > { %3367 = vmatpush1.bf16.msra.mxu0 %v4119_v26  ;;  %3531 = vmatpush1.bf16.msra.mxu1 %v4121_v27  ;;  %v286_v39 = vld [vmem:[%s4974_s6 + $0x120] sm:$0xff]  ;;  %v287_v41 = vld [vmem:[%s4974_s6 + $0x128] sm:$0xff] }
  0x63   : > { %3368 = vmatprep.subr.bf16.mxu0 %v4128_v28  ;;  %3532 = vmatprep.subr.bf16.mxu1 %v4130_v29  ;;  %v4144_v44 = vcombine.high %v282_v38, %v286_v39  ;;  %v4146_v45 = vcombine.high %v283_v40, %v287_v41  ;;  %v290_v46 = vld [vmem:[%s4974_s6 + $0x140] sm:$0xff]  ;;  %v291_v48 = vld [vmem:[%s4974_s6 + $0x148] sm:$0xff]  ;;  %v4143_v50 = vcombine.low %v282_v38, %v286_v39 }
  0x64   : > { %v294_v47 = vld [vmem:[%s4974_s6 + $0x160] sm:$0xff]  ;;  %v295_v49 = vld [vmem:[%s4974_s6 + $0x168] sm:$0xff]  ;;  %v4145_v51 = vcombine.low %v283_v40, %v287_v41 }
  0x65   : > { %v4152_v52 = vcombine.high %v290_v46, %v294_v47  ;;  %v4154_v53 = vcombine.high %v291_v48, %v295_v49  ;;  %v298_v54 = vld [vmem:[%s4974_s6 + $0x180] sm:$0xff]  ;;  %v299_v56 = vld [vmem:[%s4974_s6 + $0x188] sm:$0xff]  ;;  %v4151_v58 = vcombine.low %v290_v46, %v294_v47  ;;  %v4153_v59 = vcombine.low %v291_v48, %v295_v49 }
  0x66   : > { %3369 = vmatpush1.bf16.msra.mxu0 %v4127_v34  ;;  %3533 = vmatpush1.bf16.msra.mxu1 %v4129_v35  ;;  %v302_v55 = vld [vmem:[%s4974_s6 + $0x1a0] sm:$0xff]  ;;  %v303_v57 = vld [vmem:[%s4974_s6 + $0x1a8] sm:$0xff] }
  0x67   : > { %3370 = vmatprep.subr.bf16.mxu0 %v4136_v36  ;;  %3534 = vmatprep.subr.bf16.mxu1 %v4138_v37  ;;  %v4160_v60 = vcombine.high %v298_v54, %v302_v55  ;;  %v235_v61 = vld [vmem:[%s5681_s3 + $0x8] sm:$0xff]  ;;  %v4162_v62 = vcombine.high %v299_v56, %v303_v57  ;;  %v306_v63 = vld [vmem:[%s4974_s6 + $0x1c0] sm:$0xff]  ;;  %v4159_v4 = vcombine.low %v298_v54, %v302_v55 }
  0x68   : > { %v310_v0 = vld [vmem:[%s4974_s6 + $0x1e0] sm:$0xff]  ;;  %v5069_v1 = vpack.c.bf16 %v235_v61, %v235_v61  ;;  %v307_v2 = vld [vmem:[%s4974_s6 + $0x1c8] sm:$0xff]  ;;  %v4161_v5 = vcombine.low %v299_v56, %v303_v57 }
  0x69   : > { %v311_v3 = vld [vmem:[%s4974_s6 + $0x1e8] sm:$0xff]  ;;  %v4168_v6 = vcombine.high %v306_v63, %v310_v0  ;;  %v314_v8 = vld [vmem:[%s4974_s6 + $0x200] sm:$0xff]  ;;  %v4167_v12 = vcombine.low %v306_v63, %v310_v0 }
  0x6a   : > { %3371 = vmatpush1.bf16.msra.mxu0 %v4135_v42  ;;  %3535 = vmatpush1.bf16.msra.mxu1 %v4137_v43  ;;  %v4170_v7 = vcombine.high %v307_v2, %v311_v3  ;;  %v318_v9 = vld [vmem:[%s4974_s6 + $0x220] sm:$0xff]  ;;  %v315_v10 = vld [vmem:[%s4974_s6 + $0x208] sm:$0xff]  ;;  %v4169_v13 = vcombine.low %v307_v2, %v311_v3 }
  0x6b   : > { %3372 = vmatprep.subr.bf16.mxu0 %v4144_v44  ;;  %3536 = vmatprep.subr.bf16.mxu1 %v4146_v45  ;;  %v319_v11 = vld [vmem:[%s4974_s6 + $0x228] sm:$0xff]  ;;  %v4176_v14 = vcombine.high %v314_v8, %v318_v9  ;;  %v322_v16 = vld [vmem:[%s4974_s6 + $0x240] sm:$0xff]  ;;  %v4175_v20 = vcombine.low %v314_v8, %v318_v9 }
  0x6c   : > { %3396 = vmatprep.mubr.bf16.mxu0 %v5069_v1  ;;  %3560 = vmatprep.mubr.bf16.mxu1 %v5069_v1  ;;  %v4178_v15 = vcombine.high %v315_v10, %v319_v11  ;;  %v326_v17 = vld [vmem:[%s4974_s6 + $0x260] sm:$0xff]  ;;  %v323_v18 = vld [vmem:[%s4974_s6 + $0x248] sm:$0xff]  ;;  %v4177_v21 = vcombine.low %v315_v10, %v319_v11 }
  0x6d   : > { %v327_v19 = vld [vmem:[%s4974_s6 + $0x268] sm:$0xff]  ;;  %v4184_v22 = vcombine.high %v322_v16, %v326_v17  ;;  %v330_v24 = vld [vmem:[%s4974_s6 + $0x280] sm:$0xff]  ;;  %v4183_v28 = vcombine.low %v322_v16, %v326_v17 }
  0x6e   : > { %3373 = vmatpush1.bf16.msra.mxu0 %v4143_v50  ;;  %3537 = vmatpush1.bf16.msra.mxu1 %v4145_v51  ;;  %v4186_v23 = vcombine.high %v323_v18, %v327_v19  ;;  %v334_v25 = vld [vmem:[%s4974_s6 + $0x2a0] sm:$0xff]  ;;  %v331_v26 = vld [vmem:[%s4974_s6 + $0x288] sm:$0xff]  ;;  %v4185_v29 = vcombine.low %v323_v18, %v327_v19 }
  0x6f   : > { %3374 = vmatprep.subr.bf16.mxu0 %v4152_v52  ;;  %3538 = vmatprep.subr.bf16.mxu1 %v4154_v53  ;;  %v335_v27 = vld [vmem:[%s4974_s6 + $0x2a8] sm:$0xff]  ;;  %v4192_v30 = vcombine.high %v330_v24, %v334_v25  ;;  %v338_v32 = vld [vmem:[%s4974_s6 + $0x2c0] sm:$0xff]  ;;  %v4191_v36 = vcombine.low %v330_v24, %v334_v25 }
  0x70   : > { %v4194_v31 = vcombine.high %v331_v26, %v335_v27  ;;  %v342_v33 = vld [vmem:[%s4974_s6 + $0x2e0] sm:$0xff]  ;;  %v339_v34 = vld [vmem:[%s4974_s6 + $0x2c8] sm:$0xff]  ;;  %v4193_v37 = vcombine.low %v331_v26, %v335_v27 }
  0x71   : > { %v343_v35 = vld [vmem:[%s4974_s6 + $0x2e8] sm:$0xff]  ;;  %v4200_v38 = vcombine.high %v338_v32, %v342_v33  ;;  %v346_v40 = vld [vmem:[%s4974_s6 + $0x300] sm:$0xff]  ;;  %v4199_v44 = vcombine.low %v338_v32, %v342_v33 }
  0x72   : > { %3375 = vmatpush1.bf16.msra.mxu0 %v4151_v58  ;;  %3539 = vmatpush1.bf16.msra.mxu1 %v4153_v59  ;;  %v4202_v39 = vcombine.high %v339_v34, %v343_v35  ;;  %v350_v41 = vld [vmem:[%s4974_s6 + $0x320] sm:$0xff]  ;;  %v347_v42 = vld [vmem:[%s4974_s6 + $0x308] sm:$0xff]  ;;  %v4201_v45 = vcombine.low %v339_v34, %v343_v35 }
  0x73   : > { %3376 = vmatprep.subr.bf16.mxu0 %v4160_v60  ;;  %3540 = vmatprep.subr.bf16.mxu1 %v4162_v62  ;;  %v351_v43 = vld [vmem:[%s4974_s6 + $0x328] sm:$0xff]  ;;  %v4208_v46 = vcombine.high %v346_v40, %v350_v41  ;;  %v354_v48 = vld [vmem:[%s4974_s6 + $0x340] sm:$0xff]  ;;  %v4207_v52 = vcombine.low %v346_v40, %v350_v41 }
  0x74   : > { %v4210_v47 = vcombine.high %v347_v42, %v351_v43  ;;  %v358_v49 = vld [vmem:[%s4974_s6 + $0x360] sm:$0xff]  ;;  %v355_v50 = vld [vmem:[%s4974_s6 + $0x348] sm:$0xff]  ;;  %v4209_v53 = vcombine.low %v347_v42, %v351_v43 }
  0x75   : > { %v359_v51 = vld [vmem:[%s4974_s6 + $0x368] sm:$0xff]  ;;  %v4216_v54 = vcombine.high %v354_v48, %v358_v49  ;;  %v362_v56 = vld [vmem:[%s4974_s6 + $0x380] sm:$0xff]  ;;  %v4215_v60 = vcombine.low %v354_v48, %v358_v49 }
  0x76   : > { %3377 = vmatpush1.bf16.msra.mxu0 %v4159_v4  ;;  %3541 = vmatpush1.bf16.msra.mxu1 %v4161_v5  ;;  %v4218_v55 = vcombine.high %v355_v50, %v359_v51  ;;  %v366_v57 = vld [vmem:[%s4974_s6 + $0x3a0] sm:$0xff]  ;;  %v363_v58 = vld [vmem:[%s4974_s6 + $0x388] sm:$0xff]  ;;  %v4217_v61 = vcombine.low %v355_v50, %v359_v51 }
  0x77   : > { %3378 = vmatprep.subr.bf16.mxu0 %v4168_v6  ;;  %3542 = vmatprep.subr.bf16.mxu1 %v4170_v7  ;;  %v367_v59 = vld [vmem:[%s4974_s6 + $0x3a8] sm:$0xff]  ;;  %v4224_v62 = vcombine.high %v362_v56, %v366_v57  ;;  %v370_v0 = vld [vmem:[%s4974_s6 + $0x3c0] sm:$0xff]  ;;  %v4223_v5 = vcombine.low %v362_v56, %v366_v57 }
  0x78   : > { %v4226_v63 = vcombine.high %v363_v58, %v367_v59  ;;  %v374_v2 = vld [vmem:[%s4974_s6 + $0x3e0] sm:$0xff]  ;;  %v371_v3 = vld [vmem:[%s4974_s6 + $0x3c8] sm:$0xff]  ;;  %v4225_v6 = vcombine.low %v363_v58, %v367_v59 }
  0x79   : > { %v375_v4 = vld [vmem:[%s4974_s6 + $0x3e8] sm:$0xff]  ;;  %v4232_v7 = vcombine.high %v370_v0, %v374_v2  ;;  %v378_v9 = vld [vmem:[%s4974_s6 + $0x400] sm:$0xff] }
  0x7a   : > { %3379 = vmatpush1.bf16.msra.mxu0 %v4167_v12  ;;  %3543 = vmatpush1.bf16.msra.mxu1 %v4169_v13  ;;  %v4234_v8 = vcombine.high %v371_v3, %v375_v4  ;;  %v382_v10 = vld [vmem:[%s4974_s6 + $0x420] sm:$0xff]  ;;  %v379_v11 = vld [vmem:[%s4974_s6 + $0x408] sm:$0xff]  ;;  %v4231_v13 = vcombine.low %v370_v0, %v374_v2 }
  0x7b   : > { %3380 = vmatprep.subr.bf16.mxu0 %v4176_v14  ;;  %3544 = vmatprep.subr.bf16.mxu1 %v4178_v15  ;;  %v383_v12 = vld [vmem:[%s4974_s6 + $0x428] sm:$0xff]  ;;  %v234_v14 = vld [vmem:[%s5681_s3] sm:$0xff]  ;;  %v4233_v15 = vcombine.low %v371_v3, %v375_v4  ;;  %v4240_v16 = vcombine.high %v378_v9, %v382_v10  ;;  %v4239_v24 = vcombine.low %v378_v9, %v382_v10 }
  0x7c   : > { %v4242_v17 = vcombine.high %v379_v11, %v383_v12  ;;  %v386_v18 = vld [vmem:[%s4974_s6 + $0x440] sm:$0xff]  ;;  %v4241_v25 = vcombine.low %v379_v11, %v383_v12  ;;  %v399_v32 = vld [vmem:[%s4974_s6 + $0x4a8] sm:$0xff] }
  0x7d   : > { %v390_v19 = vld [vmem:[%s4974_s6 + $0x460] sm:$0xff]  ;;  %v407_v40 = vld [vmem:[%s4974_s6 + $0x4e8] sm:$0xff] }
  0x7e   : > { %3381 = vmatpush1.bf16.msra.mxu0 %v4175_v20  ;;  %3545 = vmatpush1.bf16.msra.mxu1 %v4177_v21  ;;  %v5116_v20 = vpack.c.bf16 %v234_v14, %v234_v14  ;;  %v387_v21 = vld [vmem:[%s4974_s6 + $0x448] sm:$0xff]  ;;  %v4248_v26 = vcombine.high %v386_v18, %v390_v19  ;;  %v4247_v33 = vcombine.low %v386_v18, %v390_v19  ;;  %v442_v14 = vld [vmem:[%s4974_s6 + $0x600] sm:$0xff] }
  0x7f   : > { %3382 = vmatprep.subr.bf16.mxu0 %v4184_v22  ;;  %3546 = vmatprep.subr.bf16.mxu1 %v4186_v23  ;;  %v391_v22 = vld [vmem:[%s4974_s6 + $0x468] sm:$0xff]  ;;  %v237_v23 = vld [vmem:[%s5681_s3 + $0x18] sm:$0xff] }
  0x80   : > { %v4250_v27 = vcombine.high %v387_v21, %v391_v22  ;;  %v4249_v34 = vcombine.low %v387_v21, %v391_v22  ;;  %v415_v48 = vld [vmem:[%s4974_s6 + $0x528] sm:$0xff] }
  0x81   : > { %v423_v56 = vld [vmem:[%s4974_s6 + $0x568] sm:$0xff] }
  0x82   : > { %3383 = vmatpush1.bf16.msra.mxu0 %v4183_v28  ;;  %3547 = vmatpush1.bf16.msra.mxu1 %v4185_v29  ;;  %v394_v28 = vld [vmem:[%s4974_s6 + $0x480] sm:$0xff]  ;;  %v431_v0 = vld [vmem:[%s4974_s6 + $0x5a8] sm:$0xff] }
  0x83   : > { %3384 = vmatprep.subr.bf16.mxu0 %v4192_v30  ;;  %3548 = vmatprep.subr.bf16.mxu1 %v4194_v31  ;;  %v398_v29 = vld [vmem:[%s4974_s6 + $0x4a0] sm:$0xff]  ;;  %v5125_v30 = vpack.c.bf16 %v237_v23, %v237_v23  ;;  %v395_v31 = vld [vmem:[%s4974_s6 + $0x488] sm:$0xff] }
  0x84   : > { %v4256_v35 = vcombine.high %v394_v28, %v398_v29  ;;  %v4255_v41 = vcombine.low %v394_v28, %v398_v29  ;;  %v4257_v42 = vcombine.low %v395_v31, %v399_v32  ;;  %v439_v9 = vld [vmem:[%s4974_s6 + $0x5e8] sm:$0xff]  ;;  %v450_v23 = vld [vmem:[%s4974_s6 + $0x640] sm:$0xff] }
  0x86   : > { %3385 = vmatpush1.bf16.msra.mxu0 %v4191_v36  ;;  %3549 = vmatpush1.bf16.msra.mxu1 %v4193_v37  ;;  %v4258_v36 = vcombine.high %v395_v31, %v399_v32  ;;  %v402_v37 = vld [vmem:[%s4974_s6 + $0x4c0] sm:$0xff] }
  0x87   : > { %3386 = vmatprep.subr.bf16.mxu0 %v4200_v38  ;;  %3550 = vmatprep.subr.bf16.mxu1 %v4202_v39  ;;  %v406_v38 = vld [vmem:[%s4974_s6 + $0x4e0] sm:$0xff]  ;;  %v403_v39 = vld [vmem:[%s4974_s6 + $0x4c8] sm:$0xff] }
  0x88   : > { %v4264_v43 = vcombine.high %v402_v37, %v406_v38  ;;  %v4263_v49 = vcombine.low %v402_v37, %v406_v38  ;;  %v4265_v50 = vcombine.low %v403_v39, %v407_v40  ;;  %v458_v32 = vld [vmem:[%s4974_s6 + $0x680] sm:$0xff] }
  0x8a   : > { %3387 = vmatpush1.bf16.msra.mxu0 %v4199_v44  ;;  %3551 = vmatpush1.bf16.msra.mxu1 %v4201_v45  ;;  %v4266_v44 = vcombine.high %v403_v39, %v407_v40  ;;  %v410_v45 = vld [vmem:[%s4974_s6 + $0x500] sm:$0xff] }
  0x8b   : > { %3388 = vmatprep.subr.bf16.mxu0 %v4208_v46  ;;  %3552 = vmatprep.subr.bf16.mxu1 %v4210_v47  ;;  %v414_v46 = vld [vmem:[%s4974_s6 + $0x520] sm:$0xff]  ;;  %v411_v47 = vld [vmem:[%s4974_s6 + $0x508] sm:$0xff] }
  0x8c   : > { %v4272_v51 = vcombine.high %v410_v45, %v414_v46  ;;  %v4271_v57 = vcombine.low %v410_v45, %v414_v46  ;;  %v4273_v58 = vcombine.low %v411_v47, %v415_v48  ;;  %v466_v40 = vld [vmem:[%s4974_s6 + $0x6c0] sm:$0xff] }
  0x8e   : > { %3389 = vmatpush1.bf16.msra.mxu0 %v4207_v52  ;;  %3553 = vmatpush1.bf16.msra.mxu1 %v4209_v53  ;;  %v4274_v52 = vcombine.high %v411_v47, %v415_v48  ;;  %v418_v53 = vld [vmem:[%s4974_s6 + $0x540] sm:$0xff] }
  0x8f   : > { %3390 = vmatprep.subr.bf16.mxu0 %v4216_v54  ;;  %3554 = vmatprep.subr.bf16.mxu1 %v4218_v55  ;;  %v422_v54 = vld [vmem:[%s4974_s6 + $0x560] sm:$0xff]  ;;  %v419_v55 = vld [vmem:[%s4974_s6 + $0x548] sm:$0xff] }
  0x90   : > { %v4280_v59 = vcombine.high %v418_v53, %v422_v54  ;;  %v4279_v2 = vcombine.low %v418_v53, %v422_v54  ;;  %v4281_v3 = vcombine.low %v419_v55, %v423_v56  ;;  %v474_v48 = vld [vmem:[%s4974_s6 + $0x700] sm:$0xff] }
  0x92   : > { %3391 = vmatpush1.bf16.msra.mxu0 %v4215_v60  ;;  %3555 = vmatpush1.bf16.msra.mxu1 %v4217_v61  ;;  %v4282_v60 = vcombine.high %v419_v55, %v423_v56  ;;  %v426_v61 = vld [vmem:[%s4974_s6 + $0x580] sm:$0xff] }
  0x93   : > { %3392 = vmatprep.subr.bf16.mxu0 %v4224_v62  ;;  %3556 = vmatprep.subr.bf16.mxu1 %v4226_v63  ;;  %v430_v62 = vld [vmem:[%s4974_s6 + $0x5a0] sm:$0xff]  ;;  %v427_v63 = vld [vmem:[%s4974_s6 + $0x588] sm:$0xff] }
  0x94   : > { %v4288_v4 = vcombine.high %v426_v61, %v430_v62  ;;  %v4287_v10 = vcombine.low %v426_v61, %v430_v62  ;;  %v4289_v11 = vcombine.low %v427_v63, %v431_v0  ;;  %v482_v56 = vld [vmem:[%s4974_s6 + $0x740] sm:$0xff] }
  0x96   : > { %3393 = vmatpush1.bf16.msra.mxu0 %v4223_v5  ;;  %3557 = vmatpush1.bf16.msra.mxu1 %v4225_v6  ;;  %v4290_v5 = vcombine.high %v427_v63, %v431_v0  ;;  %v434_v6 = vld [vmem:[%s4974_s6 + $0x5c0] sm:$0xff] }
  0x97   : > { %3394 = vmatprep.subr.bf16.mxu0 %v4232_v7  ;;  %3558 = vmatprep.subr.bf16.mxu1 %v4234_v8  ;;  %v438_v7 = vld [vmem:[%s4974_s6 + $0x5e0] sm:$0xff]  ;;  %v435_v8 = vld [vmem:[%s4974_s6 + $0x5c8] sm:$0xff] }
  0x98   : > { %v4296_v12 = vcombine.high %v434_v6, %v438_v7  ;;  %v4295_v18 = vcombine.low %v434_v6, %v438_v7  ;;  %v4297_v19 = vcombine.low %v435_v8, %v439_v9  ;;  %v490_v0 = vld [vmem:[%s4974_s6 + $0x780] sm:$0xff] }
  0x9a   : > { %3395 = vmatpush1.bf16.msra.mxu0 %v4231_v13  ;;  %3559 = vmatpush1.bf16.msra.mxu1 %v4233_v15  ;;  %v4298_v13 = vcombine.high %v435_v8, %v439_v9  ;;  %v446_v15 = vld [vmem:[%s4974_s6 + $0x620] sm:$0xff] }
  0x9b   : > { %3405 = vmatprep.subr.bf16.mxu0 %v4240_v16  ;;  %3569 = vmatprep.subr.bf16.mxu1 %v4242_v17  ;;  %v443_v16 = vld [vmem:[%s4974_s6 + $0x608] sm:$0xff]  ;;  %v4304_v21 = vcombine.high %v442_v14, %v446_v15  ;;  %v498_v9 = vld [vmem:[%s4974_s6 + $0x7c0] sm:$0xff] }
  0x9c   : > { %v447_v17 = vld [vmem:[%s4974_s6 + $0x628] sm:$0xff] }
  0x9d   : > { %3397 = vmatmul.mubr.bf16.vlgmr.msra.gmra.mrb[0].mxu0 %v5116_v20  ;;  %3561 = vmatmul.mubr.bf16.vlgmr.msra.gmra.mrb[0].mxu1 %v5116_v20  ;;  %v4306_v22 = vcombine.high %v443_v16, %v447_v17  ;;  %v4305_v28 = vcombine.low %v443_v16, %v447_v17  ;;  %v506_v17 = vld [vmem:[%s4974_s6 + $0x800] sm:$0xff] }
  0x9e   : > { %3406 = vmatpush1.bf16.msra.mxu0 %v4239_v24  ;;  %3570 = vmatpush1.bf16.msra.mxu1 %v4241_v25  ;;  %v454_v24 = vld [vmem:[%s4974_s6 + $0x660] sm:$0xff]  ;;  %v451_v25 = vld [vmem:[%s4974_s6 + $0x648] sm:$0xff] }
  0x9f   : > { %3407 = vmatprep.subr.bf16.mxu0 %v4248_v26  ;;  %3571 = vmatprep.subr.bf16.mxu1 %v4250_v27  ;;  %v455_v26 = vld [vmem:[%s4974_s6 + $0x668] sm:$0xff]  ;;  %v4303_v27 = vcombine.low %v442_v14, %v446_v15  ;;  %v4312_v29 = vcombine.high %v450_v23, %v454_v24 }
  0xa0   : > { %3437 = vmatprep.mubr.bf16.mxu0 %v5125_v30  ;;  %3601 = vmatprep.mubr.bf16.mxu1 %v5125_v30  ;;  %v4314_v31 = vcombine.high %v451_v25, %v455_v26  ;;  %v4313_v37 = vcombine.low %v451_v25, %v455_v26 }
  0xa2   : > { %3408 = vmatpush1.bf16.msra.mxu0 %v4247_v33  ;;  %3572 = vmatpush1.bf16.msra.mxu1 %v4249_v34  ;;  %v462_v33 = vld [vmem:[%s4974_s6 + $0x6a0] sm:$0xff]  ;;  %v459_v34 = vld [vmem:[%s4974_s6 + $0x688] sm:$0xff] }
  0xa3   : > { %3409 = vmatprep.subr.bf16.mxu0 %v4256_v35  ;;  %3573 = vmatprep.subr.bf16.mxu1 %v4258_v36  ;;  %v463_v35 = vld [vmem:[%s4974_s6 + $0x6a8] sm:$0xff]  ;;  %v4311_v36 = vcombine.low %v450_v23, %v454_v24  ;;  %v4320_v38 = vcombine.high %v458_v32, %v462_v33  ;;  %v236_v23 = vld [vmem:[%s5681_s3 + $0x10] sm:$0xff] }
  0xa4   : > { %v4322_v39 = vcombine.high %v459_v34, %v463_v35  ;;  %v4321_v45 = vcombine.low %v459_v34, %v463_v35 }
  0xa6   : > { %3410 = vmatpush1.bf16.msra.mxu0 %v4255_v41  ;;  %3574 = vmatpush1.bf16.msra.mxu1 %v4257_v42  ;;  %v470_v41 = vld [vmem:[%s4974_s6 + $0x6e0] sm:$0xff]  ;;  %v467_v42 = vld [vmem:[%s4974_s6 + $0x6c8] sm:$0xff] }
  0xa7   : > { %3411 = vmatprep.subr.bf16.mxu0 %v4264_v43  ;;  %3575 = vmatprep.subr.bf16.mxu1 %v4266_v44  ;;  %v471_v43 = vld [vmem:[%s4974_s6 + $0x6e8] sm:$0xff]  ;;  %v4319_v44 = vcombine.low %v458_v32, %v462_v33  ;;  %v4328_v46 = vcombine.high %v466_v40, %v470_v41 }
  0xa8   : > { %v4330_v47 = vcombine.high %v467_v42, %v471_v43  ;;  %v4329_v53 = vcombine.low %v467_v42, %v471_v43  ;;  %v519_v32 = vld [vmem:[%s4974_s6 + $0x868] sm:$0xff] }
  0xa9   : > { %v239_v33 = vld [vmem:[%s5681_s3 + $0x28] sm:$0xff] }
  0xaa   : > { %3412 = vmatpush1.bf16.msra.mxu0 %v4263_v49  ;;  %3576 = vmatpush1.bf16.msra.mxu1 %v4265_v50  ;;  %v478_v49 = vld [vmem:[%s4974_s6 + $0x720] sm:$0xff]  ;;  %v475_v50 = vld [vmem:[%s4974_s6 + $0x708] sm:$0xff] }
  0xab   : > { %3413 = vmatprep.subr.bf16.mxu0 %v4272_v51  ;;  %3577 = vmatprep.subr.bf16.mxu1 %v4274_v52  ;;  %v479_v51 = vld [vmem:[%s4974_s6 + $0x728] sm:$0xff]  ;;  %v4327_v52 = vcombine.low %v466_v40, %v470_v41  ;;  %v4336_v54 = vcombine.high %v474_v48, %v478_v49  ;;  %v5203_v40 = vpack.c.bf16 %v239_v33, %v239_v33 }
  0xac   : > { %v4338_v55 = vcombine.high %v475_v50, %v479_v51  ;;  %v4337_v61 = vcombine.low %v475_v50, %v479_v51  ;;  %v523_v41 = vld [vmem:[%s4974_s6 + $0x888] sm:$0xff] }
  0xad   : > { %v527_v42 = vld [vmem:[%s4974_s6 + $0x8a8] sm:$0xff] }
  0xae   : > { %3414 = vmatpush1.bf16.msra.mxu0 %v4271_v57  ;;  %3578 = vmatpush1.bf16.msra.mxu1 %v4273_v58  ;;  %v486_v57 = vld [vmem:[%s4974_s6 + $0x760] sm:$0xff]  ;;  %v483_v58 = vld [vmem:[%s4974_s6 + $0x748] sm:$0xff] }
  0xaf   : > { %3415 = vmatprep.subr.bf16.mxu0 %v4280_v59  ;;  %3579 = vmatprep.subr.bf16.mxu1 %v4282_v60  ;;  %v487_v59 = vld [vmem:[%s4974_s6 + $0x768] sm:$0xff]  ;;  %v4335_v60 = vcombine.low %v474_v48, %v478_v49  ;;  %v4344_v62 = vcombine.high %v482_v56, %v486_v57  ;;  %v534_v48 = vld [vmem:[%s4974_s6 + $0x8e0] sm:$0xff] }
  0xb0   : > { %v4346_v63 = vcombine.high %v483_v58, %v487_v59  ;;  %v4345_v6 = vcombine.low %v483_v58, %v487_v59  ;;  %v531_v49 = vld [vmem:[%s4974_s6 + $0x8c8] sm:$0xff] }
  0xb1   : > { %v535_v50 = vld [vmem:[%s4974_s6 + $0x8e8] sm:$0xff] }
  0xb2   : > { %3416 = vmatpush1.bf16.msra.mxu0 %v4279_v2  ;;  %3580 = vmatpush1.bf16.msra.mxu1 %v4281_v3  ;;  %v494_v2 = vld [vmem:[%s4974_s6 + $0x7a0] sm:$0xff]  ;;  %v491_v3 = vld [vmem:[%s4974_s6 + $0x788] sm:$0xff] }
  0xb3   : > { %3417 = vmatprep.subr.bf16.mxu0 %v4288_v4  ;;  %3581 = vmatprep.subr.bf16.mxu1 %v4290_v5  ;;  %v495_v4 = vld [vmem:[%s4974_s6 + $0x7a8] sm:$0xff]  ;;  %v4343_v5 = vcombine.low %v482_v56, %v486_v57  ;;  %v4352_v7 = vcombine.high %v490_v0, %v494_v2  ;;  %v542_v56 = vld [vmem:[%s4974_s6 + $0x920] sm:$0xff] }
  0xb4   : > { %v4354_v8 = vcombine.high %v491_v3, %v495_v4  ;;  %v4353_v14 = vcombine.low %v491_v3, %v495_v4  ;;  %v539_v57 = vld [vmem:[%s4974_s6 + $0x908] sm:$0xff] }
  0xb5   : > { %v543_v58 = vld [vmem:[%s4974_s6 + $0x928] sm:$0xff] }
  0xb6   : > { %3418 = vmatpush1.bf16.msra.mxu0 %v4287_v10  ;;  %3582 = vmatpush1.bf16.msra.mxu1 %v4289_v11  ;;  %v502_v10 = vld [vmem:[%s4974_s6 + $0x7e0] sm:$0xff]  ;;  %v499_v11 = vld [vmem:[%s4974_s6 + $0x7c8] sm:$0xff] }
  0xb7   : > { %3419 = vmatprep.subr.bf16.mxu0 %v4296_v12  ;;  %3583 = vmatprep.subr.bf16.mxu1 %v4298_v13  ;;  %v503_v12 = vld [vmem:[%s4974_s6 + $0x7e8] sm:$0xff]  ;;  %v4351_v13 = vcombine.low %v490_v0, %v494_v2  ;;  %v4360_v15 = vcombine.high %v498_v9, %v502_v10  ;;  %v550_v0 = vld [vmem:[%s4974_s6 + $0x960] sm:$0xff] }
  0xb8   : > { %v4362_v16 = vcombine.high %v499_v11, %v503_v12  ;;  %v4361_v24 = vcombine.low %v499_v11, %v503_v12  ;;  %v547_v2 = vld [vmem:[%s4974_s6 + $0x948] sm:$0xff] }
  0xb9   : > { %v551_v3 = vld [vmem:[%s4974_s6 + $0x968] sm:$0xff] }
  0xba   : > { %3420 = vmatpush1.bf16.msra.mxu0 %v4295_v18  ;;  %3584 = vmatpush1.bf16.msra.mxu1 %v4297_v19  ;;  %v510_v18 = vld [vmem:[%s4974_s6 + $0x820] sm:$0xff]  ;;  %v507_v19 = vld [vmem:[%s4974_s6 + $0x808] sm:$0xff] }
  0xbb   : > { %3421 = vmatprep.subr.bf16.mxu0 %v4304_v21  ;;  %3585 = vmatprep.subr.bf16.mxu1 %v4306_v22  ;;  %v511_v21 = vld [vmem:[%s4974_s6 + $0x828] sm:$0xff]  ;;  %v4359_v22 = vcombine.low %v498_v9, %v502_v10  ;;  %v4368_v25 = vcombine.high %v506_v17, %v510_v18  ;;  %v4367_v34 = vcombine.low %v506_v17, %v510_v18  ;;  %v558_v9 = vld [vmem:[%s4974_s6 + $0x9a0] sm:$0xff] }
  0xbc   : > { %v4370_v26 = vcombine.high %v507_v19, %v511_v21  ;;  %v4369_v35 = vcombine.low %v507_v19, %v511_v21  ;;  %v555_v10 = vld [vmem:[%s4974_s6 + $0x988] sm:$0xff]  ;;  %v566_v17 = vld [vmem:[%s4974_s6 + $0x9e0] sm:$0xff] }
  0xbd   : > { %v559_v11 = vld [vmem:[%s4974_s6 + $0x9a8] sm:$0xff] }
  0xbe   : > { %3422 = vmatpush1.bf16.msra.mxu0 %v4303_v27  ;;  %3586 = vmatpush1.bf16.msra.mxu1 %v4305_v28  ;;  %v514_v27 = vld [vmem:[%s4974_s6 + $0x840] sm:$0xff]  ;;  %v563_v18 = vld [vmem:[%s4974_s6 + $0x9c8] sm:$0xff] }
  0xbf   : > { %3423 = vmatprep.subr.bf16.mxu0 %v4312_v29  ;;  %3587 = vmatprep.subr.bf16.mxu1 %v4314_v31  ;;  %v518_v28 = vld [vmem:[%s4974_s6 + $0x860] sm:$0xff]  ;;  %v5194_v29 = vpack.c.bf16 %v236_v23, %v236_v23  ;;  %v515_v31 = vld [vmem:[%s4974_s6 + $0x848] sm:$0xff] }
  0xc0   : > { %v4375_v43 = vcombine.low %v514_v27, %v518_v28  ;;  %v567_v19 = vld [vmem:[%s4974_s6 + $0x9e8] sm:$0xff] }
  0xc2   : > { %3424 = vmatpush1.bf16.msra.mxu0 %v4311_v36  ;;  %3588 = vmatpush1.bf16.msra.mxu1 %v4313_v37  ;;  %v4376_v36 = vcombine.high %v514_v27, %v518_v28  ;;  %v4378_v37 = vcombine.high %v515_v31, %v519_v32  ;;  %v571_v27 = vld [vmem:[%s4974_s6 + $0xa08] sm:$0xff] }
  0xc3   : > { %3425 = vmatprep.subr.bf16.mxu0 %v4320_v38  ;;  %3589 = vmatprep.subr.bf16.mxu1 %v4322_v39  ;;  %v522_v38 = vld [vmem:[%s4974_s6 + $0x880] sm:$0xff]  ;;  %v575_v28 = vld [vmem:[%s4974_s6 + $0xa28] sm:$0xff] }
  0xc4   : > { %v526_v39 = vld [vmem:[%s4974_s6 + $0x8a0] sm:$0xff] }
  0xc5   : > { %v4383_v51 = vcombine.low %v522_v38, %v526_v39 }
  0xc6   : > { %3426 = vmatpush1.bf16.msra.mxu0 %v4319_v44  ;;  %3590 = vmatpush1.bf16.msra.mxu1 %v4321_v45  ;;  %v4377_v44 = vcombine.low %v515_v31, %v519_v32  ;;  %v4384_v45 = vcombine.high %v522_v38, %v526_v39  ;;  %v4425_v32 = vcombine.low %v563_v18, %v567_v19  ;;  %v583_v38 = vld [vmem:[%s4974_s6 + $0xa68] sm:$0xff] }
  0xc7   : > { %3427 = vmatprep.subr.bf16.mxu0 %v4328_v46  ;;  %3591 = vmatprep.subr.bf16.mxu1 %v4330_v47  ;;  %v4386_v46 = vcombine.high %v523_v41, %v527_v42  ;;  %v530_v47 = vld [vmem:[%s4974_s6 + $0x8c0] sm:$0xff] }
  0xc8   : > { %v4391_v59 = vcombine.low %v530_v47, %v534_v48 }
  0xca   : > { %3428 = vmatpush1.bf16.msra.mxu0 %v4327_v52  ;;  %3592 = vmatpush1.bf16.msra.mxu1 %v4329_v53  ;;  %v4385_v52 = vcombine.low %v523_v41, %v527_v42  ;;  %v4392_v53 = vcombine.high %v530_v47, %v534_v48  ;;  %v4433_v41 = vcombine.low %v571_v27, %v575_v28  ;;  %v591_v47 = vld [vmem:[%s4974_s6 + $0xaa8] sm:$0xff] }
  0xcb   : > { %3429 = vmatprep.subr.bf16.mxu0 %v4336_v54  ;;  %3593 = vmatprep.subr.bf16.mxu1 %v4338_v55  ;;  %v4394_v54 = vcombine.high %v531_v49, %v535_v50  ;;  %v538_v55 = vld [vmem:[%s4974_s6 + $0x900] sm:$0xff] }
  0xcc   : > { %v4399_v4 = vcombine.low %v538_v55, %v542_v56 }
  0xce   : > { %3430 = vmatpush1.bf16.msra.mxu0 %v4335_v60  ;;  %3594 = vmatpush1.bf16.msra.mxu1 %v4337_v61  ;;  %v4393_v60 = vcombine.low %v531_v49, %v535_v50  ;;  %v4400_v61 = vcombine.high %v538_v55, %v542_v56  ;;  %v599_v55 = vld [vmem:[%s4974_s6 + $0xae8] sm:$0xff] }
  0xcf   : > { %3431 = vmatprep.subr.bf16.mxu0 %v4344_v62  ;;  %3595 = vmatprep.subr.bf16.mxu1 %v4346_v63  ;;  %v4402_v62 = vcombine.high %v539_v57, %v543_v58  ;;  %v546_v63 = vld [vmem:[%s4974_s6 + $0x940] sm:$0xff] }
  0xd0   : > { %v4407_v12 = vcombine.low %v546_v63, %v550_v0 }
  0xd2   : > { %3432 = vmatpush1.bf16.msra.mxu0 %v4343_v5  ;;  %3596 = vmatpush1.bf16.msra.mxu1 %v4345_v6  ;;  %v4401_v5 = vcombine.low %v539_v57, %v543_v58  ;;  %v4408_v6 = vcombine.high %v546_v63, %v550_v0  ;;  %v607_v63 = vld [vmem:[%s4974_s6 + $0xb28] sm:$0xff] }
  0xd3   : > { %3433 = vmatprep.subr.bf16.mxu0 %v4352_v7  ;;  %3597 = vmatprep.subr.bf16.mxu1 %v4354_v8  ;;  %v4410_v7 = vcombine.high %v547_v2, %v551_v3  ;;  %v554_v8 = vld [vmem:[%s4974_s6 + $0x980] sm:$0xff] }
  0xd4   : > { %v4415_v21 = vcombine.low %v554_v8, %v558_v9 }
  0xd6   : > { %3434 = vmatpush1.bf16.msra.mxu0 %v4351_v13  ;;  %3598 = vmatpush1.bf16.msra.mxu1 %v4353_v14  ;;  %v4409_v13 = vcombine.low %v547_v2, %v551_v3  ;;  %v4416_v14 = vcombine.high %v554_v8, %v558_v9  ;;  %v615_v8 = vld [vmem:[%s4974_s6 + $0xb68] sm:$0xff] }
  0xd7   : > { %3435 = vmatprep.subr.bf16.mxu0 %v4360_v15  ;;  %3599 = vmatprep.subr.bf16.mxu1 %v4362_v16  ;;  %v4418_v15 = vcombine.high %v555_v10, %v559_v11  ;;  %v562_v16 = vld [vmem:[%s4974_s6 + $0x9c0] sm:$0xff] }
  0xd8   : > { %v4424_v23 = vcombine.high %v562_v16, %v566_v17  ;;  %v4423_v31 = vcombine.low %v562_v16, %v566_v17  ;;  %v623_v16 = vld [vmem:[%s4974_s6 + $0xba8] sm:$0xff] }
  0xda   : > { %3436 = vmatpush1.bf16.msra.mxu0 %v4359_v22  ;;  %3600 = vmatpush1.bf16.msra.mxu1 %v4361_v24  ;;  %v4417_v22 = vcombine.low %v555_v10, %v559_v11  ;;  %v4426_v24 = vcombine.high %v563_v18, %v567_v19 }
  0xdb   : > { %3446 = vmatprep.subr.bf16.mxu0 %v4368_v25  ;;  %3610 = vmatprep.subr.bf16.mxu1 %v4370_v26  ;;  %v570_v25 = vld [vmem:[%s4974_s6 + $0xa00] sm:$0xff] }
  0xdc   : > { %v574_v26 = vld [vmem:[%s4974_s6 + $0xa20] sm:$0xff] }
  0xdd   : > { %3438 = vmatmul.mubr.bf16.vlgmr.msra.gmra.mrb[0].mxu0 %v5194_v29  ;;  %3602 = vmatmul.mubr.bf16.vlgmr.msra.gmra.mrb[0].mxu1 %v5194_v29  ;;  %v4432_v33 = vcombine.high %v570_v25, %v574_v26  ;;  %v4431_v39 = vcombine.low %v570_v25, %v574_v26  ;;  %v631_v25 = vld [vmem:[%s4974_s6 + $0xbe8] sm:$0xff] }
  0xde   : > { %3447 = vmatpush1.bf16.msra.mxu0 %v4367_v34  ;;  %3611 = vmatpush1.bf16.msra.mxu1 %v4369_v35  ;;  %v4434_v34 = vcombine.high %v571_v27, %v575_v28  ;;  %v578_v35 = vld [vmem:[%s4974_s6 + $0xa40] sm:$0xff] }
  0xdf   : > { %3448 = vmatprep.subr.bf16.mxu0 %v4376_v36  ;;  %3612 = vmatprep.subr.bf16.mxu1 %v4378_v37  ;;  %v582_v36 = vld [vmem:[%s4974_s6 + $0xa60] sm:$0xff]  ;;  %v579_v37 = vld [vmem:[%s4974_s6 + $0xa48] sm:$0xff] }
  0xe0   : > { %3478 = vmatprep.mubr.bf16.mxu0 %v5203_v40  ;;  %3642 = vmatprep.mubr.bf16.mxu1 %v5203_v40  ;;  %v4440_v42 = vcombine.high %v578_v35, %v582_v36  ;;  %v4439_v48 = vcombine.low %v578_v35, %v582_v36  ;;  %v4441_v49 = vcombine.low %v579_v37, %v583_v38  ;;  %v639_v35 = vld [vmem:[%s4974_s6 + $0xc28] sm:$0xff] }
  0xe2   : > { %3449 = vmatpush1.bf16.msra.mxu0 %v4375_v43  ;;  %3613 = vmatpush1.bf16.msra.mxu1 %v4377_v44  ;;  %v4442_v43 = vcombine.high %v579_v37, %v583_v38  ;;  %v586_v44 = vld [vmem:[%s4974_s6 + $0xa80] sm:$0xff] }
  0xe3   : > { %3450 = vmatprep.subr.bf16.mxu0 %v4384_v45  ;;  %3614 = vmatprep.subr.bf16.mxu1 %v4386_v46  ;;  %v590_v45 = vld [vmem:[%s4974_s6 + $0xaa0] sm:$0xff]  ;;  %v587_v46 = vld [vmem:[%s4974_s6 + $0xa88] sm:$0xff] }
  0xe4   : > { %v4448_v50 = vcombine.high %v586_v44, %v590_v45  ;;  %v4447_v56 = vcombine.low %v586_v44, %v590_v45  ;;  %v4449_v57 = vcombine.low %v587_v46, %v591_v47  ;;  %v238_v37 = vld [vmem:[%s5681_s3 + $0x20] sm:$0xff]  ;;  %v643_v45 = vld [vmem:[%s4974_s6 + $0xc48] sm:$0xff] }
  0xe5   : > { %v5272_v44 = vpack.c.bf16 %v238_v37, %v238_v37 }
  0xe6   : > { %3451 = vmatpush1.bf16.msra.mxu0 %v4383_v51  ;;  %3615 = vmatpush1.bf16.msra.mxu1 %v4385_v52  ;;  %v4450_v51 = vcombine.high %v587_v46, %v591_v47  ;;  %v594_v52 = vld [vmem:[%s4974_s6 + $0xac0] sm:$0xff]  ;;  %v647_v46 = vld [vmem:[%s4974_s6 + $0xc68] sm:$0xff]  ;;  %v241_v47 = vld [vmem:[%s5681_s3 + $0x38] sm:$0xff] }
  0xe7   : > { %3452 = vmatprep.subr.bf16.mxu0 %v4392_v53  ;;  %3616 = vmatprep.subr.bf16.mxu1 %v4394_v54  ;;  %v598_v53 = vld [vmem:[%s4974_s6 + $0xae0] sm:$0xff]  ;;  %v595_v54 = vld [vmem:[%s4974_s6 + $0xac8] sm:$0xff] }
  0xe8   : > { %v4456_v58 = vcombine.high %v594_v52, %v598_v53  ;;  %v4455_v0 = vcombine.low %v594_v52, %v598_v53  ;;  %v4457_v2 = vcombine.low %v595_v54, %v599_v55  ;;  %v650_v52 = vld [vmem:[%s4974_s6 + $0xc80] sm:$0xff] }
  0xe9   : > { %v654_v53 = vld [vmem:[%s4974_s6 + $0xca0] sm:$0xff] }
  0xea   : > { %3453 = vmatpush1.bf16.msra.mxu0 %v4391_v59  ;;  %3617 = vmatpush1.bf16.msra.mxu1 %v4393_v60  ;;  %v4458_v59 = vcombine.high %v595_v54, %v599_v55  ;;  %v602_v60 = vld [vmem:[%s4974_s6 + $0xb00] sm:$0xff]  ;;  %v5281_v54 = vpack.c.bf16 %v241_v47, %v241_v47  ;;  %v651_v55 = vld [vmem:[%s4974_s6 + $0xc88] sm:$0xff] }
  0xeb   : > { %3454 = vmatprep.subr.bf16.mxu0 %v4400_v61  ;;  %3618 = vmatprep.subr.bf16.mxu1 %v4402_v62  ;;  %v606_v61 = vld [vmem:[%s4974_s6 + $0xb20] sm:$0xff]  ;;  %v603_v62 = vld [vmem:[%s4974_s6 + $0xb08] sm:$0xff] }
  0xec   : > { %v4464_v3 = vcombine.high %v602_v60, %v606_v61  ;;  %v4463_v9 = vcombine.low %v602_v60, %v606_v61  ;;  %v4465_v10 = vcombine.low %v603_v62, %v607_v63  ;;  %v658_v61 = vld [vmem:[%s4974_s6 + $0xcc0] sm:$0xff] }
  0xee   : > { %3455 = vmatpush1.bf16.msra.mxu0 %v4399_v4  ;;  %3619 = vmatpush1.bf16.msra.mxu1 %v4401_v5  ;;  %v4466_v4 = vcombine.high %v603_v62, %v607_v63  ;;  %v610_v5 = vld [vmem:[%s4974_s6 + $0xb40] sm:$0xff]  ;;  %v659_v63 = vld [vmem:[%s4974_s6 + $0xcc8] sm:$0xff] }
  0xef   : > { %3456 = vmatprep.subr.bf16.mxu0 %v4408_v6  ;;  %3620 = vmatprep.subr.bf16.mxu1 %v4410_v7  ;;  %v614_v6 = vld [vmem:[%s4974_s6 + $0xb60] sm:$0xff]  ;;  %v611_v7 = vld [vmem:[%s4974_s6 + $0xb48] sm:$0xff] }
  0xf0   : > { %v4472_v11 = vcombine.high %v610_v5, %v614_v6  ;;  %v4471_v17 = vcombine.low %v610_v5, %v614_v6  ;;  %v4473_v18 = vcombine.low %v611_v7, %v615_v8  ;;  %v662_v62 = vld [vmem:[%s4974_s6 + $0xce0] sm:$0xff] }
  0xf1   : > { %v666_v6 = vld [vmem:[%s4974_s6 + $0xd00] sm:$0xff] }
  0xf2   : > { %3457 = vmatpush1.bf16.msra.mxu0 %v4407_v12  ;;  %3621 = vmatpush1.bf16.msra.mxu1 %v4409_v13  ;;  %v4474_v12 = vcombine.high %v611_v7, %v615_v8  ;;  %v618_v13 = vld [vmem:[%s4974_s6 + $0xb80] sm:$0xff]  ;;  %v667_v8 = vld [vmem:[%s4974_s6 + $0xd08] sm:$0xff] }
  0xf3   : > { %3458 = vmatprep.subr.bf16.mxu0 %v4416_v14  ;;  %3622 = vmatprep.subr.bf16.mxu1 %v4418_v15  ;;  %v622_v14 = vld [vmem:[%s4974_s6 + $0xba0] sm:$0xff]  ;;  %v619_v15 = vld [vmem:[%s4974_s6 + $0xb88] sm:$0xff] }
  0xf4   : > { %v4480_v19 = vcombine.high %v618_v13, %v622_v14  ;;  %v4479_v26 = vcombine.low %v618_v13, %v622_v14  ;;  %v4481_v27 = vcombine.low %v619_v15, %v623_v16  ;;  %v670_v7 = vld [vmem:[%s4974_s6 + $0xd20] sm:$0xff] }
  0xf5   : > { %v674_v14 = vld [vmem:[%s4974_s6 + $0xd40] sm:$0xff] }
  0xf6   : > { %3459 = vmatpush1.bf16.msra.mxu0 %v4415_v21  ;;  %3623 = vmatpush1.bf16.msra.mxu1 %v4417_v22  ;;  %v4482_v21 = vcombine.high %v619_v15, %v623_v16  ;;  %v626_v22 = vld [vmem:[%s4974_s6 + $0xbc0] sm:$0xff]  ;;  %v675_v16 = vld [vmem:[%s4974_s6 + $0xd48] sm:$0xff] }
  0xf7   : > { %3460 = vmatprep.subr.bf16.mxu0 %v4424_v23  ;;  %3624 = vmatprep.subr.bf16.mxu1 %v4426_v24  ;;  %v630_v23 = vld [vmem:[%s4974_s6 + $0xbe0] sm:$0xff]  ;;  %v627_v24 = vld [vmem:[%s4974_s6 + $0xbc8] sm:$0xff] }
  0xf8   : > { %v4488_v28 = vcombine.high %v626_v22, %v630_v23  ;;  %v4487_v36 = vcombine.low %v626_v22, %v630_v23  ;;  %v4489_v38 = vcombine.low %v627_v24, %v631_v25  ;;  %v678_v15 = vld [vmem:[%s4974_s6 + $0xd60] sm:$0xff] }
  0xf9   : > { %v682_v23 = vld [vmem:[%s4974_s6 + $0xd80] sm:$0xff] }
  0xfa   : > { %3461 = vmatpush1.bf16.msra.mxu0 %v4423_v31  ;;  %3625 = vmatpush1.bf16.msra.mxu1 %v4425_v32  ;;  %v4490_v31 = vcombine.high %v627_v24, %v631_v25  ;;  %v634_v32 = vld [vmem:[%s4974_s6 + $0xc00] sm:$0xff]  ;;  %v683_v25 = vld [vmem:[%s4974_s6 + $0xd88] sm:$0xff] }
  0xfb   : > { %3462 = vmatprep.subr.bf16.mxu0 %v4432_v33  ;;  %3626 = vmatprep.subr.bf16.mxu1 %v4434_v34  ;;  %v638_v33 = vld [vmem:[%s4974_s6 + $0xc20] sm:$0xff]  ;;  %v635_v34 = vld [vmem:[%s4974_s6 + $0xc08] sm:$0xff] }
  0xfc   : > { %v686_v24 = vld [vmem:[%s4974_s6 + $0xda0] sm:$0xff] }
  0xfd   : > { %v4543_v37 = vcombine.low %v682_v23, %v686_v24 }
  0xfe   : > { %3463 = vmatpush1.bf16.msra.mxu0 %v4431_v39  ;;  %3627 = vmatpush1.bf16.msra.mxu1 %v4433_v41  ;;  %v4496_v39 = vcombine.high %v634_v32, %v638_v33  ;;  %v4498_v41 = vcombine.high %v635_v34, %v639_v35 }
  0xff   : > { %3464 = vmatprep.subr.bf16.mxu0 %v4440_v42  ;;  %3628 = vmatprep.subr.bf16.mxu1 %v4442_v43  ;;  %v642_v42 = vld [vmem:[%s4974_s6 + $0xc40] sm:$0xff] }
 0x100   : > { %v646_v43 = vld [vmem:[%s4974_s6 + $0xc60] sm:$0xff] }
 0x102   : > { %3465 = vmatpush1.bf16.msra.mxu0 %v4439_v48  ;;  %3629 = vmatpush1.bf16.msra.mxu1 %v4441_v49  ;;  %v4495_v48 = vcombine.low %v634_v32, %v638_v33  ;;  %v4497_v49 = vcombine.low %v635_v34, %v639_v35  ;;  %v690_v33 = vld [vmem:[%s4974_s6 + $0xdc0] sm:$0xff]  ;;  %v691_v35 = vld [vmem:[%s4974_s6 + $0xdc8] sm:$0xff] }
 0x103   : > { %3466 = vmatprep.subr.bf16.mxu0 %v4448_v50  ;;  %3630 = vmatprep.subr.bf16.mxu1 %v4450_v51  ;;  %v4504_v50 = vcombine.high %v642_v42, %v646_v43  ;;  %v4506_v51 = vcombine.high %v643_v45, %v647_v46  ;;  %v694_v34 = vld [vmem:[%s4974_s6 + $0xde0] sm:$0xff] }
 0x104   : > { %v4551_v47 = vcombine.low %v690_v33, %v694_v34 }
 0x106   : > { %3467 = vmatpush1.bf16.msra.mxu0 %v4447_v56  ;;  %3631 = vmatpush1.bf16.msra.mxu1 %v4449_v57  ;;  %v655_v56 = vld [vmem:[%s4974_s6 + $0xca8] sm:$0xff]  ;;  %v4503_v57 = vcombine.low %v642_v42, %v646_v43  ;;  %v698_v42 = vld [vmem:[%s4974_s6 + $0xe00] sm:$0xff] }
 0x107   : > { %3468 = vmatprep.subr.bf16.mxu0 %v4456_v58  ;;  %3632 = vmatprep.subr.bf16.mxu1 %v4458_v59  ;;  %v4505_v58 = vcombine.low %v643_v45, %v647_v46  ;;  %v4512_v59 = vcombine.high %v650_v52, %v654_v53  ;;  %v4514_v60 = vcombine.high %v651_v55, %v655_v56  ;;  %v702_v43 = vld [vmem:[%s4974_s6 + $0xe20] sm:$0xff]  ;;  %v699_v45 = vld [vmem:[%s4974_s6 + $0xe08] sm:$0xff] }
 0x108   : > { %v703_v46 = vld [vmem:[%s4974_s6 + $0xe28] sm:$0xff] }
 0x10a   : > { %3469 = vmatpush1.bf16.msra.mxu0 %v4455_v0  ;;  %3633 = vmatpush1.bf16.msra.mxu1 %v4457_v2  ;;  %v663_v0 = vld [vmem:[%s4974_s6 + $0xce8] sm:$0xff]  ;;  %v4511_v2 = vcombine.low %v650_v52, %v654_v53  ;;  %v710_v52 = vld [vmem:[%s4974_s6 + $0xe60] sm:$0xff] }
 0x10b   : > { %3470 = vmatprep.subr.bf16.mxu0 %v4464_v3  ;;  %3634 = vmatprep.subr.bf16.mxu1 %v4466_v4  ;;  %v4513_v3 = vcombine.low %v651_v55, %v655_v56  ;;  %v4520_v4 = vcombine.high %v658_v61, %v662_v62  ;;  %v4522_v5 = vcombine.high %v659_v63, %v663_v0  ;;  %v707_v53 = vld [vmem:[%s4974_s6 + $0xe48] sm:$0xff] }
 0x10c   : > { %v711_v55 = vld [vmem:[%s4974_s6 + $0xe68] sm:$0xff]  ;;  %v4559_v56 = vcombine.low %v698_v42, %v702_v43 }
 0x10e   : > { %3471 = vmatpush1.bf16.msra.mxu0 %v4463_v9  ;;  %3635 = vmatpush1.bf16.msra.mxu1 %v4465_v10  ;;  %v671_v9 = vld [vmem:[%s4974_s6 + $0xd28] sm:$0xff]  ;;  %v4519_v10 = vcombine.low %v658_v61, %v662_v62  ;;  %v718_v61 = vld [vmem:[%s4974_s6 + $0xea0] sm:$0xff] }
 0x10f   : > { %3472 = vmatprep.subr.bf16.mxu0 %v4472_v11  ;;  %3636 = vmatprep.subr.bf16.mxu1 %v4474_v12  ;;  %v4521_v11 = vcombine.low %v659_v63, %v663_v0  ;;  %v4528_v12 = vcombine.high %v666_v6, %v670_v7  ;;  %v4530_v13 = vcombine.high %v667_v8, %v671_v9  ;;  %v715_v62 = vld [vmem:[%s4974_s6 + $0xe88] sm:$0xff] }
 0x110   : > { %v719_v63 = vld [vmem:[%s4974_s6 + $0xea8] sm:$0xff] }
 0x112   : > { %3473 = vmatpush1.bf16.msra.mxu0 %v4471_v17  ;;  %3637 = vmatpush1.bf16.msra.mxu1 %v4473_v18  ;;  %v679_v17 = vld [vmem:[%s4974_s6 + $0xd68] sm:$0xff]  ;;  %v4527_v18 = vcombine.low %v666_v6, %v670_v7  ;;  %v726_v6 = vld [vmem:[%s4974_s6 + $0xee0] sm:$0xff] }
 0x113   : > { %3474 = vmatprep.subr.bf16.mxu0 %v4480_v19  ;;  %3638 = vmatprep.subr.bf16.mxu1 %v4482_v21  ;;  %v4529_v19 = vcombine.low %v667_v8, %v671_v9  ;;  %v4536_v21 = vcombine.high %v674_v14, %v678_v15  ;;  %v4538_v22 = vcombine.high %v675_v16, %v679_v17  ;;  %v723_v7 = vld [vmem:[%s4974_s6 + $0xec8] sm:$0xff] }
 0x114   : > { %v727_v8 = vld [vmem:[%s4974_s6 + $0xee8] sm:$0xff] }
 0x116   : > { %3475 = vmatpush1.bf16.msra.mxu0 %v4479_v26  ;;  %3639 = vmatpush1.bf16.msra.mxu1 %v4481_v27  ;;  %v687_v26 = vld [vmem:[%s4974_s6 + $0xda8] sm:$0xff]  ;;  %v4535_v27 = vcombine.low %v674_v14, %v678_v15  ;;  %v734_v14 = vld [vmem:[%s4974_s6 + $0xf20] sm:$0xff] }
 0x117   : > { %3476 = vmatprep.subr.bf16.mxu0 %v4488_v28  ;;  %3640 = vmatprep.subr.bf16.mxu1 %v4490_v31  ;;  %v4537_v28 = vcombine.low %v675_v16, %v679_v17  ;;  %v4544_v31 = vcombine.high %v682_v23, %v686_v24  ;;  %v4546_v32 = vcombine.high %v683_v25, %v687_v26  ;;  %v731_v15 = vld [vmem:[%s4974_s6 + $0xf08] sm:$0xff]  ;;  %v742_v23 = vld [vmem:[%s4974_s6 + $0xf60] sm:$0xff] }
 0x118   : > { %v735_v16 = vld [vmem:[%s4974_s6 + $0xf28] sm:$0xff] }
 0x119   : > { %v739_v24 = vld [vmem:[%s4974_s6 + $0xf48] sm:$0xff] }
 0x11a   : > { %3477 = vmatpush1.bf16.msra.mxu0 %v4487_v36  ;;  %3641 = vmatpush1.bf16.msra.mxu1 %v4489_v38  ;;  %v695_v36 = vld [vmem:[%s4974_s6 + $0xde8] sm:$0xff]  ;;  %v4545_v38 = vcombine.low %v683_v25, %v687_v26 }
 0x11b   : > { %3487 = vmatprep.subr.bf16.mxu0 %v4496_v39  ;;  %3651 = vmatprep.subr.bf16.mxu1 %v4498_v41  ;;  %v4552_v39 = vcombine.high %v690_v33, %v694_v34  ;;  %v4554_v41 = vcombine.high %v691_v35, %v695_v36  ;;  %v743_v25 = vld [vmem:[%s4974_s6 + $0xf68] sm:$0xff]  ;;  %v750_v33 = vld [vmem:[%s4974_s6 + $0xfa0] sm:$0xff] }
 0x11c   : > { %v747_v34 = vld [vmem:[%s4974_s6 + $0xf88] sm:$0xff] }
 0x11d   : > { %3479 = vmatmul.mubr.bf16.vlgmr.msra.gmra.mrb[0].mxu0 %v5272_v44  ;;  %3643 = vmatmul.mubr.bf16.vlgmr.msra.gmra.mrb[0].mxu1 %v5272_v44 }
 0x11e   : > { %3488 = vmatpush1.bf16.msra.mxu0 %v4495_v48  ;;  %3652 = vmatpush1.bf16.msra.mxu1 %v4497_v49  ;;  %v4553_v48 = vcombine.low %v691_v35, %v695_v36  ;;  %v4560_v49 = vcombine.high %v698_v42, %v702_v43  ;;  %v751_v35 = vld [vmem:[%s4974_s6 + $0xfa8] sm:$0xff]  ;;  %v758_v42 = vld [vmem:[%s4974_s6 + $0xfe0] sm:$0xff] }
 0x11f   : > { %3489 = vmatprep.subr.bf16.mxu0 %v4504_v50  ;;  %3653 = vmatprep.subr.bf16.mxu1 %v4506_v51  ;;  %v4562_v50 = vcombine.high %v699_v45, %v703_v46  ;;  %v706_v51 = vld [vmem:[%s4974_s6 + $0xe40] sm:$0xff]  ;;  %v755_v43 = vld [vmem:[%s4974_s6 + $0xfc8] sm:$0xff] }
 0x120   : > { %3519 = vmatprep.mubr.bf16.mxu0 %v5281_v54  ;;  %3683 = vmatprep.mubr.bf16.mxu1 %v5281_v54  ;;  %v4567_v0 = vcombine.low %v706_v51, %v710_v52 }
 0x122   : > { %3490 = vmatpush1.bf16.msra.mxu0 %v4503_v57  ;;  %3654 = vmatpush1.bf16.msra.mxu1 %v4505_v58  ;;  %v4561_v57 = vcombine.low %v699_v45, %v703_v46  ;;  %v4568_v58 = vcombine.high %v706_v51, %v710_v52  ;;  %v759_v45 = vld [vmem:[%s4974_s6 + $0xfe8] sm:$0xff]  ;;  %v256_v51 = vld [vmem:[%s4974_s6 + $0x30] sm:$0xff]  ;;  %v253_v52 = vld [vmem:[%s4974_s6 + $0x18] sm:$0xff] }
 0x123   : > { %3491 = vmatprep.subr.bf16.mxu0 %v4512_v59  ;;  %3655 = vmatprep.subr.bf16.mxu1 %v4514_v60  ;;  %v4570_v59 = vcombine.high %v707_v53, %v711_v55  ;;  %v714_v60 = vld [vmem:[%s4974_s6 + $0xe80] sm:$0xff] }
 0x124   : > { %v4575_v9 = vcombine.low %v714_v60, %v718_v61 }
 0x126   : > { %3492 = vmatpush1.bf16.msra.mxu0 %v4511_v2  ;;  %3656 = vmatpush1.bf16.msra.mxu1 %v4513_v3  ;;  %v4569_v2 = vcombine.low %v707_v53, %v711_v55  ;;  %v4576_v3 = vcombine.high %v714_v60, %v718_v61  ;;  %v257_v53 = vld [vmem:[%s4974_s6 + $0x38] sm:$0xff]  ;;  %v260_v60 = vld [vmem:[%s4974_s6 + $0x50] sm:$0xff] }
 0x127   : > { %3493 = vmatprep.subr.bf16.mxu0 %v4520_v4  ;;  %3657 = vmatprep.subr.bf16.mxu1 %v4522_v5  ;;  %v4578_v4 = vcombine.high %v715_v62, %v719_v63  ;;  %v722_v5 = vld [vmem:[%s4974_s6 + $0xec0] sm:$0xff]  ;;  %v264_v61 = vld [vmem:[%s4974_s6 + $0x70] sm:$0xff] }
 0x128   : > { %v4583_v17 = vcombine.low %v722_v5, %v726_v6 }
 0x12a   : > { %3494 = vmatpush1.bf16.msra.mxu0 %v4519_v10  ;;  %3658 = vmatpush1.bf16.msra.mxu1 %v4521_v11  ;;  %v4577_v10 = vcombine.low %v715_v62, %v719_v63  ;;  %v4584_v11 = vcombine.high %v722_v5, %v726_v6  ;;  %v261_v63 = vld [vmem:[%s4974_s6 + $0x58] sm:$0xff]  ;;  %v268_v6 = vld [vmem:[%s4974_s6 + $0x90] sm:$0xff] }
 0x12b   : > { %3495 = vmatprep.subr.bf16.mxu0 %v4528_v12  ;;  %3659 = vmatprep.subr.bf16.mxu1 %v4530_v13  ;;  %v4586_v12 = vcombine.high %v723_v7, %v727_v8  ;;  %v730_v13 = vld [vmem:[%s4974_s6 + $0xf00] sm:$0xff] }
 0x12c   : > { %v4591_v26 = vcombine.low %v730_v13, %v734_v14 }
 0x12e   : > { %3496 = vmatpush1.bf16.msra.mxu0 %v4527_v18  ;;  %3660 = vmatpush1.bf16.msra.mxu1 %v4529_v19  ;;  %v4585_v18 = vcombine.low %v723_v7, %v727_v8  ;;  %v4592_v19 = vcombine.high %v730_v13, %v734_v14  ;;  %v272_v7 = vld [vmem:[%s4974_s6 + $0xb0] sm:$0xff]  ;;  %v269_v8 = vld [vmem:[%s4974_s6 + $0x98] sm:$0xff] }
 0x12f   : > { %3497 = vmatprep.subr.bf16.mxu0 %v4536_v21  ;;  %3661 = vmatprep.subr.bf16.mxu1 %v4538_v22  ;;  %v4594_v21 = vcombine.high %v731_v15, %v735_v16  ;;  %v738_v22 = vld [vmem:[%s4974_s6 + $0xf40] sm:$0xff]  ;;  %v276_v14 = vld [vmem:[%s4974_s6 + $0xd0] sm:$0xff] }
 0x130   : > { %v4599_v36 = vcombine.low %v738_v22, %v742_v23 }
 0x132   : > { %3498 = vmatpush1.bf16.msra.mxu0 %v4535_v27  ;;  %3662 = vmatpush1.bf16.msra.mxu1 %v4537_v28  ;;  %v4593_v27 = vcombine.low %v731_v15, %v735_v16  ;;  %v4600_v28 = vcombine.high %v738_v22, %v742_v23  ;;  %v280_v15 = vld [vmem:[%s4974_s6 + $0xf0] sm:$0xff]  ;;  %v277_v16 = vld [vmem:[%s4974_s6 + $0xd8] sm:$0xff] }
 0x133   : > { %3499 = vmatprep.subr.bf16.mxu0 %v4544_v31  ;;  %3663 = vmatprep.subr.bf16.mxu1 %v4546_v32  ;;  %v4602_v31 = vcombine.high %v739_v24, %v743_v25  ;;  %v746_v32 = vld [vmem:[%s4974_s6 + $0xf80] sm:$0xff]  ;;  %v284_v23 = vld [vmem:[%s4974_s6 + $0x110] sm:$0xff] }
 0x134   : > { %v4607_v46 = vcombine.low %v746_v32, %v750_v33 }
 0x136   : > { %3500 = vmatpush1.bf16.msra.mxu0 %v4543_v37  ;;  %3664 = vmatpush1.bf16.msra.mxu1 %v4545_v38  ;;  %v4601_v37 = vcombine.low %v739_v24, %v743_v25  ;;  %v4608_v38 = vcombine.high %v746_v32, %v750_v33  ;;  %v288_v24 = vld [vmem:[%s4974_s6 + $0x130] sm:$0xff]  ;;  %v285_v25 = vld [vmem:[%s4974_s6 + $0x118] sm:$0xff] }
 0x137   : > { %3501 = vmatprep.subr.bf16.mxu0 %v4552_v39  ;;  %3665 = vmatprep.subr.bf16.mxu1 %v4554_v41  ;;  %v4610_v39 = vcombine.high %v747_v34, %v751_v35  ;;  %v754_v41 = vld [vmem:[%s4974_s6 + $0xfc0] sm:$0xff]  ;;  %v292_v32 = vld [vmem:[%s4974_s6 + $0x150] sm:$0xff] }
 0x138   : > { %v4615_v55 = vcombine.low %v754_v41, %v758_v42  ;;  %v296_v33 = vld [vmem:[%s4974_s6 + $0x170] sm:$0xff] }
 0x13a   : > { %3502 = vmatpush1.bf16.msra.mxu0 %v4551_v47  ;;  %3666 = vmatpush1.bf16.msra.mxu1 %v4553_v48  ;;  %v4609_v47 = vcombine.low %v747_v34, %v751_v35  ;;  %v4616_v48 = vcombine.high %v754_v41, %v758_v42  ;;  %v293_v34 = vld [vmem:[%s4974_s6 + $0x158] sm:$0xff]  ;;  %v300_v41 = vld [vmem:[%s4974_s6 + $0x190] sm:$0xff] }
 0x13b   : > { %3503 = vmatprep.subr.bf16.mxu0 %v4560_v49  ;;  %3667 = vmatprep.subr.bf16.mxu1 %v4562_v50  ;;  %v4618_v49 = vcombine.high %v755_v43, %v759_v45  ;;  %v252_v50 = vld [vmem:[%s4974_s6 + $0x10] sm:$0xff]  ;;  %v297_v35 = vld [vmem:[%s4974_s6 + $0x178] sm:$0xff] }
 0x13c   : > { %v304_v42 = vld [vmem:[%s4974_s6 + $0x1b0] sm:$0xff] }
 0x13e   : > { %3504 = vmatpush1.bf16.msra.mxu0 %v4559_v56  ;;  %3668 = vmatpush1.bf16.msra.mxu1 %v4561_v57  ;;  %v240_v56 = vld [vmem:[%s5681_s3 + $0x30] sm:$0xff]  ;;  %v4617_v57 = vcombine.low %v755_v43, %v759_v45  ;;  %v301_v43 = vld [vmem:[%s4974_s6 + $0x198] sm:$0xff] }
 0x13f   : > { %3505 = vmatprep.subr.bf16.mxu0 %v4568_v58  ;;  %3669 = vmatprep.subr.bf16.mxu1 %v4570_v59  ;;  %v4116_v58 = vcombine.high %v252_v50, %v256_v51  ;;  %v4118_v59 = vcombine.high %v253_v52, %v257_v53  ;;  %v5350_v62 = vpack.c.bf16 %v240_v56, %v240_v56  ;;  %v305_v45 = vld [vmem:[%s4974_s6 + $0x1b8] sm:$0xff] }
 0x140   : > { %v4165_v56 = vcombine.low %v301_v43, %v305_v45 }
 0x142   : > { %3506 = vmatpush1.bf16.msra.mxu0 %v4567_v0  ;;  %3670 = vmatpush1.bf16.msra.mxu1 %v4569_v2  ;;  %v265_v0 = vld [vmem:[%s4974_s6 + $0x78] sm:$0xff]  ;;  %v4115_v2 = vcombine.low %v252_v50, %v256_v51  ;;  %v308_v50 = vld [vmem:[%s4974_s6 + $0x1d0] sm:$0xff] }
 0x143   : > { %3507 = vmatprep.subr.bf16.mxu0 %v4576_v3  ;;  %3671 = vmatprep.subr.bf16.mxu1 %v4578_v4  ;;  %v4117_v3 = vcombine.low %v253_v52, %v257_v53  ;;  %v4124_v4 = vcombine.high %v260_v60, %v264_v61  ;;  %v4126_v5 = vcombine.high %v261_v63, %v265_v0  ;;  %v312_v51 = vld [vmem:[%s4974_s6 + $0x1f0] sm:$0xff]  ;;  %v309_v52 = vld [vmem:[%s4974_s6 + $0x1d8] sm:$0xff] }
 0x144   : > { %v313_v53 = vld [vmem:[%s4974_s6 + $0x1f8] sm:$0xff] }
 0x146   : > { %3508 = vmatpush1.bf16.msra.mxu0 %v4575_v9  ;;  %3672 = vmatpush1.bf16.msra.mxu1 %v4577_v10  ;;  %v273_v9 = vld [vmem:[%s4974_s6 + $0xb8] sm:$0xff]  ;;  %v4123_v10 = vcombine.low %v260_v60, %v264_v61  ;;  %v320_v60 = vld [vmem:[%s4974_s6 + $0x230] sm:$0xff] }
 0x147   : > { %3509 = vmatprep.subr.bf16.mxu0 %v4584_v11  ;;  %3673 = vmatprep.subr.bf16.mxu1 %v4586_v12  ;;  %v4125_v11 = vcombine.low %v261_v63, %v265_v0  ;;  %v4132_v12 = vcombine.high %v268_v6, %v272_v7  ;;  %v4134_v13 = vcombine.high %v269_v8, %v273_v9  ;;  %v317_v61 = vld [vmem:[%s4974_s6 + $0x218] sm:$0xff] }
 0x148   : > { %v321_v63 = vld [vmem:[%s4974_s6 + $0x238] sm:$0xff]  ;;  %v4171_v0 = vcombine.low %v308_v50, %v312_v51 }
 0x14a   : > { %3510 = vmatpush1.bf16.msra.mxu0 %v4583_v17  ;;  %3674 = vmatpush1.bf16.msra.mxu1 %v4585_v18  ;;  %v281_v17 = vld [vmem:[%s4974_s6 + $0xf8] sm:$0xff]  ;;  %v4131_v18 = vcombine.low %v268_v6, %v272_v7  ;;  %v328_v6 = vld [vmem:[%s4974_s6 + $0x270] sm:$0xff] }
 0x14b   : > { %3511 = vmatprep.subr.bf16.mxu0 %v4592_v19  ;;  %3675 = vmatprep.subr.bf16.mxu1 %v4594_v21  ;;  %v4133_v19 = vcombine.low %v269_v8, %v273_v9  ;;  %v4140_v21 = vcombine.high %v276_v14, %v280_v15  ;;  %v4142_v22 = vcombine.high %v277_v16, %v281_v17  ;;  %v325_v7 = vld [vmem:[%s4974_s6 + $0x258] sm:$0xff] }
 0x14c   : > { %v329_v8 = vld [vmem:[%s4974_s6 + $0x278] sm:$0xff] }
 0x14e   : > { %3512 = vmatpush1.bf16.msra.mxu0 %v4591_v26  ;;  %3676 = vmatpush1.bf16.msra.mxu1 %v4593_v27  ;;  %v289_v26 = vld [vmem:[%s4974_s6 + $0x138] sm:$0xff]  ;;  %v4139_v27 = vcombine.low %v276_v14, %v280_v15  ;;  %v336_v14 = vld [vmem:[%s4974_s6 + $0x2b0] sm:$0xff] }
 0x14f   : > { %3513 = vmatprep.subr.bf16.mxu0 %v4600_v28  ;;  %3677 = vmatprep.subr.bf16.mxu1 %v4602_v31  ;;  %v4148_v28 = vcombine.high %v284_v23, %v288_v24  ;;  %v4150_v31 = vcombine.high %v285_v25, %v289_v26  ;;  %v333_v15 = vld [vmem:[%s4974_s6 + $0x298] sm:$0xff] }
 0x152   : > { %3514 = vmatpush1.bf16.msra.mxu0 %v4599_v36  ;;  %3678 = vmatpush1.bf16.msra.mxu1 %v4601_v37  ;;  %v4147_v36 = vcombine.low %v284_v23, %v288_v24  ;;  %v4149_v37 = vcombine.low %v285_v25, %v289_v26  ;;  %v344_v23 = vld [vmem:[%s4974_s6 + $0x2f0] sm:$0xff]  ;;  %v341_v24 = vld [vmem:[%s4974_s6 + $0x2d8] sm:$0xff] }
 0x153   : > { %3515 = vmatprep.subr.bf16.mxu0 %v4608_v38  ;;  %3679 = vmatprep.subr.bf16.mxu1 %v4610_v39  ;;  %v4156_v38 = vcombine.high %v292_v32, %v296_v33  ;;  %v4158_v39 = vcombine.high %v293_v34, %v297_v35  ;;  %v345_v25 = vld [vmem:[%s4974_s6 + $0x2f8] sm:$0xff] }
 0x156   : > { %3516 = vmatpush1.bf16.msra.mxu0 %v4607_v46  ;;  %3680 = vmatpush1.bf16.msra.mxu1 %v4609_v47  ;;  %v4155_v46 = vcombine.low %v292_v32, %v296_v33  ;;  %v4157_v47 = vcombine.low %v293_v34, %v297_v35  ;;  %v352_v32 = vld [vmem:[%s4974_s6 + $0x330] sm:$0xff]  ;;  %v349_v33 = vld [vmem:[%s4974_s6 + $0x318] sm:$0xff] }
 0x157   : > { %3517 = vmatprep.subr.bf16.mxu0 %v4616_v48  ;;  %3681 = vmatprep.subr.bf16.mxu1 %v4618_v49  ;;  %v4164_v48 = vcombine.high %v300_v41, %v304_v42  ;;  %v4166_v49 = vcombine.high %v301_v43, %v305_v45  ;;  %v353_v34 = vld [vmem:[%s4974_s6 + $0x338] sm:$0xff] }
 0x158   : > { %v361_v43 = vld [vmem:[%s4974_s6 + $0x378] sm:$0xff] }
 0x15a   : > { %3518 = vmatpush1.bf16.msra.mxu0 %v4615_v55  ;;  %3682 = vmatpush1.bf16.msra.mxu1 %v4617_v57  ;;  %v4163_v55 = vcombine.low %v300_v41, %v304_v42  ;;  %v4172_v57 = vcombine.high %v308_v50, %v312_v51  ;;  %v360_v41 = vld [vmem:[%s4974_s6 + $0x370] sm:$0xff]  ;;  %v357_v42 = vld [vmem:[%s4974_s6 + $0x358] sm:$0xff] }
 0x15b   : > { %3692 = vmatprep.subr.bf16.mxu0 %v4116_v58  ;;  %3856 = vmatprep.subr.bf16.mxu1 %v4118_v59  ;;  %v4174_v58 = vcombine.high %v309_v52, %v313_v53  ;;  %v316_v59 = vld [vmem:[%s4974_s6 + $0x210] sm:$0xff]  ;;  %v365_v51 = vld [vmem:[%s4974_s6 + $0x398] sm:$0xff] }
 0x15c   : > { %v4179_v9 = vcombine.low %v316_v59, %v320_v60  ;;  %v368_v50 = vld [vmem:[%s4974_s6 + $0x3b0] sm:$0xff] }
 0x15d   : > { %3520 = vmatmul.mubr.bf16.vlgmr.msra.gmra.mrb[0].mxu0 %v5350_v62  ;;  %3684 = vmatmul.mubr.bf16.vlgmr.msra.gmra.mrb[0].mxu1 %v5350_v62 }
 0x15e   : > { %3693 = vmatpush1.bf16.msra.mxu0 %v4115_v2  ;;  %3857 = vmatpush1.bf16.msra.mxu1 %v4117_v3  ;;  %v4173_v2 = vcombine.low %v309_v52, %v313_v53  ;;  %v4180_v3 = vcombine.high %v316_v59, %v320_v60  ;;  %v369_v52 = vld [vmem:[%s4974_s6 + $0x3b8] sm:$0xff]  ;;  %v376_v59 = vld [vmem:[%s4974_s6 + $0x3f0] sm:$0xff] }
 0x15f   : > { %3694 = vmatprep.subr.bf16.mxu0 %v4124_v4  ;;  %3858 = vmatprep.subr.bf16.mxu1 %v4126_v5  ;;  %v4182_v4 = vcombine.high %v317_v61, %v321_v63  ;;  %v324_v5 = vld [vmem:[%s4974_s6 + $0x250] sm:$0xff]  ;;  %v373_v60 = vld [vmem:[%s4974_s6 + $0x3d8] sm:$0xff] }
 0x160   : > { %3724 = vmatprep.mubr.bf16.mxu0 %v5069_v1  ;;  %3888 = vmatprep.mubr.bf16.mxu1 %v5069_v1  ;;  %v4141_v1 = vcombine.low %v277_v16, %v281_v17  ;;  %v337_v16 = vld [vmem:[%s4974_s6 + $0x2b8] sm:$0xff]  ;;  %v4187_v17 = vcombine.low %v324_v5, %v328_v6 }
 0x162   : > { %3695 = vmatpush1.bf16.msra.mxu0 %v4123_v10  ;;  %3859 = vmatpush1.bf16.msra.mxu1 %v4125_v11  ;;  %v4181_v10 = vcombine.low %v317_v61, %v321_v63  ;;  %v4188_v11 = vcombine.high %v324_v5, %v328_v6  ;;  %v377_v61 = vld [vmem:[%s4974_s6 + $0x3f8] sm:$0xff]  ;;  %v384_v5 = vld [vmem:[%s4974_s6 + $0x430] sm:$0xff] }
 0x163   : > { %3696 = vmatprep.subr.bf16.mxu0 %v4132_v12  ;;  %3860 = vmatprep.subr.bf16.mxu1 %v4134_v13  ;;  %v4190_v12 = vcombine.high %v325_v7, %v329_v8  ;;  %v332_v13 = vld [vmem:[%s4974_s6 + $0x290] sm:$0xff]  ;;  %v381_v6 = vld [vmem:[%s4974_s6 + $0x418] sm:$0xff] }
 0x164   : > { %v4195_v26 = vcombine.low %v332_v13, %v336_v14 }
 0x166   : > { %3697 = vmatpush1.bf16.msra.mxu0 %v4131_v18  ;;  %3861 = vmatpush1.bf16.msra.mxu1 %v4133_v19  ;;  %v4189_v18 = vcombine.low %v325_v7, %v329_v8  ;;  %v4196_v19 = vcombine.high %v332_v13, %v336_v14  ;;  %v385_v7 = vld [vmem:[%s4974_s6 + $0x438] sm:$0xff]  ;;  %v392_v13 = vld [vmem:[%s4974_s6 + $0x470] sm:$0xff] }
 0x167   : > { %3698 = vmatprep.subr.bf16.mxu0 %v4140_v21  ;;  %3862 = vmatprep.subr.bf16.mxu1 %v4142_v22  ;;  %v4198_v21 = vcombine.high %v333_v15, %v337_v16  ;;  %v340_v22 = vld [vmem:[%s4974_s6 + $0x2d0] sm:$0xff]  ;;  %v389_v14 = vld [vmem:[%s4974_s6 + $0x458] sm:$0xff] }
 0x168   : > { %v4203_v35 = vcombine.low %v340_v22, %v344_v23 }
 0x16a   : > { %3699 = vmatpush1.bf16.msra.mxu0 %v4139_v27  ;;  %3863 = vmatpush1.bf16.msra.mxu1 %v4141_v1  ;;  %v4197_v27 = vcombine.low %v333_v15, %v337_v16  ;;  %v4204_v1 = vcombine.high %v340_v22, %v344_v23  ;;  %v393_v15 = vld [vmem:[%s4974_s6 + $0x478] sm:$0xff]  ;;  %v400_v22 = vld [vmem:[%s4974_s6 + $0x4b0] sm:$0xff] }
 0x16b   : > { %3700 = vmatprep.subr.bf16.mxu0 %v4148_v28  ;;  %3864 = vmatprep.subr.bf16.mxu1 %v4150_v31  ;;  %v4206_v28 = vcombine.high %v341_v24, %v345_v25  ;;  %v348_v31 = vld [vmem:[%s4974_s6 + $0x310] sm:$0xff]  ;;  %v397_v23 = vld [vmem:[%s4974_s6 + $0x498] sm:$0xff] }
 0x16c   : > { %v4211_v45 = vcombine.low %v348_v31, %v352_v32 }
 0x16e   : > { %3701 = vmatpush1.bf16.msra.mxu0 %v4147_v36  ;;  %3865 = vmatpush1.bf16.msra.mxu1 %v4149_v37  ;;  %v4205_v36 = vcombine.low %v341_v24, %v345_v25  ;;  %v4212_v37 = vcombine.high %v348_v31, %v352_v32  ;;  %v401_v24 = vld [vmem:[%s4974_s6 + $0x4b8] sm:$0xff]  ;;  %v408_v31 = vld [vmem:[%s4974_s6 + $0x4f0] sm:$0xff] }
 0x16f   : > { %3702 = vmatprep.subr.bf16.mxu0 %v4156_v38  ;;  %3866 = vmatprep.subr.bf16.mxu1 %v4158_v39  ;;  %v4214_v38 = vcombine.high %v349_v33, %v353_v34  ;;  %v356_v39 = vld [vmem:[%s4974_s6 + $0x350] sm:$0xff]  ;;  %v405_v32 = vld [vmem:[%s4974_s6 + $0x4d8] sm:$0xff] }
 0x170   : > { %v4219_v53 = vcombine.low %v356_v39, %v360_v41 }
 0x172   : > { %3703 = vmatpush1.bf16.msra.mxu0 %v4155_v46  ;;  %3867 = vmatpush1.bf16.msra.mxu1 %v4157_v47  ;;  %v4213_v46 = vcombine.low %v349_v33, %v353_v34  ;;  %v4220_v47 = vcombine.high %v356_v39, %v360_v41  ;;  %v409_v33 = vld [vmem:[%s4974_s6 + $0x4f8] sm:$0xff]  ;;  %v4261_v34 = vcombine.low %v397_v23, %v401_v24 }
 0x173   : > { %3704 = vmatprep.subr.bf16.mxu0 %v4164_v48  ;;  %3868 = vmatprep.subr.bf16.mxu1 %v4166_v49  ;;  %v4222_v48 = vcombine.high %v357_v42, %v361_v43  ;;  %v364_v49 = vld [vmem:[%s4974_s6 + $0x390] sm:$0xff]  ;;  %v413_v39 = vld [vmem:[%s4974_s6 + $0x518] sm:$0xff] }
 0x174   : > { %v4227_v63 = vcombine.low %v364_v49, %v368_v50  ;;  %v417_v41 = vld [vmem:[%s4974_s6 + $0x538] sm:$0xff] }
 0x176   : > { %3705 = vmatpush1.bf16.msra.mxu0 %v4163_v55  ;;  %3869 = vmatpush1.bf16.msra.mxu1 %v4165_v56  ;;  %v4221_v55 = vcombine.low %v357_v42, %v361_v43  ;;  %v4228_v56 = vcombine.high %v364_v49, %v368_v50  ;;  %v425_v49 = vld [vmem:[%s4974_s6 + $0x578] sm:$0xff] }
 0x177   : > { %3706 = vmatprep.subr.bf16.mxu0 %v4172_v57  ;;  %3870 = vmatprep.subr.bf16.mxu1 %v4174_v58  ;;  %v4230_v57 = vcombine.high %v365_v51, %v369_v52  ;;  %v372_v58 = vld [vmem:[%s4974_s6 + $0x3d0] sm:$0xff] }
 0x178   : > { %v4235_v8 = vcombine.low %v372_v58, %v376_v59 }
 0x17a   : > { %3707 = vmatpush1.bf16.msra.mxu0 %v4171_v0  ;;  %3871 = vmatpush1.bf16.msra.mxu1 %v4173_v2  ;;  %v4229_v0 = vcombine.low %v365_v51, %v369_v52  ;;  %v4236_v2 = vcombine.high %v372_v58, %v376_v59  ;;  %v4277_v51 = vcombine.low %v413_v39, %v417_v41  ;;  %v433_v58 = vld [vmem:[%s4974_s6 + $0x5b8] sm:$0xff] }
 0x17b   : > { %3708 = vmatprep.subr.bf16.mxu0 %v4180_v3  ;;  %3872 = vmatprep.subr.bf16.mxu1 %v4182_v4  ;;  %v4238_v3 = vcombine.high %v373_v60, %v377_v61  ;;  %v380_v4 = vld [vmem:[%s4974_s6 + $0x410] sm:$0xff] }
 0x17c   : > { %v4243_v16 = vcombine.low %v380_v4, %v384_v5 }
 0x17e   : > { %3709 = vmatpush1.bf16.msra.mxu0 %v4179_v9  ;;  %3873 = vmatpush1.bf16.msra.mxu1 %v4181_v10  ;;  %v4237_v9 = vcombine.low %v373_v60, %v377_v61  ;;  %v4244_v10 = vcombine.high %v380_v4, %v384_v5  ;;  %v441_v4 = vld [vmem:[%s4974_s6 + $0x5f8] sm:$0xff] }
 0x17f   : > { %3710 = vmatprep.subr.bf16.mxu0 %v4188_v11  ;;  %3874 = vmatprep.subr.bf16.mxu1 %v4190_v12  ;;  %v4246_v11 = vcombine.high %v381_v6, %v385_v7  ;;  %v388_v12 = vld [vmem:[%s4974_s6 + $0x450] sm:$0xff] }
 0x180   : > { %v4251_v25 = vcombine.low %v388_v12, %v392_v13 }
 0x182   : > { %3711 = vmatpush1.bf16.msra.mxu0 %v4187_v17  ;;  %3875 = vmatpush1.bf16.msra.mxu1 %v4189_v18  ;;  %v4245_v17 = vcombine.low %v381_v6, %v385_v7  ;;  %v4252_v18 = vcombine.high %v388_v12, %v392_v13  ;;  %v449_v12 = vld [vmem:[%s4974_s6 + $0x638] sm:$0xff] }
 0x183   : > { %3712 = vmatprep.subr.bf16.mxu0 %v4196_v19  ;;  %3876 = vmatprep.subr.bf16.mxu1 %v4198_v21  ;;  %v4254_v19 = vcombine.high %v389_v14, %v393_v15  ;;  %v396_v21 = vld [vmem:[%s4974_s6 + $0x490] sm:$0xff] }
 0x186   : > { %3713 = vmatpush1.bf16.msra.mxu0 %v4195_v26  ;;  %3877 = vmatpush1.bf16.msra.mxu1 %v4197_v27  ;;  %v4253_v26 = vcombine.low %v389_v14, %v393_v15  ;;  %v4260_v27 = vcombine.high %v396_v21, %v400_v22 }
 0x187   : > { %3714 = vmatprep.subr.bf16.mxu0 %v4204_v1  ;;  %3878 = vmatprep.subr.bf16.mxu1 %v4206_v28  ;;  %v4262_v1 = vcombine.high %v397_v23, %v401_v24  ;;  %v404_v28 = vld [vmem:[%s4974_s6 + $0x4d0] sm:$0xff] }
 0x188   : > { %v4267_v42 = vcombine.low %v404_v28, %v408_v31 }
 0x18a   : > { %3715 = vmatpush1.bf16.msra.mxu0 %v4203_v35  ;;  %3879 = vmatpush1.bf16.msra.mxu1 %v4205_v36  ;;  %v4268_v35 = vcombine.high %v404_v28, %v408_v31  ;;  %v4270_v36 = vcombine.high %v405_v32, %v409_v33  ;;  %v465_v28 = vld [vmem:[%s4974_s6 + $0x6b8] sm:$0xff] }
 0x18b   : > { %3716 = vmatprep.subr.bf16.mxu0 %v4212_v37  ;;  %3880 = vmatprep.subr.bf16.mxu1 %v4214_v38  ;;  %v412_v37 = vld [vmem:[%s4974_s6 + $0x510] sm:$0xff] }
 0x18c   : > { %v416_v38 = vld [vmem:[%s4974_s6 + $0x530] sm:$0xff] }
 0x18d   : > { %v4276_v43 = vcombine.high %v412_v37, %v416_v38  ;;  %v4275_v50 = vcombine.low %v412_v37, %v416_v38  ;;  %v473_v37 = vld [vmem:[%s4974_s6 + $0x6f8] sm:$0xff] }
 0x18e   : > { %3717 = vmatpush1.bf16.msra.mxu0 %v4211_v45  ;;  %3881 = vmatpush1.bf16.msra.mxu1 %v4213_v46  ;;  %v4278_v45 = vcombine.high %v413_v39, %v417_v41  ;;  %v420_v46 = vld [vmem:[%s4974_s6 + $0x550] sm:$0xff] }
 0x18f   : > { %3718 = vmatprep.subr.bf16.mxu0 %v4220_v47  ;;  %3882 = vmatprep.subr.bf16.mxu1 %v4222_v48  ;;  %v424_v47 = vld [vmem:[%s4974_s6 + $0x570] sm:$0xff]  ;;  %v421_v48 = vld [vmem:[%s4974_s6 + $0x558] sm:$0xff] }
 0x190   : > { %v4284_v52 = vcombine.high %v420_v46, %v424_v47  ;;  %v4283_v59 = vcombine.low %v420_v46, %v424_v47  ;;  %v4285_v60 = vcombine.low %v421_v48, %v425_v49  ;;  %v481_v46 = vld [vmem:[%s4974_s6 + $0x738] sm:$0xff] }
 0x192   : > { %3719 = vmatpush1.bf16.msra.mxu0 %v4219_v53  ;;  %3883 = vmatpush1.bf16.msra.mxu1 %v4221_v55  ;;  %v4286_v53 = vcombine.high %v421_v48, %v425_v49  ;;  %v428_v55 = vld [vmem:[%s4974_s6 + $0x590] sm:$0xff] }
 0x193   : > { %3720 = vmatprep.subr.bf16.mxu0 %v4228_v56  ;;  %3884 = vmatprep.subr.bf16.mxu1 %v4230_v57  ;;  %v432_v56 = vld [vmem:[%s4974_s6 + $0x5b0] sm:$0xff]  ;;  %v429_v57 = vld [vmem:[%s4974_s6 + $0x598] sm:$0xff] }
 0x194   : > { %v4292_v61 = vcombine.high %v428_v55, %v432_v56  ;;  %v4291_v5 = vcombine.low %v428_v55, %v432_v56  ;;  %v4293_v6 = vcombine.low %v429_v57, %v433_v58  ;;  %v489_v55 = vld [vmem:[%s4974_s6 + $0x778] sm:$0xff] }
 0x196   : > { %3721 = vmatpush1.bf16.msra.mxu0 %v4227_v63  ;;  %3885 = vmatpush1.bf16.msra.mxu1 %v4229_v0  ;;  %v4294_v63 = vcombine.high %v429_v57, %v433_v58  ;;  %v436_v0 = vld [vmem:[%s4974_s6 + $0x5d0] sm:$0xff] }
 0x197   : > { %3722 = vmatprep.subr.bf16.mxu0 %v4236_v2  ;;  %3886 = vmatprep.subr.bf16.mxu1 %v4238_v3  ;;  %v440_v2 = vld [vmem:[%s4974_s6 + $0x5f0] sm:$0xff]  ;;  %v437_v3 = vld [vmem:[%s4974_s6 + $0x5d8] sm:$0xff] }
 0x198   : > { %v4300_v7 = vcombine.high %v436_v0, %v440_v2  ;;  %v4299_v13 = vcombine.low %v436_v0, %v440_v2  ;;  %v4301_v14 = vcombine.low %v437_v3, %v441_v4  ;;  %v497_v0 = vld [vmem:[%s4974_s6 + $0x7b8] sm:$0xff] }
 0x19a   : > { %3723 = vmatpush1.bf16.msra.mxu0 %v4235_v8  ;;  %3887 = vmatpush1.bf16.msra.mxu1 %v4237_v9  ;;  %v4302_v8 = vcombine.high %v437_v3, %v441_v4  ;;  %v444_v9 = vld [vmem:[%s4974_s6 + $0x610] sm:$0xff] }
 0x19b   : > { %3733 = vmatprep.subr.bf16.mxu0 %v4244_v10  ;;  %3897 = vmatprep.subr.bf16.mxu1 %v4246_v11  ;;  %v448_v10 = vld [vmem:[%s4974_s6 + $0x630] sm:$0xff]  ;;  %v445_v11 = vld [vmem:[%s4974_s6 + $0x618] sm:$0xff] }
 0x19c   : > { %v4308_v15 = vcombine.high %v444_v9, %v448_v10  ;;  %v4309_v23 = vcombine.low %v445_v11, %v449_v12 }
 0x19d   : > { %3725 = vmatmul.mubr.bf16.vlgmr.msra.gmra.mrb[4].mxu0 %v5116_v20  ;;  %3889 = vmatmul.mubr.bf16.vlgmr.msra.gmra.mrb[4].mxu1 %v5116_v20  ;;  %v4259_v20 = vcombine.low %v396_v21, %v400_v22  ;;  %v457_v21 = vld [vmem:[%s4974_s6 + $0x678] sm:$0xff]  ;;  %v4307_v22 = vcombine.low %v444_v9, %v448_v10 }
 0x19e   : > { %3734 = vmatpush1.bf16.msra.mxu0 %v4243_v16  ;;  %3898 = vmatpush1.bf16.msra.mxu1 %v4245_v17  ;;  %v4310_v16 = vcombine.high %v445_v11, %v449_v12  ;;  %v452_v17 = vld [vmem:[%s4974_s6 + $0x650] sm:$0xff]  ;;  %v505_v9 = vld [vmem:[%s4974_s6 + $0x7f8] sm:$0xff] }
 0x19f   : > { %3735 = vmatprep.subr.bf16.mxu0 %v4252_v18  ;;  %3899 = vmatprep.subr.bf16.mxu1 %v4254_v19  ;;  %v456_v18 = vld [vmem:[%s4974_s6 + $0x670] sm:$0xff]  ;;  %v453_v19 = vld [vmem:[%s4974_s6 + $0x658] sm:$0xff] }
 0x1a0   : > { %3765 = vmatprep.mubr.bf16.mxu0 %v5125_v30  ;;  %3929 = vmatprep.mubr.bf16.mxu1 %v5125_v30  ;;  %v4269_v30 = vcombine.low %v405_v32, %v409_v33  ;;  %v4316_v24 = vcombine.high %v452_v17, %v456_v18  ;;  %v4315_v31 = vcombine.low %v452_v17, %v456_v18  ;;  %v513_v17 = vld [vmem:[%s4974_s6 + $0x838] sm:$0xff] }
 0x1a1   : > { %v4317_v32 = vcombine.low %v453_v19, %v457_v21 }
 0x1a2   : > { %3736 = vmatpush1.bf16.msra.mxu0 %v4251_v25  ;;  %3900 = vmatpush1.bf16.msra.mxu1 %v4253_v26  ;;  %v4318_v25 = vcombine.high %v453_v19, %v457_v21  ;;  %v460_v26 = vld [vmem:[%s4974_s6 + $0x690] sm:$0xff] }
 0x1a3   : > { %3737 = vmatprep.subr.bf16.mxu0 %v4260_v27  ;;  %3901 = vmatprep.subr.bf16.mxu1 %v4262_v1  ;;  %v464_v27 = vld [vmem:[%s4974_s6 + $0x6b0] sm:$0xff]  ;;  %v461_v1 = vld [vmem:[%s4974_s6 + $0x698] sm:$0xff] }
 0x1a4   : > { %v4324_v33 = vcombine.high %v460_v26, %v464_v27  ;;  %v4323_v38 = vcombine.low %v460_v26, %v464_v27  ;;  %v4325_v39 = vcombine.low %v461_v1, %v465_v28  ;;  %v521_v26 = vld [vmem:[%s4974_s6 + $0x878] sm:$0xff] }
 0x1a6   : > { %3738 = vmatpush1.bf16.msra.mxu0 %v4259_v20  ;;  %3902 = vmatpush1.bf16.msra.mxu1 %v4261_v34  ;;  %v4326_v20 = vcombine.high %v461_v1, %v465_v28  ;;  %v468_v34 = vld [vmem:[%s4974_s6 + $0x6d0] sm:$0xff] }
 0x1a7   : > { %3739 = vmatprep.subr.bf16.mxu0 %v4268_v35  ;;  %3903 = vmatprep.subr.bf16.mxu1 %v4270_v36  ;;  %v472_v35 = vld [vmem:[%s4974_s6 + $0x6f0] sm:$0xff]  ;;  %v469_v36 = vld [vmem:[%s4974_s6 + $0x6d8] sm:$0xff] }
 0x1a8   : > { %v4332_v41 = vcombine.high %v468_v34, %v472_v35  ;;  %v4331_v47 = vcombine.low %v468_v34, %v472_v35  ;;  %v4333_v48 = vcombine.low %v469_v36, %v473_v37  ;;  %v529_v34 = vld [vmem:[%s4974_s6 + $0x8b8] sm:$0xff] }
 0x1aa   : > { %3740 = vmatpush1.bf16.msra.mxu0 %v4267_v42  ;;  %3904 = vmatpush1.bf16.msra.mxu1 %v4269_v30  ;;  %v4334_v42 = vcombine.high %v469_v36, %v473_v37  ;;  %v476_v30 = vld [vmem:[%s4974_s6 + $0x710] sm:$0xff] }
 0x1ab   : > { %3741 = vmatprep.subr.bf16.mxu0 %v4276_v43  ;;  %3905 = vmatprep.subr.bf16.mxu1 %v4278_v45  ;;  %v480_v43 = vld [vmem:[%s4974_s6 + $0x730] sm:$0xff]  ;;  %v477_v45 = vld [vmem:[%s4974_s6 + $0x718] sm:$0xff] }
 0x1ac   : > { %v4340_v49 = vcombine.high %v476_v30, %v480_v43  ;;  %v4339_v56 = vcombine.low %v476_v30, %v480_v43  ;;  %v4341_v57 = vcombine.low %v477_v45, %v481_v46  ;;  %v537_v30 = vld [vmem:[%s4974_s6 + $0x8f8] sm:$0xff] }
 0x1ae   : > { %3742 = vmatpush1.bf16.msra.mxu0 %v4275_v50  ;;  %3906 = vmatpush1.bf16.msra.mxu1 %v4277_v51  ;;  %v4342_v50 = vcombine.high %v477_v45, %v481_v46  ;;  %v484_v51 = vld [vmem:[%s4974_s6 + $0x750] sm:$0xff] }
 0x1af   : > { %3743 = vmatprep.subr.bf16.mxu0 %v4284_v52  ;;  %3907 = vmatprep.subr.bf16.mxu1 %v4286_v53  ;;  %v488_v52 = vld [vmem:[%s4974_s6 + $0x770] sm:$0xff]  ;;  %v485_v53 = vld [vmem:[%s4974_s6 + $0x758] sm:$0xff] }
 0x1b0   : > { %v4348_v58 = vcombine.high %v484_v51, %v488_v52  ;;  %v4347_v2 = vcombine.low %v484_v51, %v488_v52  ;;  %v4349_v3 = vcombine.low %v485_v53, %v489_v55 }
 0x1b2   : > { %3744 = vmatpush1.bf16.msra.mxu0 %v4283_v59  ;;  %3908 = vmatpush1.bf16.msra.mxu1 %v4285_v60  ;;  %v4350_v59 = vcombine.high %v485_v53, %v489_v55  ;;  %v492_v60 = vld [vmem:[%s4974_s6 + $0x790] sm:$0xff] }
 0x1b3   : > { %3745 = vmatprep.subr.bf16.mxu0 %v4292_v61  ;;  %3909 = vmatprep.subr.bf16.mxu1 %v4294_v63  ;;  %v496_v61 = vld [vmem:[%s4974_s6 + $0x7b0] sm:$0xff]  ;;  %v493_v63 = vld [vmem:[%s4974_s6 + $0x798] sm:$0xff] }
 0x1b4   : > { %v4356_v4 = vcombine.high %v492_v60, %v496_v61  ;;  %v4355_v10 = vcombine.low %v492_v60, %v496_v61  ;;  %v4357_v11 = vcombine.low %v493_v63, %v497_v0  ;;  %v548_v55 = vld [vmem:[%s4974_s6 + $0x950] sm:$0xff] }
 0x1b6   : > { %3746 = vmatpush1.bf16.msra.mxu0 %v4291_v5  ;;  %3910 = vmatpush1.bf16.msra.mxu1 %v4293_v6  ;;  %v4358_v5 = vcombine.high %v493_v63, %v497_v0  ;;  %v500_v6 = vld [vmem:[%s4974_s6 + $0x7d0] sm:$0xff] }
 0x1b7   : > { %3747 = vmatprep.subr.bf16.mxu0 %v4300_v7  ;;  %3911 = vmatprep.subr.bf16.mxu1 %v4302_v8  ;;  %v504_v7 = vld [vmem:[%s4974_s6 + $0x7f0] sm:$0xff]  ;;  %v501_v8 = vld [vmem:[%s4974_s6 + $0x7d8] sm:$0xff] }
 0x1b8   : > { %v4364_v12 = vcombine.high %v500_v6, %v504_v7  ;;  %v4363_v18 = vcombine.low %v500_v6, %v504_v7  ;;  %v4365_v19 = vcombine.low %v501_v8, %v505_v9  ;;  %v556_v0 = vld [vmem:[%s4974_s6 + $0x990] sm:$0xff] }
 0x1ba   : > { %3748 = vmatpush1.bf16.msra.mxu0 %v4299_v13  ;;  %3912 = vmatpush1.bf16.msra.mxu1 %v4301_v14  ;;  %v4366_v13 = vcombine.high %v501_v8, %v505_v9  ;;  %v508_v14 = vld [vmem:[%s4974_s6 + $0x810] sm:$0xff] }
 0x1bb   : > { %3749 = vmatprep.subr.bf16.mxu0 %v4308_v15  ;;  %3913 = vmatprep.subr.bf16.mxu1 %v4310_v16  ;;  %v512_v15 = vld [vmem:[%s4974_s6 + $0x830] sm:$0xff]  ;;  %v509_v16 = vld [vmem:[%s4974_s6 + $0x818] sm:$0xff] }
 0x1bc   : > { %v4372_v21 = vcombine.high %v508_v14, %v512_v15  ;;  %v4371_v27 = vcombine.low %v508_v14, %v512_v15  ;;  %v4373_v1 = vcombine.low %v509_v16, %v513_v17  ;;  %v564_v9 = vld [vmem:[%s4974_s6 + $0x9d0] sm:$0xff] }
 0x1be   : > { %3750 = vmatpush1.bf16.msra.mxu0 %v4307_v22  ;;  %3914 = vmatpush1.bf16.msra.mxu1 %v4309_v23  ;;  %v4374_v22 = vcombine.high %v509_v16, %v513_v17  ;;  %v516_v23 = vld [vmem:[%s4974_s6 + $0x850] sm:$0xff] }
 0x1bf   : > { %3751 = vmatprep.subr.bf16.mxu0 %v4316_v24  ;;  %3915 = vmatprep.subr.bf16.mxu1 %v4318_v25  ;;  %v520_v24 = vld [vmem:[%s4974_s6 + $0x870] sm:$0xff]  ;;  %v517_v25 = vld [vmem:[%s4974_s6 + $0x858] sm:$0xff] }
 0x1c0   : > { %v4380_v28 = vcombine.high %v516_v23, %v520_v24  ;;  %v4379_v35 = vcombine.low %v516_v23, %v520_v24  ;;  %v4381_v36 = vcombine.low %v517_v25, %v521_v26  ;;  %v572_v17 = vld [vmem:[%s4974_s6 + $0xa10] sm:$0xff] }
 0x1c2   : > { %3752 = vmatpush1.bf16.msra.mxu0 %v4315_v31  ;;  %3916 = vmatpush1.bf16.msra.mxu1 %v4317_v32  ;;  %v4382_v31 = vcombine.high %v517_v25, %v521_v26  ;;  %v524_v32 = vld [vmem:[%s4974_s6 + $0x890] sm:$0xff] }
 0x1c3   : > { %3753 = vmatprep.subr.bf16.mxu0 %v4324_v33  ;;  %3917 = vmatprep.subr.bf16.mxu1 %v4326_v20  ;;  %v528_v33 = vld [vmem:[%s4974_s6 + $0x8b0] sm:$0xff]  ;;  %v525_v20 = vld [vmem:[%s4974_s6 + $0x898] sm:$0xff] }
 0x1c4   : > { %v4388_v37 = vcombine.high %v524_v32, %v528_v33  ;;  %v4389_v43 = vcombine.low %v525_v20, %v529_v34  ;;  %v580_v26 = vld [vmem:[%s4974_s6 + $0xa50] sm:$0xff] }
 0x1c6   : > { %3754 = vmatpush1.bf16.msra.mxu0 %v4323_v38  ;;  %3918 = vmatpush1.bf16.msra.mxu1 %v4325_v39  ;;  %v4390_v38 = vcombine.high %v525_v20, %v529_v34  ;;  %v532_v39 = vld [vmem:[%s4974_s6 + $0x8d0] sm:$0xff] }
 0x1c7   : > { %3755 = vmatprep.subr.bf16.mxu0 %v4332_v41  ;;  %3919 = vmatprep.subr.bf16.mxu1 %v4334_v42  ;;  %v536_v41 = vld [vmem:[%s4974_s6 + $0x8f0] sm:$0xff]  ;;  %v533_v42 = vld [vmem:[%s4974_s6 + $0x8d8] sm:$0xff] }
 0x1c8   : > { %v4396_v45 = vcombine.high %v532_v39, %v536_v41  ;;  %v4398_v46 = vcombine.high %v533_v42, %v537_v30  ;;  %v4395_v51 = vcombine.low %v532_v39, %v536_v41  ;;  %v588_v34 = vld [vmem:[%s4974_s6 + $0xa90] sm:$0xff] }
 0x1ca   : > { %3756 = vmatpush1.bf16.msra.mxu0 %v4331_v47  ;;  %3920 = vmatpush1.bf16.msra.mxu1 %v4333_v48  ;;  %v540_v47 = vld [vmem:[%s4974_s6 + $0x910] sm:$0xff] }
 0x1cb   : > { %3757 = vmatprep.subr.bf16.mxu0 %v4340_v49  ;;  %3921 = vmatprep.subr.bf16.mxu1 %v4342_v50  ;;  %v544_v48 = vld [vmem:[%s4974_s6 + $0x930] sm:$0xff]  ;;  %v541_v49 = vld [vmem:[%s4974_s6 + $0x918] sm:$0xff] }
 0x1cc   : > { %v545_v50 = vld [vmem:[%s4974_s6 + $0x938] sm:$0xff]  ;;  %v4404_v52 = vcombine.high %v540_v47, %v544_v48 }
 0x1cd   : > { %v4406_v53 = vcombine.high %v541_v49, %v545_v50  ;;  %v4405_v60 = vcombine.low %v541_v49, %v545_v50  ;;  %v604_v50 = vld [vmem:[%s4974_s6 + $0xb10] sm:$0xff] }
 0x1ce   : > { %3758 = vmatpush1.bf16.msra.mxu0 %v4339_v56  ;;  %3922 = vmatpush1.bf16.msra.mxu1 %v4341_v57  ;;  %v552_v56 = vld [vmem:[%s4974_s6 + $0x970] sm:$0xff]  ;;  %v549_v57 = vld [vmem:[%s4974_s6 + $0x958] sm:$0xff] }
 0x1cf   : > { %3759 = vmatprep.subr.bf16.mxu0 %v4348_v58  ;;  %3923 = vmatprep.subr.bf16.mxu1 %v4350_v59  ;;  %v553_v58 = vld [vmem:[%s4974_s6 + $0x978] sm:$0xff]  ;;  %v4403_v59 = vcombine.low %v540_v47, %v544_v48  ;;  %v4412_v61 = vcombine.high %v548_v55, %v552_v56 }
 0x1d0   : > { %v4414_v63 = vcombine.high %v549_v57, %v553_v58  ;;  %v4413_v6 = vcombine.low %v549_v57, %v553_v58  ;;  %v612_v58 = vld [vmem:[%s4974_s6 + $0xb50] sm:$0xff] }
 0x1d2   : > { %3760 = vmatpush1.bf16.msra.mxu0 %v4347_v2  ;;  %3924 = vmatpush1.bf16.msra.mxu1 %v4349_v3  ;;  %v560_v2 = vld [vmem:[%s4974_s6 + $0x9b0] sm:$0xff]  ;;  %v557_v3 = vld [vmem:[%s4974_s6 + $0x998] sm:$0xff] }
 0x1d3   : > { %3761 = vmatprep.subr.bf16.mxu0 %v4356_v4  ;;  %3925 = vmatprep.subr.bf16.mxu1 %v4358_v5  ;;  %v561_v4 = vld [vmem:[%s4974_s6 + $0x9b8] sm:$0xff]  ;;  %v4411_v5 = vcombine.low %v548_v55, %v552_v56  ;;  %v4420_v7 = vcombine.high %v556_v0, %v560_v2 }
 0x1d4   : > { %v4422_v8 = vcombine.high %v557_v3, %v561_v4  ;;  %v4421_v14 = vcombine.low %v557_v3, %v561_v4  ;;  %v620_v4 = vld [vmem:[%s4974_s6 + $0xb90] sm:$0xff] }
 0x1d6   : > { %3762 = vmatpush1.bf16.msra.mxu0 %v4355_v10  ;;  %3926 = vmatpush1.bf16.msra.mxu1 %v4357_v11  ;;  %v568_v10 = vld [vmem:[%s4974_s6 + $0x9f0] sm:$0xff]  ;;  %v565_v11 = vld [vmem:[%s4974_s6 + $0x9d8] sm:$0xff] }
 0x1d7   : > { %3763 = vmatprep.subr.bf16.mxu0 %v4364_v12  ;;  %3927 = vmatprep.subr.bf16.mxu1 %v4366_v13  ;;  %v569_v12 = vld [vmem:[%s4974_s6 + $0x9f8] sm:$0xff]  ;;  %v4419_v13 = vcombine.low %v556_v0, %v560_v2  ;;  %v4428_v15 = vcombine.high %v564_v9, %v568_v10 }
 0x1d8   : > { %v4430_v16 = vcombine.high %v565_v11, %v569_v12  ;;  %v4429_v23 = vcombine.low %v565_v11, %v569_v12  ;;  %v628_v12 = vld [vmem:[%s4974_s6 + $0xbd0] sm:$0xff] }
 0x1da   : > { %3764 = vmatpush1.bf16.msra.mxu0 %v4363_v18  ;;  %3928 = vmatpush1.bf16.msra.mxu1 %v4365_v19  ;;  %v576_v18 = vld [vmem:[%s4974_s6 + $0xa30] sm:$0xff]  ;;  %v573_v19 = vld [vmem:[%s4974_s6 + $0xa18] sm:$0xff] }
 0x1db   : > { %3774 = vmatprep.subr.bf16.mxu0 %v4372_v21  ;;  %3938 = vmatprep.subr.bf16.mxu1 %v4374_v22  ;;  %v577_v21 = vld [vmem:[%s4974_s6 + $0xa38] sm:$0xff]  ;;  %v4427_v22 = vcombine.low %v564_v9, %v568_v10  ;;  %v4436_v24 = vcombine.high %v572_v17, %v576_v18 }
 0x1dc   : > { %v4438_v25 = vcombine.high %v573_v19, %v577_v21 }
 0x1dd   : > { %3766 = vmatmul.mubr.bf16.vlgmr.msra.gmra.mrb[4].mxu0 %v5194_v29  ;;  %3930 = vmatmul.mubr.bf16.vlgmr.msra.gmra.mrb[4].mxu1 %v5194_v29  ;;  %v4387_v29 = vcombine.low %v524_v32, %v528_v33  ;;  %v4437_v32 = vcombine.low %v573_v19, %v577_v21  ;;  %v636_v21 = vld [vmem:[%s4974_s6 + $0xc10] sm:$0xff] }
 0x1de   : > { %3775 = vmatpush1.bf16.msra.mxu0 %v4371_v27  ;;  %3939 = vmatpush1.bf16.msra.mxu1 %v4373_v1  ;;  %v584_v27 = vld [vmem:[%s4974_s6 + $0xa70] sm:$0xff]  ;;  %v581_v1 = vld [vmem:[%s4974_s6 + $0xa58] sm:$0xff] }
 0x1df   : > { %3776 = vmatprep.subr.bf16.mxu0 %v4380_v28  ;;  %3940 = vmatprep.subr.bf16.mxu1 %v4382_v31  ;;  %v585_v28 = vld [vmem:[%s4974_s6 + $0xa78] sm:$0xff]  ;;  %v4435_v31 = vcombine.low %v572_v17, %v576_v18  ;;  %v4444_v33 = vcombine.high %v580_v26, %v584_v27 }
 0x1e0   : > { %3806 = vmatprep.mubr.bf16.mxu0 %v5203_v40  ;;  %3970 = vmatprep.mubr.bf16.mxu1 %v5203_v40  ;;  %v4397_v40 = vcombine.low %v533_v42, %v537_v30  ;;  %v4446_v20 = vcombine.high %v581_v1, %v585_v28  ;;  %v4445_v39 = vcombine.low %v581_v1, %v585_v28  ;;  %v596_v30 = vld [vmem:[%s4974_s6 + $0xad0] sm:$0xff] }
 0x1e1   : > { %v644_v28 = vld [vmem:[%s4974_s6 + $0xc50] sm:$0xff] }
 0x1e2   : > { %3777 = vmatpush1.bf16.msra.mxu0 %v4379_v35  ;;  %3941 = vmatpush1.bf16.msra.mxu1 %v4381_v36  ;;  %v592_v35 = vld [vmem:[%s4974_s6 + $0xab0] sm:$0xff]  ;;  %v589_v36 = vld [vmem:[%s4974_s6 + $0xa98] sm:$0xff] }
 0x1e3   : > { %3778 = vmatprep.subr.bf16.mxu0 %v4388_v37  ;;  %3942 = vmatprep.subr.bf16.mxu1 %v4390_v38  ;;  %v593_v37 = vld [vmem:[%s4974_s6 + $0xab8] sm:$0xff]  ;;  %v4443_v38 = vcombine.low %v580_v26, %v584_v27  ;;  %v4452_v41 = vcombine.high %v588_v34, %v592_v35 }
 0x1e4   : > { %v4454_v42 = vcombine.high %v589_v36, %v593_v37  ;;  %v4453_v47 = vcombine.low %v589_v36, %v593_v37  ;;  %v652_v37 = vld [vmem:[%s4974_s6 + $0xc90] sm:$0xff] }
 0x1e6   : > { %3779 = vmatpush1.bf16.msra.mxu0 %v4387_v29  ;;  %3943 = vmatpush1.bf16.msra.mxu1 %v4389_v43  ;;  %v600_v29 = vld [vmem:[%s4974_s6 + $0xaf0] sm:$0xff]  ;;  %v597_v43 = vld [vmem:[%s4974_s6 + $0xad8] sm:$0xff] }
 0x1e7   : > { %3780 = vmatprep.subr.bf16.mxu0 %v4396_v45  ;;  %3944 = vmatprep.subr.bf16.mxu1 %v4398_v46  ;;  %v601_v45 = vld [vmem:[%s4974_s6 + $0xaf8] sm:$0xff]  ;;  %v4451_v46 = vcombine.low %v588_v34, %v592_v35  ;;  %v4460_v48 = vcombine.high %v596_v30, %v600_v29 }
 0x1e8   : > { %v4462_v49 = vcombine.high %v597_v43, %v601_v45  ;;  %v4461_v55 = vcombine.low %v597_v43, %v601_v45  ;;  %v660_v45 = vld [vmem:[%s4974_s6 + $0xcd0] sm:$0xff] }
 0x1ea   : > { %3781 = vmatpush1.bf16.msra.mxu0 %v4395_v51  ;;  %3945 = vmatpush1.bf16.msra.mxu1 %v4397_v40  ;;  %v608_v51 = vld [vmem:[%s4974_s6 + $0xb30] sm:$0xff]  ;;  %v605_v40 = vld [vmem:[%s4974_s6 + $0xb18] sm:$0xff] }
 0x1eb   : > { %3782 = vmatprep.subr.bf16.mxu0 %v4404_v52  ;;  %3946 = vmatprep.subr.bf16.mxu1 %v4406_v53  ;;  %v609_v52 = vld [vmem:[%s4974_s6 + $0xb38] sm:$0xff]  ;;  %v4459_v53 = vcombine.low %v596_v30, %v600_v29  ;;  %v4468_v56 = vcombine.high %v604_v50, %v608_v51 }
 0x1ec   : > { %v4470_v57 = vcombine.high %v605_v40, %v609_v52  ;;  %v4469_v0 = vcombine.low %v605_v40, %v609_v52  ;;  %v668_v52 = vld [vmem:[%s4974_s6 + $0xd10] sm:$0xff] }
 0x1ee   : > { %3783 = vmatpush1.bf16.msra.mxu0 %v4403_v59  ;;  %3947 = vmatpush1.bf16.msra.mxu1 %v4405_v60  ;;  %v616_v59 = vld [vmem:[%s4974_s6 + $0xb70] sm:$0xff]  ;;  %v613_v60 = vld [vmem:[%s4974_s6 + $0xb58] sm:$0xff] }
 0x1ef   : > { %3784 = vmatprep.subr.bf16.mxu0 %v4412_v61  ;;  %3948 = vmatprep.subr.bf16.mxu1 %v4414_v63  ;;  %v617_v61 = vld [vmem:[%s4974_s6 + $0xb78] sm:$0xff]  ;;  %v4467_v63 = vcombine.low %v604_v50, %v608_v51  ;;  %v4476_v2 = vcombine.high %v612_v58, %v616_v59 }
 0x1f0   : > { %v4478_v3 = vcombine.high %v613_v60, %v617_v61  ;;  %v4477_v9 = vcombine.low %v613_v60, %v617_v61  ;;  %v676_v61 = vld [vmem:[%s4974_s6 + $0xd50] sm:$0xff] }
 0x1f2   : > { %3785 = vmatpush1.bf16.msra.mxu0 %v4411_v5  ;;  %3949 = vmatpush1.bf16.msra.mxu1 %v4413_v6  ;;  %v624_v5 = vld [vmem:[%s4974_s6 + $0xbb0] sm:$0xff]  ;;  %v621_v6 = vld [vmem:[%s4974_s6 + $0xb98] sm:$0xff] }
 0x1f3   : > { %3786 = vmatprep.subr.bf16.mxu0 %v4420_v7  ;;  %3950 = vmatprep.subr.bf16.mxu1 %v4422_v8  ;;  %v625_v7 = vld [vmem:[%s4974_s6 + $0xbb8] sm:$0xff]  ;;  %v4475_v8 = vcombine.low %v612_v58, %v616_v59  ;;  %v4484_v10 = vcombine.high %v620_v4, %v624_v5 }
 0x1f4   : > { %v4486_v11 = vcombine.high %v621_v6, %v625_v7  ;;  %v4485_v17 = vcombine.low %v621_v6, %v625_v7 }
 0x1f6   : > { %3787 = vmatpush1.bf16.msra.mxu0 %v4419_v13  ;;  %3951 = vmatpush1.bf16.msra.mxu1 %v4421_v14  ;;  %v632_v13 = vld [vmem:[%s4974_s6 + $0xbf0] sm:$0xff]  ;;  %v629_v14 = vld [vmem:[%s4974_s6 + $0xbd8] sm:$0xff] }
 0x1f7   : > { %3788 = vmatprep.subr.bf16.mxu0 %v4428_v15  ;;  %3952 = vmatprep.subr.bf16.mxu1 %v4430_v16  ;;  %v633_v15 = vld [vmem:[%s4974_s6 + $0xbf8] sm:$0xff]  ;;  %v4483_v16 = vcombine.low %v620_v4, %v624_v5  ;;  %v4492_v18 = vcombine.high %v628_v12, %v632_v13  ;;  %v5582_v5 = vld [vmem:[%s4980_s29] sm:$0xff] }
 0x1f8   : > { %v4494_v19 = vcombine.high %v629_v14, %v633_v15  ;;  %v4493_v26 = vcombine.low %v629_v14, %v633_v15  ;;  %v685_v15 = vld [vmem:[%s4974_s6 + $0xd98] sm:$0xff] }
 0x1fa   : > { %3789 = vmatpush1.bf16.msra.mxu0 %v4427_v22  ;;  %3953 = vmatpush1.bf16.msra.mxu1 %v4429_v23  ;;  %v640_v22 = vld [vmem:[%s4974_s6 + $0xc30] sm:$0xff]  ;;  %v637_v23 = vld [vmem:[%s4974_s6 + $0xc18] sm:$0xff] }
 0x1fb   : > { %3790 = vmatprep.subr.bf16.mxu0 %v4436_v24  ;;  %3954 = vmatprep.subr.bf16.mxu1 %v4438_v25  ;;  %v641_v24 = vld [vmem:[%s4974_s6 + $0xc38] sm:$0xff]  ;;  %v4491_v25 = vcombine.low %v628_v12, %v632_v13  ;;  %v4500_v27 = vcombine.high %v636_v21, %v640_v22  ;;  %v684_v12 = vld [vmem:[%s4974_s6 + $0xd90] sm:$0xff] }
 0x1fc   : > { %v4502_v1 = vcombine.high %v637_v23, %v641_v24  ;;  %v4501_v34 = vcombine.low %v637_v23, %v641_v24  ;;  %v688_v13 = vld [vmem:[%s4974_s6 + $0xdb0] sm:$0xff] }
 0x1fd   : > { %v4548_v23 = vcombine.high %v684_v12, %v688_v13 }
 0x1fe   : > { %3791 = vmatpush1.bf16.msra.mxu0 %v4435_v31  ;;  %3955 = vmatpush1.bf16.msra.mxu1 %v4437_v32  ;;  %v648_v31 = vld [vmem:[%s4974_s6 + $0xc70] sm:$0xff]  ;;  %v645_v32 = vld [vmem:[%s4974_s6 + $0xc58] sm:$0xff] }
 0x1ff   : > { %3792 = vmatprep.subr.bf16.mxu0 %v4444_v33  ;;  %3956 = vmatprep.subr.bf16.mxu1 %v4446_v20  ;;  %v649_v33 = vld [vmem:[%s4974_s6 + $0xc78] sm:$0xff]  ;;  %v4499_v20 = vcombine.low %v636_v21, %v640_v22  ;;  %v4508_v35 = vcombine.high %v644_v28, %v648_v31 }
 0x200   : > { %v4510_v36 = vcombine.high %v645_v32, %v649_v33  ;;  %v4509_v30 = vcombine.low %v645_v32, %v649_v33  ;;  %v693_v32 = vld [vmem:[%s4974_s6 + $0xdd8] sm:$0xff] }
 0x201   : > { %v697_v33 = vld [vmem:[%s4974_s6 + $0xdf8] sm:$0xff] }
 0x202   : > { %3793 = vmatpush1.bf16.msra.mxu0 %v4443_v38  ;;  %3957 = vmatpush1.bf16.msra.mxu1 %v4445_v39  ;;  %v656_v38 = vld [vmem:[%s4974_s6 + $0xcb0] sm:$0xff]  ;;  %v653_v39 = vld [vmem:[%s4974_s6 + $0xc98] sm:$0xff] }
 0x203   : > { %3794 = vmatprep.subr.bf16.mxu0 %v4452_v41  ;;  %3958 = vmatprep.subr.bf16.mxu1 %v4454_v42  ;;  %v657_v41 = vld [vmem:[%s4974_s6 + $0xcb8] sm:$0xff]  ;;  %v4507_v42 = vcombine.low %v644_v28, %v648_v31  ;;  %v4516_v29 = vcombine.high %v652_v37, %v656_v38 }
 0x204   : > { %v4518_v43 = vcombine.high %v653_v39, %v657_v41  ;;  %v4517_v50 = vcombine.low %v653_v39, %v657_v41 }
 0x206   : > { %3795 = vmatpush1.bf16.msra.mxu0 %v4451_v46  ;;  %3959 = vmatpush1.bf16.msra.mxu1 %v4453_v47  ;;  %v664_v46 = vld [vmem:[%s4974_s6 + $0xcf0] sm:$0xff]  ;;  %v661_v47 = vld [vmem:[%s4974_s6 + $0xcd8] sm:$0xff] }
 0x207   : > { %3796 = vmatprep.subr.bf16.mxu0 %v4460_v48  ;;  %3960 = vmatprep.subr.bf16.mxu1 %v4462_v49  ;;  %v665_v48 = vld [vmem:[%s4974_s6 + $0xcf8] sm:$0xff]  ;;  %v764_v49 = vlaneseq  ;;  %v4524_v51 = vcombine.high %v660_v45, %v664_v46 }
 0x208   : > { %v4526_v40 = vcombine.high %v661_v47, %v665_v48  ;;  %v4525_v58 = vcombine.low %v661_v47, %v665_v48  ;;  %v4558_v47 = vcombine.high %v693_v32, %v697_v33  ;;  %v700_v48 = vld [vmem:[%s4974_s6 + $0xe10] sm:$0xff] }
 0x20a   : > { %3797 = vmatpush1.bf16.msra.mxu0 %v4459_v53  ;;  %3961 = vmatpush1.bf16.msra.mxu1 %v4461_v55  ;;  %v672_v53 = vld [vmem:[%s4974_s6 + $0xd30] sm:$0xff]  ;;  %v669_v55 = vld [vmem:[%s4974_s6 + $0xd18] sm:$0xff] }
 0x20b   : > { %3798 = vmatprep.subr.bf16.mxu0 %v4468_v56  ;;  %3962 = vmatprep.subr.bf16.mxu1 %v4470_v57  ;;  %v673_v56 = vld [vmem:[%s4974_s6 + $0xd38] sm:$0xff]  ;;  %v5574_v57 = vshrl.u32 %v764_v49, 7  ;;  %v4532_v59 = vcombine.high %v668_v52, %v672_v53  ;;  %v4531_v4 = vcombine.low %v668_v52, %v672_v53  ;;  %v704_v49 = vld [vmem:[%s4974_s6 + $0xe30] sm:$0xff]  ;;  %v4557_v52 = vcombine.low %v693_v32, %v697_v33 }
 0x20c   : > { %v4534_v60 = vcombine.high %v669_v55, %v673_v56  ;;  %v4564_v53 = vcombine.high %v700_v48, %v704_v49  ;;  %v745_v32 = vld [vmem:[%s4974_s6 + $0xf78] sm:$0xff] }
 0x20d   : > { %v774_v6 = vsub.s32 2, %v5574_v57  ;;  %v770_v7 = vsub.s32 1, %v5574_v57 }
 0x20e   : > { %3799 = vmatpush1.bf16.msra.mxu0 %v4467_v63  ;;  %3963 = vmatpush1.bf16.msra.mxu1 %v4469_v0  ;;  %v680_v63 = vld [vmem:[%s4974_s6 + $0xd70] sm:$0xff]  ;;  %v766_v0 = vsub.s32 0, %v5574_v57 }
 0x20f   : > { %3800 = vmatprep.subr.bf16.mxu0 %v4476_v2  ;;  %3964 = vmatprep.subr.bf16.mxu1 %v4478_v3  ;;  %v677_v2 = vld [vmem:[%s4974_s6 + $0xd58] sm:$0xff] }
 0x210   : > { %v681_v3 = vld [vmem:[%s4974_s6 + $0xd78] sm:$0xff]  ;;  %v767_v14 = vrot.slane %v5582_v5, %v766_v0 }
 0x211   : > { %v4541_v22 = vcombine.low %v677_v2, %v681_v3 }
 0x212   : > { %3801 = vmatpush1.bf16.msra.mxu0 %v4475_v8  ;;  %3965 = vmatpush1.bf16.msra.mxu1 %v4477_v9  ;;  %v4533_v8 = vcombine.low %v669_v55, %v673_v56  ;;  %v778_v9 = vsub.s32 3, %v5574_v57  ;;  %v708_v56 = vld [vmem:[%s4974_s6 + $0xe50] sm:$0xff] }
 0x213   : > { %3802 = vmatprep.subr.bf16.mxu0 %v4484_v10  ;;  %3966 = vmatprep.subr.bf16.mxu1 %v4486_v11  ;;  %v4540_v10 = vcombine.high %v676_v61, %v680_v63  ;;  %v4542_v11 = vcombine.high %v677_v2, %v681_v3  ;;  %v716_v2 = vld [vmem:[%s4974_s6 + $0xe90] sm:$0xff] }
 0x214   : > { %v779_v21 = vrot.slane %v5582_v5, %v778_v9  ;;  %v720_v3 = vld [vmem:[%s4974_s6 + $0xeb0] sm:$0xff] }
 0x215   : > { %v4580_v9 = vcombine.high %v716_v2, %v720_v3 }
 0x216   : > { %3803 = vmatpush1.bf16.msra.mxu0 %v4483_v16  ;;  %3967 = vmatpush1.bf16.msra.mxu1 %v4485_v17  ;;  %v689_v16 = vld [vmem:[%s4974_s6 + $0xdb8] sm:$0xff]  ;;  %v775_v17 = vrot.slane %v5582_v5, %v774_v6 }
 0x217   : > { %3804 = vmatprep.subr.bf16.mxu0 %v4492_v18  ;;  %3968 = vmatprep.subr.bf16.mxu1 %v4494_v19  ;;  %v771_v18 = vrot.slane %v5582_v5, %v770_v7  ;;  %v4539_v19 = vcombine.low %v676_v61, %v680_v63  ;;  %v721_v6 = vld [vmem:[%s4974_s6 + $0xeb8] sm:$0xff] }
 0x21a   : > { %3805 = vmatpush1.bf16.msra.mxu0 %v4491_v25  ;;  %3969 = vmatpush1.bf16.msra.mxu1 %v4493_v26  ;;  %v4550_v25 = vcombine.high %v685_v15, %v689_v16  ;;  %v692_v26 = vld [vmem:[%s4974_s6 + $0xdd0] sm:$0xff] }
 0x21b   : > { %3815 = vmatprep.subr.bf16.mxu0 %v4500_v27  ;;  %3979 = vmatprep.subr.bf16.mxu1 %v4502_v1  ;;  %v696_v27 = vld [vmem:[%s4974_s6 + $0xdf0] sm:$0xff] }
 0x21d   : > { %3807 = vmatmul.mubr.bf16.vlgmr.msra.gmra.mrb[4].mxu0 %v5272_v44  ;;  %3971 = vmatmul.mubr.bf16.vlgmr.msra.gmra.mrb[4].mxu1 %v5272_v44  ;;  %v4515_v44 = vcombine.low %v652_v37, %v656_v38  ;;  %v4547_v37 = vcombine.low %v684_v12, %v688_v13  ;;  %v728_v12 = vld [vmem:[%s4974_s6 + $0xef0] sm:$0xff]  ;;  %v725_v13 = vld [vmem:[%s4974_s6 + $0xed8] sm:$0xff] }
 0x21e   : > { %3816 = vmatpush1.bf16.msra.mxu0 %v4499_v20  ;;  %3980 = vmatpush1.bf16.msra.mxu1 %v4501_v34 }
 0x21f   : > { %3817 = vmatprep.subr.bf16.mxu0 %v4508_v35  ;;  %3981 = vmatprep.subr.bf16.mxu1 %v4510_v36 }
 0x220   : > { %3847 = vmatprep.mubr.bf16.mxu0 %v5281_v54  ;;  %4011 = vmatprep.mubr.bf16.mxu1 %v5281_v54  ;;  %v4523_v54 = vcombine.low %v660_v45, %v664_v46 }
 0x222   : > { %3818 = vmatpush1.bf16.msra.mxu0 %v4507_v42  ;;  %3982 = vmatpush1.bf16.msra.mxu1 %v4509_v30  ;;  %v4549_v30 = vcombine.low %v685_v15, %v689_v16  ;;  %v4579_v15 = vcombine.low %v716_v2, %v720_v3 }
 0x223   : > { %3819 = vmatprep.subr.bf16.mxu0 %v4516_v29  ;;  %3983 = vmatprep.subr.bf16.mxu1 %v4518_v43  ;;  %v4556_v29 = vcombine.high %v692_v26, %v696_v27 }
 0x226   : > { %3820 = vmatpush1.bf16.msra.mxu0 %v4515_v44  ;;  %3984 = vmatpush1.bf16.msra.mxu1 %v4517_v50  ;;  %v701_v50 = vld [vmem:[%s4974_s6 + $0xe18] sm:$0xff] }
 0x227   : > { %3821 = vmatprep.subr.bf16.mxu0 %v4524_v51  ;;  %3985 = vmatprep.subr.bf16.mxu1 %v4526_v40  ;;  %v705_v51 = vld [vmem:[%s4974_s6 + $0xe38] sm:$0xff]  ;;  %v4555_v40 = vcombine.low %v692_v26, %v696_v27 }
 0x228   : > { %v4566_v55 = vcombine.high %v701_v50, %v705_v51  ;;  %v4565_v61 = vcombine.low %v701_v50, %v705_v51 }
 0x22a   : > { %3822 = vmatpush1.bf16.msra.mxu0 %v4523_v54  ;;  %3986 = vmatpush1.bf16.msra.mxu1 %v4525_v58  ;;  %v712_v54 = vld [vmem:[%s4974_s6 + $0xe70] sm:$0xff]  ;;  %v709_v58 = vld [vmem:[%s4974_s6 + $0xe58] sm:$0xff] }
 0x22b   : > { %3823 = vmatprep.subr.bf16.mxu0 %v4532_v59  ;;  %3987 = vmatprep.subr.bf16.mxu1 %v4534_v60  ;;  %v713_v59 = vld [vmem:[%s4974_s6 + $0xe78] sm:$0xff]  ;;  %v4563_v60 = vcombine.low %v700_v48, %v704_v49  ;;  %v4572_v63 = vcombine.high %v708_v56, %v712_v54  ;;  %v4571_v7 = vcombine.low %v708_v56, %v712_v54  ;;  %v794_v56 = vsub.s32 7, %v5574_v57 }
 0x22c   : > { %v4574_v0 = vcombine.high %v709_v58, %v713_v59 }
 0x22e   : > { %3824 = vmatpush1.bf16.msra.mxu0 %v4531_v4  ;;  %3988 = vmatpush1.bf16.msra.mxu1 %v4533_v8  ;;  %v717_v4 = vld [vmem:[%s4974_s6 + $0xe98] sm:$0xff]  ;;  %v4573_v8 = vcombine.low %v709_v58, %v713_v59 }
 0x22f   : > { %3825 = vmatprep.subr.bf16.mxu0 %v4540_v10  ;;  %3989 = vmatprep.subr.bf16.mxu1 %v4542_v11  ;;  %v4582_v10 = vcombine.high %v717_v4, %v721_v6  ;;  %v724_v11 = vld [vmem:[%s4974_s6 + $0xed0] sm:$0xff]  ;;  %v4581_v16 = vcombine.low %v717_v4, %v721_v6 }
 0x230   : > { %v3521_v24 = vpop.f32.mrb[0].mxu0  ;;  %v3685_v28 = vpop.f32.mrb[0].mxu1 }
 0x231   : > { %v4627_v1 = vadd.f32 %v3521_v24, %v767_v14  ;;  %v3523_v31 = vpop.f32.mrb[1].mxu0  ;;  %v4629_v20 = vadd.f32 %v3685_v28, %v775_v17  ;;  %v3687_v35 = vpop.f32.mrb[1].mxu1  ;;  %v729_v14 = vld [vmem:[%s4974_s6 + $0xef8] sm:$0xff]  ;;  %v4588_v17 = vcombine.high %v724_v11, %v728_v12  ;;  %v4587_v24 = vcombine.low %v724_v11, %v728_v12  ;;  %v744_v28 = vld [vmem:[%s4974_s6 + $0xf70] sm:$0xff] }
 0x232   : > { %v4628_v34 = vadd.f32 %v3523_v31, %v771_v18  ;;  %v3525_v36 = vpop.f32.mrb[2].mxu0  ;;  %3826 = vmatpush1.bf16.msra.mxu0 %v4539_v19  ;;  %v4630_v39 = vadd.f32 %v3687_v35, %v779_v21  ;;  %v3689_v41 = vpop.f32.mrb[2].mxu1  ;;  %3990 = vmatpush1.bf16.msra.mxu1 %v4541_v22  ;;  %v4590_v18 = vcombine.high %v725_v13, %v729_v14  ;;  %v732_v19 = vld [vmem:[%s4974_s6 + $0xf10] sm:$0xff]  ;;  %v733_v22 = vld [vmem:[%s4974_s6 + $0xf18] sm:$0xff] }
 0x233   : > { %v4020_v38 = vmax.f32 %v4627_v1, 0.0  ;;  %v3526_v42 = vpop.f32.mrb[3].mxu0  ;;  %3827 = vmatprep.subr.bf16.mxu0 %v4548_v23  ;;  %v4022_v43 = vmax.f32 %v4629_v20, 0.0  ;;  %v3690_v46 = vpop.f32.mrb[3].mxu1  ;;  %3991 = vmatprep.subr.bf16.mxu1 %v4550_v25  ;;  %v736_v21 = vld [vmem:[%s4974_s6 + $0xf30] sm:$0xff]  ;;  %v737_v23 = vld [vmem:[%s4974_s6 + $0xf38] sm:$0xff]  ;;  %v4589_v25 = vcombine.low %v725_v13, %v729_v14 }
 0x234   : > { %v4021_v45 = vmax.f32 %v4628_v34, 0.0  ;;  %v4023_v44 = vmax.f32 %v4630_v39, 0.0  ;;  %v4596_v26 = vcombine.high %v732_v19, %v736_v21  ;;  %v4598_v27 = vcombine.high %v733_v22, %v737_v23  ;;  %v740_v1 = vld [vmem:[%s4974_s6 + $0xf50] sm:$0xff]  ;;  %v741_v31 = vld [vmem:[%s4974_s6 + $0xf58] sm:$0xff] }
 0x235   : > { %4028 = vst [vmem:[%s5681_s3] sm:$0xff] %v4020_v38  ;;  %4030 = vst [vmem:[%s5681_s3 + $0x10] sm:$0xff] %v4022_v43  ;;  %v4595_v33 = vcombine.low %v732_v19, %v736_v21  ;;  %v4597_v20 = vcombine.low %v733_v22, %v737_v23  ;;  %v4604_v34 = vcombine.high %v740_v1, %v744_v28  ;;  %v748_v36 = vld [vmem:[%s4974_s6 + $0xf90] sm:$0xff]  ;;  %v749_v38 = vld [vmem:[%s4974_s6 + $0xf98] sm:$0xff] }
 0x236   : > { %4029 = vst [vmem:[%s5681_s3 + $0x8] sm:$0xff] %v4021_v45  ;;  %3828 = vmatpush1.bf16.msra.mxu0 %v4547_v37  ;;  %4031 = vst [vmem:[%s5681_s3 + $0x18] sm:$0xff] %v4023_v44  ;;  %3992 = vmatpush1.bf16.msra.mxu1 %v4549_v30  ;;  %v4606_v35 = vcombine.high %v741_v31, %v745_v32  ;;  %v752_v37 = vld [vmem:[%s4974_s6 + $0xfb0] sm:$0xff]  ;;  %v753_v39 = vld [vmem:[%s4974_s6 + $0xfb8] sm:$0xff]  ;;  %v4603_v41 = vcombine.low %v740_v1, %v744_v28 }
 0x237   : > { %3829 = vmatprep.subr.bf16.mxu0 %v4556_v29  ;;  %3993 = vmatprep.subr.bf16.mxu1 %v4558_v47  ;;  %v4605_v42 = vcombine.low %v741_v31, %v745_v32  ;;  %v4612_v30 = vcombine.high %v748_v36, %v752_v37  ;;  %v4614_v29 = vcombine.high %v749_v38, %v753_v39  ;;  %v756_v43 = vld [vmem:[%s4974_s6 + $0xfd0] sm:$0xff]  ;;  %v757_v46 = vld [vmem:[%s4974_s6 + $0xfd8] sm:$0xff] }
 0x238   : > { %v760_v45 = vld [vmem:[%s4974_s6 + $0xff0] sm:$0xff]  ;;  %v761_v47 = vld [vmem:[%s4974_s6 + $0xff8] sm:$0xff]  ;;  %v4611_v48 = vcombine.low %v748_v36, %v752_v37  ;;  %v4613_v49 = vcombine.low %v749_v38, %v753_v39 }
 0x239   : > { %v4620_v44 = vcombine.high %v756_v43, %v760_v45  ;;  %v4622_v50 = vcombine.high %v757_v46, %v761_v47  ;;  %v4619_v51 = vcombine.low %v756_v43, %v760_v45 }
 0x23a   : > { %3830 = vmatpush1.bf16.msra.mxu0 %v4555_v40  ;;  %3994 = vmatpush1.bf16.msra.mxu1 %v4557_v52  ;;  %v4621_v40 = vcombine.low %v757_v46, %v761_v47  ;;  %v782_v52 = vsub.s32 4, %v5574_v57 }
 0x23b   : > { %3831 = vmatprep.subr.bf16.mxu0 %v4564_v53  ;;  %3995 = vmatprep.subr.bf16.mxu1 %v4566_v55  ;;  %v790_v53 = vsub.s32 6, %v5574_v57  ;;  %v786_v55 = vsub.s32 5, %v5574_v57 }
 0x23c   : > { %v783_v54 = vrot.slane %v5582_v5, %v782_v52 }
 0x23d   : > { %v791_v58 = vrot.slane %v5582_v5, %v790_v53  ;;  %v787_v59 = vrot.slane %v5582_v5, %v786_v55 }
 0x23e   : > { %3832 = vmatpush1.bf16.msra.mxu0 %v4563_v60  ;;  %3996 = vmatpush1.bf16.msra.mxu1 %v4565_v61  ;;  %v795_v60 = vrot.slane %v5582_v5, %v794_v56 }
 0x23f   : > { %3833 = vmatprep.subr.bf16.mxu0 %v4572_v63  ;;  %3997 = vmatprep.subr.bf16.mxu1 %v4574_v0 }
 0x242   : > { %3834 = vmatpush1.bf16.msra.mxu0 %v4571_v7  ;;  %3998 = vmatpush1.bf16.msra.mxu1 %v4573_v8 }
 0x243   : > { %3835 = vmatprep.subr.bf16.mxu0 %v4580_v9  ;;  %3999 = vmatprep.subr.bf16.mxu1 %v4582_v10 }
 0x246   : > { %3836 = vmatpush1.bf16.msra.mxu0 %v4579_v15  ;;  %4000 = vmatpush1.bf16.msra.mxu1 %v4581_v16 }
 0x247   : > { %3837 = vmatprep.subr.bf16.mxu0 %v4588_v17  ;;  %4001 = vmatprep.subr.bf16.mxu1 %v4590_v18 }
 0x24a   : > { %3838 = vmatpush1.bf16.msra.mxu0 %v4587_v24  ;;  %4002 = vmatpush1.bf16.msra.mxu1 %v4589_v25 }
 0x24b   : > { %3839 = vmatprep.subr.bf16.mxu0 %v4596_v26  ;;  %4003 = vmatprep.subr.bf16.mxu1 %v4598_v27 }
 0x24e   : > { %3840 = vmatpush1.bf16.msra.mxu0 %v4595_v33  ;;  %4004 = vmatpush1.bf16.msra.mxu1 %v4597_v20 }
 0x24f   : > { %3841 = vmatprep.subr.bf16.mxu0 %v4604_v34  ;;  %4005 = vmatprep.subr.bf16.mxu1 %v4606_v35 }
 0x252   : > { %3842 = vmatpush1.bf16.msra.mxu0 %v4603_v41  ;;  %4006 = vmatpush1.bf16.msra.mxu1 %v4605_v42 }
 0x253   : > { %3843 = vmatprep.subr.bf16.mxu0 %v4612_v30  ;;  %4007 = vmatprep.subr.bf16.mxu1 %v4614_v29 }
 0x256   : > { %3844 = vmatpush1.bf16.msra.mxu0 %v4611_v48  ;;  %4008 = vmatpush1.bf16.msra.mxu1 %v4613_v49 }
 0x257   : > { %3845 = vmatprep.subr.bf16.mxu0 %v4620_v44  ;;  %4009 = vmatprep.subr.bf16.mxu1 %v4622_v50 }
 0x25a   : > { %3846 = vmatpush1.bf16.msra.mxu0 %v4619_v51  ;;  %4010 = vmatpush1.bf16.msra.mxu1 %v4621_v40 }
 0x25d   : > { %3848 = vmatmul.mubr.bf16.vlgmr.msra.gmra.mrb[4].mxu0 %v5350_v62  ;;  %4012 = vmatmul.mubr.bf16.vlgmr.msra.gmra.mrb[4].mxu1 %v5350_v62 }
 0x330   : > { %v3849_v61 = vpop.f32.mrb[4].mxu0  ;;  %v4013_v0 = vpop.f32.mrb[4].mxu1 }
 0x331   : > { %v4631_v63 = vadd.f32 %v3849_v61, %v783_v54  ;;  %v3851_v62 = vpop.f32.mrb[5].mxu0  ;;  %v4633_v2 = vadd.f32 %v4013_v0, %v791_v58  ;;  %v4015_v4 = vpop.f32.mrb[5].mxu1 }
 0x332   : > { %v4632_v3 = vadd.f32 %v3851_v62, %v787_v59  ;;  %v3853_v6 = vpop.f32.mrb[6].mxu0  ;;  %v4634_v8 = vadd.f32 %v4015_v4, %v795_v60  ;;  %v4017_v9 = vpop.f32.mrb[6].mxu1 }
 0x333   : > { %v4024_v7 = vmax.f32 %v4631_v63, 0.0  ;;  %v3854_v57 = vpop.f32.mrb[7].mxu0  ;;  %v4026_v10 = vmax.f32 %v4633_v2, 0.0  ;;  %v4018_v12 = vpop.f32.mrb[7].mxu1 }
 0x334   : > { %v4025_v11 = vmax.f32 %v4632_v3, 0.0  ;;  %v4027_v5 = vmax.f32 %v4634_v8, 0.0 }
 0x335   : > { %4032 = vst [vmem:[%s5681_s3 + $0x20] sm:$0xff] %v4024_v7  ;;  %4034 = vst [vmem:[%s5681_s3 + $0x30] sm:$0xff] %v4026_v10 }
 0x336   : > { %4033 = vst [vmem:[%s5681_s3 + $0x28] sm:$0xff] %v4025_v11  ;;  %4035 = vst [vmem:[%s5681_s3 + $0x38] sm:$0xff] %v4027_v5 }
 0x337 PF: > { %p16_p8 = scmp.ge.s32.totalorder %s4873_s17, 11   ;;  %s5689_s12 = smov %s4819_s13 }
 0x338   : > { %s5690_s13 = smov %s4823_s14  ;;  %s5691_s14 = smov %s4883_s20 }
 0x339   : > { %s5692_s15 = smov %s4873_s17  ;;  %18 = sbr.rel (!%p16_p8) target bundleno = 5 (0x5), region = 85 }
 0x340   :  { %4047 = vsyncpa [#allocation3], 1 }
 0x341   :  { %4049 = vsyncpa [#allocation3 + $0x1], 1 }
 0x342   :  { %4050 = vsyncpa [#allocation5], 1 }
 0x343   :  { %4052 = vsyncpa [#allocation5 + $0x1], 1 }

// kernel: acbase_forward.10
= control target key start
LH: loop header
LB: loop body
LE: loop exit
PB: predicated region body
PF: predicated region fallthrough
CT: control target
= control target key end

     0   :  { %s3557_s12 = smov 0   ;;  %s3559_s13 = smov 0   ;;  %s4461_s0 = inlined_call_operand.vmem [shape: f32[8,1024], index: 0, kind: input, shape index: {}]   ;;  %s4462_s1 = inlined_call_operand.vmem [shape: bf16[1024,2048], index: 1, kind: input, shape index: {}]   ;;  %s4463_s2 = inlined_call_operand.vmem [shape: f32[1,2048], index: 2, kind: input, shape index: {}]   ;;  %s4464_s3 = inlined_call_operand.vmem [shape: f32[8,2048], index: 3, kind: output, shape index: {}]  }
   0x1   :  { %s3561_s14 = smov 0   ;;  %s3563_s15 = smov 0  }
   0x2   :  { %s3565_s16 = smov 0  }
   0x3 LB: > { %s25_s17 = sadd.s32 1, %s3531_s15  ;;  %p67_p1 = scmp.ne.s32.totalorder %s3523_s13, %s3519_s12  ;;  %s3535_s16 = sphi %s3565_s16, %s13_s16   ;;  %s3531_s15 = sphi %s3563_s15, %s4468_s15   ;;  %s3527_s14 = sphi %s3561_s14, %s4467_s14   ;;  %s3523_s13 = sphi %s3559_s13, %s4466_s13   ;;  %s3519_s12 = sphi %s3557_s12, %s4465_s12  }
   0x4   : > { %p27_p0 = scmp.ge.s32.totalorder %s25_s17, 4  ;;  %p68_p2 = scmp.eq.s32.totalorder %s3535_s16, 0 }
   0x5   : > { %s60_s19 = sadd.s32 1, %s3523_s13  ;;  %p2805_p5 = scmp.ge.s32.totalorder %s3535_s16, 4 }
   0x6   : > { %s4470_s17 = smov (%p27_p0, %s25_s17), 0  ;;  %p69_p3 = por %p68_p2, %p67_p1 }
   0x7   : > { %s56_s18 = ssub.s32 %s3531_s15, %s4470_s17  ;;  %154 = sbr.rel (%p2805_p5) target bundleno = 146 (0x92), region = 20 }
   0x8   : > { %p58_p4 = scmp.eq.s32.totalorder %s56_s18, 0 }
   0xa   : > { %s3592_s20 = scalar_select %p58_p4, %s3523_s13, %s60_s19  }
   0xe   : > { %157 = sbr.rel (!%p69_p3) target bundleno = 146 (0x92), region = 24  ;;  %s159_s21 = sand.u32 (%p69_p3), 1, %s3523_s13  }
   0xf   : > { %s3072_s22 = sshll.u32 (%p69_p3), %s3531_s15, 4  ;;  %s2806_s23 = sshll.u32 (%p69_p3), %s159_s21, 11 }
  0x10   : > { %s3600_s26 = scalar_lea.vmem (%p69_p3), %s4462_s1, %s3072_s22  ;;  %s3605_s27 = scalar_lea.vmem (%p69_p3), [#allocation3], %s2806_s23 }
  0x11   : > { %v180_v0 = vld [vmem:[%s3600_s26] sm:$0xff] (%p69_p3)  ;;  %v182_v1 = vld [vmem:[%s3600_s26 + $0x8] sm:$0xff] (%p69_p3) }
  0x12   : > { %v184_v2 = vld [vmem:[%s3600_s26 + $0x40] sm:$0xff] (%p69_p3)  ;;  %181 = vst [vmem:[%s3605_s27] sm:$0xff] (%p69_p3), %v180_v0  ;;  %183 = vst [vmem:[%s3605_s27 + $0x8] sm:$0xff] (%p69_p3), %v182_v1  ;;  %v186_v3 = vld [vmem:[%s3600_s26 + $0x48] sm:$0xff] (%p69_p3) }
  0x13   : > { %185 = vst [vmem:[%s3605_s27 + $0x10] sm:$0xff] (%p69_p3), %v184_v2  ;;  %v188_v4 = vld [vmem:[%s3600_s26 + $0x80] sm:$0xff] (%p69_p3)  ;;  %v190_v5 = vld [vmem:[%s3600_s26 + $0x88] sm:$0xff] (%p69_p3)  ;;  %187 = vst [vmem:[%s3605_s27 + $0x18] sm:$0xff] (%p69_p3), %v186_v3 }
  0x14   : > { %189 = vst [vmem:[%s3605_s27 + $0x20] sm:$0xff] (%p69_p3), %v188_v4  ;;  %191 = vst [vmem:[%s3605_s27 + $0x28] sm:$0xff] (%p69_p3), %v190_v5  ;;  %v192_v6 = vld [vmem:[%s3600_s26 + $0xc0] sm:$0xff] (%p69_p3)  ;;  %v194_v7 = vld [vmem:[%s3600_s26 + $0xc8] sm:$0xff] (%p69_p3) }
  0x15   : > { %v196_v8 = vld [vmem:[%s3600_s26 + $0x100] sm:$0xff]  ;;  %193 = vst [vmem:[%s3605_s27 + $0x30] sm:$0xff] %v192_v6  ;;  %195 = vst [vmem:[%s3605_s27 + $0x38] sm:$0xff] %v194_v7  ;;  %v198_v9 = vld [vmem:[%s3600_s26 + $0x108] sm:$0xff] }
  0x16   : > { %197 = vst [vmem:[%s3605_s27 + $0x40] sm:$0xff] %v196_v8  ;;  %v200_v10 = vld [vmem:[%s3600_s26 + $0x140] sm:$0xff]  ;;  %v202_v11 = vld [vmem:[%s3600_s26 + $0x148] sm:$0xff]  ;;  %199 = vst [vmem:[%s3605_s27 + $0x48] sm:$0xff] %v198_v9 }
  0x17   : > { %201 = vst [vmem:[%s3605_s27 + $0x50] sm:$0xff] %v200_v10  ;;  %203 = vst [vmem:[%s3605_s27 + $0x58] sm:$0xff] %v202_v11  ;;  %v204_v12 = vld [vmem:[%s3600_s26 + $0x180] sm:$0xff]  ;;  %v206_v13 = vld [vmem:[%s3600_s26 + $0x188] sm:$0xff] }
  0x18   : > { %v208_v14 = vld [vmem:[%s3600_s26 + $0x1c0] sm:$0xff]  ;;  %205 = vst [vmem:[%s3605_s27 + $0x60] sm:$0xff] %v204_v12  ;;  %207 = vst [vmem:[%s3605_s27 + $0x68] sm:$0xff] %v206_v13  ;;  %v210_v15 = vld [vmem:[%s3600_s26 + $0x1c8] sm:$0xff] }
  0x19   : > { %209 = vst [vmem:[%s3605_s27 + $0x70] sm:$0xff] %v208_v14  ;;  %v212_v16 = vld [vmem:[%s3600_s26 + $0x200] sm:$0xff]  ;;  %v214_v17 = vld [vmem:[%s3600_s26 + $0x208] sm:$0xff]  ;;  %211 = vst [vmem:[%s3605_s27 + $0x78] sm:$0xff] %v210_v15 }
  0x1a   : > { %213 = vst [vmem:[%s3605_s27 + $0x80] sm:$0xff] %v212_v16  ;;  %215 = vst [vmem:[%s3605_s27 + $0x88] sm:$0xff] %v214_v17  ;;  %v216_v18 = vld [vmem:[%s3600_s26 + $0x240] sm:$0xff]  ;;  %v218_v19 = vld [vmem:[%s3600_s26 + $0x248] sm:$0xff] }
  0x1b   : > { %v220_v20 = vld [vmem:[%s3600_s26 + $0x280] sm:$0xff]  ;;  %217 = vst [vmem:[%s3605_s27 + $0x90] sm:$0xff] %v216_v18  ;;  %219 = vst [vmem:[%s3605_s27 + $0x98] sm:$0xff] %v218_v19  ;;  %v222_v21 = vld [vmem:[%s3600_s26 + $0x288] sm:$0xff] }
  0x1c   : > { %221 = vst [vmem:[%s3605_s27 + $0xa0] sm:$0xff] %v220_v20  ;;  %v224_v22 = vld [vmem:[%s3600_s26 + $0x2c0] sm:$0xff]  ;;  %v226_v23 = vld [vmem:[%s3600_s26 + $0x2c8] sm:$0xff]  ;;  %223 = vst [vmem:[%s3605_s27 + $0xa8] sm:$0xff] %v222_v21 }
  0x1d   : > { %225 = vst [vmem:[%s3605_s27 + $0xb0] sm:$0xff] %v224_v22  ;;  %227 = vst [vmem:[%s3605_s27 + $0xb8] sm:$0xff] %v226_v23  ;;  %v228_v24 = vld [vmem:[%s3600_s26 + $0x300] sm:$0xff]  ;;  %v230_v25 = vld [vmem:[%s3600_s26 + $0x308] sm:$0xff] }
  0x1e   : > { %v232_v26 = vld [vmem:[%s3600_s26 + $0x340] sm:$0xff]  ;;  %229 = vst [vmem:[%s3605_s27 + $0xc0] sm:$0xff] %v228_v24  ;;  %231 = vst [vmem:[%s3605_s27 + $0xc8] sm:$0xff] %v230_v25  ;;  %v234_v27 = vld [vmem:[%s3600_s26 + $0x348] sm:$0xff] }
  0x1f   : > { %233 = vst [vmem:[%s3605_s27 + $0xd0] sm:$0xff] %v232_v26  ;;  %v236_v28 = vld [vmem:[%s3600_s26 + $0x380] sm:$0xff]  ;;  %v238_v29 = vld [vmem:[%s3600_s26 + $0x388] sm:$0xff]  ;;  %235 = vst [vmem:[%s3605_s27 + $0xd8] sm:$0xff] %v234_v27 }
  0x20   : > { %237 = vst [vmem:[%s3605_s27 + $0xe0] sm:$0xff] %v236_v28  ;;  %239 = vst [vmem:[%s3605_s27 + $0xe8] sm:$0xff] %v238_v29  ;;  %v240_v30 = vld [vmem:[%s3600_s26 + $0x3c0] sm:$0xff]  ;;  %v242_v31 = vld [vmem:[%s3600_s26 + $0x3c8] sm:$0xff] }
  0x21   : > { %v244_v32 = vld [vmem:[%s3600_s26 + $0x400] sm:$0xff]  ;;  %241 = vst [vmem:[%s3605_s27 + $0xf0] sm:$0xff] %v240_v30  ;;  %243 = vst [vmem:[%s3605_s27 + $0xf8] sm:$0xff] %v242_v31  ;;  %v246_v33 = vld [vmem:[%s3600_s26 + $0x408] sm:$0xff] }
  0x22   : > { %245 = vst [vmem:[%s3605_s27 + $0x100] sm:$0xff] %v244_v32  ;;  %v248_v34 = vld [vmem:[%s3600_s26 + $0x440] sm:$0xff]  ;;  %v250_v35 = vld [vmem:[%s3600_s26 + $0x448] sm:$0xff]  ;;  %247 = vst [vmem:[%s3605_s27 + $0x108] sm:$0xff] %v246_v33 }
  0x23   : > { %249 = vst [vmem:[%s3605_s27 + $0x110] sm:$0xff] %v248_v34  ;;  %251 = vst [vmem:[%s3605_s27 + $0x118] sm:$0xff] %v250_v35  ;;  %v252_v36 = vld [vmem:[%s3600_s26 + $0x480] sm:$0xff]  ;;  %v254_v37 = vld [vmem:[%s3600_s26 + $0x488] sm:$0xff] }
  0x24   : > { %v256_v38 = vld [vmem:[%s3600_s26 + $0x4c0] sm:$0xff]  ;;  %253 = vst [vmem:[%s3605_s27 + $0x120] sm:$0xff] %v252_v36  ;;  %255 = vst [vmem:[%s3605_s27 + $0x128] sm:$0xff] %v254_v37  ;;  %v258_v39 = vld [vmem:[%s3600_s26 + $0x4c8] sm:$0xff] }
  0x25   : > { %257 = vst [vmem:[%s3605_s27 + $0x130] sm:$0xff] %v256_v38  ;;  %v260_v40 = vld [vmem:[%s3600_s26 + $0x500] sm:$0xff]  ;;  %v262_v41 = vld [vmem:[%s3600_s26 + $0x508] sm:$0xff]  ;;  %259 = vst [vmem:[%s3605_s27 + $0x138] sm:$0xff] %v258_v39 }
  0x26   : > { %261 = vst [vmem:[%s3605_s27 + $0x140] sm:$0xff] %v260_v40  ;;  %263 = vst [vmem:[%s3605_s27 + $0x148] sm:$0xff] %v262_v41  ;;  %v264_v42 = vld [vmem:[%s3600_s26 + $0x540] sm:$0xff]  ;;  %v266_v43 = vld [vmem:[%s3600_s26 + $0x548] sm:$0xff] }
  0x27   : > { %v268_v44 = vld [vmem:[%s3600_s26 + $0x580] sm:$0xff]  ;;  %265 = vst [vmem:[%s3605_s27 + $0x150] sm:$0xff] %v264_v42  ;;  %267 = vst [vmem:[%s3605_s27 + $0x158] sm:$0xff] %v266_v43  ;;  %v270_v45 = vld [vmem:[%s3600_s26 + $0x588] sm:$0xff] }
  0x28   : > { %269 = vst [vmem:[%s3605_s27 + $0x160] sm:$0xff] %v268_v44  ;;  %v272_v46 = vld [vmem:[%s3600_s26 + $0x5c0] sm:$0xff]  ;;  %v274_v47 = vld [vmem:[%s3600_s26 + $0x5c8] sm:$0xff]  ;;  %271 = vst [vmem:[%s3605_s27 + $0x168] sm:$0xff] %v270_v45 }
  0x29   : > { %273 = vst [vmem:[%s3605_s27 + $0x170] sm:$0xff] %v272_v46  ;;  %275 = vst [vmem:[%s3605_s27 + $0x178] sm:$0xff] %v274_v47  ;;  %v276_v48 = vld [vmem:[%s3600_s26 + $0x600] sm:$0xff]  ;;  %v278_v49 = vld [vmem:[%s3600_s26 + $0x608] sm:$0xff] }
  0x2a   : > { %v280_v50 = vld [vmem:[%s3600_s26 + $0x640] sm:$0xff]  ;;  %277 = vst [vmem:[%s3605_s27 + $0x180] sm:$0xff] %v276_v48  ;;  %279 = vst [vmem:[%s3605_s27 + $0x188] sm:$0xff] %v278_v49  ;;  %v282_v51 = vld [vmem:[%s3600_s26 + $0x648] sm:$0xff] }
  0x2b   : > { %281 = vst [vmem:[%s3605_s27 + $0x190] sm:$0xff] %v280_v50  ;;  %v284_v52 = vld [vmem:[%s3600_s26 + $0x680] sm:$0xff]  ;;  %v286_v53 = vld [vmem:[%s3600_s26 + $0x688] sm:$0xff]  ;;  %283 = vst [vmem:[%s3605_s27 + $0x198] sm:$0xff] %v282_v51 }
  0x2c   : > { %285 = vst [vmem:[%s3605_s27 + $0x1a0] sm:$0xff] %v284_v52  ;;  %287 = vst [vmem:[%s3605_s27 + $0x1a8] sm:$0xff] %v286_v53  ;;  %v288_v54 = vld [vmem:[%s3600_s26 + $0x6c0] sm:$0xff]  ;;  %v290_v55 = vld [vmem:[%s3600_s26 + $0x6c8] sm:$0xff] }
  0x2d   : > { %v292_v56 = vld [vmem:[%s3600_s26 + $0x700] sm:$0xff]  ;;  %289 = vst [vmem:[%s3605_s27 + $0x1b0] sm:$0xff] %v288_v54  ;;  %291 = vst [vmem:[%s3605_s27 + $0x1b8] sm:$0xff] %v290_v55  ;;  %v294_v57 = vld [vmem:[%s3600_s26 + $0x708] sm:$0xff] }
  0x2e   : > { %293 = vst [vmem:[%s3605_s27 + $0x1c0] sm:$0xff] %v292_v56  ;;  %v296_v58 = vld [vmem:[%s3600_s26 + $0x740] sm:$0xff]  ;;  %v298_v59 = vld [vmem:[%s3600_s26 + $0x748] sm:$0xff]  ;;  %295 = vst [vmem:[%s3605_s27 + $0x1c8] sm:$0xff] %v294_v57 }
  0x2f   : > { %297 = vst [vmem:[%s3605_s27 + $0x1d0] sm:$0xff] %v296_v58  ;;  %299 = vst [vmem:[%s3605_s27 + $0x1d8] sm:$0xff] %v298_v59  ;;  %v300_v60 = vld [vmem:[%s3600_s26 + $0x780] sm:$0xff]  ;;  %v302_v61 = vld [vmem:[%s3600_s26 + $0x788] sm:$0xff] }
  0x30   : > { %v304_v62 = vld [vmem:[%s3600_s26 + $0x7c0] sm:$0xff]  ;;  %301 = vst [vmem:[%s3605_s27 + $0x1e0] sm:$0xff] %v300_v60  ;;  %303 = vst [vmem:[%s3605_s27 + $0x1e8] sm:$0xff] %v302_v61  ;;  %v306_v63 = vld [vmem:[%s3600_s26 + $0x7c8] sm:$0xff] }
  0x31   : > { %305 = vst [vmem:[%s3605_s27 + $0x1f0] sm:$0xff] %v304_v62  ;;  %v308_v0 = vld [vmem:[%s3600_s26 + $0x800] sm:$0xff]  ;;  %v310_v1 = vld [vmem:[%s3600_s26 + $0x808] sm:$0xff]  ;;  %307 = vst [vmem:[%s3605_s27 + $0x1f8] sm:$0xff] %v306_v63 }
  0x32   : > { %309 = vst [vmem:[%s3605_s27 + $0x200] sm:$0xff] %v308_v0  ;;  %311 = vst [vmem:[%s3605_s27 + $0x208] sm:$0xff] %v310_v1  ;;  %v312_v2 = vld [vmem:[%s3600_s26 + $0x840] sm:$0xff]  ;;  %v314_v3 = vld [vmem:[%s3600_s26 + $0x848] sm:$0xff] }
  0x33   : > { %v316_v4 = vld [vmem:[%s3600_s26 + $0x880] sm:$0xff]  ;;  %313 = vst [vmem:[%s3605_s27 + $0x210] sm:$0xff] %v312_v2  ;;  %315 = vst [vmem:[%s3605_s27 + $0x218] sm:$0xff] %v314_v3  ;;  %v318_v5 = vld [vmem:[%s3600_s26 + $0x888] sm:$0xff] }
  0x34   : > { %317 = vst [vmem:[%s3605_s27 + $0x220] sm:$0xff] %v316_v4  ;;  %v320_v6 = vld [vmem:[%s3600_s26 + $0x8c0] sm:$0xff]  ;;  %v322_v7 = vld [vmem:[%s3600_s26 + $0x8c8] sm:$0xff]  ;;  %319 = vst [vmem:[%s3605_s27 + $0x228] sm:$0xff] %v318_v5 }
  0x35   : > { %321 = vst [vmem:[%s3605_s27 + $0x230] sm:$0xff] %v320_v6  ;;  %323 = vst [vmem:[%s3605_s27 + $0x238] sm:$0xff] %v322_v7  ;;  %v324_v8 = vld [vmem:[%s3600_s26 + $0x900] sm:$0xff]  ;;  %v326_v9 = vld [vmem:[%s3600_s26 + $0x908] sm:$0xff] }
  0x36   : > { %v328_v10 = vld [vmem:[%s3600_s26 + $0x940] sm:$0xff]  ;;  %325 = vst [vmem:[%s3605_s27 + $0x240] sm:$0xff] %v324_v8  ;;  %327 = vst [vmem:[%s3605_s27 + $0x248] sm:$0xff] %v326_v9  ;;  %v330_v11 = vld [vmem:[%s3600_s26 + $0x948] sm:$0xff] }
  0x37   : > { %329 = vst [vmem:[%s3605_s27 + $0x250] sm:$0xff] %v328_v10  ;;  %v332_v12 = vld [vmem:[%s3600_s26 + $0x980] sm:$0xff]  ;;  %v334_v13 = vld [vmem:[%s3600_s26 + $0x988] sm:$0xff]  ;;  %331 = vst [vmem:[%s3605_s27 + $0x258] sm:$0xff] %v330_v11 }
  0x38   : > { %333 = vst [vmem:[%s3605_s27 + $0x260] sm:$0xff] %v332_v12  ;;  %335 = vst [vmem:[%s3605_s27 + $0x268] sm:$0xff] %v334_v13  ;;  %v336_v14 = vld [vmem:[%s3600_s26 + $0x9c0] sm:$0xff]  ;;  %v338_v15 = vld [vmem:[%s3600_s26 + $0x9c8] sm:$0xff] }
  0x39   : > { %v340_v16 = vld [vmem:[%s3600_s26 + $0xa00] sm:$0xff]  ;;  %337 = vst [vmem:[%s3605_s27 + $0x270] sm:$0xff] %v336_v14  ;;  %339 = vst [vmem:[%s3605_s27 + $0x278] sm:$0xff] %v338_v15  ;;  %v342_v17 = vld [vmem:[%s3600_s26 + $0xa08] sm:$0xff] }
  0x3a   : > { %341 = vst [vmem:[%s3605_s27 + $0x280] sm:$0xff] %v340_v16  ;;  %v344_v18 = vld [vmem:[%s3600_s26 + $0xa40] sm:$0xff]  ;;  %v346_v19 = vld [vmem:[%s3600_s26 + $0xa48] sm:$0xff]  ;;  %343 = vst [vmem:[%s3605_s27 + $0x288] sm:$0xff] %v342_v17 }
  0x3b   : > { %345 = vst [vmem:[%s3605_s27 + $0x290] sm:$0xff] %v344_v18  ;;  %347 = vst [vmem:[%s3605_s27 + $0x298] sm:$0xff] %v346_v19  ;;  %v348_v20 = vld [vmem:[%s3600_s26 + $0xa80] sm:$0xff]  ;;  %v350_v21 = vld [vmem:[%s3600_s26 + $0xa88] sm:$0xff] }
  0x3c   : > { %v352_v22 = vld [vmem:[%s3600_s26 + $0xac0] sm:$0xff]  ;;  %349 = vst [vmem:[%s3605_s27 + $0x2a0] sm:$0xff] %v348_v20  ;;  %351 = vst [vmem:[%s3605_s27 + $0x2a8] sm:$0xff] %v350_v21  ;;  %v354_v23 = vld [vmem:[%s3600_s26 + $0xac8] sm:$0xff] }
  0x3d   : > { %353 = vst [vmem:[%s3605_s27 + $0x2b0] sm:$0xff] %v352_v22  ;;  %v356_v24 = vld [vmem:[%s3600_s26 + $0xb00] sm:$0xff]  ;;  %v358_v25 = vld [vmem:[%s3600_s26 + $0xb08] sm:$0xff]  ;;  %355 = vst [vmem:[%s3605_s27 + $0x2b8] sm:$0xff] %v354_v23 }
  0x3e   : > { %357 = vst [vmem:[%s3605_s27 + $0x2c0] sm:$0xff] %v356_v24  ;;  %359 = vst [vmem:[%s3605_s27 + $0x2c8] sm:$0xff] %v358_v25  ;;  %v360_v26 = vld [vmem:[%s3600_s26 + $0xb40] sm:$0xff]  ;;  %v362_v27 = vld [vmem:[%s3600_s26 + $0xb48] sm:$0xff] }
  0x3f   : > { %v364_v28 = vld [vmem:[%s3600_s26 + $0xb80] sm:$0xff]  ;;  %361 = vst [vmem:[%s3605_s27 + $0x2d0] sm:$0xff] %v360_v26  ;;  %363 = vst [vmem:[%s3605_s27 + $0x2d8] sm:$0xff] %v362_v27  ;;  %v366_v29 = vld [vmem:[%s3600_s26 + $0xb88] sm:$0xff] }
  0x40   : > { %365 = vst [vmem:[%s3605_s27 + $0x2e0] sm:$0xff] %v364_v28  ;;  %v368_v30 = vld [vmem:[%s3600_s26 + $0xbc0] sm:$0xff]  ;;  %v370_v31 = vld [vmem:[%s3600_s26 + $0xbc8] sm:$0xff]  ;;  %367 = vst [vmem:[%s3605_s27 + $0x2e8] sm:$0xff] %v366_v29 }
  0x41   : > { %369 = vst [vmem:[%s3605_s27 + $0x2f0] sm:$0xff] %v368_v30  ;;  %371 = vst [vmem:[%s3605_s27 + $0x2f8] sm:$0xff] %v370_v31  ;;  %v372_v32 = vld [vmem:[%s3600_s26 + $0xc00] sm:$0xff]  ;;  %v374_v33 = vld [vmem:[%s3600_s26 + $0xc08] sm:$0xff] }
  0x42   : > { %v376_v34 = vld [vmem:[%s3600_s26 + $0xc40] sm:$0xff]  ;;  %373 = vst [vmem:[%s3605_s27 + $0x300] sm:$0xff] %v372_v32  ;;  %375 = vst [vmem:[%s3605_s27 + $0x308] sm:$0xff] %v374_v33  ;;  %v378_v35 = vld [vmem:[%s3600_s26 + $0xc48] sm:$0xff] }
  0x43   : > { %377 = vst [vmem:[%s3605_s27 + $0x310] sm:$0xff] %v376_v34  ;;  %v380_v36 = vld [vmem:[%s3600_s26 + $0xc80] sm:$0xff]  ;;  %v382_v37 = vld [vmem:[%s3600_s26 + $0xc88] sm:$0xff]  ;;  %379 = vst [vmem:[%s3605_s27 + $0x318] sm:$0xff] %v378_v35 }
  0x44   : > { %381 = vst [vmem:[%s3605_s27 + $0x320] sm:$0xff] %v380_v36  ;;  %383 = vst [vmem:[%s3605_s27 + $0x328] sm:$0xff] %v382_v37  ;;  %v384_v38 = vld [vmem:[%s3600_s26 + $0xcc0] sm:$0xff]  ;;  %v386_v39 = vld [vmem:[%s3600_s26 + $0xcc8] sm:$0xff] }
  0x45   : > { %v388_v40 = vld [vmem:[%s3600_s26 + $0xd00] sm:$0xff]  ;;  %385 = vst [vmem:[%s3605_s27 + $0x330] sm:$0xff] %v384_v38  ;;  %387 = vst [vmem:[%s3605_s27 + $0x338] sm:$0xff] %v386_v39  ;;  %v390_v41 = vld [vmem:[%s3600_s26 + $0xd08] sm:$0xff] }
  0x46   : > { %389 = vst [vmem:[%s3605_s27 + $0x340] sm:$0xff] %v388_v40  ;;  %v392_v42 = vld [vmem:[%s3600_s26 + $0xd40] sm:$0xff]  ;;  %v394_v43 = vld [vmem:[%s3600_s26 + $0xd48] sm:$0xff]  ;;  %391 = vst [vmem:[%s3605_s27 + $0x348] sm:$0xff] %v390_v41 }
  0x47   : > { %393 = vst [vmem:[%s3605_s27 + $0x350] sm:$0xff] %v392_v42  ;;  %395 = vst [vmem:[%s3605_s27 + $0x358] sm:$0xff] %v394_v43  ;;  %v396_v44 = vld [vmem:[%s3600_s26 + $0xd80] sm:$0xff]  ;;  %v398_v45 = vld [vmem:[%s3600_s26 + $0xd88] sm:$0xff] }
  0x48   : > { %v400_v46 = vld [vmem:[%s3600_s26 + $0xdc0] sm:$0xff]  ;;  %397 = vst [vmem:[%s3605_s27 + $0x360] sm:$0xff] %v396_v44  ;;  %399 = vst [vmem:[%s3605_s27 + $0x368] sm:$0xff] %v398_v45  ;;  %v402_v47 = vld [vmem:[%s3600_s26 + $0xdc8] sm:$0xff] }
  0x49   : > { %401 = vst [vmem:[%s3605_s27 + $0x370] sm:$0xff] %v400_v46  ;;  %v404_v48 = vld [vmem:[%s3600_s26 + $0xe00] sm:$0xff]  ;;  %v406_v49 = vld [vmem:[%s3600_s26 + $0xe08] sm:$0xff]  ;;  %403 = vst [vmem:[%s3605_s27 + $0x378] sm:$0xff] %v402_v47 }
  0x4a   : > { %405 = vst [vmem:[%s3605_s27 + $0x380] sm:$0xff] %v404_v48  ;;  %407 = vst [vmem:[%s3605_s27 + $0x388] sm:$0xff] %v406_v49  ;;  %v408_v50 = vld [vmem:[%s3600_s26 + $0xe40] sm:$0xff]  ;;  %v410_v51 = vld [vmem:[%s3600_s26 + $0xe48] sm:$0xff] }
  0x4b   : > { %v412_v52 = vld [vmem:[%s3600_s26 + $0xe80] sm:$0xff]  ;;  %409 = vst [vmem:[%s3605_s27 + $0x390] sm:$0xff] %v408_v50  ;;  %411 = vst [vmem:[%s3605_s27 + $0x398] sm:$0xff] %v410_v51  ;;  %v414_v53 = vld [vmem:[%s3600_s26 + $0xe88] sm:$0xff] }
  0x4c   : > { %413 = vst [vmem:[%s3605_s27 + $0x3a0] sm:$0xff] %v412_v52  ;;  %v416_v54 = vld [vmem:[%s3600_s26 + $0xec0] sm:$0xff]  ;;  %v418_v55 = vld [vmem:[%s3600_s26 + $0xec8] sm:$0xff]  ;;  %415 = vst [vmem:[%s3605_s27 + $0x3a8] sm:$0xff] %v414_v53 }
  0x4d   : > { %417 = vst [vmem:[%s3605_s27 + $0x3b0] sm:$0xff] %v416_v54  ;;  %419 = vst [vmem:[%s3605_s27 + $0x3b8] sm:$0xff] %v418_v55  ;;  %v420_v56 = vld [vmem:[%s3600_s26 + $0xf00] sm:$0xff]  ;;  %v422_v57 = vld [vmem:[%s3600_s26 + $0xf08] sm:$0xff] }
  0x4e   : > { %v424_v58 = vld [vmem:[%s3600_s26 + $0xf40] sm:$0xff]  ;;  %421 = vst [vmem:[%s3605_s27 + $0x3c0] sm:$0xff] %v420_v56  ;;  %423 = vst [vmem:[%s3605_s27 + $0x3c8] sm:$0xff] %v422_v57  ;;  %v426_v59 = vld [vmem:[%s3600_s26 + $0xf48] sm:$0xff] }
  0x4f   : > { %425 = vst [vmem:[%s3605_s27 + $0x3d0] sm:$0xff] %v424_v58  ;;  %v428_v60 = vld [vmem:[%s3600_s26 + $0xf80] sm:$0xff]  ;;  %v430_v61 = vld [vmem:[%s3600_s26 + $0xf88] sm:$0xff]  ;;  %427 = vst [vmem:[%s3605_s27 + $0x3d8] sm:$0xff] %v426_v59 }
  0x50   : > { %429 = vst [vmem:[%s3605_s27 + $0x3e0] sm:$0xff] %v428_v60  ;;  %431 = vst [vmem:[%s3605_s27 + $0x3e8] sm:$0xff] %v430_v61  ;;  %v432_v62 = vld [vmem:[%s3600_s26 + $0xfc0] sm:$0xff]  ;;  %v434_v63 = vld [vmem:[%s3600_s26 + $0xfc8] sm:$0xff] }
  0x51   : > { %v436_v0 = vld [vmem:[%s3600_s26 + $0x1000] sm:$0xff]  ;;  %433 = vst [vmem:[%s3605_s27 + $0x3f0] sm:$0xff] %v432_v62  ;;  %435 = vst [vmem:[%s3605_s27 + $0x3f8] sm:$0xff] %v434_v63  ;;  %v438_v1 = vld [vmem:[%s3600_s26 + $0x1008] sm:$0xff] }
  0x52   : > { %437 = vst [vmem:[%s3605_s27 + $0x400] sm:$0xff] %v436_v0  ;;  %v440_v2 = vld [vmem:[%s3600_s26 + $0x1040] sm:$0xff]  ;;  %v442_v3 = vld [vmem:[%s3600_s26 + $0x1048] sm:$0xff]  ;;  %439 = vst [vmem:[%s3605_s27 + $0x408] sm:$0xff] %v438_v1 }
  0x53   : > { %441 = vst [vmem:[%s3605_s27 + $0x410] sm:$0xff] %v440_v2  ;;  %443 = vst [vmem:[%s3605_s27 + $0x418] sm:$0xff] %v442_v3  ;;  %v444_v4 = vld [vmem:[%s3600_s26 + $0x1080] sm:$0xff]  ;;  %v446_v5 = vld [vmem:[%s3600_s26 + $0x1088] sm:$0xff] }
  0x54   : > { %v448_v6 = vld [vmem:[%s3600_s26 + $0x10c0] sm:$0xff]  ;;  %445 = vst [vmem:[%s3605_s27 + $0x420] sm:$0xff] %v444_v4  ;;  %447 = vst [vmem:[%s3605_s27 + $0x428] sm:$0xff] %v446_v5  ;;  %v450_v7 = vld [vmem:[%s3600_s26 + $0x10c8] sm:$0xff] }
  0x55   : > { %449 = vst [vmem:[%s3605_s27 + $0x430] sm:$0xff] %v448_v6  ;;  %v452_v8 = vld [vmem:[%s3600_s26 + $0x1100] sm:$0xff]  ;;  %v454_v9 = vld [vmem:[%s3600_s26 + $0x1108] sm:$0xff]  ;;  %451 = vst [vmem:[%s3605_s27 + $0x438] sm:$0xff] %v450_v7 }
  0x56   : > { %453 = vst [vmem:[%s3605_s27 + $0x440] sm:$0xff] %v452_v8  ;;  %455 = vst [vmem:[%s3605_s27 + $0x448] sm:$0xff] %v454_v9  ;;  %v456_v10 = vld [vmem:[%s3600_s26 + $0x1140] sm:$0xff]  ;;  %v458_v11 = vld [vmem:[%s3600_s26 + $0x1148] sm:$0xff] }
  0x57   : > { %v460_v12 = vld [vmem:[%s3600_s26 + $0x1180] sm:$0xff]  ;;  %457 = vst [vmem:[%s3605_s27 + $0x450] sm:$0xff] %v456_v10  ;;  %459 = vst [vmem:[%s3605_s27 + $0x458] sm:$0xff] %v458_v11  ;;  %v462_v13 = vld [vmem:[%s3600_s26 + $0x1188] sm:$0xff] }
  0x58   : > { %461 = vst [vmem:[%s3605_s27 + $0x460] sm:$0xff] %v460_v12  ;;  %v464_v14 = vld [vmem:[%s3600_s26 + $0x11c0] sm:$0xff]  ;;  %v466_v15 = vld [vmem:[%s3600_s26 + $0x11c8] sm:$0xff]  ;;  %463 = vst [vmem:[%s3605_s27 + $0x468] sm:$0xff] %v462_v13 }
  0x59   : > { %465 = vst [vmem:[%s3605_s27 + $0x470] sm:$0xff] %v464_v14  ;;  %467 = vst [vmem:[%s3605_s27 + $0x478] sm:$0xff] %v466_v15  ;;  %v468_v16 = vld [vmem:[%s3600_s26 + $0x1200] sm:$0xff]  ;;  %v470_v17 = vld [vmem:[%s3600_s26 + $0x1208] sm:$0xff] }
  0x5a   : > { %v472_v18 = vld [vmem:[%s3600_s26 + $0x1240] sm:$0xff]  ;;  %469 = vst [vmem:[%s3605_s27 + $0x480] sm:$0xff] %v468_v16  ;;  %471 = vst [vmem:[%s3605_s27 + $0x488] sm:$0xff] %v470_v17  ;;  %v474_v19 = vld [vmem:[%s3600_s26 + $0x1248] sm:$0xff] }
  0x5b   : > { %473 = vst [vmem:[%s3605_s27 + $0x490] sm:$0xff] %v472_v18  ;;  %v476_v20 = vld [vmem:[%s3600_s26 + $0x1280] sm:$0xff]  ;;  %v478_v21 = vld [vmem:[%s3600_s26 + $0x1288] sm:$0xff]  ;;  %475 = vst [vmem:[%s3605_s27 + $0x498] sm:$0xff] %v474_v19 }
  0x5c   : > { %477 = vst [vmem:[%s3605_s27 + $0x4a0] sm:$0xff] %v476_v20  ;;  %479 = vst [vmem:[%s3605_s27 + $0x4a8] sm:$0xff] %v478_v21  ;;  %v480_v22 = vld [vmem:[%s3600_s26 + $0x12c0] sm:$0xff]  ;;  %v482_v23 = vld [vmem:[%s3600_s26 + $0x12c8] sm:$0xff] }
  0x5d   : > { %v484_v24 = vld [vmem:[%s3600_s26 + $0x1300] sm:$0xff]  ;;  %481 = vst [vmem:[%s3605_s27 + $0x4b0] sm:$0xff] %v480_v22  ;;  %483 = vst [vmem:[%s3605_s27 + $0x4b8] sm:$0xff] %v482_v23  ;;  %v486_v25 = vld [vmem:[%s3600_s26 + $0x1308] sm:$0xff] }
  0x5e   : > { %485 = vst [vmem:[%s3605_s27 + $0x4c0] sm:$0xff] %v484_v24  ;;  %v488_v26 = vld [vmem:[%s3600_s26 + $0x1340] sm:$0xff]  ;;  %v490_v27 = vld [vmem:[%s3600_s26 + $0x1348] sm:$0xff]  ;;  %487 = vst [vmem:[%s3605_s27 + $0x4c8] sm:$0xff] %v486_v25 }
  0x5f   : > { %489 = vst [vmem:[%s3605_s27 + $0x4d0] sm:$0xff] %v488_v26  ;;  %491 = vst [vmem:[%s3605_s27 + $0x4d8] sm:$0xff] %v490_v27  ;;  %v492_v28 = vld [vmem:[%s3600_s26 + $0x1380] sm:$0xff]  ;;  %v494_v29 = vld [vmem:[%s3600_s26 + $0x1388] sm:$0xff] }
  0x60   : > { %v496_v30 = vld [vmem:[%s3600_s26 + $0x13c0] sm:$0xff]  ;;  %493 = vst [vmem:[%s3605_s27 + $0x4e0] sm:$0xff] %v492_v28  ;;  %495 = vst [vmem:[%s3605_s27 + $0x4e8] sm:$0xff] %v494_v29  ;;  %v498_v31 = vld [vmem:[%s3600_s26 + $0x13c8] sm:$0xff] }
  0x61   : > { %497 = vst [vmem:[%s3605_s27 + $0x4f0] sm:$0xff] %v496_v30  ;;  %v500_v32 = vld [vmem:[%s3600_s26 + $0x1400] sm:$0xff]  ;;  %v502_v33 = vld [vmem:[%s3600_s26 + $0x1408] sm:$0xff]  ;;  %499 = vst [vmem:[%s3605_s27 + $0x4f8] sm:$0xff] %v498_v31 }
  0x62   : > { %501 = vst [vmem:[%s3605_s27 + $0x500] sm:$0xff] %v500_v32  ;;  %503 = vst [vmem:[%s3605_s27 + $0x508] sm:$0xff] %v502_v33  ;;  %v504_v34 = vld [vmem:[%s3600_s26 + $0x1440] sm:$0xff]  ;;  %v506_v35 = vld [vmem:[%s3600_s26 + $0x1448] sm:$0xff] }
  0x63   : > { %v508_v36 = vld [vmem:[%s3600_s26 + $0x1480] sm:$0xff]  ;;  %505 = vst [vmem:[%s3605_s27 + $0x510] sm:$0xff] %v504_v34  ;;  %507 = vst [vmem:[%s3605_s27 + $0x518] sm:$0xff] %v506_v35  ;;  %v510_v37 = vld [vmem:[%s3600_s26 + $0x1488] sm:$0xff] }
  0x64   : > { %509 = vst [vmem:[%s3605_s27 + $0x520] sm:$0xff] %v508_v36  ;;  %v512_v38 = vld [vmem:[%s3600_s26 + $0x14c0] sm:$0xff]  ;;  %v514_v39 = vld [vmem:[%s3600_s26 + $0x14c8] sm:$0xff]  ;;  %511 = vst [vmem:[%s3605_s27 + $0x528] sm:$0xff] %v510_v37 }
  0x65   : > { %513 = vst [vmem:[%s3605_s27 + $0x530] sm:$0xff] %v512_v38  ;;  %515 = vst [vmem:[%s3605_s27 + $0x538] sm:$0xff] %v514_v39  ;;  %v516_v40 = vld [vmem:[%s3600_s26 + $0x1500] sm:$0xff]  ;;  %v518_v41 = vld [vmem:[%s3600_s26 + $0x1508] sm:$0xff] }
  0x66   : > { %v520_v42 = vld [vmem:[%s3600_s26 + $0x1540] sm:$0xff]  ;;  %517 = vst [vmem:[%s3605_s27 + $0x540] sm:$0xff] %v516_v40  ;;  %519 = vst [vmem:[%s3605_s27 + $0x548] sm:$0xff] %v518_v41  ;;  %v522_v43 = vld [vmem:[%s3600_s26 + $0x1548] sm:$0xff] }
  0x67   : > { %521 = vst [vmem:[%s3605_s27 + $0x550] sm:$0xff] %v520_v42  ;;  %v524_v44 = vld [vmem:[%s3600_s26 + $0x1580] sm:$0xff]  ;;  %v526_v45 = vld [vmem:[%s3600_s26 + $0x1588] sm:$0xff]  ;;  %523 = vst [vmem:[%s3605_s27 + $0x558] sm:$0xff] %v522_v43 }
  0x68   : > { %525 = vst [vmem:[%s3605_s27 + $0x560] sm:$0xff] %v524_v44  ;;  %527 = vst [vmem:[%s3605_s27 + $0x568] sm:$0xff] %v526_v45  ;;  %v528_v46 = vld [vmem:[%s3600_s26 + $0x15c0] sm:$0xff]  ;;  %v530_v47 = vld [vmem:[%s3600_s26 + $0x15c8] sm:$0xff] }
  0x69   : > { %v532_v48 = vld [vmem:[%s3600_s26 + $0x1600] sm:$0xff]  ;;  %529 = vst [vmem:[%s3605_s27 + $0x570] sm:$0xff] %v528_v46  ;;  %531 = vst [vmem:[%s3605_s27 + $0x578] sm:$0xff] %v530_v47  ;;  %v534_v49 = vld [vmem:[%s3600_s26 + $0x1608] sm:$0xff] }
  0x6a   : > { %533 = vst [vmem:[%s3605_s27 + $0x580] sm:$0xff] %v532_v48  ;;  %v536_v50 = vld [vmem:[%s3600_s26 + $0x1640] sm:$0xff]  ;;  %v538_v51 = vld [vmem:[%s3600_s26 + $0x1648] sm:$0xff]  ;;  %535 = vst [vmem:[%s3605_s27 + $0x588] sm:$0xff] %v534_v49 }
  0x6b   : > { %537 = vst [vmem:[%s3605_s27 + $0x590] sm:$0xff] %v536_v50  ;;  %539 = vst [vmem:[%s3605_s27 + $0x598] sm:$0xff] %v538_v51  ;;  %v540_v52 = vld [vmem:[%s3600_s26 + $0x1680] sm:$0xff]  ;;  %v542_v53 = vld [vmem:[%s3600_s26 + $0x1688] sm:$0xff] }
  0x6c   : > { %v544_v54 = vld [vmem:[%s3600_s26 + $0x16c0] sm:$0xff]  ;;  %541 = vst [vmem:[%s3605_s27 + $0x5a0] sm:$0xff] %v540_v52  ;;  %543 = vst [vmem:[%s3605_s27 + $0x5a8] sm:$0xff] %v542_v53  ;;  %v546_v55 = vld [vmem:[%s3600_s26 + $0x16c8] sm:$0xff] }
  0x6d   : > { %545 = vst [vmem:[%s3605_s27 + $0x5b0] sm:$0xff] %v544_v54  ;;  %v548_v56 = vld [vmem:[%s3600_s26 + $0x1700] sm:$0xff]  ;;  %v550_v57 = vld [vmem:[%s3600_s26 + $0x1708] sm:$0xff]  ;;  %547 = vst [vmem:[%s3605_s27 + $0x5b8] sm:$0xff] %v546_v55 }
  0x6e   : > { %549 = vst [vmem:[%s3605_s27 + $0x5c0] sm:$0xff] %v548_v56  ;;  %551 = vst [vmem:[%s3605_s27 + $0x5c8] sm:$0xff] %v550_v57  ;;  %v552_v58 = vld [vmem:[%s3600_s26 + $0x1740] sm:$0xff]  ;;  %v554_v59 = vld [vmem:[%s3600_s26 + $0x1748] sm:$0xff] }
  0x6f   : > { %v556_v60 = vld [vmem:[%s3600_s26 + $0x1780] sm:$0xff]  ;;  %553 = vst [vmem:[%s3605_s27 + $0x5d0] sm:$0xff] %v552_v58  ;;  %555 = vst [vmem:[%s3605_s27 + $0x5d8] sm:$0xff] %v554_v59  ;;  %v558_v61 = vld [vmem:[%s3600_s26 + $0x1788] sm:$0xff] }
  0x70   : > { %557 = vst [vmem:[%s3605_s27 + $0x5e0] sm:$0xff] %v556_v60  ;;  %v560_v62 = vld [vmem:[%s3600_s26 + $0x17c0] sm:$0xff]  ;;  %v562_v63 = vld [vmem:[%s3600_s26 + $0x17c8] sm:$0xff]  ;;  %559 = vst [vmem:[%s3605_s27 + $0x5e8] sm:$0xff] %v558_v61 }
  0x71   : > { %561 = vst [vmem:[%s3605_s27 + $0x5f0] sm:$0xff] %v560_v62  ;;  %563 = vst [vmem:[%s3605_s27 + $0x5f8] sm:$0xff] %v562_v63  ;;  %v564_v0 = vld [vmem:[%s3600_s26 + $0x1800] sm:$0xff]  ;;  %v566_v1 = vld [vmem:[%s3600_s26 + $0x1808] sm:$0xff] }
  0x72   : > { %v568_v2 = vld [vmem:[%s3600_s26 + $0x1840] sm:$0xff]  ;;  %565 = vst [vmem:[%s3605_s27 + $0x600] sm:$0xff] %v564_v0  ;;  %567 = vst [vmem:[%s3605_s27 + $0x608] sm:$0xff] %v566_v1  ;;  %v570_v3 = vld [vmem:[%s3600_s26 + $0x1848] sm:$0xff] }
  0x73   : > { %569 = vst [vmem:[%s3605_s27 + $0x610] sm:$0xff] %v568_v2  ;;  %v572_v4 = vld [vmem:[%s3600_s26 + $0x1880] sm:$0xff]  ;;  %v574_v5 = vld [vmem:[%s3600_s26 + $0x1888] sm:$0xff]  ;;  %571 = vst [vmem:[%s3605_s27 + $0x618] sm:$0xff] %v570_v3 }
  0x74   : > { %573 = vst [vmem:[%s3605_s27 + $0x620] sm:$0xff] %v572_v4  ;;  %575 = vst [vmem:[%s3605_s27 + $0x628] sm:$0xff] %v574_v5  ;;  %v576_v6 = vld [vmem:[%s3600_s26 + $0x18c0] sm:$0xff]  ;;  %v578_v7 = vld [vmem:[%s3600_s26 + $0x18c8] sm:$0xff] }
  0x75   : > { %v580_v8 = vld [vmem:[%s3600_s26 + $0x1900] sm:$0xff]  ;;  %577 = vst [vmem:[%s3605_s27 + $0x630] sm:$0xff] %v576_v6  ;;  %579 = vst [vmem:[%s3605_s27 + $0x638] sm:$0xff] %v578_v7  ;;  %v582_v9 = vld [vmem:[%s3600_s26 + $0x1908] sm:$0xff] }
  0x76   : > { %581 = vst [vmem:[%s3605_s27 + $0x640] sm:$0xff] %v580_v8  ;;  %v584_v10 = vld [vmem:[%s3600_s26 + $0x1940] sm:$0xff]  ;;  %v586_v11 = vld [vmem:[%s3600_s26 + $0x1948] sm:$0xff]  ;;  %583 = vst [vmem:[%s3605_s27 + $0x648] sm:$0xff] %v582_v9 }
  0x77   : > { %585 = vst [vmem:[%s3605_s27 + $0x650] sm:$0xff] %v584_v10  ;;  %587 = vst [vmem:[%s3605_s27 + $0x658] sm:$0xff] %v586_v11  ;;  %v588_v12 = vld [vmem:[%s3600_s26 + $0x1980] sm:$0xff]  ;;  %v590_v13 = vld [vmem:[%s3600_s26 + $0x1988] sm:$0xff] }
  0x78   : > { %v592_v14 = vld [vmem:[%s3600_s26 + $0x19c0] sm:$0xff]  ;;  %589 = vst [vmem:[%s3605_s27 + $0x660] sm:$0xff] %v588_v12  ;;  %591 = vst [vmem:[%s3605_s27 + $0x668] sm:$0xff] %v590_v13  ;;  %v594_v15 = vld [vmem:[%s3600_s26 + $0x19c8] sm:$0xff] }
  0x79   : > { %593 = vst [vmem:[%s3605_s27 + $0x670] sm:$0xff] %v592_v14  ;;  %v596_v16 = vld [vmem:[%s3600_s26 + $0x1a00] sm:$0xff]  ;;  %v598_v17 = vld [vmem:[%s3600_s26 + $0x1a08] sm:$0xff]  ;;  %595 = vst [vmem:[%s3605_s27 + $0x678] sm:$0xff] %v594_v15 }
  0x7a   : > { %597 = vst [vmem:[%s3605_s27 + $0x680] sm:$0xff] %v596_v16  ;;  %599 = vst [vmem:[%s3605_s27 + $0x688] sm:$0xff] %v598_v17  ;;  %v600_v18 = vld [vmem:[%s3600_s26 + $0x1a40] sm:$0xff]  ;;  %v602_v19 = vld [vmem:[%s3600_s26 + $0x1a48] sm:$0xff] }
  0x7b   : > { %v604_v20 = vld [vmem:[%s3600_s26 + $0x1a80] sm:$0xff]  ;;  %601 = vst [vmem:[%s3605_s27 + $0x690] sm:$0xff] %v600_v18  ;;  %603 = vst [vmem:[%s3605_s27 + $0x698] sm:$0xff] %v602_v19  ;;  %v606_v21 = vld [vmem:[%s3600_s26 + $0x1a88] sm:$0xff] }
  0x7c   : > { %605 = vst [vmem:[%s3605_s27 + $0x6a0] sm:$0xff] %v604_v20  ;;  %v608_v22 = vld [vmem:[%s3600_s26 + $0x1ac0] sm:$0xff]  ;;  %v610_v23 = vld [vmem:[%s3600_s26 + $0x1ac8] sm:$0xff]  ;;  %607 = vst [vmem:[%s3605_s27 + $0x6a8] sm:$0xff] %v606_v21 }
  0x7d   : > { %609 = vst [vmem:[%s3605_s27 + $0x6b0] sm:$0xff] %v608_v22  ;;  %611 = vst [vmem:[%s3605_s27 + $0x6b8] sm:$0xff] %v610_v23  ;;  %v612_v24 = vld [vmem:[%s3600_s26 + $0x1b00] sm:$0xff]  ;;  %v614_v25 = vld [vmem:[%s3600_s26 + $0x1b08] sm:$0xff] }
  0x7e   : > { %v616_v26 = vld [vmem:[%s3600_s26 + $0x1b40] sm:$0xff]  ;;  %613 = vst [vmem:[%s3605_s27 + $0x6c0] sm:$0xff] %v612_v24  ;;  %615 = vst [vmem:[%s3605_s27 + $0x6c8] sm:$0xff] %v614_v25  ;;  %v618_v27 = vld [vmem:[%s3600_s26 + $0x1b48] sm:$0xff] }
  0x7f   : > { %617 = vst [vmem:[%s3605_s27 + $0x6d0] sm:$0xff] %v616_v26  ;;  %v620_v28 = vld [vmem:[%s3600_s26 + $0x1b80] sm:$0xff]  ;;  %v622_v29 = vld [vmem:[%s3600_s26 + $0x1b88] sm:$0xff]  ;;  %619 = vst [vmem:[%s3605_s27 + $0x6d8] sm:$0xff] %v618_v27 }
  0x80   : > { %621 = vst [vmem:[%s3605_s27 + $0x6e0] sm:$0xff] %v620_v28  ;;  %623 = vst [vmem:[%s3605_s27 + $0x6e8] sm:$0xff] %v622_v29  ;;  %v624_v30 = vld [vmem:[%s3600_s26 + $0x1bc0] sm:$0xff]  ;;  %v626_v31 = vld [vmem:[%s3600_s26 + $0x1bc8] sm:$0xff] }
  0x81   : > { %v628_v32 = vld [vmem:[%s3600_s26 + $0x1c00] sm:$0xff]  ;;  %625 = vst [vmem:[%s3605_s27 + $0x6f0] sm:$0xff] %v624_v30  ;;  %627 = vst [vmem:[%s3605_s27 + $0x6f8] sm:$0xff] %v626_v31  ;;  %v630_v33 = vld [vmem:[%s3600_s26 + $0x1c08] sm:$0xff] }
  0x82   : > { %629 = vst [vmem:[%s3605_s27 + $0x700] sm:$0xff] %v628_v32  ;;  %v632_v34 = vld [vmem:[%s3600_s26 + $0x1c40] sm:$0xff]  ;;  %v634_v35 = vld [vmem:[%s3600_s26 + $0x1c48] sm:$0xff]  ;;  %631 = vst [vmem:[%s3605_s27 + $0x708] sm:$0xff] %v630_v33 }
  0x83   : > { %633 = vst [vmem:[%s3605_s27 + $0x710] sm:$0xff] %v632_v34  ;;  %635 = vst [vmem:[%s3605_s27 + $0x718] sm:$0xff] %v634_v35  ;;  %v636_v36 = vld [vmem:[%s3600_s26 + $0x1c80] sm:$0xff]  ;;  %v638_v37 = vld [vmem:[%s3600_s26 + $0x1c88] sm:$0xff] }
  0x84   : > { %v640_v38 = vld [vmem:[%s3600_s26 + $0x1cc0] sm:$0xff]  ;;  %637 = vst [vmem:[%s3605_s27 + $0x720] sm:$0xff] %v636_v36  ;;  %639 = vst [vmem:[%s3605_s27 + $0x728] sm:$0xff] %v638_v37  ;;  %v642_v39 = vld [vmem:[%s3600_s26 + $0x1cc8] sm:$0xff] }
  0x85   : > { %641 = vst [vmem:[%s3605_s27 + $0x730] sm:$0xff] %v640_v38  ;;  %v644_v40 = vld [vmem:[%s3600_s26 + $0x1d00] sm:$0xff]  ;;  %v646_v41 = vld [vmem:[%s3600_s26 + $0x1d08] sm:$0xff]  ;;  %643 = vst [vmem:[%s3605_s27 + $0x738] sm:$0xff] %v642_v39 }
  0x86   : > { %645 = vst [vmem:[%s3605_s27 + $0x740] sm:$0xff] %v644_v40  ;;  %647 = vst [vmem:[%s3605_s27 + $0x748] sm:$0xff] %v646_v41  ;;  %v648_v42 = vld [vmem:[%s3600_s26 + $0x1d40] sm:$0xff]  ;;  %v650_v43 = vld [vmem:[%s3600_s26 + $0x1d48] sm:$0xff] }
  0x87   : > { %v652_v44 = vld [vmem:[%s3600_s26 + $0x1d80] sm:$0xff]  ;;  %649 = vst [vmem:[%s3605_s27 + $0x750] sm:$0xff] %v648_v42  ;;  %651 = vst [vmem:[%s3605_s27 + $0x758] sm:$0xff] %v650_v43  ;;  %v654_v45 = vld [vmem:[%s3600_s26 + $0x1d88] sm:$0xff] }
  0x88   : > { %653 = vst [vmem:[%s3605_s27 + $0x760] sm:$0xff] %v652_v44  ;;  %v656_v46 = vld [vmem:[%s3600_s26 + $0x1dc0] sm:$0xff]  ;;  %v658_v47 = vld [vmem:[%s3600_s26 + $0x1dc8] sm:$0xff]  ;;  %655 = vst [vmem:[%s3605_s27 + $0x768] sm:$0xff] %v654_v45 }
  0x89   : > { %657 = vst [vmem:[%s3605_s27 + $0x770] sm:$0xff] %v656_v46  ;;  %659 = vst [vmem:[%s3605_s27 + $0x778] sm:$0xff] %v658_v47  ;;  %v660_v48 = vld [vmem:[%s3600_s26 + $0x1e00] sm:$0xff]  ;;  %v662_v49 = vld [vmem:[%s3600_s26 + $0x1e08] sm:$0xff] }
  0x8a   : > { %v664_v50 = vld [vmem:[%s3600_s26 + $0x1e40] sm:$0xff]  ;;  %661 = vst [vmem:[%s3605_s27 + $0x780] sm:$0xff] %v660_v48  ;;  %663 = vst [vmem:[%s3605_s27 + $0x788] sm:$0xff] %v662_v49  ;;  %v666_v51 = vld [vmem:[%s3600_s26 + $0x1e48] sm:$0xff] }
  0x8b   : > { %665 = vst [vmem:[%s3605_s27 + $0x790] sm:$0xff] %v664_v50  ;;  %v668_v52 = vld [vmem:[%s3600_s26 + $0x1e80] sm:$0xff]  ;;  %v670_v53 = vld [vmem:[%s3600_s26 + $0x1e88] sm:$0xff]  ;;  %667 = vst [vmem:[%s3605_s27 + $0x798] sm:$0xff] %v666_v51 }
  0x8c   : > { %669 = vst [vmem:[%s3605_s27 + $0x7a0] sm:$0xff] %v668_v52  ;;  %671 = vst [vmem:[%s3605_s27 + $0x7a8] sm:$0xff] %v670_v53  ;;  %v672_v54 = vld [vmem:[%s3600_s26 + $0x1ec0] sm:$0xff]  ;;  %v674_v55 = vld [vmem:[%s3600_s26 + $0x1ec8] sm:$0xff] }
  0x8d   : > { %v676_v56 = vld [vmem:[%s3600_s26 + $0x1f00] sm:$0xff]  ;;  %673 = vst [vmem:[%s3605_s27 + $0x7b0] sm:$0xff] %v672_v54  ;;  %675 = vst [vmem:[%s3605_s27 + $0x7b8] sm:$0xff] %v674_v55  ;;  %v678_v57 = vld [vmem:[%s3600_s26 + $0x1f08] sm:$0xff] }
  0x8e   : > { %677 = vst [vmem:[%s3605_s27 + $0x7c0] sm:$0xff] %v676_v56  ;;  %v680_v58 = vld [vmem:[%s3600_s26 + $0x1f40] sm:$0xff]  ;;  %v682_v59 = vld [vmem:[%s3600_s26 + $0x1f48] sm:$0xff]  ;;  %679 = vst [vmem:[%s3605_s27 + $0x7c8] sm:$0xff] %v678_v57 }
  0x8f   : > { %681 = vst [vmem:[%s3605_s27 + $0x7d0] sm:$0xff] %v680_v58  ;;  %683 = vst [vmem:[%s3605_s27 + $0x7d8] sm:$0xff] %v682_v59  ;;  %v684_v60 = vld [vmem:[%s3600_s26 + $0x1f80] sm:$0xff]  ;;  %v686_v61 = vld [vmem:[%s3600_s26 + $0x1f88] sm:$0xff] }
  0x90   : > { %v688_v62 = vld [vmem:[%s3600_s26 + $0x1fc0] sm:$0xff]  ;;  %685 = vst [vmem:[%s3605_s27 + $0x7e0] sm:$0xff] %v684_v60  ;;  %687 = vst [vmem:[%s3605_s27 + $0x7e8] sm:$0xff] %v686_v61  ;;  %v690_v63 = vld [vmem:[%s3600_s26 + $0x1fc8] sm:$0xff] }
  0x91   : > { %689 = vst [vmem:[%s3605_s27 + $0x7f0] sm:$0xff] %v688_v62  ;;  %691 = vst [vmem:[%s3605_s27 + $0x7f8] sm:$0xff] %v690_v63 }
  0x92 PF: > { %p2809_p6 = scmp.ge.s32.totalorder %s3535_s16, 1  ;;  %p704_p7 = scmp.lt.s32.totalorder %s3535_s16, 5 }
  0x94   : > { %p705_p8 = pnand %p2809_p6, %p704_p7 }
  0x95   : > { %s711_s28 = sand.u32 (!%p705_p8), 1, %s3519_s12   ;;  %v775_v0 = vld [vmem:[%s4461_s0 + $0x8] sm:$0xff] (!%p705_p8)  ;;  %v777_v1 = vld [vmem:[%s4461_s0 + $0x18] sm:$0xff] (!%p705_p8)  ;;  %s2811_s26 = sshll.u32 (!%p705_p8), %s3527_s14, 2 }
  0x96   : > { %708 = sbr.rel (%p705_p8) target bundleno = 631 (0x277), region = 51  ;;  %s2810_s6 = sshll.u32 (!%p705_p8), %s711_s28, 11  ;;  %v4125_v2 = vpack.c.bf16 (!%p705_p8), %v775_v0, %v775_v0  ;;  %v4127_v3 = vpack.c.bf16 (!%p705_p8), %v777_v1, %v777_v1 }
  0x97   : > { %s4129_s7 = scalar_lea.vmem (!%p705_p8), [#allocation3], %s2810_s6  ;;  %p752_p9 = scmp.lt.s32.totalorder (!%p705_p8), %s2811_s26, 15 }
  0x98   : > { %v3113_v4 = vld [vmem:[%s4129_s7 + $0x4] ss:$16 sps:$4 sm:$0xff] (!%p705_p8)   ;;  %2358 = vmatprep.mubr.bf16.mxu0 (!%p705_p8), %v4125_v2  ;;  %2399 = vmatprep.mubr.bf16.mxu1 (!%p705_p8), %v4127_v3  ;;  %v3117_v6 = vld [vmem:[%s4129_s7] ss:$16 sps:$4 sm:$0xff] (!%p705_p8)  }
  0x99   : > { %v3115_v5 = vld [vmem:[%s4129_s7 + $0x204] ss:$16 sps:$4 sm:$0xff] (!%p705_p8)   ;;  %2326 = vmatprep.subr.bf16.mxu0 (!%p705_p8), %v3113_v4  ;;  %v3118_v7 = vld [vmem:[%s4129_s7 + $0x200] ss:$16 sps:$4 sm:$0xff] (!%p705_p8)  }
  0x9a   : > { %2367 = vmatprep.subr.bf16.mxu1 (!%p705_p8), %v3115_v5  ;;  %v3119_v8 = vld [vmem:[%s4129_s7 + $0x24] ss:$16 sps:$4 sm:$0xff] (!%p705_p8)   ;;  %2327 = vmatpush1.bf16.msra.mxu0 (!%p705_p8), %v3117_v6  ;;  %v3123_v10 = vld [vmem:[%s4129_s7 + $0x20] ss:$16 sps:$4 sm:$0xff] (!%p705_p8)  }
  0x9b   : > { %2368 = vmatpush1.bf16.msra.mxu1 (!%p705_p8), %v3118_v7  ;;  %v3121_v9 = vld [vmem:[%s4129_s7 + $0x224] ss:$16 sps:$4 sm:$0xff] (!%p705_p8)   ;;  %2328 = vmatprep.subr.bf16.mxu0 (!%p705_p8), %v3119_v8  ;;  %v3124_v11 = vld [vmem:[%s4129_s7 + $0x220] ss:$16 sps:$4 sm:$0xff] (!%p705_p8)  }
  0x9c   : > { %2369 = vmatprep.subr.bf16.mxu1 (!%p705_p8), %v3121_v9  ;;  %v3125_v12 = vld [vmem:[%s4129_s7 + $0x44] ss:$16 sps:$4 sm:$0xff] (!%p705_p8)   ;;  %v3129_v14 = vld [vmem:[%s4129_s7 + $0x40] ss:$16 sps:$4 sm:$0xff] (!%p705_p8)  }
  0x9d   : > { %v3127_v13 = vld [vmem:[%s4129_s7 + $0x244] ss:$16 sps:$4 sm:$0xff]   ;;  %v3130_v15 = vld [vmem:[%s4129_s7 + $0x240] ss:$16 sps:$4 sm:$0xff]   ;;  %s4472_s26 = smov (!%p752_p9, %s2811_s26), 15 }
  0x9e   : > { %2329 = vmatpush1.bf16.msra.mxu0 %v3123_v10  ;;  %v3131_v16 = vld [vmem:[%s4129_s7 + $0x64] ss:$16 sps:$4 sm:$0xff]   ;;  %v3135_v18 = vld [vmem:[%s4129_s7 + $0x60] ss:$16 sps:$4 sm:$0xff]   ;;  %v779_v10 = vld [vmem:[%s4461_s0 + $0x28] sm:$0xff]  ;;  %s754_s29 = scalar_lea.vmem %s4463_s2, %s4472_s26  ;;  %s2813_s14 = sshll.u32 %s4472_s26, 3 }
  0x9f   : > { %2370 = vmatpush1.bf16.msra.mxu1 %v3124_v11  ;;  %2330 = vmatprep.subr.bf16.mxu0 %v3125_v12  ;;  %v3133_v17 = vld [vmem:[%s4129_s7 + $0x264] ss:$16 sps:$4 sm:$0xff]   ;;  %v3136_v19 = vld [vmem:[%s4129_s7 + $0x260] ss:$16 sps:$4 sm:$0xff]   ;;  %v781_v11 = vld [vmem:[%s4461_s0 + $0x38] sm:$0xff]  ;;  %s4440_s5 = scalar_lea.vmem %s4464_s3, %s2813_s14 }
  0xa0   : > { %2371 = vmatprep.subr.bf16.mxu1 %v3127_v13  ;;  %v3137_v20 = vld [vmem:[%s4129_s7 + $0x84] ss:$16 sps:$4 sm:$0xff]   ;;  %v3141_v22 = vld [vmem:[%s4129_s7 + $0x80] ss:$16 sps:$4 sm:$0xff]  }
  0xa1   : > { %v3139_v21 = vld [vmem:[%s4129_s7 + $0x284] ss:$16 sps:$4 sm:$0xff]   ;;  %v3142_v23 = vld [vmem:[%s4129_s7 + $0x280] ss:$16 sps:$4 sm:$0xff]  }
  0xa2   : > { %2331 = vmatpush1.bf16.msra.mxu0 %v3129_v14  ;;  %v3143_v24 = vld [vmem:[%s4129_s7 + $0xa4] ss:$16 sps:$4 sm:$0xff]   ;;  %v3147_v26 = vld [vmem:[%s4129_s7 + $0xa0] ss:$16 sps:$4 sm:$0xff]  }
  0xa3   : > { %2372 = vmatpush1.bf16.msra.mxu1 %v3130_v15  ;;  %2332 = vmatprep.subr.bf16.mxu0 %v3131_v16  ;;  %v3145_v25 = vld [vmem:[%s4129_s7 + $0x2a4] ss:$16 sps:$4 sm:$0xff]   ;;  %v3148_v27 = vld [vmem:[%s4129_s7 + $0x2a0] ss:$16 sps:$4 sm:$0xff]  }
  0xa4   : > { %2373 = vmatprep.subr.bf16.mxu1 %v3133_v17  ;;  %v3149_v28 = vld [vmem:[%s4129_s7 + $0xc4] ss:$16 sps:$4 sm:$0xff]   ;;  %v3153_v30 = vld [vmem:[%s4129_s7 + $0xc0] ss:$16 sps:$4 sm:$0xff]  }
  0xa5   : > { %v3151_v29 = vld [vmem:[%s4129_s7 + $0x2c4] ss:$16 sps:$4 sm:$0xff]   ;;  %v3154_v31 = vld [vmem:[%s4129_s7 + $0x2c0] ss:$16 sps:$4 sm:$0xff]  }
  0xa6   : > { %2333 = vmatpush1.bf16.msra.mxu0 %v3135_v18  ;;  %v3155_v32 = vld [vmem:[%s4129_s7 + $0xe4] ss:$16 sps:$4 sm:$0xff]   ;;  %v3159_v34 = vld [vmem:[%s4129_s7 + $0xe0] ss:$16 sps:$4 sm:$0xff]   ;;  %v4219_v18 = vpack.c.bf16 %v779_v10, %v779_v10 }
  0xa7   : > { %2374 = vmatpush1.bf16.msra.mxu1 %v3136_v19  ;;  %2334 = vmatprep.subr.bf16.mxu0 %v3137_v20  ;;  %v3157_v33 = vld [vmem:[%s4129_s7 + $0x2e4] ss:$16 sps:$4 sm:$0xff]   ;;  %v3160_v35 = vld [vmem:[%s4129_s7 + $0x2e0] ss:$16 sps:$4 sm:$0xff]   ;;  %v4221_v19 = vpack.c.bf16 %v781_v11, %v781_v11 }
  0xa8   : > { %2375 = vmatprep.subr.bf16.mxu1 %v3139_v21  ;;  %v3161_v36 = vld [vmem:[%s4129_s7 + $0x104] ss:$16 sps:$4 sm:$0xff]   ;;  %v3165_v38 = vld [vmem:[%s4129_s7 + $0x100] ss:$16 sps:$4 sm:$0xff]  }
  0xa9   : > { %v3163_v37 = vld [vmem:[%s4129_s7 + $0x304] ss:$16 sps:$4 sm:$0xff]   ;;  %v3166_v39 = vld [vmem:[%s4129_s7 + $0x300] ss:$16 sps:$4 sm:$0xff]  }
  0xaa   : > { %2335 = vmatpush1.bf16.msra.mxu0 %v3141_v22  ;;  %v3167_v40 = vld [vmem:[%s4129_s7 + $0x124] ss:$16 sps:$4 sm:$0xff]   ;;  %v3171_v42 = vld [vmem:[%s4129_s7 + $0x120] ss:$16 sps:$4 sm:$0xff]  }
  0xab   : > { %2376 = vmatpush1.bf16.msra.mxu1 %v3142_v23  ;;  %2336 = vmatprep.subr.bf16.mxu0 %v3143_v24  ;;  %v3169_v41 = vld [vmem:[%s4129_s7 + $0x324] ss:$16 sps:$4 sm:$0xff]   ;;  %v3172_v43 = vld [vmem:[%s4129_s7 + $0x320] ss:$16 sps:$4 sm:$0xff]  }
  0xac   : > { %2377 = vmatprep.subr.bf16.mxu1 %v3145_v25  ;;  %v3173_v44 = vld [vmem:[%s4129_s7 + $0x144] ss:$16 sps:$4 sm:$0xff]   ;;  %v3177_v46 = vld [vmem:[%s4129_s7 + $0x140] ss:$16 sps:$4 sm:$0xff]  }
  0xad   : > { %v3175_v45 = vld [vmem:[%s4129_s7 + $0x344] ss:$16 sps:$4 sm:$0xff]   ;;  %v3178_v47 = vld [vmem:[%s4129_s7 + $0x340] ss:$16 sps:$4 sm:$0xff]  }
  0xae   : > { %2337 = vmatpush1.bf16.msra.mxu0 %v3147_v26  ;;  %v3179_v48 = vld [vmem:[%s4129_s7 + $0x164] ss:$16 sps:$4 sm:$0xff]   ;;  %v3183_v50 = vld [vmem:[%s4129_s7 + $0x160] ss:$16 sps:$4 sm:$0xff]  }
  0xaf   : > { %2378 = vmatpush1.bf16.msra.mxu1 %v3148_v27  ;;  %2338 = vmatprep.subr.bf16.mxu0 %v3149_v28  ;;  %v3181_v49 = vld [vmem:[%s4129_s7 + $0x364] ss:$16 sps:$4 sm:$0xff]   ;;  %v3184_v51 = vld [vmem:[%s4129_s7 + $0x360] ss:$16 sps:$4 sm:$0xff]  }
  0xb0   : > { %2379 = vmatprep.subr.bf16.mxu1 %v3151_v29  ;;  %v3185_v52 = vld [vmem:[%s4129_s7 + $0x184] ss:$16 sps:$4 sm:$0xff]   ;;  %v3189_v54 = vld [vmem:[%s4129_s7 + $0x180] ss:$16 sps:$4 sm:$0xff]  }
  0xb1   : > { %v3187_v53 = vld [vmem:[%s4129_s7 + $0x384] ss:$16 sps:$4 sm:$0xff]   ;;  %v3190_v55 = vld [vmem:[%s4129_s7 + $0x380] ss:$16 sps:$4 sm:$0xff]  }
  0xb2   : > { %2339 = vmatpush1.bf16.msra.mxu0 %v3153_v30  ;;  %v3191_v56 = vld [vmem:[%s4129_s7 + $0x1a4] ss:$16 sps:$4 sm:$0xff]   ;;  %v3195_v58 = vld [vmem:[%s4129_s7 + $0x1a0] ss:$16 sps:$4 sm:$0xff]  }
  0xb3   : > { %2380 = vmatpush1.bf16.msra.mxu1 %v3154_v31  ;;  %2340 = vmatprep.subr.bf16.mxu0 %v3155_v32  ;;  %v3193_v57 = vld [vmem:[%s4129_s7 + $0x3a4] ss:$16 sps:$4 sm:$0xff]   ;;  %v3196_v59 = vld [vmem:[%s4129_s7 + $0x3a0] ss:$16 sps:$4 sm:$0xff]  }
  0xb4   : > { %2381 = vmatprep.subr.bf16.mxu1 %v3157_v33  ;;  %v3197_v60 = vld [vmem:[%s4129_s7 + $0x1c4] ss:$16 sps:$4 sm:$0xff]   ;;  %v3201_v62 = vld [vmem:[%s4129_s7 + $0x1c0] ss:$16 sps:$4 sm:$0xff]  }
  0xb5   : > { %v3199_v61 = vld [vmem:[%s4129_s7 + $0x3c4] ss:$16 sps:$4 sm:$0xff]   ;;  %v3202_v63 = vld [vmem:[%s4129_s7 + $0x3c0] ss:$16 sps:$4 sm:$0xff]  }
  0xb6   : > { %2341 = vmatpush1.bf16.msra.mxu0 %v3159_v34  ;;  %v3203_v0 = vld [vmem:[%s4129_s7 + $0x1e4] ss:$16 sps:$4 sm:$0xff]   ;;  %v3207_v6 = vld [vmem:[%s4129_s7 + $0x1e0] ss:$16 sps:$4 sm:$0xff]  }
  0xb7   : > { %2382 = vmatpush1.bf16.msra.mxu1 %v3160_v35  ;;  %2342 = vmatprep.subr.bf16.mxu0 %v3161_v36  ;;  %v3205_v1 = vld [vmem:[%s4129_s7 + $0x3e4] ss:$16 sps:$4 sm:$0xff]   ;;  %v3208_v7 = vld [vmem:[%s4129_s7 + $0x3e0] ss:$16 sps:$4 sm:$0xff]  }
  0xb8   : > { %2383 = vmatprep.subr.bf16.mxu1 %v3163_v37  ;;  %v774_v4 = vld [vmem:[%s4461_s0] sm:$0xff]  ;;  %v776_v5 = vld [vmem:[%s4461_s0 + $0x10] sm:$0xff] }
  0xb9   : > { %v3211_v8 = vld [vmem:[%s4129_s7 + $0x404] ss:$16 sps:$4 sm:$0xff]   ;;  %v4211_v12 = vpack.c.bf16 %v774_v4, %v774_v4  ;;  %v4213_v13 = vpack.c.bf16 %v776_v5, %v776_v5  ;;  %v3209_v14 = vld [vmem:[%s4129_s7 + $0x400] ss:$16 sps:$4 sm:$0xff]  }
  0xba   : > { %2343 = vmatpush1.bf16.msra.mxu0 %v3165_v38  ;;  %v3214_v9 = vld [vmem:[%s4129_s7 + $0x604] ss:$16 sps:$4 sm:$0xff]   ;;  %v3212_v15 = vld [vmem:[%s4129_s7 + $0x600] ss:$16 sps:$4 sm:$0xff]  }
  0xbb   : > { %2384 = vmatpush1.bf16.msra.mxu1 %v3166_v39  ;;  %2344 = vmatprep.subr.bf16.mxu0 %v3167_v40  ;;  %v3217_v16 = vld [vmem:[%s4129_s7 + $0x424] ss:$16 sps:$4 sm:$0xff]   ;;  %v3215_v20 = vld [vmem:[%s4129_s7 + $0x420] ss:$16 sps:$4 sm:$0xff]  }
  0xbc   : > { %2385 = vmatprep.subr.bf16.mxu1 %v3169_v41  ;;  %v3220_v17 = vld [vmem:[%s4129_s7 + $0x624] ss:$16 sps:$4 sm:$0xff]   ;;  %v3218_v21 = vld [vmem:[%s4129_s7 + $0x620] ss:$16 sps:$4 sm:$0xff]  }
  0xbd   : > { %v3223_v22 = vld [vmem:[%s4129_s7 + $0x444] ss:$16 sps:$4 sm:$0xff]   ;;  %v3221_v24 = vld [vmem:[%s4129_s7 + $0x440] ss:$16 sps:$4 sm:$0xff]  }
  0xbe   : > { %2345 = vmatpush1.bf16.msra.mxu0 %v3171_v42  ;;  %v3226_v23 = vld [vmem:[%s4129_s7 + $0x644] ss:$16 sps:$4 sm:$0xff]   ;;  %v3224_v25 = vld [vmem:[%s4129_s7 + $0x640] ss:$16 sps:$4 sm:$0xff]  }
  0xbf   : > { %2386 = vmatpush1.bf16.msra.mxu1 %v3172_v43  ;;  %2346 = vmatprep.subr.bf16.mxu0 %v3173_v44  ;;  %v3229_v26 = vld [vmem:[%s4129_s7 + $0x464] ss:$16 sps:$4 sm:$0xff]   ;;  %v3227_v28 = vld [vmem:[%s4129_s7 + $0x460] ss:$16 sps:$4 sm:$0xff]  }
  0xc0   : > { %2387 = vmatprep.subr.bf16.mxu1 %v3175_v45  ;;  %v3232_v27 = vld [vmem:[%s4129_s7 + $0x664] ss:$16 sps:$4 sm:$0xff]   ;;  %v3230_v29 = vld [vmem:[%s4129_s7 + $0x660] ss:$16 sps:$4 sm:$0xff]  }
  0xc1   : > { %v3235_v30 = vld [vmem:[%s4129_s7 + $0x484] ss:$16 sps:$4 sm:$0xff]   ;;  %v3233_v32 = vld [vmem:[%s4129_s7 + $0x480] ss:$16 sps:$4 sm:$0xff]  }
  0xc2   : > { %2347 = vmatpush1.bf16.msra.mxu0 %v3177_v46  ;;  %v3238_v31 = vld [vmem:[%s4129_s7 + $0x684] ss:$16 sps:$4 sm:$0xff]   ;;  %v3236_v33 = vld [vmem:[%s4129_s7 + $0x680] ss:$16 sps:$4 sm:$0xff]  }
  0xc3   : > { %2388 = vmatpush1.bf16.msra.mxu1 %v3178_v47  ;;  %2348 = vmatprep.subr.bf16.mxu0 %v3179_v48  ;;  %v3241_v34 = vld [vmem:[%s4129_s7 + $0x4a4] ss:$16 sps:$4 sm:$0xff]   ;;  %v3239_v36 = vld [vmem:[%s4129_s7 + $0x4a0] ss:$16 sps:$4 sm:$0xff]  }
  0xc4   : > { %2389 = vmatprep.subr.bf16.mxu1 %v3181_v49  ;;  %v3244_v35 = vld [vmem:[%s4129_s7 + $0x6a4] ss:$16 sps:$4 sm:$0xff]   ;;  %v3242_v37 = vld [vmem:[%s4129_s7 + $0x6a0] ss:$16 sps:$4 sm:$0xff]  }
  0xc5   : > { %v3247_v38 = vld [vmem:[%s4129_s7 + $0x4c4] ss:$16 sps:$4 sm:$0xff]   ;;  %v3245_v40 = vld [vmem:[%s4129_s7 + $0x4c0] ss:$16 sps:$4 sm:$0xff]  }
  0xc6   : > { %2349 = vmatpush1.bf16.msra.mxu0 %v3183_v50  ;;  %v3250_v39 = vld [vmem:[%s4129_s7 + $0x6c4] ss:$16 sps:$4 sm:$0xff]   ;;  %v3248_v41 = vld [vmem:[%s4129_s7 + $0x6c0] ss:$16 sps:$4 sm:$0xff]  }
  0xc7   : > { %2390 = vmatpush1.bf16.msra.mxu1 %v3184_v51  ;;  %2350 = vmatprep.subr.bf16.mxu0 %v3185_v52  ;;  %v3253_v42 = vld [vmem:[%s4129_s7 + $0x4e4] ss:$16 sps:$4 sm:$0xff]   ;;  %v3251_v44 = vld [vmem:[%s4129_s7 + $0x4e0] ss:$16 sps:$4 sm:$0xff]  }
  0xc8   : > { %2391 = vmatprep.subr.bf16.mxu1 %v3187_v53  ;;  %v3256_v43 = vld [vmem:[%s4129_s7 + $0x6e4] ss:$16 sps:$4 sm:$0xff]   ;;  %v3254_v45 = vld [vmem:[%s4129_s7 + $0x6e0] ss:$16 sps:$4 sm:$0xff]  }
  0xc9   : > { %v3259_v46 = vld [vmem:[%s4129_s7 + $0x504] ss:$16 sps:$4 sm:$0xff]   ;;  %v3257_v48 = vld [vmem:[%s4129_s7 + $0x500] ss:$16 sps:$4 sm:$0xff]  }
  0xca   : > { %2351 = vmatpush1.bf16.msra.mxu0 %v3189_v54  ;;  %v3262_v47 = vld [vmem:[%s4129_s7 + $0x704] ss:$16 sps:$4 sm:$0xff]   ;;  %v3260_v49 = vld [vmem:[%s4129_s7 + $0x700] ss:$16 sps:$4 sm:$0xff]  }
  0xcb   : > { %2392 = vmatpush1.bf16.msra.mxu1 %v3190_v55  ;;  %2352 = vmatprep.subr.bf16.mxu0 %v3191_v56  ;;  %v3265_v50 = vld [vmem:[%s4129_s7 + $0x524] ss:$16 sps:$4 sm:$0xff]   ;;  %v3263_v52 = vld [vmem:[%s4129_s7 + $0x520] ss:$16 sps:$4 sm:$0xff]  }
  0xcc   : > { %2393 = vmatprep.subr.bf16.mxu1 %v3193_v57  ;;  %v3268_v51 = vld [vmem:[%s4129_s7 + $0x724] ss:$16 sps:$4 sm:$0xff]   ;;  %v3266_v53 = vld [vmem:[%s4129_s7 + $0x720] ss:$16 sps:$4 sm:$0xff]  }
  0xcd   : > { %v3271_v54 = vld [vmem:[%s4129_s7 + $0x544] ss:$16 sps:$4 sm:$0xff]   ;;  %v3269_v56 = vld [vmem:[%s4129_s7 + $0x540] ss:$16 sps:$4 sm:$0xff]  }
  0xce   : > { %2353 = vmatpush1.bf16.msra.mxu0 %v3195_v58  ;;  %v3274_v55 = vld [vmem:[%s4129_s7 + $0x744] ss:$16 sps:$4 sm:$0xff]   ;;  %v3272_v57 = vld [vmem:[%s4129_s7 + $0x740] ss:$16 sps:$4 sm:$0xff]  }
  0xcf   : > { %2394 = vmatpush1.bf16.msra.mxu1 %v3196_v59  ;;  %2354 = vmatprep.subr.bf16.mxu0 %v3197_v60  ;;  %v3277_v58 = vld [vmem:[%s4129_s7 + $0x564] ss:$16 sps:$4 sm:$0xff]   ;;  %v3275_v60 = vld [vmem:[%s4129_s7 + $0x560] ss:$16 sps:$4 sm:$0xff]  }
  0xd0   : > { %2395 = vmatprep.subr.bf16.mxu1 %v3199_v61  ;;  %v3280_v59 = vld [vmem:[%s4129_s7 + $0x764] ss:$16 sps:$4 sm:$0xff]   ;;  %v3278_v61 = vld [vmem:[%s4129_s7 + $0x760] ss:$16 sps:$4 sm:$0xff]  }
  0xd1   : > { %v3289_v4 = vld [vmem:[%s4129_s7 + $0x5a4] ss:$16 sps:$4 sm:$0xff]   ;;  %v3293_v10 = vld [vmem:[%s4129_s7 + $0x5c0] ss:$16 sps:$4 sm:$0xff]  }
  0xd2   : > { %2355 = vmatpush1.bf16.msra.mxu0 %v3201_v62  ;;  %v3283_v62 = vld [vmem:[%s4129_s7 + $0x584] ss:$16 sps:$4 sm:$0xff]   ;;  %v3296_v11 = vld [vmem:[%s4129_s7 + $0x7c0] ss:$16 sps:$4 sm:$0xff]  }
  0xd3   : > { %2396 = vmatpush1.bf16.msra.mxu1 %v3202_v63  ;;  %2356 = vmatprep.subr.bf16.mxu0 %v3203_v0  ;;  %v3286_v63 = vld [vmem:[%s4129_s7 + $0x784] ss:$16 sps:$4 sm:$0xff]   ;;  %v3281_v0 = vld [vmem:[%s4129_s7 + $0x580] ss:$16 sps:$4 sm:$0xff]  }
  0xd4   : > { %2397 = vmatprep.subr.bf16.mxu1 %v3205_v1  ;;  %v3284_v1 = vld [vmem:[%s4129_s7 + $0x780] ss:$16 sps:$4 sm:$0xff]   ;;  %v3292_v5 = vld [vmem:[%s4129_s7 + $0x7a4] ss:$16 sps:$4 sm:$0xff]  }
  0xd6   : > { %2357 = vmatpush1.bf16.msra.mxu0 %v3207_v6  ;;  %v3287_v6 = vld [vmem:[%s4129_s7 + $0x5a0] ss:$16 sps:$4 sm:$0xff]  }
  0xd7   : > { %2398 = vmatpush1.bf16.msra.mxu1 %v3208_v7  ;;  %2408 = vmatprep.subr.bf16.mxu0 %v3211_v8  ;;  %v3290_v7 = vld [vmem:[%s4129_s7 + $0x7a0] ss:$16 sps:$4 sm:$0xff]   ;;  %v3295_v8 = vld [vmem:[%s4129_s7 + $0x5c4] ss:$16 sps:$4 sm:$0xff]  }
  0xd8   : > { %2449 = vmatprep.subr.bf16.mxu1 %v3214_v9  ;;  %v3298_v9 = vld [vmem:[%s4129_s7 + $0x7c4] ss:$16 sps:$4 sm:$0xff]  }
  0xd9   : > { %2359 = vmatmul.mubr.bf16.vlgmr.msra.gmra.mrb[0].mxu0 %v4211_v12 }
  0xda   : > { %2400 = vmatmul.mubr.bf16.vlgmr.msra.gmra.mrb[0].mxu1 %v4213_v13  ;;  %2409 = vmatpush1.bf16.msra.mxu0 %v3209_v14  ;;  %v3301_v14 = vld [vmem:[%s4129_s7 + $0x5e4] ss:$16 sps:$4 sm:$0xff]  }
  0xdb   : > { %2450 = vmatpush1.bf16.msra.mxu1 %v3212_v15  ;;  %2410 = vmatprep.subr.bf16.mxu0 %v3217_v16  ;;  %v3304_v15 = vld [vmem:[%s4129_s7 + $0x7e4] ss:$16 sps:$4 sm:$0xff]   ;;  %v3299_v16 = vld [vmem:[%s4129_s7 + $0x5e0] ss:$16 sps:$4 sm:$0xff]  }
  0xdc   : > { %2451 = vmatprep.subr.bf16.mxu1 %v3220_v17  ;;  %2440 = vmatprep.mubr.bf16.mxu0 %v4219_v18  ;;  %v3302_v17 = vld [vmem:[%s4129_s7 + $0x7e0] ss:$16 sps:$4 sm:$0xff]  }
  0xdd   : > { %2481 = vmatprep.mubr.bf16.mxu1 %v4221_v19 }
  0xde   : > { %2411 = vmatpush1.bf16.msra.mxu0 %v3215_v20  ;;  %v778_v20 = vld [vmem:[%s4461_s0 + $0x20] sm:$0xff] }
  0xdf   : > { %2452 = vmatpush1.bf16.msra.mxu1 %v3218_v21  ;;  %2412 = vmatprep.subr.bf16.mxu0 %v3223_v22  ;;  %v780_v21 = vld [vmem:[%s4461_s0 + $0x30] sm:$0xff]  ;;  %v3307_v22 = vld [vmem:[%s4129_s7 + $0xc] ss:$16 sps:$4 sm:$0xff]  }
  0xe0   : > { %2453 = vmatprep.subr.bf16.mxu1 %v3226_v23  ;;  %v3310_v23 = vld [vmem:[%s4129_s7 + $0x20c] ss:$16 sps:$4 sm:$0xff]  }
  0xe2   : > { %2413 = vmatpush1.bf16.msra.mxu0 %v3221_v24  ;;  %v4293_v24 = vpack.c.bf16 %v778_v20, %v778_v20  ;;  %v3391_v20 = vld [vmem:[%s4129_s7 + $0x1cc] ss:$16 sps:$4 sm:$0xff]  }
  0xe3   : > { %2454 = vmatpush1.bf16.msra.mxu1 %v3224_v25  ;;  %2414 = vmatprep.subr.bf16.mxu0 %v3229_v26  ;;  %v4295_v25 = vpack.c.bf16 %v780_v21, %v780_v21  ;;  %v3305_v26 = vld [vmem:[%s4129_s7 + $0x8] ss:$16 sps:$4 sm:$0xff]   ;;  %v3394_v21 = vld [vmem:[%s4129_s7 + $0x3cc] ss:$16 sps:$4 sm:$0xff]  }
  0xe4   : > { %2455 = vmatprep.subr.bf16.mxu1 %v3232_v27  ;;  %v3308_v27 = vld [vmem:[%s4129_s7 + $0x208] ss:$16 sps:$4 sm:$0xff]  }
  0xe6   : > { %2415 = vmatpush1.bf16.msra.mxu0 %v3227_v28  ;;  %v3313_v28 = vld [vmem:[%s4129_s7 + $0x2c] ss:$16 sps:$4 sm:$0xff]  }
  0xe7   : > { %2456 = vmatpush1.bf16.msra.mxu1 %v3230_v29  ;;  %2416 = vmatprep.subr.bf16.mxu0 %v3235_v30  ;;  %v3316_v29 = vld [vmem:[%s4129_s7 + $0x22c] ss:$16 sps:$4 sm:$0xff]   ;;  %v3311_v30 = vld [vmem:[%s4129_s7 + $0x28] ss:$16 sps:$4 sm:$0xff]  }
  0xe8   : > { %2457 = vmatprep.subr.bf16.mxu1 %v3238_v31  ;;  %v3314_v31 = vld [vmem:[%s4129_s7 + $0x228] ss:$16 sps:$4 sm:$0xff]  }
  0xea   : > { %2417 = vmatpush1.bf16.msra.mxu0 %v3233_v32  ;;  %v3319_v32 = vld [vmem:[%s4129_s7 + $0x4c] ss:$16 sps:$4 sm:$0xff]  }
  0xeb   : > { %2458 = vmatpush1.bf16.msra.mxu1 %v3236_v33  ;;  %2418 = vmatprep.subr.bf16.mxu0 %v3241_v34  ;;  %v3322_v33 = vld [vmem:[%s4129_s7 + $0x24c] ss:$16 sps:$4 sm:$0xff]   ;;  %v3317_v34 = vld [vmem:[%s4129_s7 + $0x48] ss:$16 sps:$4 sm:$0xff]  }
  0xec   : > { %2459 = vmatprep.subr.bf16.mxu1 %v3244_v35  ;;  %v3320_v35 = vld [vmem:[%s4129_s7 + $0x248] ss:$16 sps:$4 sm:$0xff]  }
  0xee   : > { %2419 = vmatpush1.bf16.msra.mxu0 %v3239_v36  ;;  %v3325_v36 = vld [vmem:[%s4129_s7 + $0x6c] ss:$16 sps:$4 sm:$0xff]  }
  0xef   : > { %2460 = vmatpush1.bf16.msra.mxu1 %v3242_v37  ;;  %2420 = vmatprep.subr.bf16.mxu0 %v3247_v38  ;;  %v3328_v37 = vld [vmem:[%s4129_s7 + $0x26c] ss:$16 sps:$4 sm:$0xff]   ;;  %v3323_v38 = vld [vmem:[%s4129_s7 + $0x68] ss:$16 sps:$4 sm:$0xff]  }
  0xf0   : > { %2461 = vmatprep.subr.bf16.mxu1 %v3250_v39  ;;  %v3334_v39 = vld [vmem:[%s4129_s7 + $0x28c] ss:$16 sps:$4 sm:$0xff]  }
  0xf2   : > { %2421 = vmatpush1.bf16.msra.mxu0 %v3245_v40  ;;  %v3329_v40 = vld [vmem:[%s4129_s7 + $0x88] ss:$16 sps:$4 sm:$0xff]  }
  0xf3   : > { %2462 = vmatpush1.bf16.msra.mxu1 %v3248_v41  ;;  %2422 = vmatprep.subr.bf16.mxu0 %v3253_v42  ;;  %v3332_v41 = vld [vmem:[%s4129_s7 + $0x288] ss:$16 sps:$4 sm:$0xff]   ;;  %v3337_v42 = vld [vmem:[%s4129_s7 + $0xac] ss:$16 sps:$4 sm:$0xff]  }
  0xf4   : > { %2463 = vmatprep.subr.bf16.mxu1 %v3256_v43  ;;  %v3340_v43 = vld [vmem:[%s4129_s7 + $0x2ac] ss:$16 sps:$4 sm:$0xff]  }
  0xf6   : > { %2423 = vmatpush1.bf16.msra.mxu0 %v3251_v44  ;;  %v3335_v44 = vld [vmem:[%s4129_s7 + $0xa8] ss:$16 sps:$4 sm:$0xff]  }
  0xf7   : > { %2464 = vmatpush1.bf16.msra.mxu1 %v3254_v45  ;;  %2424 = vmatprep.subr.bf16.mxu0 %v3259_v46  ;;  %v3338_v45 = vld [vmem:[%s4129_s7 + $0x2a8] ss:$16 sps:$4 sm:$0xff]   ;;  %v3343_v46 = vld [vmem:[%s4129_s7 + $0xcc] ss:$16 sps:$4 sm:$0xff]  }
  0xf8   : > { %2465 = vmatprep.subr.bf16.mxu1 %v3262_v47  ;;  %v3346_v47 = vld [vmem:[%s4129_s7 + $0x2cc] ss:$16 sps:$4 sm:$0xff]  }
  0xfa   : > { %2425 = vmatpush1.bf16.msra.mxu0 %v3257_v48  ;;  %v3341_v48 = vld [vmem:[%s4129_s7 + $0xc8] ss:$16 sps:$4 sm:$0xff]  }
  0xfb   : > { %2466 = vmatpush1.bf16.msra.mxu1 %v3260_v49  ;;  %2426 = vmatprep.subr.bf16.mxu0 %v3265_v50  ;;  %v3344_v49 = vld [vmem:[%s4129_s7 + $0x2c8] ss:$16 sps:$4 sm:$0xff]   ;;  %v3349_v50 = vld [vmem:[%s4129_s7 + $0xec] ss:$16 sps:$4 sm:$0xff]  }
  0xfc   : > { %2467 = vmatprep.subr.bf16.mxu1 %v3268_v51  ;;  %v3352_v51 = vld [vmem:[%s4129_s7 + $0x2ec] ss:$16 sps:$4 sm:$0xff]  }
  0xfe   : > { %2427 = vmatpush1.bf16.msra.mxu0 %v3263_v52  ;;  %v3347_v52 = vld [vmem:[%s4129_s7 + $0xe8] ss:$16 sps:$4 sm:$0xff]  }
  0xff   : > { %2468 = vmatpush1.bf16.msra.mxu1 %v3266_v53  ;;  %2428 = vmatprep.subr.bf16.mxu0 %v3271_v54  ;;  %v3350_v53 = vld [vmem:[%s4129_s7 + $0x2e8] ss:$16 sps:$4 sm:$0xff]   ;;  %v3355_v54 = vld [vmem:[%s4129_s7 + $0x10c] ss:$16 sps:$4 sm:$0xff]  }
 0x100   : > { %2469 = vmatprep.subr.bf16.mxu1 %v3274_v55  ;;  %v3358_v55 = vld [vmem:[%s4129_s7 + $0x30c] ss:$16 sps:$4 sm:$0xff]  }
 0x102   : > { %2429 = vmatpush1.bf16.msra.mxu0 %v3269_v56  ;;  %v3353_v56 = vld [vmem:[%s4129_s7 + $0x108] ss:$16 sps:$4 sm:$0xff]  }
 0x103   : > { %2470 = vmatpush1.bf16.msra.mxu1 %v3272_v57  ;;  %2430 = vmatprep.subr.bf16.mxu0 %v3277_v58  ;;  %v3356_v57 = vld [vmem:[%s4129_s7 + $0x308] ss:$16 sps:$4 sm:$0xff]   ;;  %v3361_v58 = vld [vmem:[%s4129_s7 + $0x12c] ss:$16 sps:$4 sm:$0xff]  }
 0x104   : > { %2471 = vmatprep.subr.bf16.mxu1 %v3280_v59  ;;  %v3364_v59 = vld [vmem:[%s4129_s7 + $0x32c] ss:$16 sps:$4 sm:$0xff]  }
 0x106   : > { %2431 = vmatpush1.bf16.msra.mxu0 %v3275_v60  ;;  %v3359_v60 = vld [vmem:[%s4129_s7 + $0x128] ss:$16 sps:$4 sm:$0xff]  }
 0x107   : > { %2472 = vmatpush1.bf16.msra.mxu1 %v3278_v61  ;;  %2432 = vmatprep.subr.bf16.mxu0 %v3283_v62  ;;  %v3362_v61 = vld [vmem:[%s4129_s7 + $0x328] ss:$16 sps:$4 sm:$0xff]   ;;  %v3367_v62 = vld [vmem:[%s4129_s7 + $0x14c] ss:$16 sps:$4 sm:$0xff]  }
 0x108   : > { %2473 = vmatprep.subr.bf16.mxu1 %v3286_v63  ;;  %v3370_v63 = vld [vmem:[%s4129_s7 + $0x34c] ss:$16 sps:$4 sm:$0xff]  }
 0x10a   : > { %2433 = vmatpush1.bf16.msra.mxu0 %v3281_v0  ;;  %v3365_v0 = vld [vmem:[%s4129_s7 + $0x148] ss:$16 sps:$4 sm:$0xff]  }
 0x10b   : > { %2474 = vmatpush1.bf16.msra.mxu1 %v3284_v1  ;;  %2434 = vmatprep.subr.bf16.mxu0 %v3289_v4  ;;  %v3368_v1 = vld [vmem:[%s4129_s7 + $0x348] ss:$16 sps:$4 sm:$0xff]   ;;  %v3373_v4 = vld [vmem:[%s4129_s7 + $0x16c] ss:$16 sps:$4 sm:$0xff]  }
 0x10c   : > { %2475 = vmatprep.subr.bf16.mxu1 %v3292_v5  ;;  %v3376_v5 = vld [vmem:[%s4129_s7 + $0x36c] ss:$16 sps:$4 sm:$0xff]  }
 0x10e   : > { %2435 = vmatpush1.bf16.msra.mxu0 %v3287_v6  ;;  %v3371_v6 = vld [vmem:[%s4129_s7 + $0x168] ss:$16 sps:$4 sm:$0xff]  }
 0x10f   : > { %2476 = vmatpush1.bf16.msra.mxu1 %v3290_v7  ;;  %2436 = vmatprep.subr.bf16.mxu0 %v3295_v8  ;;  %v3374_v7 = vld [vmem:[%s4129_s7 + $0x368] ss:$16 sps:$4 sm:$0xff]   ;;  %v3379_v8 = vld [vmem:[%s4129_s7 + $0x18c] ss:$16 sps:$4 sm:$0xff]  }
 0x110   : > { %2477 = vmatprep.subr.bf16.mxu1 %v3298_v9  ;;  %v3382_v9 = vld [vmem:[%s4129_s7 + $0x38c] ss:$16 sps:$4 sm:$0xff]  }
 0x112   : > { %2437 = vmatpush1.bf16.msra.mxu0 %v3293_v10  ;;  %v3377_v10 = vld [vmem:[%s4129_s7 + $0x188] ss:$16 sps:$4 sm:$0xff]  }
 0x113   : > { %2478 = vmatpush1.bf16.msra.mxu1 %v3296_v11  ;;  %2438 = vmatprep.subr.bf16.mxu0 %v3301_v14  ;;  %v3380_v11 = vld [vmem:[%s4129_s7 + $0x388] ss:$16 sps:$4 sm:$0xff]   ;;  %v3385_v14 = vld [vmem:[%s4129_s7 + $0x1ac] ss:$16 sps:$4 sm:$0xff]  }
 0x114   : > { %2479 = vmatprep.subr.bf16.mxu1 %v3304_v15  ;;  %v3388_v15 = vld [vmem:[%s4129_s7 + $0x3ac] ss:$16 sps:$4 sm:$0xff]  }
 0x116   : > { %2439 = vmatpush1.bf16.msra.mxu0 %v3299_v16  ;;  %v3383_v16 = vld [vmem:[%s4129_s7 + $0x1a8] ss:$16 sps:$4 sm:$0xff]  }
 0x117   : > { %2480 = vmatpush1.bf16.msra.mxu1 %v3302_v17  ;;  %2490 = vmatprep.subr.bf16.mxu0 %v3307_v22  ;;  %v3386_v17 = vld [vmem:[%s4129_s7 + $0x3a8] ss:$16 sps:$4 sm:$0xff]  }
 0x118   : > { %2531 = vmatprep.subr.bf16.mxu1 %v3310_v23  ;;  %v3389_v22 = vld [vmem:[%s4129_s7 + $0x1c8] ss:$16 sps:$4 sm:$0xff]  }
 0x119   : > { %2441 = vmatmul.mubr.bf16.vlgmr.msra.gmra.mrb[4].mxu0 %v4293_v24  ;;  %v3392_v23 = vld [vmem:[%s4129_s7 + $0x3c8] ss:$16 sps:$4 sm:$0xff]  }
 0x11a   : > { %2482 = vmatmul.mubr.bf16.vlgmr.msra.gmra.mrb[4].mxu1 %v4295_v25  ;;  %2491 = vmatpush1.bf16.msra.mxu0 %v3305_v26  ;;  %v3397_v26 = vld [vmem:[%s4129_s7 + $0x1ec] ss:$16 sps:$4 sm:$0xff]  }
 0x11b   : > { %2532 = vmatpush1.bf16.msra.mxu1 %v3308_v27  ;;  %2492 = vmatprep.subr.bf16.mxu0 %v3313_v28  ;;  %v3400_v27 = vld [vmem:[%s4129_s7 + $0x3ec] ss:$16 sps:$4 sm:$0xff]   ;;  %v3395_v28 = vld [vmem:[%s4129_s7 + $0x1e8] ss:$16 sps:$4 sm:$0xff]  }
 0x11c   : > { %2533 = vmatprep.subr.bf16.mxu1 %v3316_v29  ;;  %2522 = vmatprep.mubr.bf16.mxu0 %v4125_v2  ;;  %v3326_v2 = vld [vmem:[%s4129_s7 + $0x268] ss:$16 sps:$4 sm:$0xff]  }
 0x11d   : > { %2563 = vmatprep.mubr.bf16.mxu1 %v4127_v3  ;;  %v3331_v3 = vld [vmem:[%s4129_s7 + $0x8c] ss:$16 sps:$4 sm:$0xff]   ;;  %v3398_v29 = vld [vmem:[%s4129_s7 + $0x3e8] ss:$16 sps:$4 sm:$0xff]  }
 0x11e   : > { %2493 = vmatpush1.bf16.msra.mxu0 %v3311_v30  ;;  %v3403_v30 = vld [vmem:[%s4129_s7 + $0x40c] ss:$16 sps:$4 sm:$0xff]  }
 0x11f   : > { %2534 = vmatpush1.bf16.msra.mxu1 %v3314_v31  ;;  %2494 = vmatprep.subr.bf16.mxu0 %v3319_v32  ;;  %v3406_v31 = vld [vmem:[%s4129_s7 + $0x60c] ss:$16 sps:$4 sm:$0xff]   ;;  %v3401_v32 = vld [vmem:[%s4129_s7 + $0x408] ss:$16 sps:$4 sm:$0xff]  }
 0x120   : > { %2535 = vmatprep.subr.bf16.mxu1 %v3322_v33  ;;  %v3404_v33 = vld [vmem:[%s4129_s7 + $0x608] ss:$16 sps:$4 sm:$0xff]  }
 0x122   : > { %2495 = vmatpush1.bf16.msra.mxu0 %v3317_v34  ;;  %v3409_v34 = vld [vmem:[%s4129_s7 + $0x42c] ss:$16 sps:$4 sm:$0xff]  }
 0x123   : > { %2536 = vmatpush1.bf16.msra.mxu1 %v3320_v35  ;;  %2496 = vmatprep.subr.bf16.mxu0 %v3325_v36  ;;  %v3412_v35 = vld [vmem:[%s4129_s7 + $0x62c] ss:$16 sps:$4 sm:$0xff]   ;;  %v3407_v36 = vld [vmem:[%s4129_s7 + $0x428] ss:$16 sps:$4 sm:$0xff]  }
 0x124   : > { %2537 = vmatprep.subr.bf16.mxu1 %v3328_v37  ;;  %v3410_v37 = vld [vmem:[%s4129_s7 + $0x628] ss:$16 sps:$4 sm:$0xff]  }
 0x126   : > { %2497 = vmatpush1.bf16.msra.mxu0 %v3323_v38  ;;  %v3415_v38 = vld [vmem:[%s4129_s7 + $0x44c] ss:$16 sps:$4 sm:$0xff]  }
 0x127   : > { %2538 = vmatpush1.bf16.msra.mxu1 %v3326_v2  ;;  %2498 = vmatprep.subr.bf16.mxu0 %v3331_v3  ;;  %v3418_v2 = vld [vmem:[%s4129_s7 + $0x64c] ss:$16 sps:$4 sm:$0xff]  }
 0x128   : > { %2539 = vmatprep.subr.bf16.mxu1 %v3334_v39  ;;  %v3421_v3 = vld [vmem:[%s4129_s7 + $0x46c] ss:$16 sps:$4 sm:$0xff]  }
 0x129   : > { %v3424_v39 = vld [vmem:[%s4129_s7 + $0x66c] ss:$16 sps:$4 sm:$0xff]  }
 0x12a   : > { %2499 = vmatpush1.bf16.msra.mxu0 %v3329_v40  ;;  %v3419_v40 = vld [vmem:[%s4129_s7 + $0x468] ss:$16 sps:$4 sm:$0xff]  }
 0x12b   : > { %2540 = vmatpush1.bf16.msra.mxu1 %v3332_v41  ;;  %2500 = vmatprep.subr.bf16.mxu0 %v3337_v42  ;;  %v3430_v41 = vld [vmem:[%s4129_s7 + $0x68c] ss:$16 sps:$4 sm:$0xff]   ;;  %v3425_v42 = vld [vmem:[%s4129_s7 + $0x488] ss:$16 sps:$4 sm:$0xff]  }
 0x12c   : > { %2541 = vmatprep.subr.bf16.mxu1 %v3340_v43  ;;  %v3428_v43 = vld [vmem:[%s4129_s7 + $0x688] ss:$16 sps:$4 sm:$0xff]  }
 0x12e   : > { %2501 = vmatpush1.bf16.msra.mxu0 %v3335_v44  ;;  %v3433_v44 = vld [vmem:[%s4129_s7 + $0x4ac] ss:$16 sps:$4 sm:$0xff]  }
 0x12f   : > { %2542 = vmatpush1.bf16.msra.mxu1 %v3338_v45  ;;  %2502 = vmatprep.subr.bf16.mxu0 %v3343_v46  ;;  %v3436_v45 = vld [vmem:[%s4129_s7 + $0x6ac] ss:$16 sps:$4 sm:$0xff]   ;;  %v3431_v46 = vld [vmem:[%s4129_s7 + $0x4a8] ss:$16 sps:$4 sm:$0xff]  }
 0x130   : > { %2543 = vmatprep.subr.bf16.mxu1 %v3346_v47  ;;  %v3434_v47 = vld [vmem:[%s4129_s7 + $0x6a8] ss:$16 sps:$4 sm:$0xff]  }
 0x132   : > { %2503 = vmatpush1.bf16.msra.mxu0 %v3341_v48  ;;  %v3439_v48 = vld [vmem:[%s4129_s7 + $0x4cc] ss:$16 sps:$4 sm:$0xff]  }
 0x133   : > { %2544 = vmatpush1.bf16.msra.mxu1 %v3344_v49  ;;  %2504 = vmatprep.subr.bf16.mxu0 %v3349_v50  ;;  %v3442_v49 = vld [vmem:[%s4129_s7 + $0x6cc] ss:$16 sps:$4 sm:$0xff]   ;;  %v3437_v50 = vld [vmem:[%s4129_s7 + $0x4c8] ss:$16 sps:$4 sm:$0xff]  }
 0x134   : > { %2545 = vmatprep.subr.bf16.mxu1 %v3352_v51  ;;  %v3440_v51 = vld [vmem:[%s4129_s7 + $0x6c8] ss:$16 sps:$4 sm:$0xff]  }
 0x136   : > { %2505 = vmatpush1.bf16.msra.mxu0 %v3347_v52  ;;  %v3445_v52 = vld [vmem:[%s4129_s7 + $0x4ec] ss:$16 sps:$4 sm:$0xff]  }
 0x137   : > { %2546 = vmatpush1.bf16.msra.mxu1 %v3350_v53  ;;  %2506 = vmatprep.subr.bf16.mxu0 %v3355_v54  ;;  %v3448_v53 = vld [vmem:[%s4129_s7 + $0x6ec] ss:$16 sps:$4 sm:$0xff]   ;;  %v3443_v54 = vld [vmem:[%s4129_s7 + $0x4e8] ss:$16 sps:$4 sm:$0xff]  }
 0x138   : > { %2547 = vmatprep.subr.bf16.mxu1 %v3358_v55  ;;  %v3446_v55 = vld [vmem:[%s4129_s7 + $0x6e8] ss:$16 sps:$4 sm:$0xff]  }
 0x13a   : > { %2507 = vmatpush1.bf16.msra.mxu0 %v3353_v56  ;;  %v3451_v56 = vld [vmem:[%s4129_s7 + $0x50c] ss:$16 sps:$4 sm:$0xff]  }
 0x13b   : > { %2548 = vmatpush1.bf16.msra.mxu1 %v3356_v57  ;;  %2508 = vmatprep.subr.bf16.mxu0 %v3361_v58  ;;  %v3454_v57 = vld [vmem:[%s4129_s7 + $0x70c] ss:$16 sps:$4 sm:$0xff]   ;;  %v3449_v58 = vld [vmem:[%s4129_s7 + $0x508] ss:$16 sps:$4 sm:$0xff]  }
 0x13c   : > { %2549 = vmatprep.subr.bf16.mxu1 %v3364_v59  ;;  %v3452_v59 = vld [vmem:[%s4129_s7 + $0x708] ss:$16 sps:$4 sm:$0xff]  }
 0x13e   : > { %2509 = vmatpush1.bf16.msra.mxu0 %v3359_v60  ;;  %v3457_v60 = vld [vmem:[%s4129_s7 + $0x52c] ss:$16 sps:$4 sm:$0xff]  }
 0x13f   : > { %2550 = vmatpush1.bf16.msra.mxu1 %v3362_v61  ;;  %2510 = vmatprep.subr.bf16.mxu0 %v3367_v62  ;;  %v3460_v61 = vld [vmem:[%s4129_s7 + $0x72c] ss:$16 sps:$4 sm:$0xff]   ;;  %v3455_v62 = vld [vmem:[%s4129_s7 + $0x528] ss:$16 sps:$4 sm:$0xff]  }
 0x140   : > { %2551 = vmatprep.subr.bf16.mxu1 %v3370_v63  ;;  %v3458_v63 = vld [vmem:[%s4129_s7 + $0x728] ss:$16 sps:$4 sm:$0xff]  }
 0x142   : > { %2511 = vmatpush1.bf16.msra.mxu0 %v3365_v0  ;;  %v3463_v0 = vld [vmem:[%s4129_s7 + $0x54c] ss:$16 sps:$4 sm:$0xff]  }
 0x143   : > { %2552 = vmatpush1.bf16.msra.mxu1 %v3368_v1  ;;  %2512 = vmatprep.subr.bf16.mxu0 %v3373_v4  ;;  %v3466_v1 = vld [vmem:[%s4129_s7 + $0x74c] ss:$16 sps:$4 sm:$0xff]   ;;  %v3461_v4 = vld [vmem:[%s4129_s7 + $0x548] ss:$16 sps:$4 sm:$0xff]  }
 0x144   : > { %2553 = vmatprep.subr.bf16.mxu1 %v3376_v5  ;;  %v3464_v5 = vld [vmem:[%s4129_s7 + $0x748] ss:$16 sps:$4 sm:$0xff]  }
 0x146   : > { %2513 = vmatpush1.bf16.msra.mxu0 %v3371_v6  ;;  %v3469_v6 = vld [vmem:[%s4129_s7 + $0x56c] ss:$16 sps:$4 sm:$0xff]  }
 0x147   : > { %2554 = vmatpush1.bf16.msra.mxu1 %v3374_v7  ;;  %2514 = vmatprep.subr.bf16.mxu0 %v3379_v8  ;;  %v3472_v7 = vld [vmem:[%s4129_s7 + $0x76c] ss:$16 sps:$4 sm:$0xff]   ;;  %v3467_v8 = vld [vmem:[%s4129_s7 + $0x568] ss:$16 sps:$4 sm:$0xff]  }
 0x148   : > { %2555 = vmatprep.subr.bf16.mxu1 %v3382_v9  ;;  %v3470_v9 = vld [vmem:[%s4129_s7 + $0x768] ss:$16 sps:$4 sm:$0xff]  }
 0x14a   : > { %2515 = vmatpush1.bf16.msra.mxu0 %v3377_v10  ;;  %v3475_v10 = vld [vmem:[%s4129_s7 + $0x58c] ss:$16 sps:$4 sm:$0xff]  }
 0x14b   : > { %2556 = vmatpush1.bf16.msra.mxu1 %v3380_v11  ;;  %2516 = vmatprep.subr.bf16.mxu0 %v3385_v14  ;;  %v3478_v11 = vld [vmem:[%s4129_s7 + $0x78c] ss:$16 sps:$4 sm:$0xff]   ;;  %v3473_v14 = vld [vmem:[%s4129_s7 + $0x588] ss:$16 sps:$4 sm:$0xff]  }
 0x14c   : > { %2557 = vmatprep.subr.bf16.mxu1 %v3388_v15  ;;  %v3476_v15 = vld [vmem:[%s4129_s7 + $0x788] ss:$16 sps:$4 sm:$0xff]  }
 0x14e   : > { %2517 = vmatpush1.bf16.msra.mxu0 %v3383_v16  ;;  %v3481_v16 = vld [vmem:[%s4129_s7 + $0x5ac] ss:$16 sps:$4 sm:$0xff]  }
 0x14f   : > { %2558 = vmatpush1.bf16.msra.mxu1 %v3386_v17  ;;  %2518 = vmatprep.subr.bf16.mxu0 %v3391_v20  ;;  %v3484_v17 = vld [vmem:[%s4129_s7 + $0x7ac] ss:$16 sps:$4 sm:$0xff]   ;;  %v3479_v20 = vld [vmem:[%s4129_s7 + $0x5a8] ss:$16 sps:$4 sm:$0xff]  }
 0x150   : > { %2559 = vmatprep.subr.bf16.mxu1 %v3394_v21  ;;  %v3482_v21 = vld [vmem:[%s4129_s7 + $0x7a8] ss:$16 sps:$4 sm:$0xff]  }
 0x152   : > { %2519 = vmatpush1.bf16.msra.mxu0 %v3389_v22  ;;  %v3487_v22 = vld [vmem:[%s4129_s7 + $0x5cc] ss:$16 sps:$4 sm:$0xff]  }
 0x153   : > { %2560 = vmatpush1.bf16.msra.mxu1 %v3392_v23  ;;  %2520 = vmatprep.subr.bf16.mxu0 %v3397_v26  ;;  %v3490_v23 = vld [vmem:[%s4129_s7 + $0x7cc] ss:$16 sps:$4 sm:$0xff]   ;;  %v3485_v26 = vld [vmem:[%s4129_s7 + $0x5c8] ss:$16 sps:$4 sm:$0xff]  }
 0x154   : > { %2561 = vmatprep.subr.bf16.mxu1 %v3400_v27  ;;  %v3488_v27 = vld [vmem:[%s4129_s7 + $0x7c8] ss:$16 sps:$4 sm:$0xff]  }
 0x156   : > { %2521 = vmatpush1.bf16.msra.mxu0 %v3395_v28  ;;  %v3493_v28 = vld [vmem:[%s4129_s7 + $0x5ec] ss:$16 sps:$4 sm:$0xff]  }
 0x157   : > { %2562 = vmatpush1.bf16.msra.mxu1 %v3398_v29  ;;  %2572 = vmatprep.subr.bf16.mxu0 %v3403_v30  ;;  %v3496_v29 = vld [vmem:[%s4129_s7 + $0x7ec] ss:$16 sps:$4 sm:$0xff]   ;;  %v3491_v30 = vld [vmem:[%s4129_s7 + $0x5e8] ss:$16 sps:$4 sm:$0xff]  }
 0x158   : > { %2613 = vmatprep.subr.bf16.mxu1 %v3406_v31  ;;  %v3494_v31 = vld [vmem:[%s4129_s7 + $0x7e8] ss:$16 sps:$4 sm:$0xff]  }
 0x159   : > { %2523 = vmatmul.mubr.bf16.vlgmr.msra.gmra.mrb[8].mxu0 %v4211_v12  ;;  %v3413_v12 = vld [vmem:[%s4129_s7 + $0x448] ss:$16 sps:$4 sm:$0xff]  }
 0x15a   : > { %2564 = vmatmul.mubr.bf16.vlgmr.msra.gmra.mrb[8].mxu1 %v4213_v13  ;;  %2573 = vmatpush1.bf16.msra.mxu0 %v3401_v32  ;;  %v3416_v13 = vld [vmem:[%s4129_s7 + $0x648] ss:$16 sps:$4 sm:$0xff]  }
 0x15b   : > { %2614 = vmatpush1.bf16.msra.mxu1 %v3404_v33  ;;  %2574 = vmatprep.subr.bf16.mxu0 %v3409_v34 }
 0x15c   : > { %2615 = vmatprep.subr.bf16.mxu1 %v3412_v35  ;;  %2604 = vmatprep.mubr.bf16.mxu0 %v4219_v18  ;;  %v3422_v18 = vld [vmem:[%s4129_s7 + $0x668] ss:$16 sps:$4 sm:$0xff]  }
 0x15d   : > { %2645 = vmatprep.mubr.bf16.mxu1 %v4221_v19  ;;  %v3427_v19 = vld [vmem:[%s4129_s7 + $0x48c] ss:$16 sps:$4 sm:$0xff]  }
 0x15e   : > { %2575 = vmatpush1.bf16.msra.mxu0 %v3407_v36 }
 0x15f   : > { %2616 = vmatpush1.bf16.msra.mxu1 %v3410_v37  ;;  %2576 = vmatprep.subr.bf16.mxu0 %v3415_v38 }
 0x160   : > { %2617 = vmatprep.subr.bf16.mxu1 %v3418_v2 }
 0x162   : > { %2577 = vmatpush1.bf16.msra.mxu0 %v3413_v12 }
 0x163   : > { %2618 = vmatpush1.bf16.msra.mxu1 %v3416_v13  ;;  %2578 = vmatprep.subr.bf16.mxu0 %v3421_v3  ;;  %v2671_v3 = vlaneseq }
 0x164   : > { %2619 = vmatprep.subr.bf16.mxu1 %v3424_v39 }
 0x165   : > { %v2672_v39 = vshrl.u32 %v2671_v3, 7 }
 0x166   : > { %2579 = vmatpush1.bf16.msra.mxu0 %v3419_v40 }
 0x167   : > { %2620 = vmatpush1.bf16.msra.mxu1 %v3422_v18  ;;  %2580 = vmatprep.subr.bf16.mxu0 %v3427_v19  ;;  %v2677_v40 = vsub.s32 1, %v2672_v39 }
 0x168   : > { %2621 = vmatprep.subr.bf16.mxu1 %v3430_v41 }
 0x16a   : > { %2581 = vmatpush1.bf16.msra.mxu0 %v3425_v42 }
 0x16b   : > { %2622 = vmatpush1.bf16.msra.mxu1 %v3428_v43  ;;  %2582 = vmatprep.subr.bf16.mxu0 %v3433_v44 }
 0x16c   : > { %2623 = vmatprep.subr.bf16.mxu1 %v3436_v45 }
 0x16e   : > { %2583 = vmatpush1.bf16.msra.mxu0 %v3431_v46 }
 0x16f   : > { %2624 = vmatpush1.bf16.msra.mxu1 %v3434_v47  ;;  %2584 = vmatprep.subr.bf16.mxu0 %v3439_v48 }
 0x170   : > { %2625 = vmatprep.subr.bf16.mxu1 %v3442_v49 }
 0x172   : > { %2585 = vmatpush1.bf16.msra.mxu0 %v3437_v50 }
 0x173   : > { %2626 = vmatpush1.bf16.msra.mxu1 %v3440_v51  ;;  %2586 = vmatprep.subr.bf16.mxu0 %v3445_v52 }
 0x174   : > { %2627 = vmatprep.subr.bf16.mxu1 %v3448_v53 }
 0x176   : > { %2587 = vmatpush1.bf16.msra.mxu0 %v3443_v54 }
 0x177   : > { %2628 = vmatpush1.bf16.msra.mxu1 %v3446_v55  ;;  %2588 = vmatprep.subr.bf16.mxu0 %v3451_v56 }
 0x178   : > { %2629 = vmatprep.subr.bf16.mxu1 %v3454_v57 }
 0x17a   : > { %2589 = vmatpush1.bf16.msra.mxu0 %v3449_v58 }
 0x17b   : > { %2630 = vmatpush1.bf16.msra.mxu1 %v3452_v59  ;;  %2590 = vmatprep.subr.bf16.mxu0 %v3457_v60 }
 0x17c   : > { %2631 = vmatprep.subr.bf16.mxu1 %v3460_v61 }
 0x17e   : > { %2591 = vmatpush1.bf16.msra.mxu0 %v3455_v62 }
 0x17f   : > { %2632 = vmatpush1.bf16.msra.mxu1 %v3458_v63  ;;  %2592 = vmatprep.subr.bf16.mxu0 %v3463_v0 }
 0x180   : > { %2633 = vmatprep.subr.bf16.mxu1 %v3466_v1 }
 0x182   : > { %2593 = vmatpush1.bf16.msra.mxu0 %v3461_v4 }
 0x183   : > { %2634 = vmatpush1.bf16.msra.mxu1 %v3464_v5  ;;  %2594 = vmatprep.subr.bf16.mxu0 %v3469_v6  ;;  %v2681_v5 = vsub.s32 2, %v2672_v39  ;;  %v2685_v6 = vsub.s32 3, %v2672_v39 }
 0x184   : > { %2635 = vmatprep.subr.bf16.mxu1 %v3472_v7 }
 0x186   : > { %2595 = vmatpush1.bf16.msra.mxu0 %v3467_v8 }
 0x187   : > { %2636 = vmatpush1.bf16.msra.mxu1 %v3470_v9  ;;  %2596 = vmatprep.subr.bf16.mxu0 %v3475_v10 }
 0x188   : > { %2637 = vmatprep.subr.bf16.mxu1 %v3478_v11 }
 0x18a   : > { %2597 = vmatpush1.bf16.msra.mxu0 %v3473_v14 }
 0x18b   : > { %2638 = vmatpush1.bf16.msra.mxu1 %v3476_v15  ;;  %2598 = vmatprep.subr.bf16.mxu0 %v3481_v16 }
 0x18c   : > { %2639 = vmatprep.subr.bf16.mxu1 %v3484_v17 }
 0x18e   : > { %2599 = vmatpush1.bf16.msra.mxu0 %v3479_v20 }
 0x18f   : > { %2640 = vmatpush1.bf16.msra.mxu1 %v3482_v21  ;;  %2600 = vmatprep.subr.bf16.mxu0 %v3487_v22 }
 0x190   : > { %2641 = vmatprep.subr.bf16.mxu1 %v3490_v23 }
 0x192   : > { %2601 = vmatpush1.bf16.msra.mxu0 %v3485_v26 }
 0x193   : > { %2642 = vmatpush1.bf16.msra.mxu1 %v3488_v27  ;;  %2602 = vmatprep.subr.bf16.mxu0 %v3493_v28 }
 0x194   : > { %2643 = vmatprep.subr.bf16.mxu1 %v3496_v29 }
 0x196   : > { %2603 = vmatpush1.bf16.msra.mxu0 %v3491_v30 }
 0x197   : > { %2644 = vmatpush1.bf16.msra.mxu1 %v3494_v31 }
 0x199   : > { %2605 = vmatmul.mubr.bf16.vlgmr.msra.gmra.mrb[12].mxu0 %v4293_v24  ;;  %v2673_v24 = vsub.s32 0, %v2672_v39 }
 0x19a   : > { %2646 = vmatmul.mubr.bf16.vlgmr.msra.gmra.mrb[12].mxu1 %v4295_v25  ;;  %v2669_v25 = vld [vmem:[%s754_s29] sm:$0xf] }
 0x19b   : > { %v2674_v42 = vrot.slane %v2669_v25, %v2673_v24  ;;  %v2678_v46 = vrot.slane %v2669_v25, %v2677_v40  ;;  %v2682_v10 = vrot.slane %v2669_v25, %v2681_v5  ;;  %v2686_v16 = vrot.slane %v2669_v25, %v2685_v6 }
 0x1ac   : > { %v2360_v32 = vpop.f32.mrb[0].mxu0 }
 0x1ad   : > { %v2401_v33 = vpop.f32.mrb[0].mxu1  ;;  %v2362_v35 = vpop.f32.mrb[1].mxu0 }
 0x1ae   : > { %v2402_v34 = vadd.f32 %v2401_v33, %v2360_v32  ;;  %v2403_v36 = vpop.f32.mrb[1].mxu1  ;;  %v2364_v38 = vpop.f32.mrb[2].mxu0 }
 0x1af   : > { %v2404_v37 = vadd.f32 %v2403_v36, %v2362_v35  ;;  %v2405_v2 = vpop.f32.mrb[2].mxu1  ;;  %v2365_v12 = vpop.f32.mrb[3].mxu0 }
 0x1b0   : > { %v2406_v13 = vpop.f32.mrb[3].mxu1 }
 0x1ec   : > { %v2442_v18 = vpop.f32.mrb[4].mxu0 }
 0x1ed   : > { %v2483_v19 = vpop.f32.mrb[4].mxu1  ;;  %v2443_v41 = vadd.f32 %v2442_v18, %v2402_v34  ;;  %v2444_v43 = vpop.f32.mrb[5].mxu0 }
 0x1ee   : > { %v2485_v44 = vpop.f32.mrb[5].mxu1  ;;  %v2445_v45 = vadd.f32 %v2444_v43, %v2404_v37  ;;  %v2446_v47 = vpop.f32.mrb[6].mxu0 }
 0x1ef   : > { %v2487_v48 = vpop.f32.mrb[6].mxu1  ;;  %v2484_v49 = vadd.f32 %v2483_v19, %v2443_v41  ;;  %v2447_v50 = vpop.f32.mrb[7].mxu0 }
 0x1f0   : > { %v2488_v51 = vpop.f32.mrb[7].mxu1  ;;  %v2486_v52 = vadd.f32 %v2485_v44, %v2445_v45 }
 0x1f1   : > { %v2691_v53 = vadd.f32 %v2674_v42, %v2484_v49 }
 0x1f2   : > { %v2692_v54 = vadd.f32 %v2678_v46, %v2486_v52 }
 0x1f3   : > { %v2695_v55 = vmax.f32 %v2691_v53, 0.0 }
 0x1f4   : > { %v2696_v56 = vmax.f32 %v2692_v54, 0.0 }
 0x1f5   : > { %2699 = vst [vmem:[%s4440_s5] sm:$0xff] %v2695_v55 }
 0x1f6   : > { %2700 = vst [vmem:[%s4440_s5 + $0x8] sm:$0xff] %v2696_v56 }
 0x22c   : > { %v2524_v57 = vpop.f32.mrb[8].mxu0 }
 0x22d   : > { %v2565_v58 = vpop.f32.mrb[8].mxu1  ;;  %v2526_v60 = vpop.f32.mrb[9].mxu0 }
 0x22e   : > { %v2566_v59 = vadd.f32 %v2565_v58, %v2524_v57  ;;  %v2567_v61 = vpop.f32.mrb[9].mxu1  ;;  %v2528_v63 = vpop.f32.mrb[10].mxu0 }
 0x22f   : > { %v2568_v62 = vadd.f32 %v2567_v61, %v2526_v60  ;;  %v2569_v0 = vpop.f32.mrb[10].mxu1  ;;  %v2529_v1 = vpop.f32.mrb[11].mxu0 }
 0x230   : > { %v2570_v4 = vpop.f32.mrb[11].mxu1 }
 0x26c   : > { %v2606_v7 = vpop.f32.mrb[12].mxu0 }
 0x26d   : > { %v2647_v8 = vpop.f32.mrb[12].mxu1  ;;  %v2607_v9 = vadd.f32 %v2606_v7, %v2566_v59  ;;  %v2608_v11 = vpop.f32.mrb[13].mxu0 }
 0x26e   : > { %v2649_v14 = vpop.f32.mrb[13].mxu1  ;;  %v2609_v15 = vadd.f32 %v2608_v11, %v2568_v62  ;;  %v2610_v17 = vpop.f32.mrb[14].mxu0 }
 0x26f   : > { %v2651_v20 = vpop.f32.mrb[14].mxu1  ;;  %v2648_v21 = vadd.f32 %v2647_v8, %v2607_v9  ;;  %v2611_v22 = vpop.f32.mrb[15].mxu0 }
 0x270   : > { %v2652_v23 = vpop.f32.mrb[15].mxu1  ;;  %v2650_v26 = vadd.f32 %v2649_v14, %v2609_v15 }
 0x271   : > { %v2693_v27 = vadd.f32 %v2682_v10, %v2648_v21 }
 0x272   : > { %v2694_v28 = vadd.f32 %v2686_v16, %v2650_v26 }
 0x273   : > { %v2697_v29 = vmax.f32 %v2693_v27, 0.0 }
 0x274   : > { %v2698_v30 = vmax.f32 %v2694_v28, 0.0 }
 0x275   : > { %2701 = vst [vmem:[%s4440_s5 + $0x10] sm:$0xff] %v2697_v29 }
 0x276   : > { %2702 = vst [vmem:[%s4440_s5 + $0x18] sm:$0xff] %v2698_v30 }
 0x277 PF: > { %s13_s16 = sadd.s32 1, %s3535_s16   ;;  %s4465_s12 = smov %s3523_s13 }
 0x278   : > { %p10_p10 = scmp.ge.s32.totalorder %s13_s16, 6   ;;  %s4466_s13 = smov %s3592_s20 }
 0x279   : > { %s4467_s14 = smov %s3531_s15  ;;  %s4468_s15 = smov %s4470_s17 }
 0x27a   :  { %12 = sbr.rel (!%p10_p10) target bundleno = 3 (0x3), region = 104 }

// kernel: acbase_forward.11
= control target key start
LH: loop header
LB: loop body
LE: loop exit
PB: predicated region body
PF: predicated region fallthrough
CT: control target
= control target key end

     0   :  { %8 = vsyncpa [#allocation4], 0  ;;  %s3628_s0 = inlined_call_operand.vmem [shape: f32[8,2048], index: 0, kind: input, shape index: {}]   ;;  %s3629_s1 = inlined_call_operand.hbm [shape: bf16[2048,4096], index: 1, kind: input, shape index: {}]   ;;  %s3630_s2 = inlined_call_operand.vmem [shape: f32[1,4096], index: 2, kind: input, shape index: {}]   ;;  %s3631_s3 = inlined_call_operand.vmem [shape: f32[8,4096], index: 3, kind: output, shape index: {}]  }
   0x1   :  { %10 = vsyncpa [#allocation4 + $0x1], 0  ;;  %s3156_s12 = smov 0   ;;  %s3158_s13 = smov 0  }
   0x2   :  { %s3160_s14 = smov 0   ;;  %s3162_s15 = smov 0  }
   0x3   :  { %s3164_s16 = smov 0   ;;  %s3166_s17 = smov 0  }
   0x4   :  { %s3168_s18 = smov 0   ;;  %s3170_s19 = smov 0  }
   0x5 LB: > { %s2297_s20 = sadd.s32 4294967295, %s3129_s19   ;;  %s25_s21 = sadd.s32 1, %s3121_s17  ;;  %s3129_s19 = sphi %s3170_s19, %s16_s19   ;;  %s3125_s18 = sphi %s3168_s18, %s3641_s18   ;;  %s3121_s17 = sphi %s3166_s17, %s3640_s17   ;;  %s3117_s16 = sphi %s3164_s16, %s3639_s16   ;;  %s3113_s15 = sphi %s3162_s15, %s3638_s15   ;;  %s3109_s14 = sphi %s3160_s14, %s3637_s14   ;;  %s3105_s13 = sphi %s3158_s13, %s3636_s13   ;;  %s3101_s12 = sphi %s3156_s12, %s3635_s12  }
   0x6   : > { %p26_p0 = scmp.ge.s32.totalorder %s25_s21, 2  ;;  %s28_s22 = sadd.s32 1, %s3125_s18 }
   0x7   : > { %s63_s23 = sadd.s32 1, %s3109_s14  ;;  %p70_p1 = scmp.ne.s32.totalorder %s3109_s14, %s3105_s13 }
   0x8   : > { %s3643_s21 = smov (%p26_p0, %s25_s21), 0  ;;  %s3645_s22 = smov (!%p26_p0, %s28_s22), %s3125_s18 }
   0x9   : > { %s58_s24 = ssub.s32 %s3121_s17, %s3643_s21  ;;  %p71_p2 = scmp.eq.s32.totalorder %s3129_s19, 0 }
   0xa   : > { %p30_p3 = scmp.ge.s32.totalorder %s3645_s22, 8  ;;  %p76_p4 = scmp.ne.s32.totalorder %s3105_s13, %s3101_s12 }
   0xb   : > { %p3207_p5 = por %p71_p2, %p70_p1  ;;  %p77_p6 = scmp.eq.s32.totalorder %s2297_s20, 0 }
   0xc   : > { %s3647_s22 = smov (%p30_p3, %s3645_s22), 0  ;;  %p2580_p8 = scmp.lt.s32.totalorder %s3129_s19, 16 }
   0xd   : > { %p3213_p7 = por %p77_p6, %p76_p4  ;;  %s59_s27 = ssub.s32 %s3125_s18, %s3647_s22 }
   0xe   : > { %s60_s28 = sor.u32 %s59_s27, %s58_s24  ;;  %s161_s29 = sand.u32 1, %s3109_s14  }
   0xf   : > { %p61_p9 = scmp.eq.s32.totalorder %s60_s28, 0  ;;  %s2301_s30 = sshll.u32 %s161_s29, 11 }
  0x10   : > { %s2303_s4 = sshll.u32 %s3125_s18, 2  ;;  %s2573_s6 = sshll.u32 %s3121_s17, 12 }
  0x11   : > { %s3223_s5 = scalar_select %p61_p9, %s3109_s14, %s63_s23  }
  0x12   : > { %s172_s7 = sadd.s32 %s2573_s6, %s2303_s4  ;;  %s165_s8 = scalar_lea.vmem [#allocation3], %s2301_s30 }
  0x13   : > { %s175_s9 = sshll.u32 %s165_s8, 4  ;;  %s2305_s10 = sshll.u32 %s172_s7, 6  ;;  %s3226_s9 = int_to_ptr.vmem [resolvable:$true] %s175_s9 }
  0x14   : > { %s3231_s20 = scalar_lea.hbm %s3629_s1, %s2305_s10  ;;  %p3237_p10 = pnand %p2580_p8, %p3207_p5 }
  0x15   : > { %s3241_s24 = scalar_lea.sflag [#allocation4], %s161_s29  ;;  %s3033_s27 = scalar_lea.hbm %s3231_s20, 32768 }
  0x16   : > { %p3034_p11 = scmp.ne.s32.totalorder %s3231_s20, %s3033_s27  ;;  %p3035_p12 = pneg %p3237_p10 }
  0x17   : > { %s3038_s30 = scalar_lea.hbm %s3629_s1, 524288  ;;  %p3039_p1 = scmp.lt.u32.totalorder %s3231_s20, %s3629_s1 }
  0x18   : > { %p3036_p13 = pnand %p3035_p12, %p3034_p11  ;;  %p3040_p2 = scmp.lt.u32.totalorder %s3038_s30, %s3033_s27 }
  0x19   : > { %p3042_p4 = scmp.lt.u32.totalorder %s3033_s27, %s3231_s20 }
  0x1a   : > { %p3037_p0 = pneg %p3036_p13  ;;  %p3041_p3 = por %p3040_p2, %p3039_p1 }
  0x1c   : > { %p3043_p5 = por %p3042_p4, %p3041_p3 }
  0x1e   : > { %p3044_p6 = pnand %p3043_p5, %p3037_p0 }
  0x20   : > { %3047 = shalt.err (!%p3044_p6)
}
  0x21   : > { %s3048_s29 = scalar_lea.vmem %s3226_s9, 32768  ;;  %s3131_s7 = smov [#allocation3]  }
  0x22   : > { %p3049_p8 = scmp.ne.s32.totalorder %s3226_s9, %s3048_s29  ;;  %s3053_s8 = sshll.u32 %s3131_s7, 4  ;;  %s3054_s8 = int_to_ptr.vmem [resolvable:$false] %s3053_s8 }
  0x23   : > { %s3055_s10 = scalar_lea.vmem %s3054_s8, 65536  ;;  %p3056_p13 = scmp.lt.s32.totalorder %s3226_s9, %s3054_s8 }
  0x24   : > { %p3051_p9 = pnand %p3049_p8, %p3035_p12  ;;  %p3057_p1 = scmp.lt.s32.totalorder %s3055_s10, %s3048_s29 }
  0x26   : > { %p3052_p11 = pneg %p3051_p9  ;;  %p3058_p2 = por %p3057_p1, %p3056_p13 }
  0x28   : > { %p3059_p3 = pnand %p3058_p2, %p3052_p11 }
  0x2a   : > { %3062 = shalt.err (!%p3059_p3)
}
  0x2b   : > { %s3132_s11 = smov 2048   ;;  %s3133_s12 = smov 256  }
  0x2c   : > { %s3134_s27 = smov 16   ;;  %p2306_p12 = scmp.ge.s32.totalorder %s3129_s19, 1 }
  0x2d   : > { %2579 = dma.hbm_to_vmem [thread:$0]  (!%p3237_p10), %s3231_s20, 32768, %s3226_s9, %s3241_s24, %s3132_s11, %s3133_s12, %s3134_s27  }
  0x2e   : > { %p191_p0 = scmp.lt.s32.totalorder %s3129_s19, 17 }
  0x30   : > { %p192_p4 = pnand %p2306_p12, %p191_p0 }
  0x31   : > { %s197_s25 = sand.u32 (!%p192_p4), 1, %s3105_s13  }
  0x32   : > { %195 = sbr.rel (%p192_p4) target bundleno = 560 (0x230), region = 32  ;;  %s2307_s28 = sshll.u32 (!%p192_p4), %s197_s25, 11 }
  0x33   : > { %s198_s30 = scalar_lea.sflag (!%p192_p4), [#allocation4], %s197_s25  ;;  %s3272_s4 = scalar_lea.vmem (!%p192_p4), [#allocation3], %s2307_s28 }
  0x39   : > { %3096 = dma.done.wait (%p3213_p7), %s198_s30, 32768  }
  0x3a   : > { %3098 = vsyncadd (%p3213_p7), %s198_s30, 4294934528  ;;  %s2308_s23 = sshll.u32 %s3113_s15, 3  ;;  %s2310_s9 = sshll.u32 %s3117_s16, 2 }
  0x3b   : > { %p234_p10 = scmp.lt.s32.totalorder %s2308_s23, 15  ;;  %p242_p5 = scmp.lt.s32.totalorder %s2310_s9, 31 }
  0x3c   : > { %p2313_p7 = scmp.ne.s32.totalorder %s3113_s15, 0 }
  0x3d   : > { %s3649_s23 = smov (!%p234_p10, %s2308_s23), 15  ;;  %s3651_s9 = smov (!%p242_p5, %s2310_s9), 31 }
  0x3e   : > { %s2309_s20 = sshll.u32 %s3649_s23, 3  ;;  %s244_s8 = scalar_lea.vmem %s3630_s2, %s3651_s9  ;;  %v3135_v0 = vmov (!%p2313_p7), 0.0  }
  0x3f   : > { %s3285_s29 = scalar_lea.vmem %s3628_s0, %s2309_s20  ;;  %s2312_s10 = sshll.u32 %s3651_s9, 3  ;;  %256 = vst [vmem:[#allocation2] sm:$0xff] (!%p2313_p7), %v3135_v0  ;;  %257 = vst [vmem:[#allocation2 + $0x8] sm:$0xff] (!%p2313_p7), %v3135_v0 }
  0x40   : > { %s3295_s12 = scalar_lea.vmem %s3631_s3, %s2312_s10  ;;  %255 = sbr.rel (%p2313_p7) target bundleno = 71 (0x47), region = 40  ;;  %258 = vst [vmem:[#allocation2 + $0x10] sm:$0xff] (!%p2313_p7), %v3135_v0  ;;  %259 = vst [vmem:[#allocation2 + $0x18] sm:$0xff] (!%p2313_p7), %v3135_v0 }
  0x47 PF: > { %v2649_v1 = vld [vmem:[%s3272_s4 + $0x4] ss:$16 sps:$4 sm:$0xff]   ;;  %v2653_v3 = vld [vmem:[%s3272_s4] ss:$16 sps:$4 sm:$0xff]   ;;  %v265_v47 = vld [vmem:[%s3285_s29 + $0x8] sm:$0xff]  ;;  %p2570_p6 = scmp.ne.s32.totalorder %s3113_s15, 1 }
  0x48   : > { %v2651_v2 = vld [vmem:[%s3272_s4 + $0x204] ss:$16 sps:$4 sm:$0xff]   ;;  %1816 = vmatprep.subr.bf16.mxu0 %v2649_v1  ;;  %v2654_v4 = vld [vmem:[%s3272_s4 + $0x200] ss:$16 sps:$4 sm:$0xff]   ;;  %v3347_v50 = vpack.c.bf16 %v265_v47, %v265_v47  ;;  %v267_v51 = vld [vmem:[%s3285_s29 + $0x18] sm:$0xff] }
  0x49   : > { %1857 = vmatprep.subr.bf16.mxu1 %v2651_v2  ;;  %v2655_v5 = vld [vmem:[%s3272_s4 + $0x24] ss:$16 sps:$4 sm:$0xff]   ;;  %1817 = vmatpush1.bf16.msra.mxu0 %v2653_v3  ;;  %v2659_v7 = vld [vmem:[%s3272_s4 + $0x20] ss:$16 sps:$4 sm:$0xff]   ;;  %v3351_v53 = vpack.c.bf16 %v267_v51, %v267_v51 }
  0x4a   : > { %1858 = vmatpush1.bf16.msra.mxu1 %v2654_v4  ;;  %v2657_v6 = vld [vmem:[%s3272_s4 + $0x224] ss:$16 sps:$4 sm:$0xff]   ;;  %1818 = vmatprep.subr.bf16.mxu0 %v2655_v5  ;;  %v2660_v8 = vld [vmem:[%s3272_s4 + $0x220] ss:$16 sps:$4 sm:$0xff]  }
  0x4b   : > { %1859 = vmatprep.subr.bf16.mxu1 %v2657_v6  ;;  %v2661_v9 = vld [vmem:[%s3272_s4 + $0x44] ss:$16 sps:$4 sm:$0xff]   ;;  %v2665_v11 = vld [vmem:[%s3272_s4 + $0x40] ss:$16 sps:$4 sm:$0xff]   ;;  %1848 = vmatprep.mubr.bf16.mxu0 %v3347_v50 }
  0x4c   : > { %v2663_v10 = vld [vmem:[%s3272_s4 + $0x244] ss:$16 sps:$4 sm:$0xff]   ;;  %v2666_v12 = vld [vmem:[%s3272_s4 + $0x240] ss:$16 sps:$4 sm:$0xff]   ;;  %1889 = vmatprep.mubr.bf16.mxu1 %v3351_v53 }
  0x4d   : > { %1819 = vmatpush1.bf16.msra.mxu0 %v2659_v7  ;;  %v2667_v13 = vld [vmem:[%s3272_s4 + $0x64] ss:$16 sps:$4 sm:$0xff]   ;;  %v2671_v15 = vld [vmem:[%s3272_s4 + $0x60] ss:$16 sps:$4 sm:$0xff]  }
  0x4e   : > { %1860 = vmatpush1.bf16.msra.mxu1 %v2660_v8  ;;  %1820 = vmatprep.subr.bf16.mxu0 %v2661_v9  ;;  %v2669_v14 = vld [vmem:[%s3272_s4 + $0x264] ss:$16 sps:$4 sm:$0xff]   ;;  %v2672_v16 = vld [vmem:[%s3272_s4 + $0x260] ss:$16 sps:$4 sm:$0xff]  }
  0x4f   : > { %1861 = vmatprep.subr.bf16.mxu1 %v2663_v10  ;;  %v2673_v17 = vld [vmem:[%s3272_s4 + $0x84] ss:$16 sps:$4 sm:$0xff]   ;;  %v2677_v19 = vld [vmem:[%s3272_s4 + $0x80] ss:$16 sps:$4 sm:$0xff]  }
  0x50   : > { %v2675_v18 = vld [vmem:[%s3272_s4 + $0x284] ss:$16 sps:$4 sm:$0xff]   ;;  %v2678_v20 = vld [vmem:[%s3272_s4 + $0x280] ss:$16 sps:$4 sm:$0xff]  }
  0x51   : > { %1821 = vmatpush1.bf16.msra.mxu0 %v2665_v11  ;;  %v2679_v21 = vld [vmem:[%s3272_s4 + $0xa4] ss:$16 sps:$4 sm:$0xff]   ;;  %v2683_v23 = vld [vmem:[%s3272_s4 + $0xa0] ss:$16 sps:$4 sm:$0xff]  }
  0x52   : > { %1862 = vmatpush1.bf16.msra.mxu1 %v2666_v12  ;;  %1822 = vmatprep.subr.bf16.mxu0 %v2667_v13  ;;  %v2681_v22 = vld [vmem:[%s3272_s4 + $0x2a4] ss:$16 sps:$4 sm:$0xff]   ;;  %v2684_v24 = vld [vmem:[%s3272_s4 + $0x2a0] ss:$16 sps:$4 sm:$0xff]  }
  0x53   : > { %1863 = vmatprep.subr.bf16.mxu1 %v2669_v14  ;;  %v2685_v25 = vld [vmem:[%s3272_s4 + $0xc4] ss:$16 sps:$4 sm:$0xff]   ;;  %v2689_v27 = vld [vmem:[%s3272_s4 + $0xc0] ss:$16 sps:$4 sm:$0xff]  }
  0x54   : > { %v2687_v26 = vld [vmem:[%s3272_s4 + $0x2c4] ss:$16 sps:$4 sm:$0xff]   ;;  %v2690_v28 = vld [vmem:[%s3272_s4 + $0x2c0] ss:$16 sps:$4 sm:$0xff]  }
  0x55   : > { %1823 = vmatpush1.bf16.msra.mxu0 %v2671_v15  ;;  %v2691_v29 = vld [vmem:[%s3272_s4 + $0xe4] ss:$16 sps:$4 sm:$0xff]   ;;  %v2695_v31 = vld [vmem:[%s3272_s4 + $0xe0] ss:$16 sps:$4 sm:$0xff]  }
  0x56   : > { %1864 = vmatpush1.bf16.msra.mxu1 %v2672_v16  ;;  %1824 = vmatprep.subr.bf16.mxu0 %v2673_v17  ;;  %v2693_v30 = vld [vmem:[%s3272_s4 + $0x2e4] ss:$16 sps:$4 sm:$0xff]   ;;  %v2696_v32 = vld [vmem:[%s3272_s4 + $0x2e0] ss:$16 sps:$4 sm:$0xff]  }
  0x57   : > { %1865 = vmatprep.subr.bf16.mxu1 %v2675_v18  ;;  %v2697_v33 = vld [vmem:[%s3272_s4 + $0x104] ss:$16 sps:$4 sm:$0xff]   ;;  %v2701_v35 = vld [vmem:[%s3272_s4 + $0x100] ss:$16 sps:$4 sm:$0xff]  }
  0x58   : > { %v2699_v34 = vld [vmem:[%s3272_s4 + $0x304] ss:$16 sps:$4 sm:$0xff]   ;;  %v2702_v36 = vld [vmem:[%s3272_s4 + $0x300] ss:$16 sps:$4 sm:$0xff]  }
  0x59   : > { %1825 = vmatpush1.bf16.msra.mxu0 %v2677_v19  ;;  %v2703_v37 = vld [vmem:[%s3272_s4 + $0x124] ss:$16 sps:$4 sm:$0xff]   ;;  %v2707_v39 = vld [vmem:[%s3272_s4 + $0x120] ss:$16 sps:$4 sm:$0xff]  }
  0x5a   : > { %1866 = vmatpush1.bf16.msra.mxu1 %v2678_v20  ;;  %1826 = vmatprep.subr.bf16.mxu0 %v2679_v21  ;;  %v2705_v38 = vld [vmem:[%s3272_s4 + $0x324] ss:$16 sps:$4 sm:$0xff]   ;;  %v2708_v40 = vld [vmem:[%s3272_s4 + $0x320] ss:$16 sps:$4 sm:$0xff]  }
  0x5b   : > { %1867 = vmatprep.subr.bf16.mxu1 %v2681_v22  ;;  %v2709_v41 = vld [vmem:[%s3272_s4 + $0x144] ss:$16 sps:$4 sm:$0xff]   ;;  %v2713_v43 = vld [vmem:[%s3272_s4 + $0x140] ss:$16 sps:$4 sm:$0xff]  }
  0x5c   : > { %v2711_v42 = vld [vmem:[%s3272_s4 + $0x344] ss:$16 sps:$4 sm:$0xff]   ;;  %v2714_v44 = vld [vmem:[%s3272_s4 + $0x340] ss:$16 sps:$4 sm:$0xff]  }
  0x5d   : > { %1827 = vmatpush1.bf16.msra.mxu0 %v2683_v23  ;;  %v2715_v45 = vld [vmem:[%s3272_s4 + $0x164] ss:$16 sps:$4 sm:$0xff]   ;;  %v2719_v48 = vld [vmem:[%s3272_s4 + $0x160] ss:$16 sps:$4 sm:$0xff]  }
  0x5e   : > { %1868 = vmatpush1.bf16.msra.mxu1 %v2684_v24  ;;  %1828 = vmatprep.subr.bf16.mxu0 %v2685_v25  ;;  %v2717_v46 = vld [vmem:[%s3272_s4 + $0x364] ss:$16 sps:$4 sm:$0xff]   ;;  %v2720_v49 = vld [vmem:[%s3272_s4 + $0x360] ss:$16 sps:$4 sm:$0xff]  }
  0x5f   : > { %1869 = vmatprep.subr.bf16.mxu1 %v2687_v26  ;;  %v2721_v52 = vld [vmem:[%s3272_s4 + $0x184] ss:$16 sps:$4 sm:$0xff]   ;;  %v2725_v55 = vld [vmem:[%s3272_s4 + $0x180] ss:$16 sps:$4 sm:$0xff]  }
  0x60   : > { %v2723_v54 = vld [vmem:[%s3272_s4 + $0x384] ss:$16 sps:$4 sm:$0xff]   ;;  %v2726_v56 = vld [vmem:[%s3272_s4 + $0x380] ss:$16 sps:$4 sm:$0xff]  }
  0x61   : > { %1829 = vmatpush1.bf16.msra.mxu0 %v2689_v27  ;;  %v2727_v57 = vld [vmem:[%s3272_s4 + $0x1a4] ss:$16 sps:$4 sm:$0xff]   ;;  %v2731_v59 = vld [vmem:[%s3272_s4 + $0x1a0] ss:$16 sps:$4 sm:$0xff]  }
  0x62   : > { %1870 = vmatpush1.bf16.msra.mxu1 %v2690_v28  ;;  %1830 = vmatprep.subr.bf16.mxu0 %v2691_v29  ;;  %v2729_v58 = vld [vmem:[%s3272_s4 + $0x3a4] ss:$16 sps:$4 sm:$0xff]   ;;  %v2732_v60 = vld [vmem:[%s3272_s4 + $0x3a0] ss:$16 sps:$4 sm:$0xff]  }
  0x63   : > { %1871 = vmatprep.subr.bf16.mxu1 %v2693_v30  ;;  %v2733_v61 = vld [vmem:[%s3272_s4 + $0x1c4] ss:$16 sps:$4 sm:$0xff]   ;;  %v2737_v63 = vld [vmem:[%s3272_s4 + $0x1c0] ss:$16 sps:$4 sm:$0xff]  }
  0x64   : > { %v2735_v62 = vld [vmem:[%s3272_s4 + $0x3c4] ss:$16 sps:$4 sm:$0xff]   ;;  %v2738_v0 = vld [vmem:[%s3272_s4 + $0x3c0] ss:$16 sps:$4 sm:$0xff]  }
  0x65   : > { %1831 = vmatpush1.bf16.msra.mxu0 %v2695_v31  ;;  %v2739_v1 = vld [vmem:[%s3272_s4 + $0x1e4] ss:$16 sps:$4 sm:$0xff]   ;;  %v2743_v3 = vld [vmem:[%s3272_s4 + $0x1e0] ss:$16 sps:$4 sm:$0xff]  }
  0x66   : > { %1872 = vmatpush1.bf16.msra.mxu1 %v2696_v32  ;;  %1832 = vmatprep.subr.bf16.mxu0 %v2697_v33  ;;  %v2741_v2 = vld [vmem:[%s3272_s4 + $0x3e4] ss:$16 sps:$4 sm:$0xff]   ;;  %v2744_v4 = vld [vmem:[%s3272_s4 + $0x3e0] ss:$16 sps:$4 sm:$0xff]  }
  0x67   : > { %1873 = vmatprep.subr.bf16.mxu1 %v2699_v34  ;;  %v264_v5 = vld [vmem:[%s3285_s29] sm:$0xff]  ;;  %v266_v6 = vld [vmem:[%s3285_s29 + $0x10] sm:$0xff] }
  0x68   : > { %v2747_v7 = vld [vmem:[%s3272_s4 + $0x404] ss:$16 sps:$4 sm:$0xff]   ;;  %v3374_v9 = vpack.c.bf16 %v264_v5, %v264_v5  ;;  %v3376_v10 = vpack.c.bf16 %v266_v6, %v266_v6  ;;  %v2745_v11 = vld [vmem:[%s3272_s4 + $0x400] ss:$16 sps:$4 sm:$0xff]  }
  0x69   : > { %1833 = vmatpush1.bf16.msra.mxu0 %v2701_v35  ;;  %v2750_v8 = vld [vmem:[%s3272_s4 + $0x604] ss:$16 sps:$4 sm:$0xff]   ;;  %v2748_v12 = vld [vmem:[%s3272_s4 + $0x600] ss:$16 sps:$4 sm:$0xff]   ;;  %v269_v35 = vld [vmem:[%s3285_s29 + $0x28] sm:$0xff] }
  0x6a   : > { %1874 = vmatpush1.bf16.msra.mxu1 %v2702_v36  ;;  %1834 = vmatprep.subr.bf16.mxu0 %v2703_v37  ;;  %v2753_v13 = vld [vmem:[%s3272_s4 + $0x424] ss:$16 sps:$4 sm:$0xff]   ;;  %v2751_v15 = vld [vmem:[%s3272_s4 + $0x420] ss:$16 sps:$4 sm:$0xff]  }
  0x6b   : > { %1875 = vmatprep.subr.bf16.mxu1 %v2705_v38  ;;  %v2756_v14 = vld [vmem:[%s3272_s4 + $0x624] ss:$16 sps:$4 sm:$0xff]   ;;  %v2754_v16 = vld [vmem:[%s3272_s4 + $0x620] ss:$16 sps:$4 sm:$0xff]   ;;  %v3407_v38 = vpack.c.bf16 %v269_v35, %v269_v35  ;;  %v2859_v35 = vld [vmem:[%s3272_s4 + $0x68] ss:$16 sps:$4 sm:$0xff]  }
  0x6c   : > { %v2759_v17 = vld [vmem:[%s3272_s4 + $0x444] ss:$16 sps:$4 sm:$0xff]   ;;  %v2757_v19 = vld [vmem:[%s3272_s4 + $0x440] ss:$16 sps:$4 sm:$0xff]  }
  0x6d   : > { %1835 = vmatpush1.bf16.msra.mxu0 %v2707_v39  ;;  %v2762_v18 = vld [vmem:[%s3272_s4 + $0x644] ss:$16 sps:$4 sm:$0xff]   ;;  %v2760_v20 = vld [vmem:[%s3272_s4 + $0x640] ss:$16 sps:$4 sm:$0xff]   ;;  %v271_v39 = vld [vmem:[%s3285_s29 + $0x38] sm:$0xff] }
  0x6e   : > { %1876 = vmatpush1.bf16.msra.mxu1 %v2708_v40  ;;  %1836 = vmatprep.subr.bf16.mxu0 %v2709_v41  ;;  %v2765_v21 = vld [vmem:[%s3272_s4 + $0x464] ss:$16 sps:$4 sm:$0xff]   ;;  %v2763_v23 = vld [vmem:[%s3272_s4 + $0x460] ss:$16 sps:$4 sm:$0xff]   ;;  %v3411_v41 = vpack.c.bf16 %v271_v39, %v271_v39  ;;  %v2868_v39 = vld [vmem:[%s3272_s4 + $0x288] ss:$16 sps:$4 sm:$0xff]  }
  0x6f   : > { %1877 = vmatprep.subr.bf16.mxu1 %v2711_v42  ;;  %v2768_v22 = vld [vmem:[%s3272_s4 + $0x664] ss:$16 sps:$4 sm:$0xff]   ;;  %v2766_v24 = vld [vmem:[%s3272_s4 + $0x660] ss:$16 sps:$4 sm:$0xff]  }
  0x70   : > { %v2771_v25 = vld [vmem:[%s3272_s4 + $0x484] ss:$16 sps:$4 sm:$0xff]   ;;  %v2769_v27 = vld [vmem:[%s3272_s4 + $0x480] ss:$16 sps:$4 sm:$0xff]  }
  0x71   : > { %1837 = vmatpush1.bf16.msra.mxu0 %v2713_v43  ;;  %v2774_v26 = vld [vmem:[%s3272_s4 + $0x684] ss:$16 sps:$4 sm:$0xff]   ;;  %v2772_v28 = vld [vmem:[%s3272_s4 + $0x680] ss:$16 sps:$4 sm:$0xff]  }
  0x72   : > { %1878 = vmatpush1.bf16.msra.mxu1 %v2714_v44  ;;  %1838 = vmatprep.subr.bf16.mxu0 %v2715_v45  ;;  %v2777_v29 = vld [vmem:[%s3272_s4 + $0x4a4] ss:$16 sps:$4 sm:$0xff]   ;;  %v2775_v31 = vld [vmem:[%s3272_s4 + $0x4a0] ss:$16 sps:$4 sm:$0xff]  }
  0x73   : > { %1879 = vmatprep.subr.bf16.mxu1 %v2717_v46  ;;  %v2780_v30 = vld [vmem:[%s3272_s4 + $0x6a4] ss:$16 sps:$4 sm:$0xff]   ;;  %v2778_v32 = vld [vmem:[%s3272_s4 + $0x6a0] ss:$16 sps:$4 sm:$0xff]  }
  0x74   : > { %v2783_v33 = vld [vmem:[%s3272_s4 + $0x4c4] ss:$16 sps:$4 sm:$0xff]   ;;  %v2781_v36 = vld [vmem:[%s3272_s4 + $0x4c0] ss:$16 sps:$4 sm:$0xff]  }
  0x75   : > { %1839 = vmatpush1.bf16.msra.mxu0 %v2719_v48  ;;  %v2786_v34 = vld [vmem:[%s3272_s4 + $0x6c4] ss:$16 sps:$4 sm:$0xff]   ;;  %v2784_v37 = vld [vmem:[%s3272_s4 + $0x6c0] ss:$16 sps:$4 sm:$0xff]  }
  0x76   : > { %1880 = vmatpush1.bf16.msra.mxu1 %v2720_v49  ;;  %1840 = vmatprep.subr.bf16.mxu0 %v2721_v52  ;;  %v2789_v40 = vld [vmem:[%s3272_s4 + $0x4e4] ss:$16 sps:$4 sm:$0xff]   ;;  %v2787_v43 = vld [vmem:[%s3272_s4 + $0x4e0] ss:$16 sps:$4 sm:$0xff]  }
  0x77   : > { %1881 = vmatprep.subr.bf16.mxu1 %v2723_v54  ;;  %v2792_v42 = vld [vmem:[%s3272_s4 + $0x6e4] ss:$16 sps:$4 sm:$0xff]   ;;  %v2790_v44 = vld [vmem:[%s3272_s4 + $0x6e0] ss:$16 sps:$4 sm:$0xff]  }
  0x78   : > { %v2795_v45 = vld [vmem:[%s3272_s4 + $0x504] ss:$16 sps:$4 sm:$0xff]   ;;  %v2793_v47 = vld [vmem:[%s3272_s4 + $0x500] ss:$16 sps:$4 sm:$0xff]  }
  0x79   : > { %1841 = vmatpush1.bf16.msra.mxu0 %v2725_v55  ;;  %v2798_v46 = vld [vmem:[%s3272_s4 + $0x704] ss:$16 sps:$4 sm:$0xff]   ;;  %v2796_v48 = vld [vmem:[%s3272_s4 + $0x700] ss:$16 sps:$4 sm:$0xff]  }
  0x7a   : > { %1882 = vmatpush1.bf16.msra.mxu1 %v2726_v56  ;;  %1842 = vmatprep.subr.bf16.mxu0 %v2727_v57  ;;  %v2801_v49 = vld [vmem:[%s3272_s4 + $0x524] ss:$16 sps:$4 sm:$0xff]   ;;  %v2799_v52 = vld [vmem:[%s3272_s4 + $0x520] ss:$16 sps:$4 sm:$0xff]  }
  0x7b   : > { %1883 = vmatprep.subr.bf16.mxu1 %v2729_v58  ;;  %v2804_v51 = vld [vmem:[%s3272_s4 + $0x724] ss:$16 sps:$4 sm:$0xff]   ;;  %v2802_v54 = vld [vmem:[%s3272_s4 + $0x720] ss:$16 sps:$4 sm:$0xff]  }
  0x7c   : > { %v2807_v55 = vld [vmem:[%s3272_s4 + $0x544] ss:$16 sps:$4 sm:$0xff]   ;;  %v2805_v57 = vld [vmem:[%s3272_s4 + $0x540] ss:$16 sps:$4 sm:$0xff]  }
  0x7d   : > { %1843 = vmatpush1.bf16.msra.mxu0 %v2731_v59  ;;  %v2810_v56 = vld [vmem:[%s3272_s4 + $0x744] ss:$16 sps:$4 sm:$0xff]   ;;  %v2808_v58 = vld [vmem:[%s3272_s4 + $0x740] ss:$16 sps:$4 sm:$0xff]  }
  0x7e   : > { %1884 = vmatpush1.bf16.msra.mxu1 %v2732_v60  ;;  %1844 = vmatprep.subr.bf16.mxu0 %v2733_v61  ;;  %v2813_v59 = vld [vmem:[%s3272_s4 + $0x564] ss:$16 sps:$4 sm:$0xff]   ;;  %v2811_v61 = vld [vmem:[%s3272_s4 + $0x560] ss:$16 sps:$4 sm:$0xff]  }
  0x7f   : > { %1885 = vmatprep.subr.bf16.mxu1 %v2735_v62  ;;  %v2816_v60 = vld [vmem:[%s3272_s4 + $0x764] ss:$16 sps:$4 sm:$0xff]   ;;  %v2814_v62 = vld [vmem:[%s3272_s4 + $0x760] ss:$16 sps:$4 sm:$0xff]  }
  0x80   : > { %v2823_v5 = vld [vmem:[%s3272_s4 + $0x5a0] ss:$16 sps:$4 sm:$0xff]  }
  0x81   : > { %1845 = vmatpush1.bf16.msra.mxu0 %v2737_v63  ;;  %v2819_v63 = vld [vmem:[%s3272_s4 + $0x584] ss:$16 sps:$4 sm:$0xff]   ;;  %v2826_v6 = vld [vmem:[%s3272_s4 + $0x7a0] ss:$16 sps:$4 sm:$0xff]  }
  0x82   : > { %1886 = vmatpush1.bf16.msra.mxu1 %v2738_v0  ;;  %1846 = vmatprep.subr.bf16.mxu0 %v2739_v1  ;;  %v2822_v0 = vld [vmem:[%s3272_s4 + $0x784] ss:$16 sps:$4 sm:$0xff]   ;;  %v2817_v1 = vld [vmem:[%s3272_s4 + $0x580] ss:$16 sps:$4 sm:$0xff]  }
  0x83   : > { %1887 = vmatprep.subr.bf16.mxu1 %v2741_v2  ;;  %v2820_v2 = vld [vmem:[%s3272_s4 + $0x780] ss:$16 sps:$4 sm:$0xff]  }
  0x85   : > { %1847 = vmatpush1.bf16.msra.mxu0 %v2743_v3  ;;  %v2825_v3 = vld [vmem:[%s3272_s4 + $0x5a4] ss:$16 sps:$4 sm:$0xff]  }
  0x86   : > { %1888 = vmatpush1.bf16.msra.mxu1 %v2744_v4  ;;  %1898 = vmatprep.subr.bf16.mxu0 %v2747_v7  ;;  %v2828_v4 = vld [vmem:[%s3272_s4 + $0x7a4] ss:$16 sps:$4 sm:$0xff]  }
  0x87   : > { %1939 = vmatprep.subr.bf16.mxu1 %v2750_v8  ;;  %v2831_v7 = vld [vmem:[%s3272_s4 + $0x5c4] ss:$16 sps:$4 sm:$0xff]  }
  0x88   : > { %1849 = vmatmul.mubr.bf16.vlgmr.msra.gmra.mrb[0].mxu0 %v3374_v9  ;;  %v2834_v8 = vld [vmem:[%s3272_s4 + $0x7c4] ss:$16 sps:$4 sm:$0xff]  }
  0x89   : > { %1890 = vmatmul.mubr.bf16.vlgmr.msra.gmra.mrb[0].mxu1 %v3376_v10  ;;  %1899 = vmatpush1.bf16.msra.mxu0 %v2745_v11  ;;  %v2829_v11 = vld [vmem:[%s3272_s4 + $0x5c0] ss:$16 sps:$4 sm:$0xff]  }
  0x8a   : > { %1940 = vmatpush1.bf16.msra.mxu1 %v2748_v12  ;;  %1900 = vmatprep.subr.bf16.mxu0 %v2753_v13  ;;  %v2832_v12 = vld [vmem:[%s3272_s4 + $0x7c0] ss:$16 sps:$4 sm:$0xff]   ;;  %v2837_v13 = vld [vmem:[%s3272_s4 + $0x5e4] ss:$16 sps:$4 sm:$0xff]  }
  0x8b   : > { %1941 = vmatprep.subr.bf16.mxu1 %v2756_v14  ;;  %1930 = vmatprep.mubr.bf16.mxu0 %v3407_v38  ;;  %v2840_v14 = vld [vmem:[%s3272_s4 + $0x7e4] ss:$16 sps:$4 sm:$0xff]  }
  0x8c   : > { %1971 = vmatprep.mubr.bf16.mxu1 %v3411_v41 }
  0x8d   : > { %1901 = vmatpush1.bf16.msra.mxu0 %v2751_v15  ;;  %v2835_v15 = vld [vmem:[%s3272_s4 + $0x5e0] ss:$16 sps:$4 sm:$0xff]  }
  0x8e   : > { %1942 = vmatpush1.bf16.msra.mxu1 %v2754_v16  ;;  %1902 = vmatprep.subr.bf16.mxu0 %v2759_v17  ;;  %v2838_v16 = vld [vmem:[%s3272_s4 + $0x7e0] ss:$16 sps:$4 sm:$0xff]  }
  0x8f   : > { %1943 = vmatprep.subr.bf16.mxu1 %v2762_v18  ;;  %v268_v17 = vld [vmem:[%s3285_s29 + $0x20] sm:$0xff]  ;;  %v270_v18 = vld [vmem:[%s3285_s29 + $0x30] sm:$0xff] }
  0x91   : > { %1903 = vmatpush1.bf16.msra.mxu0 %v2757_v19  ;;  %v2843_v19 = vld [vmem:[%s3272_s4 + $0xc] ss:$16 sps:$4 sm:$0xff]  }
  0x92   : > { %1944 = vmatpush1.bf16.msra.mxu1 %v2760_v20  ;;  %1904 = vmatprep.subr.bf16.mxu0 %v2765_v21  ;;  %v2846_v20 = vld [vmem:[%s3272_s4 + $0x20c] ss:$16 sps:$4 sm:$0xff]   ;;  %v3454_v21 = vpack.c.bf16 %v268_v17, %v268_v17 }
  0x93   : > { %1945 = vmatprep.subr.bf16.mxu1 %v2768_v22  ;;  %v3456_v22 = vpack.c.bf16 %v270_v18, %v270_v18  ;;  %v2927_v17 = vld [vmem:[%s3272_s4 + $0x1cc] ss:$16 sps:$4 sm:$0xff]  }
  0x94   : > { %v2930_v18 = vld [vmem:[%s3272_s4 + $0x3cc] ss:$16 sps:$4 sm:$0xff]  }
  0x95   : > { %1905 = vmatpush1.bf16.msra.mxu0 %v2763_v23  ;;  %v2841_v23 = vld [vmem:[%s3272_s4 + $0x8] ss:$16 sps:$4 sm:$0xff]  }
  0x96   : > { %1946 = vmatpush1.bf16.msra.mxu1 %v2766_v24  ;;  %1906 = vmatprep.subr.bf16.mxu0 %v2771_v25  ;;  %v2844_v24 = vld [vmem:[%s3272_s4 + $0x208] ss:$16 sps:$4 sm:$0xff]   ;;  %v2849_v25 = vld [vmem:[%s3272_s4 + $0x2c] ss:$16 sps:$4 sm:$0xff]  }
  0x97   : > { %1947 = vmatprep.subr.bf16.mxu1 %v2774_v26  ;;  %v2852_v26 = vld [vmem:[%s3272_s4 + $0x22c] ss:$16 sps:$4 sm:$0xff]  }
  0x99   : > { %1907 = vmatpush1.bf16.msra.mxu0 %v2769_v27  ;;  %v2847_v27 = vld [vmem:[%s3272_s4 + $0x28] ss:$16 sps:$4 sm:$0xff]  }
  0x9a   : > { %1948 = vmatpush1.bf16.msra.mxu1 %v2772_v28  ;;  %1908 = vmatprep.subr.bf16.mxu0 %v2777_v29  ;;  %v2850_v28 = vld [vmem:[%s3272_s4 + $0x228] ss:$16 sps:$4 sm:$0xff]   ;;  %v2855_v29 = vld [vmem:[%s3272_s4 + $0x4c] ss:$16 sps:$4 sm:$0xff]  }
  0x9b   : > { %1949 = vmatprep.subr.bf16.mxu1 %v2780_v30  ;;  %v2858_v30 = vld [vmem:[%s3272_s4 + $0x24c] ss:$16 sps:$4 sm:$0xff]  }
  0x9d   : > { %1909 = vmatpush1.bf16.msra.mxu0 %v2775_v31  ;;  %v2853_v31 = vld [vmem:[%s3272_s4 + $0x48] ss:$16 sps:$4 sm:$0xff]  }
  0x9e   : > { %1950 = vmatpush1.bf16.msra.mxu1 %v2778_v32  ;;  %1910 = vmatprep.subr.bf16.mxu0 %v2783_v33  ;;  %v2856_v32 = vld [vmem:[%s3272_s4 + $0x248] ss:$16 sps:$4 sm:$0xff]   ;;  %v2861_v33 = vld [vmem:[%s3272_s4 + $0x6c] ss:$16 sps:$4 sm:$0xff]  }
  0x9f   : > { %1951 = vmatprep.subr.bf16.mxu1 %v2786_v34  ;;  %v2864_v34 = vld [vmem:[%s3272_s4 + $0x26c] ss:$16 sps:$4 sm:$0xff]  }
  0xa1   : > { %1911 = vmatpush1.bf16.msra.mxu0 %v2781_v36  ;;  %v2862_v36 = vld [vmem:[%s3272_s4 + $0x268] ss:$16 sps:$4 sm:$0xff]  }
  0xa2   : > { %1952 = vmatpush1.bf16.msra.mxu1 %v2784_v37  ;;  %1912 = vmatprep.subr.bf16.mxu0 %v2789_v40  ;;  %v2865_v37 = vld [vmem:[%s3272_s4 + $0x88] ss:$16 sps:$4 sm:$0xff]   ;;  %v2873_v40 = vld [vmem:[%s3272_s4 + $0xac] ss:$16 sps:$4 sm:$0xff]  }
  0xa3   : > { %1953 = vmatprep.subr.bf16.mxu1 %v2792_v42  ;;  %v2876_v42 = vld [vmem:[%s3272_s4 + $0x2ac] ss:$16 sps:$4 sm:$0xff]  }
  0xa5   : > { %1913 = vmatpush1.bf16.msra.mxu0 %v2787_v43  ;;  %v2871_v43 = vld [vmem:[%s3272_s4 + $0xa8] ss:$16 sps:$4 sm:$0xff]  }
  0xa6   : > { %1954 = vmatpush1.bf16.msra.mxu1 %v2790_v44  ;;  %1914 = vmatprep.subr.bf16.mxu0 %v2795_v45  ;;  %v2874_v44 = vld [vmem:[%s3272_s4 + $0x2a8] ss:$16 sps:$4 sm:$0xff]   ;;  %v2879_v45 = vld [vmem:[%s3272_s4 + $0xcc] ss:$16 sps:$4 sm:$0xff]  }
  0xa7   : > { %1955 = vmatprep.subr.bf16.mxu1 %v2798_v46  ;;  %v2882_v46 = vld [vmem:[%s3272_s4 + $0x2cc] ss:$16 sps:$4 sm:$0xff]  }
  0xa9   : > { %1915 = vmatpush1.bf16.msra.mxu0 %v2793_v47  ;;  %v2877_v47 = vld [vmem:[%s3272_s4 + $0xc8] ss:$16 sps:$4 sm:$0xff]  }
  0xaa   : > { %1956 = vmatpush1.bf16.msra.mxu1 %v2796_v48  ;;  %1916 = vmatprep.subr.bf16.mxu0 %v2801_v49  ;;  %v2880_v48 = vld [vmem:[%s3272_s4 + $0x2c8] ss:$16 sps:$4 sm:$0xff]   ;;  %v2885_v49 = vld [vmem:[%s3272_s4 + $0xec] ss:$16 sps:$4 sm:$0xff]  }
  0xab   : > { %1957 = vmatprep.subr.bf16.mxu1 %v2804_v51  ;;  %v2888_v51 = vld [vmem:[%s3272_s4 + $0x2ec] ss:$16 sps:$4 sm:$0xff]  }
  0xad   : > { %1917 = vmatpush1.bf16.msra.mxu0 %v2799_v52  ;;  %v2883_v52 = vld [vmem:[%s3272_s4 + $0xe8] ss:$16 sps:$4 sm:$0xff]  }
  0xae   : > { %1958 = vmatpush1.bf16.msra.mxu1 %v2802_v54  ;;  %1918 = vmatprep.subr.bf16.mxu0 %v2807_v55  ;;  %v2886_v54 = vld [vmem:[%s3272_s4 + $0x2e8] ss:$16 sps:$4 sm:$0xff]   ;;  %v2891_v55 = vld [vmem:[%s3272_s4 + $0x10c] ss:$16 sps:$4 sm:$0xff]  }
  0xaf   : > { %1959 = vmatprep.subr.bf16.mxu1 %v2810_v56  ;;  %v2894_v56 = vld [vmem:[%s3272_s4 + $0x30c] ss:$16 sps:$4 sm:$0xff]  }
  0xb1   : > { %1919 = vmatpush1.bf16.msra.mxu0 %v2805_v57  ;;  %v2889_v57 = vld [vmem:[%s3272_s4 + $0x108] ss:$16 sps:$4 sm:$0xff]  }
  0xb2   : > { %1960 = vmatpush1.bf16.msra.mxu1 %v2808_v58  ;;  %1920 = vmatprep.subr.bf16.mxu0 %v2813_v59  ;;  %v2892_v58 = vld [vmem:[%s3272_s4 + $0x308] ss:$16 sps:$4 sm:$0xff]   ;;  %v2897_v59 = vld [vmem:[%s3272_s4 + $0x12c] ss:$16 sps:$4 sm:$0xff]  }
  0xb3   : > { %1961 = vmatprep.subr.bf16.mxu1 %v2816_v60  ;;  %v2900_v60 = vld [vmem:[%s3272_s4 + $0x32c] ss:$16 sps:$4 sm:$0xff]  }
  0xb5   : > { %1921 = vmatpush1.bf16.msra.mxu0 %v2811_v61  ;;  %v2895_v61 = vld [vmem:[%s3272_s4 + $0x128] ss:$16 sps:$4 sm:$0xff]  }
  0xb6   : > { %1962 = vmatpush1.bf16.msra.mxu1 %v2814_v62  ;;  %1922 = vmatprep.subr.bf16.mxu0 %v2819_v63  ;;  %v2898_v62 = vld [vmem:[%s3272_s4 + $0x328] ss:$16 sps:$4 sm:$0xff]   ;;  %v2903_v63 = vld [vmem:[%s3272_s4 + $0x14c] ss:$16 sps:$4 sm:$0xff]  }
  0xb7   : > { %1963 = vmatprep.subr.bf16.mxu1 %v2822_v0  ;;  %v2906_v0 = vld [vmem:[%s3272_s4 + $0x34c] ss:$16 sps:$4 sm:$0xff]  }
  0xb9   : > { %1923 = vmatpush1.bf16.msra.mxu0 %v2817_v1  ;;  %v2901_v1 = vld [vmem:[%s3272_s4 + $0x148] ss:$16 sps:$4 sm:$0xff]  }
  0xba   : > { %1964 = vmatpush1.bf16.msra.mxu1 %v2820_v2  ;;  %1924 = vmatprep.subr.bf16.mxu0 %v2825_v3  ;;  %v2904_v2 = vld [vmem:[%s3272_s4 + $0x348] ss:$16 sps:$4 sm:$0xff]   ;;  %v2909_v3 = vld [vmem:[%s3272_s4 + $0x16c] ss:$16 sps:$4 sm:$0xff]  }
  0xbb   : > { %1965 = vmatprep.subr.bf16.mxu1 %v2828_v4  ;;  %v2912_v4 = vld [vmem:[%s3272_s4 + $0x36c] ss:$16 sps:$4 sm:$0xff]  }
  0xbd   : > { %1925 = vmatpush1.bf16.msra.mxu0 %v2823_v5  ;;  %v2907_v5 = vld [vmem:[%s3272_s4 + $0x168] ss:$16 sps:$4 sm:$0xff]  }
  0xbe   : > { %1966 = vmatpush1.bf16.msra.mxu1 %v2826_v6  ;;  %1926 = vmatprep.subr.bf16.mxu0 %v2831_v7  ;;  %v2910_v6 = vld [vmem:[%s3272_s4 + $0x368] ss:$16 sps:$4 sm:$0xff]   ;;  %v2915_v7 = vld [vmem:[%s3272_s4 + $0x18c] ss:$16 sps:$4 sm:$0xff]  }
  0xbf   : > { %1967 = vmatprep.subr.bf16.mxu1 %v2834_v8  ;;  %v2918_v8 = vld [vmem:[%s3272_s4 + $0x38c] ss:$16 sps:$4 sm:$0xff]  }
  0xc1   : > { %1927 = vmatpush1.bf16.msra.mxu0 %v2829_v11  ;;  %v2913_v11 = vld [vmem:[%s3272_s4 + $0x188] ss:$16 sps:$4 sm:$0xff]  }
  0xc2   : > { %1968 = vmatpush1.bf16.msra.mxu1 %v2832_v12  ;;  %1928 = vmatprep.subr.bf16.mxu0 %v2837_v13  ;;  %v2916_v12 = vld [vmem:[%s3272_s4 + $0x388] ss:$16 sps:$4 sm:$0xff]   ;;  %v2921_v13 = vld [vmem:[%s3272_s4 + $0x1ac] ss:$16 sps:$4 sm:$0xff]  }
  0xc3   : > { %1969 = vmatprep.subr.bf16.mxu1 %v2840_v14  ;;  %v2924_v14 = vld [vmem:[%s3272_s4 + $0x3ac] ss:$16 sps:$4 sm:$0xff]  }
  0xc5   : > { %1929 = vmatpush1.bf16.msra.mxu0 %v2835_v15  ;;  %v2919_v15 = vld [vmem:[%s3272_s4 + $0x1a8] ss:$16 sps:$4 sm:$0xff]  }
  0xc6   : > { %1970 = vmatpush1.bf16.msra.mxu1 %v2838_v16  ;;  %1980 = vmatprep.subr.bf16.mxu0 %v2843_v19  ;;  %v2922_v16 = vld [vmem:[%s3272_s4 + $0x3a8] ss:$16 sps:$4 sm:$0xff]  }
  0xc7   : > { %2021 = vmatprep.subr.bf16.mxu1 %v2846_v20  ;;  %v2925_v19 = vld [vmem:[%s3272_s4 + $0x1c8] ss:$16 sps:$4 sm:$0xff]  }
  0xc8   : > { %1931 = vmatmul.mubr.bf16.vlgmr.msra.gmra.mrb[4].mxu0 %v3454_v21  ;;  %v2928_v20 = vld [vmem:[%s3272_s4 + $0x3c8] ss:$16 sps:$4 sm:$0xff]  }
  0xc9   : > { %1972 = vmatmul.mubr.bf16.vlgmr.msra.gmra.mrb[4].mxu1 %v3456_v22  ;;  %1981 = vmatpush1.bf16.msra.mxu0 %v2841_v23  ;;  %v2933_v23 = vld [vmem:[%s3272_s4 + $0x1ec] ss:$16 sps:$4 sm:$0xff]  }
  0xca   : > { %2022 = vmatpush1.bf16.msra.mxu1 %v2844_v24  ;;  %1982 = vmatprep.subr.bf16.mxu0 %v2849_v25  ;;  %v2936_v24 = vld [vmem:[%s3272_s4 + $0x3ec] ss:$16 sps:$4 sm:$0xff]   ;;  %v2931_v25 = vld [vmem:[%s3272_s4 + $0x1e8] ss:$16 sps:$4 sm:$0xff]  }
  0xcb   : > { %2023 = vmatprep.subr.bf16.mxu1 %v2852_v26  ;;  %2012 = vmatprep.mubr.bf16.mxu0 %v3347_v50  ;;  %v2867_v50 = vld [vmem:[%s3272_s4 + $0x8c] ss:$16 sps:$4 sm:$0xff]   ;;  %v2934_v26 = vld [vmem:[%s3272_s4 + $0x3e8] ss:$16 sps:$4 sm:$0xff]  }
  0xcc   : > { %2053 = vmatprep.mubr.bf16.mxu1 %v3351_v53  ;;  %v2870_v53 = vld [vmem:[%s3272_s4 + $0x28c] ss:$16 sps:$4 sm:$0xff]  }
  0xcd   : > { %1983 = vmatpush1.bf16.msra.mxu0 %v2847_v27  ;;  %v2939_v27 = vld [vmem:[%s3272_s4 + $0x40c] ss:$16 sps:$4 sm:$0xff]  }
  0xce   : > { %2024 = vmatpush1.bf16.msra.mxu1 %v2850_v28  ;;  %1984 = vmatprep.subr.bf16.mxu0 %v2855_v29  ;;  %v2942_v28 = vld [vmem:[%s3272_s4 + $0x60c] ss:$16 sps:$4 sm:$0xff]   ;;  %v2937_v29 = vld [vmem:[%s3272_s4 + $0x408] ss:$16 sps:$4 sm:$0xff]  }
  0xcf   : > { %2025 = vmatprep.subr.bf16.mxu1 %v2858_v30  ;;  %v2940_v30 = vld [vmem:[%s3272_s4 + $0x608] ss:$16 sps:$4 sm:$0xff]  }
  0xd1   : > { %1985 = vmatpush1.bf16.msra.mxu0 %v2853_v31  ;;  %v2945_v31 = vld [vmem:[%s3272_s4 + $0x42c] ss:$16 sps:$4 sm:$0xff]  }
  0xd2   : > { %2026 = vmatpush1.bf16.msra.mxu1 %v2856_v32  ;;  %1986 = vmatprep.subr.bf16.mxu0 %v2861_v33  ;;  %v2948_v32 = vld [vmem:[%s3272_s4 + $0x62c] ss:$16 sps:$4 sm:$0xff]   ;;  %v2943_v33 = vld [vmem:[%s3272_s4 + $0x428] ss:$16 sps:$4 sm:$0xff]  }
  0xd3   : > { %2027 = vmatprep.subr.bf16.mxu1 %v2864_v34  ;;  %v2946_v34 = vld [vmem:[%s3272_s4 + $0x628] ss:$16 sps:$4 sm:$0xff]  }
  0xd5   : > { %1987 = vmatpush1.bf16.msra.mxu0 %v2859_v35  ;;  %v2951_v35 = vld [vmem:[%s3272_s4 + $0x44c] ss:$16 sps:$4 sm:$0xff]  }
  0xd6   : > { %2028 = vmatpush1.bf16.msra.mxu1 %v2862_v36  ;;  %1988 = vmatprep.subr.bf16.mxu0 %v2867_v50  ;;  %v2954_v36 = vld [vmem:[%s3272_s4 + $0x64c] ss:$16 sps:$4 sm:$0xff]  }
  0xd7   : > { %2029 = vmatprep.subr.bf16.mxu1 %v2870_v53  ;;  %v2957_v50 = vld [vmem:[%s3272_s4 + $0x46c] ss:$16 sps:$4 sm:$0xff]  }
  0xd8   : > { %v2960_v53 = vld [vmem:[%s3272_s4 + $0x66c] ss:$16 sps:$4 sm:$0xff]  }
  0xd9   : > { %1989 = vmatpush1.bf16.msra.mxu0 %v2865_v37  ;;  %v2955_v37 = vld [vmem:[%s3272_s4 + $0x468] ss:$16 sps:$4 sm:$0xff]  }
  0xda   : > { %2030 = vmatpush1.bf16.msra.mxu1 %v2868_v39  ;;  %1990 = vmatprep.subr.bf16.mxu0 %v2873_v40  ;;  %v2966_v39 = vld [vmem:[%s3272_s4 + $0x68c] ss:$16 sps:$4 sm:$0xff]   ;;  %v2961_v40 = vld [vmem:[%s3272_s4 + $0x488] ss:$16 sps:$4 sm:$0xff]  }
  0xdb   : > { %2031 = vmatprep.subr.bf16.mxu1 %v2876_v42  ;;  %v2964_v42 = vld [vmem:[%s3272_s4 + $0x688] ss:$16 sps:$4 sm:$0xff]  }
  0xdd   : > { %1991 = vmatpush1.bf16.msra.mxu0 %v2871_v43  ;;  %v2969_v43 = vld [vmem:[%s3272_s4 + $0x4ac] ss:$16 sps:$4 sm:$0xff]  }
  0xde   : > { %2032 = vmatpush1.bf16.msra.mxu1 %v2874_v44  ;;  %1992 = vmatprep.subr.bf16.mxu0 %v2879_v45  ;;  %v2972_v44 = vld [vmem:[%s3272_s4 + $0x6ac] ss:$16 sps:$4 sm:$0xff]   ;;  %v2967_v45 = vld [vmem:[%s3272_s4 + $0x4a8] ss:$16 sps:$4 sm:$0xff]  }
  0xdf   : > { %2033 = vmatprep.subr.bf16.mxu1 %v2882_v46  ;;  %v2970_v46 = vld [vmem:[%s3272_s4 + $0x6a8] ss:$16 sps:$4 sm:$0xff]  }
  0xe1   : > { %1993 = vmatpush1.bf16.msra.mxu0 %v2877_v47  ;;  %v2975_v47 = vld [vmem:[%s3272_s4 + $0x4cc] ss:$16 sps:$4 sm:$0xff]  }
  0xe2   : > { %2034 = vmatpush1.bf16.msra.mxu1 %v2880_v48  ;;  %1994 = vmatprep.subr.bf16.mxu0 %v2885_v49  ;;  %v2978_v48 = vld [vmem:[%s3272_s4 + $0x6cc] ss:$16 sps:$4 sm:$0xff]   ;;  %v2973_v49 = vld [vmem:[%s3272_s4 + $0x4c8] ss:$16 sps:$4 sm:$0xff]  }
  0xe3   : > { %2035 = vmatprep.subr.bf16.mxu1 %v2888_v51  ;;  %v2976_v51 = vld [vmem:[%s3272_s4 + $0x6c8] ss:$16 sps:$4 sm:$0xff]  }
  0xe5   : > { %1995 = vmatpush1.bf16.msra.mxu0 %v2883_v52  ;;  %v2981_v52 = vld [vmem:[%s3272_s4 + $0x4ec] ss:$16 sps:$4 sm:$0xff]  }
  0xe6   : > { %2036 = vmatpush1.bf16.msra.mxu1 %v2886_v54  ;;  %1996 = vmatprep.subr.bf16.mxu0 %v2891_v55  ;;  %v2984_v54 = vld [vmem:[%s3272_s4 + $0x6ec] ss:$16 sps:$4 sm:$0xff]   ;;  %v2979_v55 = vld [vmem:[%s3272_s4 + $0x4e8] ss:$16 sps:$4 sm:$0xff]  }
  0xe7   : > { %2037 = vmatprep.subr.bf16.mxu1 %v2894_v56  ;;  %v2982_v56 = vld [vmem:[%s3272_s4 + $0x6e8] ss:$16 sps:$4 sm:$0xff]  }
  0xe9   : > { %1997 = vmatpush1.bf16.msra.mxu0 %v2889_v57  ;;  %v2987_v57 = vld [vmem:[%s3272_s4 + $0x50c] ss:$16 sps:$4 sm:$0xff]  }
  0xea   : > { %2038 = vmatpush1.bf16.msra.mxu1 %v2892_v58  ;;  %1998 = vmatprep.subr.bf16.mxu0 %v2897_v59  ;;  %v2990_v58 = vld [vmem:[%s3272_s4 + $0x70c] ss:$16 sps:$4 sm:$0xff]   ;;  %v2985_v59 = vld [vmem:[%s3272_s4 + $0x508] ss:$16 sps:$4 sm:$0xff]  }
  0xeb   : > { %2039 = vmatprep.subr.bf16.mxu1 %v2900_v60  ;;  %v2988_v60 = vld [vmem:[%s3272_s4 + $0x708] ss:$16 sps:$4 sm:$0xff]  }
  0xed   : > { %1999 = vmatpush1.bf16.msra.mxu0 %v2895_v61  ;;  %v2993_v61 = vld [vmem:[%s3272_s4 + $0x52c] ss:$16 sps:$4 sm:$0xff]  }
  0xee   : > { %2040 = vmatpush1.bf16.msra.mxu1 %v2898_v62  ;;  %2000 = vmatprep.subr.bf16.mxu0 %v2903_v63  ;;  %v2996_v62 = vld [vmem:[%s3272_s4 + $0x72c] ss:$16 sps:$4 sm:$0xff]   ;;  %v2991_v63 = vld [vmem:[%s3272_s4 + $0x528] ss:$16 sps:$4 sm:$0xff]  }
  0xef   : > { %2041 = vmatprep.subr.bf16.mxu1 %v2906_v0  ;;  %v2994_v0 = vld [vmem:[%s3272_s4 + $0x728] ss:$16 sps:$4 sm:$0xff]  }
  0xf1   : > { %2001 = vmatpush1.bf16.msra.mxu0 %v2901_v1  ;;  %v2999_v1 = vld [vmem:[%s3272_s4 + $0x54c] ss:$16 sps:$4 sm:$0xff]  }
  0xf2   : > { %2042 = vmatpush1.bf16.msra.mxu1 %v2904_v2  ;;  %2002 = vmatprep.subr.bf16.mxu0 %v2909_v3  ;;  %v3002_v2 = vld [vmem:[%s3272_s4 + $0x74c] ss:$16 sps:$4 sm:$0xff]   ;;  %v2997_v3 = vld [vmem:[%s3272_s4 + $0x548] ss:$16 sps:$4 sm:$0xff]  }
  0xf3   : > { %2043 = vmatprep.subr.bf16.mxu1 %v2912_v4  ;;  %v3000_v4 = vld [vmem:[%s3272_s4 + $0x748] ss:$16 sps:$4 sm:$0xff]  }
  0xf5   : > { %2003 = vmatpush1.bf16.msra.mxu0 %v2907_v5  ;;  %v3005_v5 = vld [vmem:[%s3272_s4 + $0x56c] ss:$16 sps:$4 sm:$0xff]  }
  0xf6   : > { %2044 = vmatpush1.bf16.msra.mxu1 %v2910_v6  ;;  %2004 = vmatprep.subr.bf16.mxu0 %v2915_v7  ;;  %v3008_v6 = vld [vmem:[%s3272_s4 + $0x76c] ss:$16 sps:$4 sm:$0xff]   ;;  %v3003_v7 = vld [vmem:[%s3272_s4 + $0x568] ss:$16 sps:$4 sm:$0xff]  }
  0xf7   : > { %2045 = vmatprep.subr.bf16.mxu1 %v2918_v8  ;;  %v3006_v8 = vld [vmem:[%s3272_s4 + $0x768] ss:$16 sps:$4 sm:$0xff]  }
  0xf9   : > { %2005 = vmatpush1.bf16.msra.mxu0 %v2913_v11  ;;  %v3011_v11 = vld [vmem:[%s3272_s4 + $0x58c] ss:$16 sps:$4 sm:$0xff]  }
  0xfa   : > { %2046 = vmatpush1.bf16.msra.mxu1 %v2916_v12  ;;  %2006 = vmatprep.subr.bf16.mxu0 %v2921_v13  ;;  %v3014_v12 = vld [vmem:[%s3272_s4 + $0x78c] ss:$16 sps:$4 sm:$0xff]   ;;  %v3009_v13 = vld [vmem:[%s3272_s4 + $0x588] ss:$16 sps:$4 sm:$0xff]  }
  0xfb   : > { %2047 = vmatprep.subr.bf16.mxu1 %v2924_v14  ;;  %v3012_v14 = vld [vmem:[%s3272_s4 + $0x788] ss:$16 sps:$4 sm:$0xff]  }
  0xfd   : > { %2007 = vmatpush1.bf16.msra.mxu0 %v2919_v15  ;;  %v3017_v15 = vld [vmem:[%s3272_s4 + $0x5ac] ss:$16 sps:$4 sm:$0xff]  }
  0xfe   : > { %2048 = vmatpush1.bf16.msra.mxu1 %v2922_v16  ;;  %2008 = vmatprep.subr.bf16.mxu0 %v2927_v17  ;;  %v3020_v16 = vld [vmem:[%s3272_s4 + $0x7ac] ss:$16 sps:$4 sm:$0xff]   ;;  %v3015_v17 = vld [vmem:[%s3272_s4 + $0x5a8] ss:$16 sps:$4 sm:$0xff]  }
  0xff   : > { %2049 = vmatprep.subr.bf16.mxu1 %v2930_v18  ;;  %v3018_v18 = vld [vmem:[%s3272_s4 + $0x7a8] ss:$16 sps:$4 sm:$0xff]  }
 0x101   : > { %2009 = vmatpush1.bf16.msra.mxu0 %v2925_v19  ;;  %v3023_v19 = vld [vmem:[%s3272_s4 + $0x5cc] ss:$16 sps:$4 sm:$0xff]  }
 0x102   : > { %2050 = vmatpush1.bf16.msra.mxu1 %v2928_v20  ;;  %2010 = vmatprep.subr.bf16.mxu0 %v2933_v23  ;;  %v3026_v20 = vld [vmem:[%s3272_s4 + $0x7cc] ss:$16 sps:$4 sm:$0xff]   ;;  %v3021_v23 = vld [vmem:[%s3272_s4 + $0x5c8] ss:$16 sps:$4 sm:$0xff]  }
 0x103   : > { %2051 = vmatprep.subr.bf16.mxu1 %v2936_v24  ;;  %v3024_v24 = vld [vmem:[%s3272_s4 + $0x7c8] ss:$16 sps:$4 sm:$0xff]  }
 0x105   : > { %2011 = vmatpush1.bf16.msra.mxu0 %v2931_v25  ;;  %v3029_v25 = vld [vmem:[%s3272_s4 + $0x5ec] ss:$16 sps:$4 sm:$0xff]  }
 0x106   : > { %2052 = vmatpush1.bf16.msra.mxu1 %v2934_v26  ;;  %2062 = vmatprep.subr.bf16.mxu0 %v2939_v27  ;;  %v3032_v26 = vld [vmem:[%s3272_s4 + $0x7ec] ss:$16 sps:$4 sm:$0xff]   ;;  %v3027_v27 = vld [vmem:[%s3272_s4 + $0x5e8] ss:$16 sps:$4 sm:$0xff]  }
 0x107   : > { %2103 = vmatprep.subr.bf16.mxu1 %v2942_v28  ;;  %v3030_v28 = vld [vmem:[%s3272_s4 + $0x7e8] ss:$16 sps:$4 sm:$0xff]  }
 0x108   : > { %2013 = vmatmul.mubr.bf16.vlgmr.msra.gmra.mrb[8].mxu0 %v3374_v9  ;;  %v2949_v9 = vld [vmem:[%s3272_s4 + $0x448] ss:$16 sps:$4 sm:$0xff]  }
 0x109   : > { %2054 = vmatmul.mubr.bf16.vlgmr.msra.gmra.mrb[8].mxu1 %v3376_v10  ;;  %2063 = vmatpush1.bf16.msra.mxu0 %v2937_v29  ;;  %v2952_v10 = vld [vmem:[%s3272_s4 + $0x648] ss:$16 sps:$4 sm:$0xff]  }
 0x10a   : > { %2104 = vmatpush1.bf16.msra.mxu1 %v2940_v30  ;;  %2064 = vmatprep.subr.bf16.mxu0 %v2945_v31 }
 0x10b   : > { %2105 = vmatprep.subr.bf16.mxu1 %v2948_v32  ;;  %2094 = vmatprep.mubr.bf16.mxu0 %v3407_v38  ;;  %v2958_v38 = vld [vmem:[%s3272_s4 + $0x668] ss:$16 sps:$4 sm:$0xff]  }
 0x10c   : > { %2135 = vmatprep.mubr.bf16.mxu1 %v3411_v41  ;;  %v2963_v41 = vld [vmem:[%s3272_s4 + $0x48c] ss:$16 sps:$4 sm:$0xff]  }
 0x10d   : > { %2065 = vmatpush1.bf16.msra.mxu0 %v2943_v33 }
 0x10e   : > { %2106 = vmatpush1.bf16.msra.mxu1 %v2946_v34  ;;  %2066 = vmatprep.subr.bf16.mxu0 %v2951_v35 }
 0x10f   : > { %2107 = vmatprep.subr.bf16.mxu1 %v2954_v36 }
 0x111   : > { %2067 = vmatpush1.bf16.msra.mxu0 %v2949_v9 }
 0x112   : > { %2108 = vmatpush1.bf16.msra.mxu1 %v2952_v10  ;;  %2068 = vmatprep.subr.bf16.mxu0 %v2957_v50 }
 0x113   : > { %2109 = vmatprep.subr.bf16.mxu1 %v2960_v53 }
 0x115   : > { %2069 = vmatpush1.bf16.msra.mxu0 %v2955_v37 }
 0x116   : > { %2110 = vmatpush1.bf16.msra.mxu1 %v2958_v38  ;;  %2070 = vmatprep.subr.bf16.mxu0 %v2963_v41 }
 0x117   : > { %2111 = vmatprep.subr.bf16.mxu1 %v2966_v39  ;;  %v260_v39 = vld [vmem:[#allocation2] sm:$0xff] }
 0x119   : > { %2071 = vmatpush1.bf16.msra.mxu0 %v2961_v40 }
 0x11a   : > { %2112 = vmatpush1.bf16.msra.mxu1 %v2964_v42  ;;  %2072 = vmatprep.subr.bf16.mxu0 %v2969_v43  ;;  %v261_v43 = vld [vmem:[#allocation2 + $0x8] sm:$0xff] }
 0x11b   : > { %2113 = vmatprep.subr.bf16.mxu1 %v2972_v44 }
 0x11d   : > { %2073 = vmatpush1.bf16.msra.mxu0 %v2967_v45 }
 0x11e   : > { %2114 = vmatpush1.bf16.msra.mxu1 %v2970_v46  ;;  %2074 = vmatprep.subr.bf16.mxu0 %v2975_v47 }
 0x11f   : > { %2115 = vmatprep.subr.bf16.mxu1 %v2978_v48 }
 0x121   : > { %2075 = vmatpush1.bf16.msra.mxu0 %v2973_v49 }
 0x122   : > { %2116 = vmatpush1.bf16.msra.mxu1 %v2976_v51  ;;  %2076 = vmatprep.subr.bf16.mxu0 %v2981_v52 }
 0x123   : > { %2117 = vmatprep.subr.bf16.mxu1 %v2984_v54 }
 0x125   : > { %2077 = vmatpush1.bf16.msra.mxu0 %v2979_v55 }
 0x126   : > { %2118 = vmatpush1.bf16.msra.mxu1 %v2982_v56  ;;  %2078 = vmatprep.subr.bf16.mxu0 %v2987_v57 }
 0x127   : > { %2119 = vmatprep.subr.bf16.mxu1 %v2990_v58 }
 0x129   : > { %2079 = vmatpush1.bf16.msra.mxu0 %v2985_v59 }
 0x12a   : > { %2120 = vmatpush1.bf16.msra.mxu1 %v2988_v60  ;;  %2080 = vmatprep.subr.bf16.mxu0 %v2993_v61 }
 0x12b   : > { %2121 = vmatprep.subr.bf16.mxu1 %v2996_v62 }
 0x12d   : > { %2081 = vmatpush1.bf16.msra.mxu0 %v2991_v63 }
 0x12e   : > { %2122 = vmatpush1.bf16.msra.mxu1 %v2994_v0  ;;  %2082 = vmatprep.subr.bf16.mxu0 %v2999_v1 }
 0x12f   : > { %2123 = vmatprep.subr.bf16.mxu1 %v3002_v2  ;;  %v262_v2 = vld [vmem:[#allocation2 + $0x10] sm:$0xff] }
 0x131   : > { %2083 = vmatpush1.bf16.msra.mxu0 %v2997_v3 }
 0x132   : > { %2124 = vmatpush1.bf16.msra.mxu1 %v3000_v4  ;;  %2084 = vmatprep.subr.bf16.mxu0 %v3005_v5 }
 0x133   : > { %2125 = vmatprep.subr.bf16.mxu1 %v3008_v6 }
 0x135   : > { %2085 = vmatpush1.bf16.msra.mxu0 %v3003_v7  ;;  %v263_v7 = vld [vmem:[#allocation2 + $0x18] sm:$0xff] }
 0x136   : > { %2126 = vmatpush1.bf16.msra.mxu1 %v3006_v8  ;;  %2086 = vmatprep.subr.bf16.mxu0 %v3011_v11 }
 0x137   : > { %2127 = vmatprep.subr.bf16.mxu1 %v3014_v12 }
 0x139   : > { %2087 = vmatpush1.bf16.msra.mxu0 %v3009_v13 }
 0x13a   : > { %2128 = vmatpush1.bf16.msra.mxu1 %v3012_v14  ;;  %2088 = vmatprep.subr.bf16.mxu0 %v3017_v15  ;;  %v2162_v15 = vlaneseq (!%p2570_p6) }
 0x13b   : > { %2129 = vmatprep.subr.bf16.mxu1 %v3020_v16 }
 0x13c   : > { %v2163_v16 = vshrl.u32 (!%p2570_p6), %v2162_v15, 7 }
 0x13d   : > { %2089 = vmatpush1.bf16.msra.mxu0 %v3015_v17  ;;  %v2160_v17 = vld [vmem:[%s244_s8] sm:$0xf] (!%p2570_p6) }
 0x13e   : > { %2130 = vmatpush1.bf16.msra.mxu1 %v3018_v18  ;;  %2090 = vmatprep.subr.bf16.mxu0 %v3023_v19  ;;  %v2164_v19 = vsub.s32 (!%p2570_p6), 0, %v2163_v16 }
 0x13f   : > { %2131 = vmatprep.subr.bf16.mxu1 %v3026_v20  ;;  %v2168_v20 = vsub.s32 (!%p2570_p6), 1, %v2163_v16 }
 0x141   : > { %2091 = vmatpush1.bf16.msra.mxu0 %v3021_v23  ;;  %v2172_v23 = vsub.s32 (!%p2570_p6), 2, %v2163_v16 }
 0x142   : > { %2132 = vmatpush1.bf16.msra.mxu1 %v3024_v24  ;;  %2092 = vmatprep.subr.bf16.mxu0 %v3029_v25  ;;  %v2176_v24 = vsub.s32 (!%p2570_p6), 3, %v2163_v16 }
 0x143   : > { %2133 = vmatprep.subr.bf16.mxu1 %v3032_v26 }
 0x145   : > { %2093 = vmatpush1.bf16.msra.mxu0 %v3027_v27 }
 0x146   : > { %2134 = vmatpush1.bf16.msra.mxu1 %v3030_v28  ;;  %v2165_v28 = vrot.slane (!%p2570_p6), %v2160_v17, %v2164_v19 }
 0x148   : > { %2095 = vmatmul.mubr.bf16.vlgmr.msra.gmra.mrb[12].mxu0 %v3454_v21 }
 0x149   : > { %2136 = vmatmul.mubr.bf16.vlgmr.msra.gmra.mrb[12].mxu1 %v3456_v22 }
 0x15b   : > { %v1850_v29 = vpop.f32.mrb[0].mxu0 }
 0x15c   : > { %v1891_v30 = vpop.f32.mrb[0].mxu1  ;;  %v1852_v32 = vpop.f32.mrb[1].mxu0 }
 0x15d   : > { %v1892_v31 = vadd.f32 %v1891_v30, %v1850_v29  ;;  %v1893_v33 = vpop.f32.mrb[1].mxu1  ;;  %v1854_v35 = vpop.f32.mrb[2].mxu0  ;;  %v2169_v29 = vrot.slane (!%p2570_p6), %v2160_v17, %v2168_v20  ;;  %v2173_v30 = vrot.slane (!%p2570_p6), %v2160_v17, %v2172_v23 }
 0x15e   : > { %v1894_v34 = vadd.f32 %v1893_v33, %v1852_v32  ;;  %v1895_v36 = vpop.f32.mrb[2].mxu1  ;;  %v1855_v9 = vpop.f32.mrb[3].mxu0 }
 0x15f   : > { %v1896_v10 = vpop.f32.mrb[3].mxu1 }
 0x19b   : > { %v1932_v50 = vpop.f32.mrb[4].mxu0 }
 0x19c   : > { %v1973_v53 = vpop.f32.mrb[4].mxu1  ;;  %v1933_v37 = vadd.f32 %v1932_v50, %v1892_v31  ;;  %v1934_v38 = vpop.f32.mrb[5].mxu0  ;;  %v2177_v31 = vrot.slane (!%p2570_p6), %v2160_v17, %v2176_v24 }
 0x19d   : > { %v1975_v41 = vpop.f32.mrb[5].mxu1  ;;  %v1935_v40 = vadd.f32 %v1934_v38, %v1894_v34  ;;  %v1936_v21 = vpop.f32.mrb[6].mxu0 }
 0x19e   : > { %v1977_v42 = vpop.f32.mrb[6].mxu1  ;;  %v1974_v22 = vadd.f32 %v1973_v53, %v1933_v37  ;;  %v1937_v44 = vpop.f32.mrb[7].mxu0 }
 0x19f   : > { %v1978_v45 = vpop.f32.mrb[7].mxu1  ;;  %v1976_v46 = vadd.f32 %v1975_v41, %v1935_v40 }
 0x1a0   : > { %v2144_v47 = vadd.f32 %v1974_v22, %v260_v39 }
 0x1a1   : > { %v2145_v48 = vadd.f32 %v1976_v46, %v261_v43 }
 0x1a2   : > { %2148 = vst [vmem:[#allocation2] sm:$0xff] %v2144_v47 }
 0x1a3   : > { %2149 = vst [vmem:[#allocation2 + $0x8] sm:$0xff] %v2145_v48 }
 0x1a9   : > { %v2156_v18 = vld [vmem:[#allocation2] sm:$0xff] (!%p2570_p6) }
 0x1aa   : > { %v2157_v25 = vld [vmem:[#allocation2 + $0x8] sm:$0xff] (!%p2570_p6)  ;;  %v2182_v32 = vadd.f32 (!%p2570_p6), %v2165_v28, %v2156_v18 }
 0x1ab   : > { %v2183_v33 = vadd.f32 (!%p2570_p6), %v2169_v29, %v2157_v25 }
 0x1ac   : > { %v2186_v36 = vmax.f32 (!%p2570_p6), %v2182_v32, 0.0 }
 0x1ad   : > { %v2187_v9 = vmax.f32 (!%p2570_p6), %v2183_v33, 0.0 }
 0x1ae   : > { %2190 = vst [vmem:[%s3295_s12] sm:$0xff] (!%p2570_p6), %v2186_v36 }
 0x1af   : > { %2191 = vst [vmem:[%s3295_s12 + $0x8] sm:$0xff] (!%p2570_p6), %v2187_v9 }
 0x1db   : > { %v2014_v49 = vpop.f32.mrb[8].mxu0 }
 0x1dc   : > { %v2055_v51 = vpop.f32.mrb[8].mxu1  ;;  %v2016_v54 = vpop.f32.mrb[9].mxu0 }
 0x1dd   : > { %v2056_v52 = vadd.f32 %v2055_v51, %v2014_v49  ;;  %v2057_v55 = vpop.f32.mrb[9].mxu1  ;;  %v2018_v57 = vpop.f32.mrb[10].mxu0 }
 0x1de   : > { %v2058_v56 = vadd.f32 %v2057_v55, %v2016_v54  ;;  %v2059_v58 = vpop.f32.mrb[10].mxu1  ;;  %v2019_v59 = vpop.f32.mrb[11].mxu0 }
 0x1df   : > { %v2060_v60 = vpop.f32.mrb[11].mxu1 }
 0x21b   : > { %v2096_v61 = vpop.f32.mrb[12].mxu0 }
 0x21c   : > { %v2137_v62 = vpop.f32.mrb[12].mxu1  ;;  %v2097_v63 = vadd.f32 %v2096_v61, %v2056_v52  ;;  %v2098_v0 = vpop.f32.mrb[13].mxu0 }
 0x21d   : > { %v2139_v1 = vpop.f32.mrb[13].mxu1  ;;  %v2099_v3 = vadd.f32 %v2098_v0, %v2058_v56  ;;  %v2100_v4 = vpop.f32.mrb[14].mxu0  ;;  %2155 = sbr.rel (%p2570_p6) target bundleno = 560 (0x230), region = 44 }
 0x21e   : > { %v2141_v5 = vpop.f32.mrb[14].mxu1  ;;  %v2138_v6 = vadd.f32 %v2137_v62, %v2097_v63  ;;  %v2101_v8 = vpop.f32.mrb[15].mxu0 }
 0x21f   : > { %v2142_v11 = vpop.f32.mrb[15].mxu1  ;;  %v2140_v12 = vadd.f32 %v2139_v1, %v2099_v3 }
 0x220   : > { %v2146_v13 = vadd.f32 %v2138_v6, %v262_v2 }
 0x221   : > { %v2147_v14 = vadd.f32 %v2140_v12, %v263_v7 }
 0x222   : > { %2150 = vst [vmem:[#allocation2 + $0x10] sm:$0xff] %v2146_v13 }
 0x223   : > { %2151 = vst [vmem:[#allocation2 + $0x18] sm:$0xff] %v2147_v14 }
 0x229   : > { %v2158_v26 = vld [vmem:[#allocation2 + $0x10] sm:$0xff] }
 0x22a   : > { %v2159_v27 = vld [vmem:[#allocation2 + $0x18] sm:$0xff]  ;;  %v2184_v34 = vadd.f32 %v2173_v30, %v2158_v26 }
 0x22b   : > { %v2185_v35 = vadd.f32 %v2177_v31, %v2159_v27 }
 0x22c   : > { %v2188_v10 = vmax.f32 %v2184_v34, 0.0 }
 0x22d   : > { %v2189_v50 = vmax.f32 %v2185_v35, 0.0 }
 0x22e   : > { %2192 = vst [vmem:[%s3295_s12 + $0x10] sm:$0xff] %v2188_v10 }
 0x22f   : > { %2193 = vst [vmem:[%s3295_s12 + $0x18] sm:$0xff] %v2189_v50 }
 0x230 PF: > { %s16_s19 = sadd.s32 1, %s3129_s19   ;;  %s3635_s12 = smov %s3105_s13 }
 0x231   : > { %p13_p8 = scmp.ge.s32.totalorder %s16_s19, 18   ;;  %s3636_s13 = smov %s3109_s14 }
 0x232   : > { %s3637_s14 = smov %s3223_s5  ;;  %s3638_s15 = smov %s3121_s17 }
 0x233   : > { %s3639_s16 = smov %s3125_s18  ;;  %s3640_s17 = smov %s3643_s21 }
 0x234   : > { %s3641_s18 = smov %s3647_s22  ;;  %15 = sbr.rel (!%p13_p8) target bundleno = 5 (0x5), region = 86 }
 0x23b   :  { %2216 = vsyncpa [#allocation4], 1 }
 0x23c   :  { %2218 = vsyncpa [#allocation4 + $0x1], 1 }

// kernel: acbase_forward.13
= control target key start
LH: loop header
LB: loop body
LE: loop exit
PB: predicated region body
PF: predicated region fallthrough
CT: control target
= control target key end

     0   :  { %s4650_s12 = smov 0   ;;  %s5348_s0 = inlined_call_operand.vmem [shape: f32[8,1024], index: 0, kind: input, shape index: {}]   ;;  %s5349_s1 = inlined_call_operand.vmem [shape: bf16[9,1024,1024], index: 1, kind: input, shape index: {}]   ;;  %s5350_s2 = inlined_call_operand.vmem [shape: f32[9,1,1024], index: 2, kind: input, shape index: {}]   ;;  %s5351_s3 = inlined_call_operand.vmem [shape: f32[8,1024], index: 3, kind: output, shape index: {}]  }
   0x1 LB: > { %s4035_s13 = sadd.s32 4294967295, %s4628_s12   ;;  %p4038_p0 = scmp.ge.s32.totalorder %s4628_s12, 1  ;;  %s4628_s12 = sphi %s4650_s12, %s13_s12  }
   0x2   : > { %p141_p1 = scmp.lt.s32.totalorder %s4628_s12, 10 }
   0x4   : > { %p142_p2 = pnand %p4038_p0, %p141_p1 }
   0x5   : > { %p164_p3 = scmp.lt.s32.totalorder (!%p142_p2), %s4035_s13, 8  ;;  %p4042_p4 = scmp.ne.s32.totalorder (!%p142_p2), %s4035_s13, 0 }
   0x6   : > { %145 = sbr.rel (%p142_p2) target bundleno = 755 (0x2f3), region = 32 }
   0xd   : > { %s165_s14 = scalar_select %p164_p3, %s4035_s13, 8 }
   0xe   : > { %176 = sbr.rel (%p4042_p4) target bundleno = 21 (0x15), region = 36  ;;  %v177_v0 = vld [vmem:[%s5348_s0] sm:$0xff] (!%p4042_p4)  ;;  %v178_v1 = vld [vmem:[%s5348_s0 + $0x8] sm:$0xff] (!%p4042_p4)  ;;  %v179_v2 = vld [vmem:[%s5348_s0 + $0x10] sm:$0xff] (!%p4042_p4) }
   0xf   : > { %s4557_s15 = sshll.u32 %s165_s14, 12  ;;  %s4041_s16 = sshll.u32 %s165_s14, 3  ;;  %185 = vst [vmem:[%s5351_s3] sm:$0xff] (!%p4042_p4), %v177_v0  ;;  %186 = vst [vmem:[%s5351_s3 + $0x8] sm:$0xff] (!%p4042_p4), %v178_v1  ;;  %v180_v3 = vld [vmem:[%s5348_s0 + $0x18] sm:$0xff] (!%p4042_p4)  ;;  %v181_v4 = vld [vmem:[%s5348_s0 + $0x20] sm:$0xff] (!%p4042_p4) }
  0x10   : > { %s4661_s19 = scalar_lea.vmem %s5349_s1, %s4557_s15  ;;  %s4666_s22 = scalar_lea.vmem %s5350_s2, %s4041_s16  ;;  %187 = vst [vmem:[%s5351_s3 + $0x10] sm:$0xff] (!%p4042_p4), %v179_v2  ;;  %v182_v5 = vld [vmem:[%s5348_s0 + $0x28] sm:$0xff] (!%p4042_p4)  ;;  %188 = vst [vmem:[%s5351_s3 + $0x18] sm:$0xff] (!%p4042_p4), %v180_v3  ;;  %v183_v6 = vld [vmem:[%s5348_s0 + $0x30] sm:$0xff] (!%p4042_p4) }
  0x11   : > { %189 = vst [vmem:[%s5351_s3 + $0x20] sm:$0xff] (!%p4042_p4), %v181_v4  ;;  %190 = vst [vmem:[%s5351_s3 + $0x28] sm:$0xff] (!%p4042_p4), %v182_v5  ;;  %v184_v7 = vld [vmem:[%s5348_s0 + $0x38] sm:$0xff] (!%p4042_p4) }
  0x12   : > { %191 = vst [vmem:[%s5351_s3 + $0x30] sm:$0xff] (!%p4042_p4), %v183_v6  ;;  %192 = vst [vmem:[%s5351_s3 + $0x38] sm:$0xff] (!%p4042_p4), %v184_v7 }
  0x15 PF: > { %v209_v8 = vld [vmem:[%s4661_s19] sm:$0xff]  ;;  %v210_v10 = vld [vmem:[%s4661_s19 + $0x8] sm:$0xff] }
  0x16   : > { %v213_v9 = vld [vmem:[%s4661_s19 + $0x20] sm:$0xff]  ;;  %v214_v12 = vld [vmem:[%s4661_s19 + $0x28] sm:$0xff] }
  0x17   : > { %v4044_v11 = vcombine.high %v209_v8, %v213_v9  ;;  %v4043_v13 = vcombine.low %v209_v8, %v213_v9  ;;  %v217_v14 = vld [vmem:[%s4661_s19 + $0x40] sm:$0xff]  ;;  %v4046_v16 = vcombine.high %v210_v10, %v214_v12  ;;  %v4045_v17 = vcombine.low %v210_v10, %v214_v12  ;;  %v218_v19 = vld [vmem:[%s4661_s19 + $0x48] sm:$0xff] }
  0x18   : > { %v221_v15 = vld [vmem:[%s4661_s19 + $0x60] sm:$0xff]  ;;  %v222_v20 = vld [vmem:[%s4661_s19 + $0x68] sm:$0xff] }
  0x19   : > { %v4052_v18 = vcombine.high %v217_v14, %v221_v15  ;;  %v225_v21 = vld [vmem:[%s4661_s19 + $0x80] sm:$0xff]  ;;  %3323 = vmatprep.subr.bf16.mxu0 %v4044_v11  ;;  %v4054_v22 = vcombine.high %v218_v19, %v222_v20  ;;  %v226_v24 = vld [vmem:[%s4661_s19 + $0x88] sm:$0xff]  ;;  %3487 = vmatprep.subr.bf16.mxu1 %v4046_v16  ;;  %v4051_v26 = vcombine.low %v217_v14, %v221_v15 }
  0x1a   : > { %v229_v23 = vld [vmem:[%s4661_s19 + $0xa0] sm:$0xff]  ;;  %v230_v25 = vld [vmem:[%s4661_s19 + $0xa8] sm:$0xff]  ;;  %3324 = vmatpush1.bf16.msra.mxu0 %v4043_v13  ;;  %3488 = vmatpush1.bf16.msra.mxu1 %v4045_v17  ;;  %v4053_v27 = vcombine.low %v218_v19, %v222_v20 }
  0x1b   : > { %3325 = vmatprep.subr.bf16.mxu0 %v4052_v18  ;;  %v4060_v28 = vcombine.high %v225_v21, %v229_v23  ;;  %3489 = vmatprep.subr.bf16.mxu1 %v4054_v22  ;;  %v4062_v29 = vcombine.high %v226_v24, %v230_v25  ;;  %v233_v30 = vld [vmem:[%s4661_s19 + $0xc0] sm:$0xff]  ;;  %v234_v32 = vld [vmem:[%s4661_s19 + $0xc8] sm:$0xff]  ;;  %v4059_v34 = vcombine.low %v225_v21, %v229_v23 }
  0x1c   : > { %v237_v31 = vld [vmem:[%s4661_s19 + $0xe0] sm:$0xff]  ;;  %v238_v33 = vld [vmem:[%s4661_s19 + $0xe8] sm:$0xff]  ;;  %v4061_v35 = vcombine.low %v226_v24, %v230_v25 }
  0x1d   : > { %v4068_v36 = vcombine.high %v233_v30, %v237_v31  ;;  %v4070_v37 = vcombine.high %v234_v32, %v238_v33  ;;  %v241_v38 = vld [vmem:[%s4661_s19 + $0x100] sm:$0xff]  ;;  %v242_v40 = vld [vmem:[%s4661_s19 + $0x108] sm:$0xff]  ;;  %v4067_v42 = vcombine.low %v233_v30, %v237_v31  ;;  %v4069_v43 = vcombine.low %v234_v32, %v238_v33 }
  0x1e   : > { %3326 = vmatpush1.bf16.msra.mxu0 %v4051_v26  ;;  %3490 = vmatpush1.bf16.msra.mxu1 %v4053_v27  ;;  %v245_v39 = vld [vmem:[%s4661_s19 + $0x120] sm:$0xff]  ;;  %v246_v41 = vld [vmem:[%s4661_s19 + $0x128] sm:$0xff] }
  0x1f   : > { %3327 = vmatprep.subr.bf16.mxu0 %v4060_v28  ;;  %3491 = vmatprep.subr.bf16.mxu1 %v4062_v29  ;;  %v4076_v44 = vcombine.high %v241_v38, %v245_v39  ;;  %v4078_v45 = vcombine.high %v242_v40, %v246_v41  ;;  %v249_v46 = vld [vmem:[%s4661_s19 + $0x140] sm:$0xff]  ;;  %v250_v48 = vld [vmem:[%s4661_s19 + $0x148] sm:$0xff]  ;;  %v4075_v50 = vcombine.low %v241_v38, %v245_v39 }
  0x20   : > { %v253_v47 = vld [vmem:[%s4661_s19 + $0x160] sm:$0xff]  ;;  %v254_v49 = vld [vmem:[%s4661_s19 + $0x168] sm:$0xff]  ;;  %v4077_v51 = vcombine.low %v242_v40, %v246_v41 }
  0x21   : > { %v4084_v52 = vcombine.high %v249_v46, %v253_v47  ;;  %v4086_v53 = vcombine.high %v250_v48, %v254_v49  ;;  %v257_v54 = vld [vmem:[%s4661_s19 + $0x180] sm:$0xff]  ;;  %v258_v56 = vld [vmem:[%s4661_s19 + $0x188] sm:$0xff]  ;;  %v4083_v58 = vcombine.low %v249_v46, %v253_v47  ;;  %v4085_v59 = vcombine.low %v250_v48, %v254_v49 }
  0x22   : > { %3328 = vmatpush1.bf16.msra.mxu0 %v4059_v34  ;;  %3492 = vmatpush1.bf16.msra.mxu1 %v4061_v35  ;;  %v261_v55 = vld [vmem:[%s4661_s19 + $0x1a0] sm:$0xff]  ;;  %v262_v57 = vld [vmem:[%s4661_s19 + $0x1a8] sm:$0xff] }
  0x23   : > { %3329 = vmatprep.subr.bf16.mxu0 %v4068_v36  ;;  %3493 = vmatprep.subr.bf16.mxu1 %v4070_v37  ;;  %v4092_v60 = vcombine.high %v257_v54, %v261_v55  ;;  %v194_v61 = vld [vmem:[%s5351_s3 + $0x8] sm:$0xff]  ;;  %v4094_v62 = vcombine.high %v258_v56, %v262_v57  ;;  %v265_v63 = vld [vmem:[%s4661_s19 + $0x1c0] sm:$0xff]  ;;  %v4091_v4 = vcombine.low %v257_v54, %v261_v55 }
  0x24   : > { %v269_v0 = vld [vmem:[%s4661_s19 + $0x1e0] sm:$0xff]  ;;  %v4749_v1 = vpack.c.bf16 %v194_v61, %v194_v61  ;;  %v266_v2 = vld [vmem:[%s4661_s19 + $0x1c8] sm:$0xff]  ;;  %v4093_v5 = vcombine.low %v258_v56, %v262_v57 }
  0x25   : > { %v270_v3 = vld [vmem:[%s4661_s19 + $0x1e8] sm:$0xff]  ;;  %v4100_v6 = vcombine.high %v265_v63, %v269_v0  ;;  %v273_v8 = vld [vmem:[%s4661_s19 + $0x200] sm:$0xff]  ;;  %v4099_v12 = vcombine.low %v265_v63, %v269_v0 }
  0x26   : > { %3330 = vmatpush1.bf16.msra.mxu0 %v4067_v42  ;;  %3494 = vmatpush1.bf16.msra.mxu1 %v4069_v43  ;;  %v4102_v7 = vcombine.high %v266_v2, %v270_v3  ;;  %v277_v9 = vld [vmem:[%s4661_s19 + $0x220] sm:$0xff]  ;;  %v274_v10 = vld [vmem:[%s4661_s19 + $0x208] sm:$0xff]  ;;  %v4101_v13 = vcombine.low %v266_v2, %v270_v3 }
  0x27   : > { %3331 = vmatprep.subr.bf16.mxu0 %v4076_v44  ;;  %3495 = vmatprep.subr.bf16.mxu1 %v4078_v45  ;;  %v278_v11 = vld [vmem:[%s4661_s19 + $0x228] sm:$0xff]  ;;  %v4108_v14 = vcombine.high %v273_v8, %v277_v9  ;;  %v281_v16 = vld [vmem:[%s4661_s19 + $0x240] sm:$0xff]  ;;  %v4107_v20 = vcombine.low %v273_v8, %v277_v9 }
  0x28   : > { %3355 = vmatprep.mubr.bf16.mxu0 %v4749_v1  ;;  %3519 = vmatprep.mubr.bf16.mxu1 %v4749_v1  ;;  %v4110_v15 = vcombine.high %v274_v10, %v278_v11  ;;  %v285_v17 = vld [vmem:[%s4661_s19 + $0x260] sm:$0xff]  ;;  %v282_v18 = vld [vmem:[%s4661_s19 + $0x248] sm:$0xff]  ;;  %v4109_v21 = vcombine.low %v274_v10, %v278_v11 }
  0x29   : > { %v286_v19 = vld [vmem:[%s4661_s19 + $0x268] sm:$0xff]  ;;  %v4116_v22 = vcombine.high %v281_v16, %v285_v17  ;;  %v289_v24 = vld [vmem:[%s4661_s19 + $0x280] sm:$0xff]  ;;  %v4115_v28 = vcombine.low %v281_v16, %v285_v17 }
  0x2a   : > { %3332 = vmatpush1.bf16.msra.mxu0 %v4075_v50  ;;  %3496 = vmatpush1.bf16.msra.mxu1 %v4077_v51  ;;  %v4118_v23 = vcombine.high %v282_v18, %v286_v19  ;;  %v293_v25 = vld [vmem:[%s4661_s19 + $0x2a0] sm:$0xff]  ;;  %v290_v26 = vld [vmem:[%s4661_s19 + $0x288] sm:$0xff]  ;;  %v4117_v29 = vcombine.low %v282_v18, %v286_v19 }
  0x2b   : > { %3333 = vmatprep.subr.bf16.mxu0 %v4084_v52  ;;  %3497 = vmatprep.subr.bf16.mxu1 %v4086_v53  ;;  %v294_v27 = vld [vmem:[%s4661_s19 + $0x2a8] sm:$0xff]  ;;  %v4124_v30 = vcombine.high %v289_v24, %v293_v25  ;;  %v297_v32 = vld [vmem:[%s4661_s19 + $0x2c0] sm:$0xff]  ;;  %v4123_v36 = vcombine.low %v289_v24, %v293_v25 }
  0x2c   : > { %v4126_v31 = vcombine.high %v290_v26, %v294_v27  ;;  %v301_v33 = vld [vmem:[%s4661_s19 + $0x2e0] sm:$0xff]  ;;  %v298_v34 = vld [vmem:[%s4661_s19 + $0x2c8] sm:$0xff]  ;;  %v4125_v37 = vcombine.low %v290_v26, %v294_v27 }
  0x2d   : > { %v302_v35 = vld [vmem:[%s4661_s19 + $0x2e8] sm:$0xff]  ;;  %v4132_v38 = vcombine.high %v297_v32, %v301_v33  ;;  %v305_v40 = vld [vmem:[%s4661_s19 + $0x300] sm:$0xff]  ;;  %v4131_v44 = vcombine.low %v297_v32, %v301_v33 }
  0x2e   : > { %3334 = vmatpush1.bf16.msra.mxu0 %v4083_v58  ;;  %3498 = vmatpush1.bf16.msra.mxu1 %v4085_v59  ;;  %v4134_v39 = vcombine.high %v298_v34, %v302_v35  ;;  %v309_v41 = vld [vmem:[%s4661_s19 + $0x320] sm:$0xff]  ;;  %v306_v42 = vld [vmem:[%s4661_s19 + $0x308] sm:$0xff]  ;;  %v4133_v45 = vcombine.low %v298_v34, %v302_v35 }
  0x2f   : > { %3335 = vmatprep.subr.bf16.mxu0 %v4092_v60  ;;  %3499 = vmatprep.subr.bf16.mxu1 %v4094_v62  ;;  %v310_v43 = vld [vmem:[%s4661_s19 + $0x328] sm:$0xff]  ;;  %v4140_v46 = vcombine.high %v305_v40, %v309_v41  ;;  %v313_v48 = vld [vmem:[%s4661_s19 + $0x340] sm:$0xff]  ;;  %v4139_v52 = vcombine.low %v305_v40, %v309_v41 }
  0x30   : > { %v4142_v47 = vcombine.high %v306_v42, %v310_v43  ;;  %v317_v49 = vld [vmem:[%s4661_s19 + $0x360] sm:$0xff]  ;;  %v314_v50 = vld [vmem:[%s4661_s19 + $0x348] sm:$0xff]  ;;  %v4141_v53 = vcombine.low %v306_v42, %v310_v43 }
  0x31   : > { %v318_v51 = vld [vmem:[%s4661_s19 + $0x368] sm:$0xff]  ;;  %v4148_v54 = vcombine.high %v313_v48, %v317_v49  ;;  %v321_v56 = vld [vmem:[%s4661_s19 + $0x380] sm:$0xff]  ;;  %v4147_v60 = vcombine.low %v313_v48, %v317_v49 }
  0x32   : > { %3336 = vmatpush1.bf16.msra.mxu0 %v4091_v4  ;;  %3500 = vmatpush1.bf16.msra.mxu1 %v4093_v5  ;;  %v4150_v55 = vcombine.high %v314_v50, %v318_v51  ;;  %v325_v57 = vld [vmem:[%s4661_s19 + $0x3a0] sm:$0xff]  ;;  %v322_v58 = vld [vmem:[%s4661_s19 + $0x388] sm:$0xff]  ;;  %v4149_v61 = vcombine.low %v314_v50, %v318_v51 }
  0x33   : > { %3337 = vmatprep.subr.bf16.mxu0 %v4100_v6  ;;  %3501 = vmatprep.subr.bf16.mxu1 %v4102_v7  ;;  %v326_v59 = vld [vmem:[%s4661_s19 + $0x3a8] sm:$0xff]  ;;  %v4156_v62 = vcombine.high %v321_v56, %v325_v57  ;;  %v329_v0 = vld [vmem:[%s4661_s19 + $0x3c0] sm:$0xff]  ;;  %v4155_v5 = vcombine.low %v321_v56, %v325_v57 }
  0x34   : > { %v4158_v63 = vcombine.high %v322_v58, %v326_v59  ;;  %v333_v2 = vld [vmem:[%s4661_s19 + $0x3e0] sm:$0xff]  ;;  %v330_v3 = vld [vmem:[%s4661_s19 + $0x3c8] sm:$0xff]  ;;  %v4157_v6 = vcombine.low %v322_v58, %v326_v59 }
  0x35   : > { %v334_v4 = vld [vmem:[%s4661_s19 + $0x3e8] sm:$0xff]  ;;  %v4164_v7 = vcombine.high %v329_v0, %v333_v2  ;;  %v337_v9 = vld [vmem:[%s4661_s19 + $0x400] sm:$0xff] }
  0x36   : > { %3338 = vmatpush1.bf16.msra.mxu0 %v4099_v12  ;;  %3502 = vmatpush1.bf16.msra.mxu1 %v4101_v13  ;;  %v4166_v8 = vcombine.high %v330_v3, %v334_v4  ;;  %v341_v10 = vld [vmem:[%s4661_s19 + $0x420] sm:$0xff]  ;;  %v338_v11 = vld [vmem:[%s4661_s19 + $0x408] sm:$0xff]  ;;  %v4163_v13 = vcombine.low %v329_v0, %v333_v2 }
  0x37   : > { %3339 = vmatprep.subr.bf16.mxu0 %v4108_v14  ;;  %3503 = vmatprep.subr.bf16.mxu1 %v4110_v15  ;;  %v342_v12 = vld [vmem:[%s4661_s19 + $0x428] sm:$0xff]  ;;  %v193_v14 = vld [vmem:[%s5351_s3] sm:$0xff]  ;;  %v4165_v15 = vcombine.low %v330_v3, %v334_v4  ;;  %v4172_v16 = vcombine.high %v337_v9, %v341_v10  ;;  %v4171_v24 = vcombine.low %v337_v9, %v341_v10 }
  0x38   : > { %v4174_v17 = vcombine.high %v338_v11, %v342_v12  ;;  %v345_v18 = vld [vmem:[%s4661_s19 + $0x440] sm:$0xff]  ;;  %v4173_v25 = vcombine.low %v338_v11, %v342_v12  ;;  %v358_v32 = vld [vmem:[%s4661_s19 + $0x4a8] sm:$0xff] }
  0x39   : > { %v349_v19 = vld [vmem:[%s4661_s19 + $0x460] sm:$0xff]  ;;  %v366_v40 = vld [vmem:[%s4661_s19 + $0x4e8] sm:$0xff] }
  0x3a   : > { %3340 = vmatpush1.bf16.msra.mxu0 %v4107_v20  ;;  %3504 = vmatpush1.bf16.msra.mxu1 %v4109_v21  ;;  %v4796_v20 = vpack.c.bf16 %v193_v14, %v193_v14  ;;  %v346_v21 = vld [vmem:[%s4661_s19 + $0x448] sm:$0xff]  ;;  %v4180_v26 = vcombine.high %v345_v18, %v349_v19  ;;  %v4179_v33 = vcombine.low %v345_v18, %v349_v19  ;;  %v401_v14 = vld [vmem:[%s4661_s19 + $0x600] sm:$0xff] }
  0x3b   : > { %3341 = vmatprep.subr.bf16.mxu0 %v4116_v22  ;;  %3505 = vmatprep.subr.bf16.mxu1 %v4118_v23  ;;  %v350_v22 = vld [vmem:[%s4661_s19 + $0x468] sm:$0xff]  ;;  %v196_v23 = vld [vmem:[%s5351_s3 + $0x18] sm:$0xff] }
  0x3c   : > { %v4182_v27 = vcombine.high %v346_v21, %v350_v22  ;;  %v4181_v34 = vcombine.low %v346_v21, %v350_v22  ;;  %v374_v48 = vld [vmem:[%s4661_s19 + $0x528] sm:$0xff] }
  0x3d   : > { %v382_v56 = vld [vmem:[%s4661_s19 + $0x568] sm:$0xff] }
  0x3e   : > { %3342 = vmatpush1.bf16.msra.mxu0 %v4115_v28  ;;  %3506 = vmatpush1.bf16.msra.mxu1 %v4117_v29  ;;  %v353_v28 = vld [vmem:[%s4661_s19 + $0x480] sm:$0xff]  ;;  %v390_v0 = vld [vmem:[%s4661_s19 + $0x5a8] sm:$0xff] }
  0x3f   : > { %3343 = vmatprep.subr.bf16.mxu0 %v4124_v30  ;;  %3507 = vmatprep.subr.bf16.mxu1 %v4126_v31  ;;  %v357_v29 = vld [vmem:[%s4661_s19 + $0x4a0] sm:$0xff]  ;;  %v4805_v30 = vpack.c.bf16 %v196_v23, %v196_v23  ;;  %v354_v31 = vld [vmem:[%s4661_s19 + $0x488] sm:$0xff] }
  0x40   : > { %v4188_v35 = vcombine.high %v353_v28, %v357_v29  ;;  %v4187_v41 = vcombine.low %v353_v28, %v357_v29  ;;  %v4189_v42 = vcombine.low %v354_v31, %v358_v32  ;;  %v398_v9 = vld [vmem:[%s4661_s19 + $0x5e8] sm:$0xff]  ;;  %v409_v23 = vld [vmem:[%s4661_s19 + $0x640] sm:$0xff] }
  0x42   : > { %3344 = vmatpush1.bf16.msra.mxu0 %v4123_v36  ;;  %3508 = vmatpush1.bf16.msra.mxu1 %v4125_v37  ;;  %v4190_v36 = vcombine.high %v354_v31, %v358_v32  ;;  %v361_v37 = vld [vmem:[%s4661_s19 + $0x4c0] sm:$0xff] }
  0x43   : > { %3345 = vmatprep.subr.bf16.mxu0 %v4132_v38  ;;  %3509 = vmatprep.subr.bf16.mxu1 %v4134_v39  ;;  %v365_v38 = vld [vmem:[%s4661_s19 + $0x4e0] sm:$0xff]  ;;  %v362_v39 = vld [vmem:[%s4661_s19 + $0x4c8] sm:$0xff] }
  0x44   : > { %v4196_v43 = vcombine.high %v361_v37, %v365_v38  ;;  %v4195_v49 = vcombine.low %v361_v37, %v365_v38  ;;  %v4197_v50 = vcombine.low %v362_v39, %v366_v40  ;;  %v417_v32 = vld [vmem:[%s4661_s19 + $0x680] sm:$0xff] }
  0x46   : > { %3346 = vmatpush1.bf16.msra.mxu0 %v4131_v44  ;;  %3510 = vmatpush1.bf16.msra.mxu1 %v4133_v45  ;;  %v4198_v44 = vcombine.high %v362_v39, %v366_v40  ;;  %v369_v45 = vld [vmem:[%s4661_s19 + $0x500] sm:$0xff] }
  0x47   : > { %3347 = vmatprep.subr.bf16.mxu0 %v4140_v46  ;;  %3511 = vmatprep.subr.bf16.mxu1 %v4142_v47  ;;  %v373_v46 = vld [vmem:[%s4661_s19 + $0x520] sm:$0xff]  ;;  %v370_v47 = vld [vmem:[%s4661_s19 + $0x508] sm:$0xff] }
  0x48   : > { %v4204_v51 = vcombine.high %v369_v45, %v373_v46  ;;  %v4203_v57 = vcombine.low %v369_v45, %v373_v46  ;;  %v4205_v58 = vcombine.low %v370_v47, %v374_v48  ;;  %v425_v40 = vld [vmem:[%s4661_s19 + $0x6c0] sm:$0xff] }
  0x4a   : > { %3348 = vmatpush1.bf16.msra.mxu0 %v4139_v52  ;;  %3512 = vmatpush1.bf16.msra.mxu1 %v4141_v53  ;;  %v4206_v52 = vcombine.high %v370_v47, %v374_v48  ;;  %v377_v53 = vld [vmem:[%s4661_s19 + $0x540] sm:$0xff] }
  0x4b   : > { %3349 = vmatprep.subr.bf16.mxu0 %v4148_v54  ;;  %3513 = vmatprep.subr.bf16.mxu1 %v4150_v55  ;;  %v381_v54 = vld [vmem:[%s4661_s19 + $0x560] sm:$0xff]  ;;  %v378_v55 = vld [vmem:[%s4661_s19 + $0x548] sm:$0xff] }
  0x4c   : > { %v4212_v59 = vcombine.high %v377_v53, %v381_v54  ;;  %v4211_v2 = vcombine.low %v377_v53, %v381_v54  ;;  %v4213_v3 = vcombine.low %v378_v55, %v382_v56  ;;  %v433_v48 = vld [vmem:[%s4661_s19 + $0x700] sm:$0xff] }
  0x4e   : > { %3350 = vmatpush1.bf16.msra.mxu0 %v4147_v60  ;;  %3514 = vmatpush1.bf16.msra.mxu1 %v4149_v61  ;;  %v4214_v60 = vcombine.high %v378_v55, %v382_v56  ;;  %v385_v61 = vld [vmem:[%s4661_s19 + $0x580] sm:$0xff] }
  0x4f   : > { %3351 = vmatprep.subr.bf16.mxu0 %v4156_v62  ;;  %3515 = vmatprep.subr.bf16.mxu1 %v4158_v63  ;;  %v389_v62 = vld [vmem:[%s4661_s19 + $0x5a0] sm:$0xff]  ;;  %v386_v63 = vld [vmem:[%s4661_s19 + $0x588] sm:$0xff] }
  0x50   : > { %v4220_v4 = vcombine.high %v385_v61, %v389_v62  ;;  %v4219_v10 = vcombine.low %v385_v61, %v389_v62  ;;  %v4221_v11 = vcombine.low %v386_v63, %v390_v0  ;;  %v441_v56 = vld [vmem:[%s4661_s19 + $0x740] sm:$0xff] }
  0x52   : > { %3352 = vmatpush1.bf16.msra.mxu0 %v4155_v5  ;;  %3516 = vmatpush1.bf16.msra.mxu1 %v4157_v6  ;;  %v4222_v5 = vcombine.high %v386_v63, %v390_v0  ;;  %v393_v6 = vld [vmem:[%s4661_s19 + $0x5c0] sm:$0xff] }
  0x53   : > { %3353 = vmatprep.subr.bf16.mxu0 %v4164_v7  ;;  %3517 = vmatprep.subr.bf16.mxu1 %v4166_v8  ;;  %v397_v7 = vld [vmem:[%s4661_s19 + $0x5e0] sm:$0xff]  ;;  %v394_v8 = vld [vmem:[%s4661_s19 + $0x5c8] sm:$0xff] }
  0x54   : > { %v4228_v12 = vcombine.high %v393_v6, %v397_v7  ;;  %v4227_v18 = vcombine.low %v393_v6, %v397_v7  ;;  %v4229_v19 = vcombine.low %v394_v8, %v398_v9  ;;  %v449_v0 = vld [vmem:[%s4661_s19 + $0x780] sm:$0xff] }
  0x56   : > { %3354 = vmatpush1.bf16.msra.mxu0 %v4163_v13  ;;  %3518 = vmatpush1.bf16.msra.mxu1 %v4165_v15  ;;  %v4230_v13 = vcombine.high %v394_v8, %v398_v9  ;;  %v405_v15 = vld [vmem:[%s4661_s19 + $0x620] sm:$0xff] }
  0x57   : > { %3364 = vmatprep.subr.bf16.mxu0 %v4172_v16  ;;  %3528 = vmatprep.subr.bf16.mxu1 %v4174_v17  ;;  %v402_v16 = vld [vmem:[%s4661_s19 + $0x608] sm:$0xff]  ;;  %v4236_v21 = vcombine.high %v401_v14, %v405_v15  ;;  %v457_v9 = vld [vmem:[%s4661_s19 + $0x7c0] sm:$0xff] }
  0x58   : > { %v406_v17 = vld [vmem:[%s4661_s19 + $0x628] sm:$0xff] }
  0x59   : > { %3356 = vmatmul.mubr.bf16.vlgmr.msra.gmra.mrb[0].mxu0 %v4796_v20  ;;  %3520 = vmatmul.mubr.bf16.vlgmr.msra.gmra.mrb[0].mxu1 %v4796_v20  ;;  %v4238_v22 = vcombine.high %v402_v16, %v406_v17  ;;  %v4237_v28 = vcombine.low %v402_v16, %v406_v17  ;;  %v465_v17 = vld [vmem:[%s4661_s19 + $0x800] sm:$0xff] }
  0x5a   : > { %3365 = vmatpush1.bf16.msra.mxu0 %v4171_v24  ;;  %3529 = vmatpush1.bf16.msra.mxu1 %v4173_v25  ;;  %v413_v24 = vld [vmem:[%s4661_s19 + $0x660] sm:$0xff]  ;;  %v410_v25 = vld [vmem:[%s4661_s19 + $0x648] sm:$0xff] }
  0x5b   : > { %3366 = vmatprep.subr.bf16.mxu0 %v4180_v26  ;;  %3530 = vmatprep.subr.bf16.mxu1 %v4182_v27  ;;  %v414_v26 = vld [vmem:[%s4661_s19 + $0x668] sm:$0xff]  ;;  %v4235_v27 = vcombine.low %v401_v14, %v405_v15  ;;  %v4244_v29 = vcombine.high %v409_v23, %v413_v24 }
  0x5c   : > { %3396 = vmatprep.mubr.bf16.mxu0 %v4805_v30  ;;  %3560 = vmatprep.mubr.bf16.mxu1 %v4805_v30  ;;  %v4246_v31 = vcombine.high %v410_v25, %v414_v26  ;;  %v4245_v37 = vcombine.low %v410_v25, %v414_v26 }
  0x5e   : > { %3367 = vmatpush1.bf16.msra.mxu0 %v4179_v33  ;;  %3531 = vmatpush1.bf16.msra.mxu1 %v4181_v34  ;;  %v421_v33 = vld [vmem:[%s4661_s19 + $0x6a0] sm:$0xff]  ;;  %v418_v34 = vld [vmem:[%s4661_s19 + $0x688] sm:$0xff] }
  0x5f   : > { %3368 = vmatprep.subr.bf16.mxu0 %v4188_v35  ;;  %3532 = vmatprep.subr.bf16.mxu1 %v4190_v36  ;;  %v422_v35 = vld [vmem:[%s4661_s19 + $0x6a8] sm:$0xff]  ;;  %v4243_v36 = vcombine.low %v409_v23, %v413_v24  ;;  %v4252_v38 = vcombine.high %v417_v32, %v421_v33  ;;  %v195_v23 = vld [vmem:[%s5351_s3 + $0x10] sm:$0xff] }
  0x60   : > { %v4254_v39 = vcombine.high %v418_v34, %v422_v35  ;;  %v4253_v45 = vcombine.low %v418_v34, %v422_v35 }
  0x62   : > { %3369 = vmatpush1.bf16.msra.mxu0 %v4187_v41  ;;  %3533 = vmatpush1.bf16.msra.mxu1 %v4189_v42  ;;  %v429_v41 = vld [vmem:[%s4661_s19 + $0x6e0] sm:$0xff]  ;;  %v426_v42 = vld [vmem:[%s4661_s19 + $0x6c8] sm:$0xff] }
  0x63   : > { %3370 = vmatprep.subr.bf16.mxu0 %v4196_v43  ;;  %3534 = vmatprep.subr.bf16.mxu1 %v4198_v44  ;;  %v430_v43 = vld [vmem:[%s4661_s19 + $0x6e8] sm:$0xff]  ;;  %v4251_v44 = vcombine.low %v417_v32, %v421_v33  ;;  %v4260_v46 = vcombine.high %v425_v40, %v429_v41 }
  0x64   : > { %v4262_v47 = vcombine.high %v426_v42, %v430_v43  ;;  %v4261_v53 = vcombine.low %v426_v42, %v430_v43  ;;  %v478_v32 = vld [vmem:[%s4661_s19 + $0x868] sm:$0xff] }
  0x65   : > { %v198_v33 = vld [vmem:[%s5351_s3 + $0x28] sm:$0xff] }
  0x66   : > { %3371 = vmatpush1.bf16.msra.mxu0 %v4195_v49  ;;  %3535 = vmatpush1.bf16.msra.mxu1 %v4197_v50  ;;  %v437_v49 = vld [vmem:[%s4661_s19 + $0x720] sm:$0xff]  ;;  %v434_v50 = vld [vmem:[%s4661_s19 + $0x708] sm:$0xff] }
  0x67   : > { %3372 = vmatprep.subr.bf16.mxu0 %v4204_v51  ;;  %3536 = vmatprep.subr.bf16.mxu1 %v4206_v52  ;;  %v438_v51 = vld [vmem:[%s4661_s19 + $0x728] sm:$0xff]  ;;  %v4259_v52 = vcombine.low %v425_v40, %v429_v41  ;;  %v4268_v54 = vcombine.high %v433_v48, %v437_v49  ;;  %v4883_v40 = vpack.c.bf16 %v198_v33, %v198_v33 }
  0x68   : > { %v4270_v55 = vcombine.high %v434_v50, %v438_v51  ;;  %v4269_v61 = vcombine.low %v434_v50, %v438_v51  ;;  %v482_v41 = vld [vmem:[%s4661_s19 + $0x888] sm:$0xff] }
  0x69   : > { %v486_v42 = vld [vmem:[%s4661_s19 + $0x8a8] sm:$0xff] }
  0x6a   : > { %3373 = vmatpush1.bf16.msra.mxu0 %v4203_v57  ;;  %3537 = vmatpush1.bf16.msra.mxu1 %v4205_v58  ;;  %v445_v57 = vld [vmem:[%s4661_s19 + $0x760] sm:$0xff]  ;;  %v442_v58 = vld [vmem:[%s4661_s19 + $0x748] sm:$0xff] }
  0x6b   : > { %3374 = vmatprep.subr.bf16.mxu0 %v4212_v59  ;;  %3538 = vmatprep.subr.bf16.mxu1 %v4214_v60  ;;  %v446_v59 = vld [vmem:[%s4661_s19 + $0x768] sm:$0xff]  ;;  %v4267_v60 = vcombine.low %v433_v48, %v437_v49  ;;  %v4276_v62 = vcombine.high %v441_v56, %v445_v57  ;;  %v493_v48 = vld [vmem:[%s4661_s19 + $0x8e0] sm:$0xff] }
  0x6c   : > { %v4278_v63 = vcombine.high %v442_v58, %v446_v59  ;;  %v4277_v6 = vcombine.low %v442_v58, %v446_v59  ;;  %v490_v49 = vld [vmem:[%s4661_s19 + $0x8c8] sm:$0xff] }
  0x6d   : > { %v494_v50 = vld [vmem:[%s4661_s19 + $0x8e8] sm:$0xff] }
  0x6e   : > { %3375 = vmatpush1.bf16.msra.mxu0 %v4211_v2  ;;  %3539 = vmatpush1.bf16.msra.mxu1 %v4213_v3  ;;  %v453_v2 = vld [vmem:[%s4661_s19 + $0x7a0] sm:$0xff]  ;;  %v450_v3 = vld [vmem:[%s4661_s19 + $0x788] sm:$0xff] }
  0x6f   : > { %3376 = vmatprep.subr.bf16.mxu0 %v4220_v4  ;;  %3540 = vmatprep.subr.bf16.mxu1 %v4222_v5  ;;  %v454_v4 = vld [vmem:[%s4661_s19 + $0x7a8] sm:$0xff]  ;;  %v4275_v5 = vcombine.low %v441_v56, %v445_v57  ;;  %v4284_v7 = vcombine.high %v449_v0, %v453_v2  ;;  %v501_v56 = vld [vmem:[%s4661_s19 + $0x920] sm:$0xff] }
  0x70   : > { %v4286_v8 = vcombine.high %v450_v3, %v454_v4  ;;  %v4285_v14 = vcombine.low %v450_v3, %v454_v4  ;;  %v498_v57 = vld [vmem:[%s4661_s19 + $0x908] sm:$0xff] }
  0x71   : > { %v502_v58 = vld [vmem:[%s4661_s19 + $0x928] sm:$0xff] }
  0x72   : > { %3377 = vmatpush1.bf16.msra.mxu0 %v4219_v10  ;;  %3541 = vmatpush1.bf16.msra.mxu1 %v4221_v11  ;;  %v461_v10 = vld [vmem:[%s4661_s19 + $0x7e0] sm:$0xff]  ;;  %v458_v11 = vld [vmem:[%s4661_s19 + $0x7c8] sm:$0xff] }
  0x73   : > { %3378 = vmatprep.subr.bf16.mxu0 %v4228_v12  ;;  %3542 = vmatprep.subr.bf16.mxu1 %v4230_v13  ;;  %v462_v12 = vld [vmem:[%s4661_s19 + $0x7e8] sm:$0xff]  ;;  %v4283_v13 = vcombine.low %v449_v0, %v453_v2  ;;  %v4292_v15 = vcombine.high %v457_v9, %v461_v10  ;;  %v509_v0 = vld [vmem:[%s4661_s19 + $0x960] sm:$0xff] }
  0x74   : > { %v4294_v16 = vcombine.high %v458_v11, %v462_v12  ;;  %v4293_v24 = vcombine.low %v458_v11, %v462_v12  ;;  %v506_v2 = vld [vmem:[%s4661_s19 + $0x948] sm:$0xff] }
  0x75   : > { %v510_v3 = vld [vmem:[%s4661_s19 + $0x968] sm:$0xff] }
  0x76   : > { %3379 = vmatpush1.bf16.msra.mxu0 %v4227_v18  ;;  %3543 = vmatpush1.bf16.msra.mxu1 %v4229_v19  ;;  %v469_v18 = vld [vmem:[%s4661_s19 + $0x820] sm:$0xff]  ;;  %v466_v19 = vld [vmem:[%s4661_s19 + $0x808] sm:$0xff] }
  0x77   : > { %3380 = vmatprep.subr.bf16.mxu0 %v4236_v21  ;;  %3544 = vmatprep.subr.bf16.mxu1 %v4238_v22  ;;  %v470_v21 = vld [vmem:[%s4661_s19 + $0x828] sm:$0xff]  ;;  %v4291_v22 = vcombine.low %v457_v9, %v461_v10  ;;  %v4300_v25 = vcombine.high %v465_v17, %v469_v18  ;;  %v4299_v34 = vcombine.low %v465_v17, %v469_v18  ;;  %v517_v9 = vld [vmem:[%s4661_s19 + $0x9a0] sm:$0xff] }
  0x78   : > { %v4302_v26 = vcombine.high %v466_v19, %v470_v21  ;;  %v4301_v35 = vcombine.low %v466_v19, %v470_v21  ;;  %v514_v10 = vld [vmem:[%s4661_s19 + $0x988] sm:$0xff]  ;;  %v525_v17 = vld [vmem:[%s4661_s19 + $0x9e0] sm:$0xff] }
  0x79   : > { %v518_v11 = vld [vmem:[%s4661_s19 + $0x9a8] sm:$0xff] }
  0x7a   : > { %3381 = vmatpush1.bf16.msra.mxu0 %v4235_v27  ;;  %3545 = vmatpush1.bf16.msra.mxu1 %v4237_v28  ;;  %v473_v27 = vld [vmem:[%s4661_s19 + $0x840] sm:$0xff]  ;;  %v522_v18 = vld [vmem:[%s4661_s19 + $0x9c8] sm:$0xff] }
  0x7b   : > { %3382 = vmatprep.subr.bf16.mxu0 %v4244_v29  ;;  %3546 = vmatprep.subr.bf16.mxu1 %v4246_v31  ;;  %v477_v28 = vld [vmem:[%s4661_s19 + $0x860] sm:$0xff]  ;;  %v4874_v29 = vpack.c.bf16 %v195_v23, %v195_v23  ;;  %v474_v31 = vld [vmem:[%s4661_s19 + $0x848] sm:$0xff] }
  0x7c   : > { %v4307_v43 = vcombine.low %v473_v27, %v477_v28  ;;  %v526_v19 = vld [vmem:[%s4661_s19 + $0x9e8] sm:$0xff] }
  0x7e   : > { %3383 = vmatpush1.bf16.msra.mxu0 %v4243_v36  ;;  %3547 = vmatpush1.bf16.msra.mxu1 %v4245_v37  ;;  %v4308_v36 = vcombine.high %v473_v27, %v477_v28  ;;  %v4310_v37 = vcombine.high %v474_v31, %v478_v32  ;;  %v530_v27 = vld [vmem:[%s4661_s19 + $0xa08] sm:$0xff] }
  0x7f   : > { %3384 = vmatprep.subr.bf16.mxu0 %v4252_v38  ;;  %3548 = vmatprep.subr.bf16.mxu1 %v4254_v39  ;;  %v481_v38 = vld [vmem:[%s4661_s19 + $0x880] sm:$0xff]  ;;  %v534_v28 = vld [vmem:[%s4661_s19 + $0xa28] sm:$0xff] }
  0x80   : > { %v485_v39 = vld [vmem:[%s4661_s19 + $0x8a0] sm:$0xff] }
  0x81   : > { %v4315_v51 = vcombine.low %v481_v38, %v485_v39 }
  0x82   : > { %3385 = vmatpush1.bf16.msra.mxu0 %v4251_v44  ;;  %3549 = vmatpush1.bf16.msra.mxu1 %v4253_v45  ;;  %v4309_v44 = vcombine.low %v474_v31, %v478_v32  ;;  %v4316_v45 = vcombine.high %v481_v38, %v485_v39  ;;  %v4357_v32 = vcombine.low %v522_v18, %v526_v19  ;;  %v542_v38 = vld [vmem:[%s4661_s19 + $0xa68] sm:$0xff] }
  0x83   : > { %3386 = vmatprep.subr.bf16.mxu0 %v4260_v46  ;;  %3550 = vmatprep.subr.bf16.mxu1 %v4262_v47  ;;  %v4318_v46 = vcombine.high %v482_v41, %v486_v42  ;;  %v489_v47 = vld [vmem:[%s4661_s19 + $0x8c0] sm:$0xff] }
  0x84   : > { %v4323_v59 = vcombine.low %v489_v47, %v493_v48 }
  0x86   : > { %3387 = vmatpush1.bf16.msra.mxu0 %v4259_v52  ;;  %3551 = vmatpush1.bf16.msra.mxu1 %v4261_v53  ;;  %v4317_v52 = vcombine.low %v482_v41, %v486_v42  ;;  %v4324_v53 = vcombine.high %v489_v47, %v493_v48  ;;  %v4365_v41 = vcombine.low %v530_v27, %v534_v28  ;;  %v550_v47 = vld [vmem:[%s4661_s19 + $0xaa8] sm:$0xff] }
  0x87   : > { %3388 = vmatprep.subr.bf16.mxu0 %v4268_v54  ;;  %3552 = vmatprep.subr.bf16.mxu1 %v4270_v55  ;;  %v4326_v54 = vcombine.high %v490_v49, %v494_v50  ;;  %v497_v55 = vld [vmem:[%s4661_s19 + $0x900] sm:$0xff] }
  0x88   : > { %v4331_v4 = vcombine.low %v497_v55, %v501_v56 }
  0x8a   : > { %3389 = vmatpush1.bf16.msra.mxu0 %v4267_v60  ;;  %3553 = vmatpush1.bf16.msra.mxu1 %v4269_v61  ;;  %v4325_v60 = vcombine.low %v490_v49, %v494_v50  ;;  %v4332_v61 = vcombine.high %v497_v55, %v501_v56  ;;  %v558_v55 = vld [vmem:[%s4661_s19 + $0xae8] sm:$0xff] }
  0x8b   : > { %3390 = vmatprep.subr.bf16.mxu0 %v4276_v62  ;;  %3554 = vmatprep.subr.bf16.mxu1 %v4278_v63  ;;  %v4334_v62 = vcombine.high %v498_v57, %v502_v58  ;;  %v505_v63 = vld [vmem:[%s4661_s19 + $0x940] sm:$0xff] }
  0x8c   : > { %v4339_v12 = vcombine.low %v505_v63, %v509_v0 }
  0x8e   : > { %3391 = vmatpush1.bf16.msra.mxu0 %v4275_v5  ;;  %3555 = vmatpush1.bf16.msra.mxu1 %v4277_v6  ;;  %v4333_v5 = vcombine.low %v498_v57, %v502_v58  ;;  %v4340_v6 = vcombine.high %v505_v63, %v509_v0  ;;  %v566_v63 = vld [vmem:[%s4661_s19 + $0xb28] sm:$0xff] }
  0x8f   : > { %3392 = vmatprep.subr.bf16.mxu0 %v4284_v7  ;;  %3556 = vmatprep.subr.bf16.mxu1 %v4286_v8  ;;  %v4342_v7 = vcombine.high %v506_v2, %v510_v3  ;;  %v513_v8 = vld [vmem:[%s4661_s19 + $0x980] sm:$0xff] }
  0x90   : > { %v4347_v21 = vcombine.low %v513_v8, %v517_v9 }
  0x92   : > { %3393 = vmatpush1.bf16.msra.mxu0 %v4283_v13  ;;  %3557 = vmatpush1.bf16.msra.mxu1 %v4285_v14  ;;  %v4341_v13 = vcombine.low %v506_v2, %v510_v3  ;;  %v4348_v14 = vcombine.high %v513_v8, %v517_v9  ;;  %v574_v8 = vld [vmem:[%s4661_s19 + $0xb68] sm:$0xff] }
  0x93   : > { %3394 = vmatprep.subr.bf16.mxu0 %v4292_v15  ;;  %3558 = vmatprep.subr.bf16.mxu1 %v4294_v16  ;;  %v4350_v15 = vcombine.high %v514_v10, %v518_v11  ;;  %v521_v16 = vld [vmem:[%s4661_s19 + $0x9c0] sm:$0xff] }
  0x94   : > { %v4356_v23 = vcombine.high %v521_v16, %v525_v17  ;;  %v4355_v31 = vcombine.low %v521_v16, %v525_v17  ;;  %v582_v16 = vld [vmem:[%s4661_s19 + $0xba8] sm:$0xff] }
  0x96   : > { %3395 = vmatpush1.bf16.msra.mxu0 %v4291_v22  ;;  %3559 = vmatpush1.bf16.msra.mxu1 %v4293_v24  ;;  %v4349_v22 = vcombine.low %v514_v10, %v518_v11  ;;  %v4358_v24 = vcombine.high %v522_v18, %v526_v19 }
  0x97   : > { %3405 = vmatprep.subr.bf16.mxu0 %v4300_v25  ;;  %3569 = vmatprep.subr.bf16.mxu1 %v4302_v26  ;;  %v529_v25 = vld [vmem:[%s4661_s19 + $0xa00] sm:$0xff] }
  0x98   : > { %v533_v26 = vld [vmem:[%s4661_s19 + $0xa20] sm:$0xff] }
  0x99   : > { %3397 = vmatmul.mubr.bf16.vlgmr.msra.gmra.mrb[0].mxu0 %v4874_v29  ;;  %3561 = vmatmul.mubr.bf16.vlgmr.msra.gmra.mrb[0].mxu1 %v4874_v29  ;;  %v4364_v33 = vcombine.high %v529_v25, %v533_v26  ;;  %v4363_v39 = vcombine.low %v529_v25, %v533_v26  ;;  %v590_v25 = vld [vmem:[%s4661_s19 + $0xbe8] sm:$0xff] }
  0x9a   : > { %3406 = vmatpush1.bf16.msra.mxu0 %v4299_v34  ;;  %3570 = vmatpush1.bf16.msra.mxu1 %v4301_v35  ;;  %v4366_v34 = vcombine.high %v530_v27, %v534_v28  ;;  %v537_v35 = vld [vmem:[%s4661_s19 + $0xa40] sm:$0xff] }
  0x9b   : > { %3407 = vmatprep.subr.bf16.mxu0 %v4308_v36  ;;  %3571 = vmatprep.subr.bf16.mxu1 %v4310_v37  ;;  %v541_v36 = vld [vmem:[%s4661_s19 + $0xa60] sm:$0xff]  ;;  %v538_v37 = vld [vmem:[%s4661_s19 + $0xa48] sm:$0xff] }
  0x9c   : > { %3437 = vmatprep.mubr.bf16.mxu0 %v4883_v40  ;;  %3601 = vmatprep.mubr.bf16.mxu1 %v4883_v40  ;;  %v4372_v42 = vcombine.high %v537_v35, %v541_v36  ;;  %v4371_v48 = vcombine.low %v537_v35, %v541_v36  ;;  %v4373_v49 = vcombine.low %v538_v37, %v542_v38  ;;  %v598_v35 = vld [vmem:[%s4661_s19 + $0xc28] sm:$0xff] }
  0x9e   : > { %3408 = vmatpush1.bf16.msra.mxu0 %v4307_v43  ;;  %3572 = vmatpush1.bf16.msra.mxu1 %v4309_v44  ;;  %v4374_v43 = vcombine.high %v538_v37, %v542_v38  ;;  %v545_v44 = vld [vmem:[%s4661_s19 + $0xa80] sm:$0xff] }
  0x9f   : > { %3409 = vmatprep.subr.bf16.mxu0 %v4316_v45  ;;  %3573 = vmatprep.subr.bf16.mxu1 %v4318_v46  ;;  %v549_v45 = vld [vmem:[%s4661_s19 + $0xaa0] sm:$0xff]  ;;  %v546_v46 = vld [vmem:[%s4661_s19 + $0xa88] sm:$0xff] }
  0xa0   : > { %v4380_v50 = vcombine.high %v545_v44, %v549_v45  ;;  %v4379_v56 = vcombine.low %v545_v44, %v549_v45  ;;  %v4381_v57 = vcombine.low %v546_v46, %v550_v47  ;;  %v197_v37 = vld [vmem:[%s5351_s3 + $0x20] sm:$0xff]  ;;  %v602_v45 = vld [vmem:[%s4661_s19 + $0xc48] sm:$0xff] }
  0xa1   : > { %v4952_v44 = vpack.c.bf16 %v197_v37, %v197_v37 }
  0xa2   : > { %3410 = vmatpush1.bf16.msra.mxu0 %v4315_v51  ;;  %3574 = vmatpush1.bf16.msra.mxu1 %v4317_v52  ;;  %v4382_v51 = vcombine.high %v546_v46, %v550_v47  ;;  %v553_v52 = vld [vmem:[%s4661_s19 + $0xac0] sm:$0xff]  ;;  %v606_v46 = vld [vmem:[%s4661_s19 + $0xc68] sm:$0xff]  ;;  %v200_v47 = vld [vmem:[%s5351_s3 + $0x38] sm:$0xff] }
  0xa3   : > { %3411 = vmatprep.subr.bf16.mxu0 %v4324_v53  ;;  %3575 = vmatprep.subr.bf16.mxu1 %v4326_v54  ;;  %v557_v53 = vld [vmem:[%s4661_s19 + $0xae0] sm:$0xff]  ;;  %v554_v54 = vld [vmem:[%s4661_s19 + $0xac8] sm:$0xff] }
  0xa4   : > { %v4388_v58 = vcombine.high %v553_v52, %v557_v53  ;;  %v4387_v0 = vcombine.low %v553_v52, %v557_v53  ;;  %v4389_v2 = vcombine.low %v554_v54, %v558_v55  ;;  %v609_v52 = vld [vmem:[%s4661_s19 + $0xc80] sm:$0xff] }
  0xa5   : > { %v613_v53 = vld [vmem:[%s4661_s19 + $0xca0] sm:$0xff] }
  0xa6   : > { %3412 = vmatpush1.bf16.msra.mxu0 %v4323_v59  ;;  %3576 = vmatpush1.bf16.msra.mxu1 %v4325_v60  ;;  %v4390_v59 = vcombine.high %v554_v54, %v558_v55  ;;  %v561_v60 = vld [vmem:[%s4661_s19 + $0xb00] sm:$0xff]  ;;  %v4961_v54 = vpack.c.bf16 %v200_v47, %v200_v47  ;;  %v610_v55 = vld [vmem:[%s4661_s19 + $0xc88] sm:$0xff] }
  0xa7   : > { %3413 = vmatprep.subr.bf16.mxu0 %v4332_v61  ;;  %3577 = vmatprep.subr.bf16.mxu1 %v4334_v62  ;;  %v565_v61 = vld [vmem:[%s4661_s19 + $0xb20] sm:$0xff]  ;;  %v562_v62 = vld [vmem:[%s4661_s19 + $0xb08] sm:$0xff] }
  0xa8   : > { %v4396_v3 = vcombine.high %v561_v60, %v565_v61  ;;  %v4395_v9 = vcombine.low %v561_v60, %v565_v61  ;;  %v4397_v10 = vcombine.low %v562_v62, %v566_v63  ;;  %v617_v61 = vld [vmem:[%s4661_s19 + $0xcc0] sm:$0xff] }
  0xaa   : > { %3414 = vmatpush1.bf16.msra.mxu0 %v4331_v4  ;;  %3578 = vmatpush1.bf16.msra.mxu1 %v4333_v5  ;;  %v4398_v4 = vcombine.high %v562_v62, %v566_v63  ;;  %v569_v5 = vld [vmem:[%s4661_s19 + $0xb40] sm:$0xff]  ;;  %v618_v63 = vld [vmem:[%s4661_s19 + $0xcc8] sm:$0xff] }
  0xab   : > { %3415 = vmatprep.subr.bf16.mxu0 %v4340_v6  ;;  %3579 = vmatprep.subr.bf16.mxu1 %v4342_v7  ;;  %v573_v6 = vld [vmem:[%s4661_s19 + $0xb60] sm:$0xff]  ;;  %v570_v7 = vld [vmem:[%s4661_s19 + $0xb48] sm:$0xff] }
  0xac   : > { %v4404_v11 = vcombine.high %v569_v5, %v573_v6  ;;  %v4403_v17 = vcombine.low %v569_v5, %v573_v6  ;;  %v4405_v18 = vcombine.low %v570_v7, %v574_v8  ;;  %v621_v62 = vld [vmem:[%s4661_s19 + $0xce0] sm:$0xff] }
  0xad   : > { %v625_v6 = vld [vmem:[%s4661_s19 + $0xd00] sm:$0xff] }
  0xae   : > { %3416 = vmatpush1.bf16.msra.mxu0 %v4339_v12  ;;  %3580 = vmatpush1.bf16.msra.mxu1 %v4341_v13  ;;  %v4406_v12 = vcombine.high %v570_v7, %v574_v8  ;;  %v577_v13 = vld [vmem:[%s4661_s19 + $0xb80] sm:$0xff]  ;;  %v626_v8 = vld [vmem:[%s4661_s19 + $0xd08] sm:$0xff] }
  0xaf   : > { %3417 = vmatprep.subr.bf16.mxu0 %v4348_v14  ;;  %3581 = vmatprep.subr.bf16.mxu1 %v4350_v15  ;;  %v581_v14 = vld [vmem:[%s4661_s19 + $0xba0] sm:$0xff]  ;;  %v578_v15 = vld [vmem:[%s4661_s19 + $0xb88] sm:$0xff] }
  0xb0   : > { %v4412_v19 = vcombine.high %v577_v13, %v581_v14  ;;  %v4411_v26 = vcombine.low %v577_v13, %v581_v14  ;;  %v4413_v27 = vcombine.low %v578_v15, %v582_v16  ;;  %v629_v7 = vld [vmem:[%s4661_s19 + $0xd20] sm:$0xff] }
  0xb1   : > { %v633_v14 = vld [vmem:[%s4661_s19 + $0xd40] sm:$0xff] }
  0xb2   : > { %3418 = vmatpush1.bf16.msra.mxu0 %v4347_v21  ;;  %3582 = vmatpush1.bf16.msra.mxu1 %v4349_v22  ;;  %v4414_v21 = vcombine.high %v578_v15, %v582_v16  ;;  %v585_v22 = vld [vmem:[%s4661_s19 + $0xbc0] sm:$0xff]  ;;  %v634_v16 = vld [vmem:[%s4661_s19 + $0xd48] sm:$0xff] }
  0xb3   : > { %3419 = vmatprep.subr.bf16.mxu0 %v4356_v23  ;;  %3583 = vmatprep.subr.bf16.mxu1 %v4358_v24  ;;  %v589_v23 = vld [vmem:[%s4661_s19 + $0xbe0] sm:$0xff]  ;;  %v586_v24 = vld [vmem:[%s4661_s19 + $0xbc8] sm:$0xff] }
  0xb4   : > { %v4420_v28 = vcombine.high %v585_v22, %v589_v23  ;;  %v4419_v36 = vcombine.low %v585_v22, %v589_v23  ;;  %v4421_v38 = vcombine.low %v586_v24, %v590_v25  ;;  %v637_v15 = vld [vmem:[%s4661_s19 + $0xd60] sm:$0xff] }
  0xb5   : > { %v641_v23 = vld [vmem:[%s4661_s19 + $0xd80] sm:$0xff] }
  0xb6   : > { %3420 = vmatpush1.bf16.msra.mxu0 %v4355_v31  ;;  %3584 = vmatpush1.bf16.msra.mxu1 %v4357_v32  ;;  %v4422_v31 = vcombine.high %v586_v24, %v590_v25  ;;  %v593_v32 = vld [vmem:[%s4661_s19 + $0xc00] sm:$0xff]  ;;  %v642_v25 = vld [vmem:[%s4661_s19 + $0xd88] sm:$0xff] }
  0xb7   : > { %3421 = vmatprep.subr.bf16.mxu0 %v4364_v33  ;;  %3585 = vmatprep.subr.bf16.mxu1 %v4366_v34  ;;  %v597_v33 = vld [vmem:[%s4661_s19 + $0xc20] sm:$0xff]  ;;  %v594_v34 = vld [vmem:[%s4661_s19 + $0xc08] sm:$0xff] }
  0xb8   : > { %v645_v24 = vld [vmem:[%s4661_s19 + $0xda0] sm:$0xff] }
  0xb9   : > { %v4475_v37 = vcombine.low %v641_v23, %v645_v24 }
  0xba   : > { %3422 = vmatpush1.bf16.msra.mxu0 %v4363_v39  ;;  %3586 = vmatpush1.bf16.msra.mxu1 %v4365_v41  ;;  %v4428_v39 = vcombine.high %v593_v32, %v597_v33  ;;  %v4430_v41 = vcombine.high %v594_v34, %v598_v35 }
  0xbb   : > { %3423 = vmatprep.subr.bf16.mxu0 %v4372_v42  ;;  %3587 = vmatprep.subr.bf16.mxu1 %v4374_v43  ;;  %v601_v42 = vld [vmem:[%s4661_s19 + $0xc40] sm:$0xff] }
  0xbc   : > { %v605_v43 = vld [vmem:[%s4661_s19 + $0xc60] sm:$0xff] }
  0xbe   : > { %3424 = vmatpush1.bf16.msra.mxu0 %v4371_v48  ;;  %3588 = vmatpush1.bf16.msra.mxu1 %v4373_v49  ;;  %v4427_v48 = vcombine.low %v593_v32, %v597_v33  ;;  %v4429_v49 = vcombine.low %v594_v34, %v598_v35  ;;  %v649_v33 = vld [vmem:[%s4661_s19 + $0xdc0] sm:$0xff]  ;;  %v650_v35 = vld [vmem:[%s4661_s19 + $0xdc8] sm:$0xff] }
  0xbf   : > { %3425 = vmatprep.subr.bf16.mxu0 %v4380_v50  ;;  %3589 = vmatprep.subr.bf16.mxu1 %v4382_v51  ;;  %v4436_v50 = vcombine.high %v601_v42, %v605_v43  ;;  %v4438_v51 = vcombine.high %v602_v45, %v606_v46  ;;  %v653_v34 = vld [vmem:[%s4661_s19 + $0xde0] sm:$0xff] }
  0xc0   : > { %v4483_v47 = vcombine.low %v649_v33, %v653_v34 }
  0xc2   : > { %3426 = vmatpush1.bf16.msra.mxu0 %v4379_v56  ;;  %3590 = vmatpush1.bf16.msra.mxu1 %v4381_v57  ;;  %v614_v56 = vld [vmem:[%s4661_s19 + $0xca8] sm:$0xff]  ;;  %v4435_v57 = vcombine.low %v601_v42, %v605_v43  ;;  %v657_v42 = vld [vmem:[%s4661_s19 + $0xe00] sm:$0xff] }
  0xc3   : > { %3427 = vmatprep.subr.bf16.mxu0 %v4388_v58  ;;  %3591 = vmatprep.subr.bf16.mxu1 %v4390_v59  ;;  %v4437_v58 = vcombine.low %v602_v45, %v606_v46  ;;  %v4444_v59 = vcombine.high %v609_v52, %v613_v53  ;;  %v4446_v60 = vcombine.high %v610_v55, %v614_v56  ;;  %v661_v43 = vld [vmem:[%s4661_s19 + $0xe20] sm:$0xff]  ;;  %v658_v45 = vld [vmem:[%s4661_s19 + $0xe08] sm:$0xff] }
  0xc4   : > { %v662_v46 = vld [vmem:[%s4661_s19 + $0xe28] sm:$0xff] }
  0xc6   : > { %3428 = vmatpush1.bf16.msra.mxu0 %v4387_v0  ;;  %3592 = vmatpush1.bf16.msra.mxu1 %v4389_v2  ;;  %v622_v0 = vld [vmem:[%s4661_s19 + $0xce8] sm:$0xff]  ;;  %v4443_v2 = vcombine.low %v609_v52, %v613_v53  ;;  %v669_v52 = vld [vmem:[%s4661_s19 + $0xe60] sm:$0xff] }
  0xc7   : > { %3429 = vmatprep.subr.bf16.mxu0 %v4396_v3  ;;  %3593 = vmatprep.subr.bf16.mxu1 %v4398_v4  ;;  %v4445_v3 = vcombine.low %v610_v55, %v614_v56  ;;  %v4452_v4 = vcombine.high %v617_v61, %v621_v62  ;;  %v4454_v5 = vcombine.high %v618_v63, %v622_v0  ;;  %v666_v53 = vld [vmem:[%s4661_s19 + $0xe48] sm:$0xff] }
  0xc8   : > { %v670_v55 = vld [vmem:[%s4661_s19 + $0xe68] sm:$0xff]  ;;  %v4491_v56 = vcombine.low %v657_v42, %v661_v43 }
  0xca   : > { %3430 = vmatpush1.bf16.msra.mxu0 %v4395_v9  ;;  %3594 = vmatpush1.bf16.msra.mxu1 %v4397_v10  ;;  %v630_v9 = vld [vmem:[%s4661_s19 + $0xd28] sm:$0xff]  ;;  %v4451_v10 = vcombine.low %v617_v61, %v621_v62  ;;  %v677_v61 = vld [vmem:[%s4661_s19 + $0xea0] sm:$0xff] }
  0xcb   : > { %3431 = vmatprep.subr.bf16.mxu0 %v4404_v11  ;;  %3595 = vmatprep.subr.bf16.mxu1 %v4406_v12  ;;  %v4453_v11 = vcombine.low %v618_v63, %v622_v0  ;;  %v4460_v12 = vcombine.high %v625_v6, %v629_v7  ;;  %v4462_v13 = vcombine.high %v626_v8, %v630_v9  ;;  %v674_v62 = vld [vmem:[%s4661_s19 + $0xe88] sm:$0xff] }
  0xcc   : > { %v678_v63 = vld [vmem:[%s4661_s19 + $0xea8] sm:$0xff] }
  0xce   : > { %3432 = vmatpush1.bf16.msra.mxu0 %v4403_v17  ;;  %3596 = vmatpush1.bf16.msra.mxu1 %v4405_v18  ;;  %v638_v17 = vld [vmem:[%s4661_s19 + $0xd68] sm:$0xff]  ;;  %v4459_v18 = vcombine.low %v625_v6, %v629_v7  ;;  %v685_v6 = vld [vmem:[%s4661_s19 + $0xee0] sm:$0xff] }
  0xcf   : > { %3433 = vmatprep.subr.bf16.mxu0 %v4412_v19  ;;  %3597 = vmatprep.subr.bf16.mxu1 %v4414_v21  ;;  %v4461_v19 = vcombine.low %v626_v8, %v630_v9  ;;  %v4468_v21 = vcombine.high %v633_v14, %v637_v15  ;;  %v4470_v22 = vcombine.high %v634_v16, %v638_v17  ;;  %v682_v7 = vld [vmem:[%s4661_s19 + $0xec8] sm:$0xff] }
  0xd0   : > { %v686_v8 = vld [vmem:[%s4661_s19 + $0xee8] sm:$0xff] }
  0xd2   : > { %3434 = vmatpush1.bf16.msra.mxu0 %v4411_v26  ;;  %3598 = vmatpush1.bf16.msra.mxu1 %v4413_v27  ;;  %v646_v26 = vld [vmem:[%s4661_s19 + $0xda8] sm:$0xff]  ;;  %v4467_v27 = vcombine.low %v633_v14, %v637_v15  ;;  %v693_v14 = vld [vmem:[%s4661_s19 + $0xf20] sm:$0xff] }
  0xd3   : > { %3435 = vmatprep.subr.bf16.mxu0 %v4420_v28  ;;  %3599 = vmatprep.subr.bf16.mxu1 %v4422_v31  ;;  %v4469_v28 = vcombine.low %v634_v16, %v638_v17  ;;  %v4476_v31 = vcombine.high %v641_v23, %v645_v24  ;;  %v4478_v32 = vcombine.high %v642_v25, %v646_v26  ;;  %v690_v15 = vld [vmem:[%s4661_s19 + $0xf08] sm:$0xff]  ;;  %v701_v23 = vld [vmem:[%s4661_s19 + $0xf60] sm:$0xff] }
  0xd4   : > { %v694_v16 = vld [vmem:[%s4661_s19 + $0xf28] sm:$0xff] }
  0xd5   : > { %v698_v24 = vld [vmem:[%s4661_s19 + $0xf48] sm:$0xff] }
  0xd6   : > { %3436 = vmatpush1.bf16.msra.mxu0 %v4419_v36  ;;  %3600 = vmatpush1.bf16.msra.mxu1 %v4421_v38  ;;  %v654_v36 = vld [vmem:[%s4661_s19 + $0xde8] sm:$0xff]  ;;  %v4477_v38 = vcombine.low %v642_v25, %v646_v26 }
  0xd7   : > { %3446 = vmatprep.subr.bf16.mxu0 %v4428_v39  ;;  %3610 = vmatprep.subr.bf16.mxu1 %v4430_v41  ;;  %v4484_v39 = vcombine.high %v649_v33, %v653_v34  ;;  %v4486_v41 = vcombine.high %v650_v35, %v654_v36  ;;  %v702_v25 = vld [vmem:[%s4661_s19 + $0xf68] sm:$0xff]  ;;  %v709_v33 = vld [vmem:[%s4661_s19 + $0xfa0] sm:$0xff] }
  0xd8   : > { %v706_v34 = vld [vmem:[%s4661_s19 + $0xf88] sm:$0xff] }
  0xd9   : > { %3438 = vmatmul.mubr.bf16.vlgmr.msra.gmra.mrb[0].mxu0 %v4952_v44  ;;  %3602 = vmatmul.mubr.bf16.vlgmr.msra.gmra.mrb[0].mxu1 %v4952_v44 }
  0xda   : > { %3447 = vmatpush1.bf16.msra.mxu0 %v4427_v48  ;;  %3611 = vmatpush1.bf16.msra.mxu1 %v4429_v49  ;;  %v4485_v48 = vcombine.low %v650_v35, %v654_v36  ;;  %v4492_v49 = vcombine.high %v657_v42, %v661_v43  ;;  %v710_v35 = vld [vmem:[%s4661_s19 + $0xfa8] sm:$0xff]  ;;  %v717_v42 = vld [vmem:[%s4661_s19 + $0xfe0] sm:$0xff] }
  0xdb   : > { %3448 = vmatprep.subr.bf16.mxu0 %v4436_v50  ;;  %3612 = vmatprep.subr.bf16.mxu1 %v4438_v51  ;;  %v4494_v50 = vcombine.high %v658_v45, %v662_v46  ;;  %v665_v51 = vld [vmem:[%s4661_s19 + $0xe40] sm:$0xff]  ;;  %v714_v43 = vld [vmem:[%s4661_s19 + $0xfc8] sm:$0xff] }
  0xdc   : > { %3478 = vmatprep.mubr.bf16.mxu0 %v4961_v54  ;;  %3642 = vmatprep.mubr.bf16.mxu1 %v4961_v54  ;;  %v4499_v0 = vcombine.low %v665_v51, %v669_v52 }
  0xde   : > { %3449 = vmatpush1.bf16.msra.mxu0 %v4435_v57  ;;  %3613 = vmatpush1.bf16.msra.mxu1 %v4437_v58  ;;  %v4493_v57 = vcombine.low %v658_v45, %v662_v46  ;;  %v4500_v58 = vcombine.high %v665_v51, %v669_v52  ;;  %v718_v45 = vld [vmem:[%s4661_s19 + $0xfe8] sm:$0xff]  ;;  %v215_v51 = vld [vmem:[%s4661_s19 + $0x30] sm:$0xff]  ;;  %v212_v52 = vld [vmem:[%s4661_s19 + $0x18] sm:$0xff] }
  0xdf   : > { %3450 = vmatprep.subr.bf16.mxu0 %v4444_v59  ;;  %3614 = vmatprep.subr.bf16.mxu1 %v4446_v60  ;;  %v4502_v59 = vcombine.high %v666_v53, %v670_v55  ;;  %v673_v60 = vld [vmem:[%s4661_s19 + $0xe80] sm:$0xff] }
  0xe0   : > { %v4507_v9 = vcombine.low %v673_v60, %v677_v61 }
  0xe2   : > { %3451 = vmatpush1.bf16.msra.mxu0 %v4443_v2  ;;  %3615 = vmatpush1.bf16.msra.mxu1 %v4445_v3  ;;  %v4501_v2 = vcombine.low %v666_v53, %v670_v55  ;;  %v4508_v3 = vcombine.high %v673_v60, %v677_v61  ;;  %v216_v53 = vld [vmem:[%s4661_s19 + $0x38] sm:$0xff]  ;;  %v219_v60 = vld [vmem:[%s4661_s19 + $0x50] sm:$0xff] }
  0xe3   : > { %3452 = vmatprep.subr.bf16.mxu0 %v4452_v4  ;;  %3616 = vmatprep.subr.bf16.mxu1 %v4454_v5  ;;  %v4510_v4 = vcombine.high %v674_v62, %v678_v63  ;;  %v681_v5 = vld [vmem:[%s4661_s19 + $0xec0] sm:$0xff]  ;;  %v223_v61 = vld [vmem:[%s4661_s19 + $0x70] sm:$0xff] }
  0xe4   : > { %v4515_v17 = vcombine.low %v681_v5, %v685_v6 }
  0xe6   : > { %3453 = vmatpush1.bf16.msra.mxu0 %v4451_v10  ;;  %3617 = vmatpush1.bf16.msra.mxu1 %v4453_v11  ;;  %v4509_v10 = vcombine.low %v674_v62, %v678_v63  ;;  %v4516_v11 = vcombine.high %v681_v5, %v685_v6  ;;  %v220_v63 = vld [vmem:[%s4661_s19 + $0x58] sm:$0xff]  ;;  %v227_v6 = vld [vmem:[%s4661_s19 + $0x90] sm:$0xff] }
  0xe7   : > { %3454 = vmatprep.subr.bf16.mxu0 %v4460_v12  ;;  %3618 = vmatprep.subr.bf16.mxu1 %v4462_v13  ;;  %v4518_v12 = vcombine.high %v682_v7, %v686_v8  ;;  %v689_v13 = vld [vmem:[%s4661_s19 + $0xf00] sm:$0xff] }
  0xe8   : > { %v4523_v26 = vcombine.low %v689_v13, %v693_v14 }
  0xea   : > { %3455 = vmatpush1.bf16.msra.mxu0 %v4459_v18  ;;  %3619 = vmatpush1.bf16.msra.mxu1 %v4461_v19  ;;  %v4517_v18 = vcombine.low %v682_v7, %v686_v8  ;;  %v4524_v19 = vcombine.high %v689_v13, %v693_v14  ;;  %v231_v7 = vld [vmem:[%s4661_s19 + $0xb0] sm:$0xff]  ;;  %v228_v8 = vld [vmem:[%s4661_s19 + $0x98] sm:$0xff] }
  0xeb   : > { %3456 = vmatprep.subr.bf16.mxu0 %v4468_v21  ;;  %3620 = vmatprep.subr.bf16.mxu1 %v4470_v22  ;;  %v4526_v21 = vcombine.high %v690_v15, %v694_v16  ;;  %v697_v22 = vld [vmem:[%s4661_s19 + $0xf40] sm:$0xff]  ;;  %v235_v14 = vld [vmem:[%s4661_s19 + $0xd0] sm:$0xff] }
  0xec   : > { %v4531_v36 = vcombine.low %v697_v22, %v701_v23 }
  0xee   : > { %3457 = vmatpush1.bf16.msra.mxu0 %v4467_v27  ;;  %3621 = vmatpush1.bf16.msra.mxu1 %v4469_v28  ;;  %v4525_v27 = vcombine.low %v690_v15, %v694_v16  ;;  %v4532_v28 = vcombine.high %v697_v22, %v701_v23  ;;  %v239_v15 = vld [vmem:[%s4661_s19 + $0xf0] sm:$0xff]  ;;  %v236_v16 = vld [vmem:[%s4661_s19 + $0xd8] sm:$0xff] }
  0xef   : > { %3458 = vmatprep.subr.bf16.mxu0 %v4476_v31  ;;  %3622 = vmatprep.subr.bf16.mxu1 %v4478_v32  ;;  %v4534_v31 = vcombine.high %v698_v24, %v702_v25  ;;  %v705_v32 = vld [vmem:[%s4661_s19 + $0xf80] sm:$0xff]  ;;  %v243_v23 = vld [vmem:[%s4661_s19 + $0x110] sm:$0xff] }
  0xf0   : > { %v4539_v46 = vcombine.low %v705_v32, %v709_v33 }
  0xf2   : > { %3459 = vmatpush1.bf16.msra.mxu0 %v4475_v37  ;;  %3623 = vmatpush1.bf16.msra.mxu1 %v4477_v38  ;;  %v4533_v37 = vcombine.low %v698_v24, %v702_v25  ;;  %v4540_v38 = vcombine.high %v705_v32, %v709_v33  ;;  %v247_v24 = vld [vmem:[%s4661_s19 + $0x130] sm:$0xff]  ;;  %v244_v25 = vld [vmem:[%s4661_s19 + $0x118] sm:$0xff] }
  0xf3   : > { %3460 = vmatprep.subr.bf16.mxu0 %v4484_v39  ;;  %3624 = vmatprep.subr.bf16.mxu1 %v4486_v41  ;;  %v4542_v39 = vcombine.high %v706_v34, %v710_v35  ;;  %v713_v41 = vld [vmem:[%s4661_s19 + $0xfc0] sm:$0xff]  ;;  %v251_v32 = vld [vmem:[%s4661_s19 + $0x150] sm:$0xff] }
  0xf4   : > { %v4547_v55 = vcombine.low %v713_v41, %v717_v42  ;;  %v255_v33 = vld [vmem:[%s4661_s19 + $0x170] sm:$0xff] }
  0xf6   : > { %3461 = vmatpush1.bf16.msra.mxu0 %v4483_v47  ;;  %3625 = vmatpush1.bf16.msra.mxu1 %v4485_v48  ;;  %v4541_v47 = vcombine.low %v706_v34, %v710_v35  ;;  %v4548_v48 = vcombine.high %v713_v41, %v717_v42  ;;  %v252_v34 = vld [vmem:[%s4661_s19 + $0x158] sm:$0xff]  ;;  %v259_v41 = vld [vmem:[%s4661_s19 + $0x190] sm:$0xff] }
  0xf7   : > { %3462 = vmatprep.subr.bf16.mxu0 %v4492_v49  ;;  %3626 = vmatprep.subr.bf16.mxu1 %v4494_v50  ;;  %v4550_v49 = vcombine.high %v714_v43, %v718_v45  ;;  %v211_v50 = vld [vmem:[%s4661_s19 + $0x10] sm:$0xff]  ;;  %v256_v35 = vld [vmem:[%s4661_s19 + $0x178] sm:$0xff] }
  0xf8   : > { %v263_v42 = vld [vmem:[%s4661_s19 + $0x1b0] sm:$0xff] }
  0xfa   : > { %3463 = vmatpush1.bf16.msra.mxu0 %v4491_v56  ;;  %3627 = vmatpush1.bf16.msra.mxu1 %v4493_v57  ;;  %v199_v56 = vld [vmem:[%s5351_s3 + $0x30] sm:$0xff]  ;;  %v4549_v57 = vcombine.low %v714_v43, %v718_v45  ;;  %v260_v43 = vld [vmem:[%s4661_s19 + $0x198] sm:$0xff] }
  0xfb   : > { %3464 = vmatprep.subr.bf16.mxu0 %v4500_v58  ;;  %3628 = vmatprep.subr.bf16.mxu1 %v4502_v59  ;;  %v4048_v58 = vcombine.high %v211_v50, %v215_v51  ;;  %v4050_v59 = vcombine.high %v212_v52, %v216_v53  ;;  %v5030_v62 = vpack.c.bf16 %v199_v56, %v199_v56  ;;  %v264_v45 = vld [vmem:[%s4661_s19 + $0x1b8] sm:$0xff] }
  0xfc   : > { %v4097_v56 = vcombine.low %v260_v43, %v264_v45 }
  0xfe   : > { %3465 = vmatpush1.bf16.msra.mxu0 %v4499_v0  ;;  %3629 = vmatpush1.bf16.msra.mxu1 %v4501_v2  ;;  %v224_v0 = vld [vmem:[%s4661_s19 + $0x78] sm:$0xff]  ;;  %v4047_v2 = vcombine.low %v211_v50, %v215_v51  ;;  %v267_v50 = vld [vmem:[%s4661_s19 + $0x1d0] sm:$0xff] }
  0xff   : > { %3466 = vmatprep.subr.bf16.mxu0 %v4508_v3  ;;  %3630 = vmatprep.subr.bf16.mxu1 %v4510_v4  ;;  %v4049_v3 = vcombine.low %v212_v52, %v216_v53  ;;  %v4056_v4 = vcombine.high %v219_v60, %v223_v61  ;;  %v4058_v5 = vcombine.high %v220_v63, %v224_v0  ;;  %v271_v51 = vld [vmem:[%s4661_s19 + $0x1f0] sm:$0xff]  ;;  %v268_v52 = vld [vmem:[%s4661_s19 + $0x1d8] sm:$0xff] }
 0x100   : > { %v272_v53 = vld [vmem:[%s4661_s19 + $0x1f8] sm:$0xff] }
 0x102   : > { %3467 = vmatpush1.bf16.msra.mxu0 %v4507_v9  ;;  %3631 = vmatpush1.bf16.msra.mxu1 %v4509_v10  ;;  %v232_v9 = vld [vmem:[%s4661_s19 + $0xb8] sm:$0xff]  ;;  %v4055_v10 = vcombine.low %v219_v60, %v223_v61  ;;  %v279_v60 = vld [vmem:[%s4661_s19 + $0x230] sm:$0xff] }
 0x103   : > { %3468 = vmatprep.subr.bf16.mxu0 %v4516_v11  ;;  %3632 = vmatprep.subr.bf16.mxu1 %v4518_v12  ;;  %v4057_v11 = vcombine.low %v220_v63, %v224_v0  ;;  %v4064_v12 = vcombine.high %v227_v6, %v231_v7  ;;  %v4066_v13 = vcombine.high %v228_v8, %v232_v9  ;;  %v276_v61 = vld [vmem:[%s4661_s19 + $0x218] sm:$0xff] }
 0x104   : > { %v280_v63 = vld [vmem:[%s4661_s19 + $0x238] sm:$0xff]  ;;  %v4103_v0 = vcombine.low %v267_v50, %v271_v51 }
 0x106   : > { %3469 = vmatpush1.bf16.msra.mxu0 %v4515_v17  ;;  %3633 = vmatpush1.bf16.msra.mxu1 %v4517_v18  ;;  %v240_v17 = vld [vmem:[%s4661_s19 + $0xf8] sm:$0xff]  ;;  %v4063_v18 = vcombine.low %v227_v6, %v231_v7  ;;  %v287_v6 = vld [vmem:[%s4661_s19 + $0x270] sm:$0xff] }
 0x107   : > { %3470 = vmatprep.subr.bf16.mxu0 %v4524_v19  ;;  %3634 = vmatprep.subr.bf16.mxu1 %v4526_v21  ;;  %v4065_v19 = vcombine.low %v228_v8, %v232_v9  ;;  %v4072_v21 = vcombine.high %v235_v14, %v239_v15  ;;  %v4074_v22 = vcombine.high %v236_v16, %v240_v17  ;;  %v284_v7 = vld [vmem:[%s4661_s19 + $0x258] sm:$0xff] }
 0x108   : > { %v288_v8 = vld [vmem:[%s4661_s19 + $0x278] sm:$0xff] }
 0x10a   : > { %3471 = vmatpush1.bf16.msra.mxu0 %v4523_v26  ;;  %3635 = vmatpush1.bf16.msra.mxu1 %v4525_v27  ;;  %v248_v26 = vld [vmem:[%s4661_s19 + $0x138] sm:$0xff]  ;;  %v4071_v27 = vcombine.low %v235_v14, %v239_v15  ;;  %v295_v14 = vld [vmem:[%s4661_s19 + $0x2b0] sm:$0xff] }
 0x10b   : > { %3472 = vmatprep.subr.bf16.mxu0 %v4532_v28  ;;  %3636 = vmatprep.subr.bf16.mxu1 %v4534_v31  ;;  %v4080_v28 = vcombine.high %v243_v23, %v247_v24  ;;  %v4082_v31 = vcombine.high %v244_v25, %v248_v26  ;;  %v292_v15 = vld [vmem:[%s4661_s19 + $0x298] sm:$0xff] }
 0x10e   : > { %3473 = vmatpush1.bf16.msra.mxu0 %v4531_v36  ;;  %3637 = vmatpush1.bf16.msra.mxu1 %v4533_v37  ;;  %v4079_v36 = vcombine.low %v243_v23, %v247_v24  ;;  %v4081_v37 = vcombine.low %v244_v25, %v248_v26  ;;  %v303_v23 = vld [vmem:[%s4661_s19 + $0x2f0] sm:$0xff]  ;;  %v300_v24 = vld [vmem:[%s4661_s19 + $0x2d8] sm:$0xff] }
 0x10f   : > { %3474 = vmatprep.subr.bf16.mxu0 %v4540_v38  ;;  %3638 = vmatprep.subr.bf16.mxu1 %v4542_v39  ;;  %v4088_v38 = vcombine.high %v251_v32, %v255_v33  ;;  %v4090_v39 = vcombine.high %v252_v34, %v256_v35  ;;  %v304_v25 = vld [vmem:[%s4661_s19 + $0x2f8] sm:$0xff] }
 0x112   : > { %3475 = vmatpush1.bf16.msra.mxu0 %v4539_v46  ;;  %3639 = vmatpush1.bf16.msra.mxu1 %v4541_v47  ;;  %v4087_v46 = vcombine.low %v251_v32, %v255_v33  ;;  %v4089_v47 = vcombine.low %v252_v34, %v256_v35  ;;  %v311_v32 = vld [vmem:[%s4661_s19 + $0x330] sm:$0xff]  ;;  %v308_v33 = vld [vmem:[%s4661_s19 + $0x318] sm:$0xff] }
 0x113   : > { %3476 = vmatprep.subr.bf16.mxu0 %v4548_v48  ;;  %3640 = vmatprep.subr.bf16.mxu1 %v4550_v49  ;;  %v4096_v48 = vcombine.high %v259_v41, %v263_v42  ;;  %v4098_v49 = vcombine.high %v260_v43, %v264_v45  ;;  %v312_v34 = vld [vmem:[%s4661_s19 + $0x338] sm:$0xff] }
 0x114   : > { %v320_v43 = vld [vmem:[%s4661_s19 + $0x378] sm:$0xff] }
 0x116   : > { %3477 = vmatpush1.bf16.msra.mxu0 %v4547_v55  ;;  %3641 = vmatpush1.bf16.msra.mxu1 %v4549_v57  ;;  %v4095_v55 = vcombine.low %v259_v41, %v263_v42  ;;  %v4104_v57 = vcombine.high %v267_v50, %v271_v51  ;;  %v319_v41 = vld [vmem:[%s4661_s19 + $0x370] sm:$0xff]  ;;  %v316_v42 = vld [vmem:[%s4661_s19 + $0x358] sm:$0xff] }
 0x117   : > { %3651 = vmatprep.subr.bf16.mxu0 %v4048_v58  ;;  %3815 = vmatprep.subr.bf16.mxu1 %v4050_v59  ;;  %v4106_v58 = vcombine.high %v268_v52, %v272_v53  ;;  %v275_v59 = vld [vmem:[%s4661_s19 + $0x210] sm:$0xff]  ;;  %v324_v51 = vld [vmem:[%s4661_s19 + $0x398] sm:$0xff] }
 0x118   : > { %v4111_v9 = vcombine.low %v275_v59, %v279_v60  ;;  %v327_v50 = vld [vmem:[%s4661_s19 + $0x3b0] sm:$0xff] }
 0x119   : > { %3479 = vmatmul.mubr.bf16.vlgmr.msra.gmra.mrb[0].mxu0 %v5030_v62  ;;  %3643 = vmatmul.mubr.bf16.vlgmr.msra.gmra.mrb[0].mxu1 %v5030_v62 }
 0x11a   : > { %3652 = vmatpush1.bf16.msra.mxu0 %v4047_v2  ;;  %3816 = vmatpush1.bf16.msra.mxu1 %v4049_v3  ;;  %v4105_v2 = vcombine.low %v268_v52, %v272_v53  ;;  %v4112_v3 = vcombine.high %v275_v59, %v279_v60  ;;  %v328_v52 = vld [vmem:[%s4661_s19 + $0x3b8] sm:$0xff]  ;;  %v335_v59 = vld [vmem:[%s4661_s19 + $0x3f0] sm:$0xff] }
 0x11b   : > { %3653 = vmatprep.subr.bf16.mxu0 %v4056_v4  ;;  %3817 = vmatprep.subr.bf16.mxu1 %v4058_v5  ;;  %v4114_v4 = vcombine.high %v276_v61, %v280_v63  ;;  %v283_v5 = vld [vmem:[%s4661_s19 + $0x250] sm:$0xff]  ;;  %v332_v60 = vld [vmem:[%s4661_s19 + $0x3d8] sm:$0xff] }
 0x11c   : > { %3683 = vmatprep.mubr.bf16.mxu0 %v4749_v1  ;;  %3847 = vmatprep.mubr.bf16.mxu1 %v4749_v1  ;;  %v4073_v1 = vcombine.low %v236_v16, %v240_v17  ;;  %v296_v16 = vld [vmem:[%s4661_s19 + $0x2b8] sm:$0xff]  ;;  %v4119_v17 = vcombine.low %v283_v5, %v287_v6 }
 0x11e   : > { %3654 = vmatpush1.bf16.msra.mxu0 %v4055_v10  ;;  %3818 = vmatpush1.bf16.msra.mxu1 %v4057_v11  ;;  %v4113_v10 = vcombine.low %v276_v61, %v280_v63  ;;  %v4120_v11 = vcombine.high %v283_v5, %v287_v6  ;;  %v336_v61 = vld [vmem:[%s4661_s19 + $0x3f8] sm:$0xff]  ;;  %v343_v5 = vld [vmem:[%s4661_s19 + $0x430] sm:$0xff] }
 0x11f   : > { %3655 = vmatprep.subr.bf16.mxu0 %v4064_v12  ;;  %3819 = vmatprep.subr.bf16.mxu1 %v4066_v13  ;;  %v4122_v12 = vcombine.high %v284_v7, %v288_v8  ;;  %v291_v13 = vld [vmem:[%s4661_s19 + $0x290] sm:$0xff]  ;;  %v340_v6 = vld [vmem:[%s4661_s19 + $0x418] sm:$0xff] }
 0x120   : > { %v4127_v26 = vcombine.low %v291_v13, %v295_v14 }
 0x122   : > { %3656 = vmatpush1.bf16.msra.mxu0 %v4063_v18  ;;  %3820 = vmatpush1.bf16.msra.mxu1 %v4065_v19  ;;  %v4121_v18 = vcombine.low %v284_v7, %v288_v8  ;;  %v4128_v19 = vcombine.high %v291_v13, %v295_v14  ;;  %v344_v7 = vld [vmem:[%s4661_s19 + $0x438] sm:$0xff]  ;;  %v351_v13 = vld [vmem:[%s4661_s19 + $0x470] sm:$0xff] }
 0x123   : > { %3657 = vmatprep.subr.bf16.mxu0 %v4072_v21  ;;  %3821 = vmatprep.subr.bf16.mxu1 %v4074_v22  ;;  %v4130_v21 = vcombine.high %v292_v15, %v296_v16  ;;  %v299_v22 = vld [vmem:[%s4661_s19 + $0x2d0] sm:$0xff]  ;;  %v348_v14 = vld [vmem:[%s4661_s19 + $0x458] sm:$0xff] }
 0x124   : > { %v4135_v35 = vcombine.low %v299_v22, %v303_v23 }
 0x126   : > { %3658 = vmatpush1.bf16.msra.mxu0 %v4071_v27  ;;  %3822 = vmatpush1.bf16.msra.mxu1 %v4073_v1  ;;  %v4129_v27 = vcombine.low %v292_v15, %v296_v16  ;;  %v4136_v1 = vcombine.high %v299_v22, %v303_v23  ;;  %v352_v15 = vld [vmem:[%s4661_s19 + $0x478] sm:$0xff]  ;;  %v359_v22 = vld [vmem:[%s4661_s19 + $0x4b0] sm:$0xff] }
 0x127   : > { %3659 = vmatprep.subr.bf16.mxu0 %v4080_v28  ;;  %3823 = vmatprep.subr.bf16.mxu1 %v4082_v31  ;;  %v4138_v28 = vcombine.high %v300_v24, %v304_v25  ;;  %v307_v31 = vld [vmem:[%s4661_s19 + $0x310] sm:$0xff]  ;;  %v356_v23 = vld [vmem:[%s4661_s19 + $0x498] sm:$0xff] }
 0x128   : > { %v4143_v45 = vcombine.low %v307_v31, %v311_v32 }
 0x12a   : > { %3660 = vmatpush1.bf16.msra.mxu0 %v4079_v36  ;;  %3824 = vmatpush1.bf16.msra.mxu1 %v4081_v37  ;;  %v4137_v36 = vcombine.low %v300_v24, %v304_v25  ;;  %v4144_v37 = vcombine.high %v307_v31, %v311_v32  ;;  %v360_v24 = vld [vmem:[%s4661_s19 + $0x4b8] sm:$0xff]  ;;  %v367_v31 = vld [vmem:[%s4661_s19 + $0x4f0] sm:$0xff] }
 0x12b   : > { %3661 = vmatprep.subr.bf16.mxu0 %v4088_v38  ;;  %3825 = vmatprep.subr.bf16.mxu1 %v4090_v39  ;;  %v4146_v38 = vcombine.high %v308_v33, %v312_v34  ;;  %v315_v39 = vld [vmem:[%s4661_s19 + $0x350] sm:$0xff]  ;;  %v364_v32 = vld [vmem:[%s4661_s19 + $0x4d8] sm:$0xff] }
 0x12c   : > { %v4151_v53 = vcombine.low %v315_v39, %v319_v41 }
 0x12e   : > { %3662 = vmatpush1.bf16.msra.mxu0 %v4087_v46  ;;  %3826 = vmatpush1.bf16.msra.mxu1 %v4089_v47  ;;  %v4145_v46 = vcombine.low %v308_v33, %v312_v34  ;;  %v4152_v47 = vcombine.high %v315_v39, %v319_v41  ;;  %v368_v33 = vld [vmem:[%s4661_s19 + $0x4f8] sm:$0xff]  ;;  %v4193_v34 = vcombine.low %v356_v23, %v360_v24 }
 0x12f   : > { %3663 = vmatprep.subr.bf16.mxu0 %v4096_v48  ;;  %3827 = vmatprep.subr.bf16.mxu1 %v4098_v49  ;;  %v4154_v48 = vcombine.high %v316_v42, %v320_v43  ;;  %v323_v49 = vld [vmem:[%s4661_s19 + $0x390] sm:$0xff]  ;;  %v372_v39 = vld [vmem:[%s4661_s19 + $0x518] sm:$0xff] }
 0x130   : > { %v4159_v63 = vcombine.low %v323_v49, %v327_v50  ;;  %v376_v41 = vld [vmem:[%s4661_s19 + $0x538] sm:$0xff] }
 0x132   : > { %3664 = vmatpush1.bf16.msra.mxu0 %v4095_v55  ;;  %3828 = vmatpush1.bf16.msra.mxu1 %v4097_v56  ;;  %v4153_v55 = vcombine.low %v316_v42, %v320_v43  ;;  %v4160_v56 = vcombine.high %v323_v49, %v327_v50  ;;  %v384_v49 = vld [vmem:[%s4661_s19 + $0x578] sm:$0xff] }
 0x133   : > { %3665 = vmatprep.subr.bf16.mxu0 %v4104_v57  ;;  %3829 = vmatprep.subr.bf16.mxu1 %v4106_v58  ;;  %v4162_v57 = vcombine.high %v324_v51, %v328_v52  ;;  %v331_v58 = vld [vmem:[%s4661_s19 + $0x3d0] sm:$0xff] }
 0x134   : > { %v4167_v8 = vcombine.low %v331_v58, %v335_v59 }
 0x136   : > { %3666 = vmatpush1.bf16.msra.mxu0 %v4103_v0  ;;  %3830 = vmatpush1.bf16.msra.mxu1 %v4105_v2  ;;  %v4161_v0 = vcombine.low %v324_v51, %v328_v52  ;;  %v4168_v2 = vcombine.high %v331_v58, %v335_v59  ;;  %v4209_v51 = vcombine.low %v372_v39, %v376_v41  ;;  %v392_v58 = vld [vmem:[%s4661_s19 + $0x5b8] sm:$0xff] }
 0x137   : > { %3667 = vmatprep.subr.bf16.mxu0 %v4112_v3  ;;  %3831 = vmatprep.subr.bf16.mxu1 %v4114_v4  ;;  %v4170_v3 = vcombine.high %v332_v60, %v336_v61  ;;  %v339_v4 = vld [vmem:[%s4661_s19 + $0x410] sm:$0xff] }
 0x138   : > { %v4175_v16 = vcombine.low %v339_v4, %v343_v5 }
 0x13a   : > { %3668 = vmatpush1.bf16.msra.mxu0 %v4111_v9  ;;  %3832 = vmatpush1.bf16.msra.mxu1 %v4113_v10  ;;  %v4169_v9 = vcombine.low %v332_v60, %v336_v61  ;;  %v4176_v10 = vcombine.high %v339_v4, %v343_v5  ;;  %v400_v4 = vld [vmem:[%s4661_s19 + $0x5f8] sm:$0xff] }
 0x13b   : > { %3669 = vmatprep.subr.bf16.mxu0 %v4120_v11  ;;  %3833 = vmatprep.subr.bf16.mxu1 %v4122_v12  ;;  %v4178_v11 = vcombine.high %v340_v6, %v344_v7  ;;  %v347_v12 = vld [vmem:[%s4661_s19 + $0x450] sm:$0xff] }
 0x13c   : > { %v4183_v25 = vcombine.low %v347_v12, %v351_v13 }
 0x13e   : > { %3670 = vmatpush1.bf16.msra.mxu0 %v4119_v17  ;;  %3834 = vmatpush1.bf16.msra.mxu1 %v4121_v18  ;;  %v4177_v17 = vcombine.low %v340_v6, %v344_v7  ;;  %v4184_v18 = vcombine.high %v347_v12, %v351_v13  ;;  %v408_v12 = vld [vmem:[%s4661_s19 + $0x638] sm:$0xff] }
 0x13f   : > { %3671 = vmatprep.subr.bf16.mxu0 %v4128_v19  ;;  %3835 = vmatprep.subr.bf16.mxu1 %v4130_v21  ;;  %v4186_v19 = vcombine.high %v348_v14, %v352_v15  ;;  %v355_v21 = vld [vmem:[%s4661_s19 + $0x490] sm:$0xff] }
 0x142   : > { %3672 = vmatpush1.bf16.msra.mxu0 %v4127_v26  ;;  %3836 = vmatpush1.bf16.msra.mxu1 %v4129_v27  ;;  %v4185_v26 = vcombine.low %v348_v14, %v352_v15  ;;  %v4192_v27 = vcombine.high %v355_v21, %v359_v22 }
 0x143   : > { %3673 = vmatprep.subr.bf16.mxu0 %v4136_v1  ;;  %3837 = vmatprep.subr.bf16.mxu1 %v4138_v28  ;;  %v4194_v1 = vcombine.high %v356_v23, %v360_v24  ;;  %v363_v28 = vld [vmem:[%s4661_s19 + $0x4d0] sm:$0xff] }
 0x144   : > { %v4199_v42 = vcombine.low %v363_v28, %v367_v31 }
 0x146   : > { %3674 = vmatpush1.bf16.msra.mxu0 %v4135_v35  ;;  %3838 = vmatpush1.bf16.msra.mxu1 %v4137_v36  ;;  %v4200_v35 = vcombine.high %v363_v28, %v367_v31  ;;  %v4202_v36 = vcombine.high %v364_v32, %v368_v33  ;;  %v424_v28 = vld [vmem:[%s4661_s19 + $0x6b8] sm:$0xff] }
 0x147   : > { %3675 = vmatprep.subr.bf16.mxu0 %v4144_v37  ;;  %3839 = vmatprep.subr.bf16.mxu1 %v4146_v38  ;;  %v371_v37 = vld [vmem:[%s4661_s19 + $0x510] sm:$0xff] }
 0x148   : > { %v375_v38 = vld [vmem:[%s4661_s19 + $0x530] sm:$0xff] }
 0x149   : > { %v4208_v43 = vcombine.high %v371_v37, %v375_v38  ;;  %v4207_v50 = vcombine.low %v371_v37, %v375_v38  ;;  %v432_v37 = vld [vmem:[%s4661_s19 + $0x6f8] sm:$0xff] }
 0x14a   : > { %3676 = vmatpush1.bf16.msra.mxu0 %v4143_v45  ;;  %3840 = vmatpush1.bf16.msra.mxu1 %v4145_v46  ;;  %v4210_v45 = vcombine.high %v372_v39, %v376_v41  ;;  %v379_v46 = vld [vmem:[%s4661_s19 + $0x550] sm:$0xff] }
 0x14b   : > { %3677 = vmatprep.subr.bf16.mxu0 %v4152_v47  ;;  %3841 = vmatprep.subr.bf16.mxu1 %v4154_v48  ;;  %v383_v47 = vld [vmem:[%s4661_s19 + $0x570] sm:$0xff]  ;;  %v380_v48 = vld [vmem:[%s4661_s19 + $0x558] sm:$0xff] }
 0x14c   : > { %v4216_v52 = vcombine.high %v379_v46, %v383_v47  ;;  %v4215_v59 = vcombine.low %v379_v46, %v383_v47  ;;  %v4217_v60 = vcombine.low %v380_v48, %v384_v49  ;;  %v440_v46 = vld [vmem:[%s4661_s19 + $0x738] sm:$0xff] }
 0x14e   : > { %3678 = vmatpush1.bf16.msra.mxu0 %v4151_v53  ;;  %3842 = vmatpush1.bf16.msra.mxu1 %v4153_v55  ;;  %v4218_v53 = vcombine.high %v380_v48, %v384_v49  ;;  %v387_v55 = vld [vmem:[%s4661_s19 + $0x590] sm:$0xff] }
 0x14f   : > { %3679 = vmatprep.subr.bf16.mxu0 %v4160_v56  ;;  %3843 = vmatprep.subr.bf16.mxu1 %v4162_v57  ;;  %v391_v56 = vld [vmem:[%s4661_s19 + $0x5b0] sm:$0xff]  ;;  %v388_v57 = vld [vmem:[%s4661_s19 + $0x598] sm:$0xff] }
 0x150   : > { %v4224_v61 = vcombine.high %v387_v55, %v391_v56  ;;  %v4223_v5 = vcombine.low %v387_v55, %v391_v56  ;;  %v4225_v6 = vcombine.low %v388_v57, %v392_v58  ;;  %v448_v55 = vld [vmem:[%s4661_s19 + $0x778] sm:$0xff] }
 0x152   : > { %3680 = vmatpush1.bf16.msra.mxu0 %v4159_v63  ;;  %3844 = vmatpush1.bf16.msra.mxu1 %v4161_v0  ;;  %v4226_v63 = vcombine.high %v388_v57, %v392_v58  ;;  %v395_v0 = vld [vmem:[%s4661_s19 + $0x5d0] sm:$0xff] }
 0x153   : > { %3681 = vmatprep.subr.bf16.mxu0 %v4168_v2  ;;  %3845 = vmatprep.subr.bf16.mxu1 %v4170_v3  ;;  %v399_v2 = vld [vmem:[%s4661_s19 + $0x5f0] sm:$0xff]  ;;  %v396_v3 = vld [vmem:[%s4661_s19 + $0x5d8] sm:$0xff] }
 0x154   : > { %v4232_v7 = vcombine.high %v395_v0, %v399_v2  ;;  %v4231_v13 = vcombine.low %v395_v0, %v399_v2  ;;  %v4233_v14 = vcombine.low %v396_v3, %v400_v4  ;;  %v456_v0 = vld [vmem:[%s4661_s19 + $0x7b8] sm:$0xff] }
 0x156   : > { %3682 = vmatpush1.bf16.msra.mxu0 %v4167_v8  ;;  %3846 = vmatpush1.bf16.msra.mxu1 %v4169_v9  ;;  %v4234_v8 = vcombine.high %v396_v3, %v400_v4  ;;  %v403_v9 = vld [vmem:[%s4661_s19 + $0x610] sm:$0xff] }
 0x157   : > { %3692 = vmatprep.subr.bf16.mxu0 %v4176_v10  ;;  %3856 = vmatprep.subr.bf16.mxu1 %v4178_v11  ;;  %v407_v10 = vld [vmem:[%s4661_s19 + $0x630] sm:$0xff]  ;;  %v404_v11 = vld [vmem:[%s4661_s19 + $0x618] sm:$0xff] }
 0x158   : > { %v4240_v15 = vcombine.high %v403_v9, %v407_v10  ;;  %v4241_v23 = vcombine.low %v404_v11, %v408_v12 }
 0x159   : > { %3684 = vmatmul.mubr.bf16.vlgmr.msra.gmra.mrb[4].mxu0 %v4796_v20  ;;  %3848 = vmatmul.mubr.bf16.vlgmr.msra.gmra.mrb[4].mxu1 %v4796_v20  ;;  %v4191_v20 = vcombine.low %v355_v21, %v359_v22  ;;  %v416_v21 = vld [vmem:[%s4661_s19 + $0x678] sm:$0xff]  ;;  %v4239_v22 = vcombine.low %v403_v9, %v407_v10 }
 0x15a   : > { %3693 = vmatpush1.bf16.msra.mxu0 %v4175_v16  ;;  %3857 = vmatpush1.bf16.msra.mxu1 %v4177_v17  ;;  %v4242_v16 = vcombine.high %v404_v11, %v408_v12  ;;  %v411_v17 = vld [vmem:[%s4661_s19 + $0x650] sm:$0xff]  ;;  %v464_v9 = vld [vmem:[%s4661_s19 + $0x7f8] sm:$0xff] }
 0x15b   : > { %3694 = vmatprep.subr.bf16.mxu0 %v4184_v18  ;;  %3858 = vmatprep.subr.bf16.mxu1 %v4186_v19  ;;  %v415_v18 = vld [vmem:[%s4661_s19 + $0x670] sm:$0xff]  ;;  %v412_v19 = vld [vmem:[%s4661_s19 + $0x658] sm:$0xff] }
 0x15c   : > { %3724 = vmatprep.mubr.bf16.mxu0 %v4805_v30  ;;  %3888 = vmatprep.mubr.bf16.mxu1 %v4805_v30  ;;  %v4201_v30 = vcombine.low %v364_v32, %v368_v33  ;;  %v4248_v24 = vcombine.high %v411_v17, %v415_v18  ;;  %v4247_v31 = vcombine.low %v411_v17, %v415_v18  ;;  %v472_v17 = vld [vmem:[%s4661_s19 + $0x838] sm:$0xff] }
 0x15d   : > { %v4249_v32 = vcombine.low %v412_v19, %v416_v21 }
 0x15e   : > { %3695 = vmatpush1.bf16.msra.mxu0 %v4183_v25  ;;  %3859 = vmatpush1.bf16.msra.mxu1 %v4185_v26  ;;  %v4250_v25 = vcombine.high %v412_v19, %v416_v21  ;;  %v419_v26 = vld [vmem:[%s4661_s19 + $0x690] sm:$0xff] }
 0x15f   : > { %3696 = vmatprep.subr.bf16.mxu0 %v4192_v27  ;;  %3860 = vmatprep.subr.bf16.mxu1 %v4194_v1  ;;  %v423_v27 = vld [vmem:[%s4661_s19 + $0x6b0] sm:$0xff]  ;;  %v420_v1 = vld [vmem:[%s4661_s19 + $0x698] sm:$0xff] }
 0x160   : > { %v4256_v33 = vcombine.high %v419_v26, %v423_v27  ;;  %v4255_v38 = vcombine.low %v419_v26, %v423_v27  ;;  %v4257_v39 = vcombine.low %v420_v1, %v424_v28  ;;  %v480_v26 = vld [vmem:[%s4661_s19 + $0x878] sm:$0xff] }
 0x162   : > { %3697 = vmatpush1.bf16.msra.mxu0 %v4191_v20  ;;  %3861 = vmatpush1.bf16.msra.mxu1 %v4193_v34  ;;  %v4258_v20 = vcombine.high %v420_v1, %v424_v28  ;;  %v427_v34 = vld [vmem:[%s4661_s19 + $0x6d0] sm:$0xff] }
 0x163   : > { %3698 = vmatprep.subr.bf16.mxu0 %v4200_v35  ;;  %3862 = vmatprep.subr.bf16.mxu1 %v4202_v36  ;;  %v431_v35 = vld [vmem:[%s4661_s19 + $0x6f0] sm:$0xff]  ;;  %v428_v36 = vld [vmem:[%s4661_s19 + $0x6d8] sm:$0xff] }
 0x164   : > { %v4264_v41 = vcombine.high %v427_v34, %v431_v35  ;;  %v4263_v47 = vcombine.low %v427_v34, %v431_v35  ;;  %v4265_v48 = vcombine.low %v428_v36, %v432_v37  ;;  %v488_v34 = vld [vmem:[%s4661_s19 + $0x8b8] sm:$0xff] }
 0x166   : > { %3699 = vmatpush1.bf16.msra.mxu0 %v4199_v42  ;;  %3863 = vmatpush1.bf16.msra.mxu1 %v4201_v30  ;;  %v4266_v42 = vcombine.high %v428_v36, %v432_v37  ;;  %v435_v30 = vld [vmem:[%s4661_s19 + $0x710] sm:$0xff] }
 0x167   : > { %3700 = vmatprep.subr.bf16.mxu0 %v4208_v43  ;;  %3864 = vmatprep.subr.bf16.mxu1 %v4210_v45  ;;  %v439_v43 = vld [vmem:[%s4661_s19 + $0x730] sm:$0xff]  ;;  %v436_v45 = vld [vmem:[%s4661_s19 + $0x718] sm:$0xff] }
 0x168   : > { %v4272_v49 = vcombine.high %v435_v30, %v439_v43  ;;  %v4271_v56 = vcombine.low %v435_v30, %v439_v43  ;;  %v4273_v57 = vcombine.low %v436_v45, %v440_v46  ;;  %v496_v30 = vld [vmem:[%s4661_s19 + $0x8f8] sm:$0xff] }
 0x16a   : > { %3701 = vmatpush1.bf16.msra.mxu0 %v4207_v50  ;;  %3865 = vmatpush1.bf16.msra.mxu1 %v4209_v51  ;;  %v4274_v50 = vcombine.high %v436_v45, %v440_v46  ;;  %v443_v51 = vld [vmem:[%s4661_s19 + $0x750] sm:$0xff] }
 0x16b   : > { %3702 = vmatprep.subr.bf16.mxu0 %v4216_v52  ;;  %3866 = vmatprep.subr.bf16.mxu1 %v4218_v53  ;;  %v447_v52 = vld [vmem:[%s4661_s19 + $0x770] sm:$0xff]  ;;  %v444_v53 = vld [vmem:[%s4661_s19 + $0x758] sm:$0xff] }
 0x16c   : > { %v4280_v58 = vcombine.high %v443_v51, %v447_v52  ;;  %v4279_v2 = vcombine.low %v443_v51, %v447_v52  ;;  %v4281_v3 = vcombine.low %v444_v53, %v448_v55 }
 0x16e   : > { %3703 = vmatpush1.bf16.msra.mxu0 %v4215_v59  ;;  %3867 = vmatpush1.bf16.msra.mxu1 %v4217_v60  ;;  %v4282_v59 = vcombine.high %v444_v53, %v448_v55  ;;  %v451_v60 = vld [vmem:[%s4661_s19 + $0x790] sm:$0xff] }
 0x16f   : > { %3704 = vmatprep.subr.bf16.mxu0 %v4224_v61  ;;  %3868 = vmatprep.subr.bf16.mxu1 %v4226_v63  ;;  %v455_v61 = vld [vmem:[%s4661_s19 + $0x7b0] sm:$0xff]  ;;  %v452_v63 = vld [vmem:[%s4661_s19 + $0x798] sm:$0xff] }
 0x170   : > { %v4288_v4 = vcombine.high %v451_v60, %v455_v61  ;;  %v4287_v10 = vcombine.low %v451_v60, %v455_v61  ;;  %v4289_v11 = vcombine.low %v452_v63, %v456_v0  ;;  %v507_v55 = vld [vmem:[%s4661_s19 + $0x950] sm:$0xff] }
 0x172   : > { %3705 = vmatpush1.bf16.msra.mxu0 %v4223_v5  ;;  %3869 = vmatpush1.bf16.msra.mxu1 %v4225_v6  ;;  %v4290_v5 = vcombine.high %v452_v63, %v456_v0  ;;  %v459_v6 = vld [vmem:[%s4661_s19 + $0x7d0] sm:$0xff] }
 0x173   : > { %3706 = vmatprep.subr.bf16.mxu0 %v4232_v7  ;;  %3870 = vmatprep.subr.bf16.mxu1 %v4234_v8  ;;  %v463_v7 = vld [vmem:[%s4661_s19 + $0x7f0] sm:$0xff]  ;;  %v460_v8 = vld [vmem:[%s4661_s19 + $0x7d8] sm:$0xff] }
 0x174   : > { %v4296_v12 = vcombine.high %v459_v6, %v463_v7  ;;  %v4295_v18 = vcombine.low %v459_v6, %v463_v7  ;;  %v4297_v19 = vcombine.low %v460_v8, %v464_v9  ;;  %v515_v0 = vld [vmem:[%s4661_s19 + $0x990] sm:$0xff] }
 0x176   : > { %3707 = vmatpush1.bf16.msra.mxu0 %v4231_v13  ;;  %3871 = vmatpush1.bf16.msra.mxu1 %v4233_v14  ;;  %v4298_v13 = vcombine.high %v460_v8, %v464_v9  ;;  %v467_v14 = vld [vmem:[%s4661_s19 + $0x810] sm:$0xff] }
 0x177   : > { %3708 = vmatprep.subr.bf16.mxu0 %v4240_v15  ;;  %3872 = vmatprep.subr.bf16.mxu1 %v4242_v16  ;;  %v471_v15 = vld [vmem:[%s4661_s19 + $0x830] sm:$0xff]  ;;  %v468_v16 = vld [vmem:[%s4661_s19 + $0x818] sm:$0xff] }
 0x178   : > { %v4304_v21 = vcombine.high %v467_v14, %v471_v15  ;;  %v4303_v27 = vcombine.low %v467_v14, %v471_v15  ;;  %v4305_v1 = vcombine.low %v468_v16, %v472_v17  ;;  %v523_v9 = vld [vmem:[%s4661_s19 + $0x9d0] sm:$0xff] }
 0x17a   : > { %3709 = vmatpush1.bf16.msra.mxu0 %v4239_v22  ;;  %3873 = vmatpush1.bf16.msra.mxu1 %v4241_v23  ;;  %v4306_v22 = vcombine.high %v468_v16, %v472_v17  ;;  %v475_v23 = vld [vmem:[%s4661_s19 + $0x850] sm:$0xff] }
 0x17b   : > { %3710 = vmatprep.subr.bf16.mxu0 %v4248_v24  ;;  %3874 = vmatprep.subr.bf16.mxu1 %v4250_v25  ;;  %v479_v24 = vld [vmem:[%s4661_s19 + $0x870] sm:$0xff]  ;;  %v476_v25 = vld [vmem:[%s4661_s19 + $0x858] sm:$0xff] }
 0x17c   : > { %v4312_v28 = vcombine.high %v475_v23, %v479_v24  ;;  %v4311_v35 = vcombine.low %v475_v23, %v479_v24  ;;  %v4313_v36 = vcombine.low %v476_v25, %v480_v26  ;;  %v531_v17 = vld [vmem:[%s4661_s19 + $0xa10] sm:$0xff] }
 0x17e   : > { %3711 = vmatpush1.bf16.msra.mxu0 %v4247_v31  ;;  %3875 = vmatpush1.bf16.msra.mxu1 %v4249_v32  ;;  %v4314_v31 = vcombine.high %v476_v25, %v480_v26  ;;  %v483_v32 = vld [vmem:[%s4661_s19 + $0x890] sm:$0xff] }
 0x17f   : > { %3712 = vmatprep.subr.bf16.mxu0 %v4256_v33  ;;  %3876 = vmatprep.subr.bf16.mxu1 %v4258_v20  ;;  %v487_v33 = vld [vmem:[%s4661_s19 + $0x8b0] sm:$0xff]  ;;  %v484_v20 = vld [vmem:[%s4661_s19 + $0x898] sm:$0xff] }
 0x180   : > { %v4320_v37 = vcombine.high %v483_v32, %v487_v33  ;;  %v4321_v43 = vcombine.low %v484_v20, %v488_v34  ;;  %v539_v26 = vld [vmem:[%s4661_s19 + $0xa50] sm:$0xff] }
 0x182   : > { %3713 = vmatpush1.bf16.msra.mxu0 %v4255_v38  ;;  %3877 = vmatpush1.bf16.msra.mxu1 %v4257_v39  ;;  %v4322_v38 = vcombine.high %v484_v20, %v488_v34  ;;  %v491_v39 = vld [vmem:[%s4661_s19 + $0x8d0] sm:$0xff] }
 0x183   : > { %3714 = vmatprep.subr.bf16.mxu0 %v4264_v41  ;;  %3878 = vmatprep.subr.bf16.mxu1 %v4266_v42  ;;  %v495_v41 = vld [vmem:[%s4661_s19 + $0x8f0] sm:$0xff]  ;;  %v492_v42 = vld [vmem:[%s4661_s19 + $0x8d8] sm:$0xff] }
 0x184   : > { %v4328_v45 = vcombine.high %v491_v39, %v495_v41  ;;  %v4330_v46 = vcombine.high %v492_v42, %v496_v30  ;;  %v4327_v51 = vcombine.low %v491_v39, %v495_v41  ;;  %v547_v34 = vld [vmem:[%s4661_s19 + $0xa90] sm:$0xff] }
 0x186   : > { %3715 = vmatpush1.bf16.msra.mxu0 %v4263_v47  ;;  %3879 = vmatpush1.bf16.msra.mxu1 %v4265_v48  ;;  %v499_v47 = vld [vmem:[%s4661_s19 + $0x910] sm:$0xff] }
 0x187   : > { %3716 = vmatprep.subr.bf16.mxu0 %v4272_v49  ;;  %3880 = vmatprep.subr.bf16.mxu1 %v4274_v50  ;;  %v503_v48 = vld [vmem:[%s4661_s19 + $0x930] sm:$0xff]  ;;  %v500_v49 = vld [vmem:[%s4661_s19 + $0x918] sm:$0xff] }
 0x188   : > { %v504_v50 = vld [vmem:[%s4661_s19 + $0x938] sm:$0xff]  ;;  %v4336_v52 = vcombine.high %v499_v47, %v503_v48 }
 0x189   : > { %v4338_v53 = vcombine.high %v500_v49, %v504_v50  ;;  %v4337_v60 = vcombine.low %v500_v49, %v504_v50  ;;  %v563_v50 = vld [vmem:[%s4661_s19 + $0xb10] sm:$0xff] }
 0x18a   : > { %3717 = vmatpush1.bf16.msra.mxu0 %v4271_v56  ;;  %3881 = vmatpush1.bf16.msra.mxu1 %v4273_v57  ;;  %v511_v56 = vld [vmem:[%s4661_s19 + $0x970] sm:$0xff]  ;;  %v508_v57 = vld [vmem:[%s4661_s19 + $0x958] sm:$0xff] }
 0x18b   : > { %3718 = vmatprep.subr.bf16.mxu0 %v4280_v58  ;;  %3882 = vmatprep.subr.bf16.mxu1 %v4282_v59  ;;  %v512_v58 = vld [vmem:[%s4661_s19 + $0x978] sm:$0xff]  ;;  %v4335_v59 = vcombine.low %v499_v47, %v503_v48  ;;  %v4344_v61 = vcombine.high %v507_v55, %v511_v56 }
 0x18c   : > { %v4346_v63 = vcombine.high %v508_v57, %v512_v58  ;;  %v4345_v6 = vcombine.low %v508_v57, %v512_v58  ;;  %v571_v58 = vld [vmem:[%s4661_s19 + $0xb50] sm:$0xff] }
 0x18e   : > { %3719 = vmatpush1.bf16.msra.mxu0 %v4279_v2  ;;  %3883 = vmatpush1.bf16.msra.mxu1 %v4281_v3  ;;  %v519_v2 = vld [vmem:[%s4661_s19 + $0x9b0] sm:$0xff]  ;;  %v516_v3 = vld [vmem:[%s4661_s19 + $0x998] sm:$0xff] }
 0x18f   : > { %3720 = vmatprep.subr.bf16.mxu0 %v4288_v4  ;;  %3884 = vmatprep.subr.bf16.mxu1 %v4290_v5  ;;  %v520_v4 = vld [vmem:[%s4661_s19 + $0x9b8] sm:$0xff]  ;;  %v4343_v5 = vcombine.low %v507_v55, %v511_v56  ;;  %v4352_v7 = vcombine.high %v515_v0, %v519_v2 }
 0x190   : > { %v4354_v8 = vcombine.high %v516_v3, %v520_v4  ;;  %v4353_v14 = vcombine.low %v516_v3, %v520_v4  ;;  %v579_v4 = vld [vmem:[%s4661_s19 + $0xb90] sm:$0xff] }
 0x192   : > { %3721 = vmatpush1.bf16.msra.mxu0 %v4287_v10  ;;  %3885 = vmatpush1.bf16.msra.mxu1 %v4289_v11  ;;  %v527_v10 = vld [vmem:[%s4661_s19 + $0x9f0] sm:$0xff]  ;;  %v524_v11 = vld [vmem:[%s4661_s19 + $0x9d8] sm:$0xff] }
 0x193   : > { %3722 = vmatprep.subr.bf16.mxu0 %v4296_v12  ;;  %3886 = vmatprep.subr.bf16.mxu1 %v4298_v13  ;;  %v528_v12 = vld [vmem:[%s4661_s19 + $0x9f8] sm:$0xff]  ;;  %v4351_v13 = vcombine.low %v515_v0, %v519_v2  ;;  %v4360_v15 = vcombine.high %v523_v9, %v527_v10 }
 0x194   : > { %v4362_v16 = vcombine.high %v524_v11, %v528_v12  ;;  %v4361_v23 = vcombine.low %v524_v11, %v528_v12  ;;  %v587_v12 = vld [vmem:[%s4661_s19 + $0xbd0] sm:$0xff] }
 0x196   : > { %3723 = vmatpush1.bf16.msra.mxu0 %v4295_v18  ;;  %3887 = vmatpush1.bf16.msra.mxu1 %v4297_v19  ;;  %v535_v18 = vld [vmem:[%s4661_s19 + $0xa30] sm:$0xff]  ;;  %v532_v19 = vld [vmem:[%s4661_s19 + $0xa18] sm:$0xff] }
 0x197   : > { %3733 = vmatprep.subr.bf16.mxu0 %v4304_v21  ;;  %3897 = vmatprep.subr.bf16.mxu1 %v4306_v22  ;;  %v536_v21 = vld [vmem:[%s4661_s19 + $0xa38] sm:$0xff]  ;;  %v4359_v22 = vcombine.low %v523_v9, %v527_v10  ;;  %v4368_v24 = vcombine.high %v531_v17, %v535_v18 }
 0x198   : > { %v4370_v25 = vcombine.high %v532_v19, %v536_v21 }
 0x199   : > { %3725 = vmatmul.mubr.bf16.vlgmr.msra.gmra.mrb[4].mxu0 %v4874_v29  ;;  %3889 = vmatmul.mubr.bf16.vlgmr.msra.gmra.mrb[4].mxu1 %v4874_v29  ;;  %v4319_v29 = vcombine.low %v483_v32, %v487_v33  ;;  %v4369_v32 = vcombine.low %v532_v19, %v536_v21  ;;  %v595_v21 = vld [vmem:[%s4661_s19 + $0xc10] sm:$0xff] }
 0x19a   : > { %3734 = vmatpush1.bf16.msra.mxu0 %v4303_v27  ;;  %3898 = vmatpush1.bf16.msra.mxu1 %v4305_v1  ;;  %v543_v27 = vld [vmem:[%s4661_s19 + $0xa70] sm:$0xff]  ;;  %v540_v1 = vld [vmem:[%s4661_s19 + $0xa58] sm:$0xff] }
 0x19b   : > { %3735 = vmatprep.subr.bf16.mxu0 %v4312_v28  ;;  %3899 = vmatprep.subr.bf16.mxu1 %v4314_v31  ;;  %v544_v28 = vld [vmem:[%s4661_s19 + $0xa78] sm:$0xff]  ;;  %v4367_v31 = vcombine.low %v531_v17, %v535_v18  ;;  %v4376_v33 = vcombine.high %v539_v26, %v543_v27 }
 0x19c   : > { %3765 = vmatprep.mubr.bf16.mxu0 %v4883_v40  ;;  %3929 = vmatprep.mubr.bf16.mxu1 %v4883_v40  ;;  %v4329_v40 = vcombine.low %v492_v42, %v496_v30  ;;  %v4378_v20 = vcombine.high %v540_v1, %v544_v28  ;;  %v4377_v39 = vcombine.low %v540_v1, %v544_v28  ;;  %v555_v30 = vld [vmem:[%s4661_s19 + $0xad0] sm:$0xff] }
 0x19d   : > { %v603_v28 = vld [vmem:[%s4661_s19 + $0xc50] sm:$0xff] }
 0x19e   : > { %3736 = vmatpush1.bf16.msra.mxu0 %v4311_v35  ;;  %3900 = vmatpush1.bf16.msra.mxu1 %v4313_v36  ;;  %v551_v35 = vld [vmem:[%s4661_s19 + $0xab0] sm:$0xff]  ;;  %v548_v36 = vld [vmem:[%s4661_s19 + $0xa98] sm:$0xff] }
 0x19f   : > { %3737 = vmatprep.subr.bf16.mxu0 %v4320_v37  ;;  %3901 = vmatprep.subr.bf16.mxu1 %v4322_v38  ;;  %v552_v37 = vld [vmem:[%s4661_s19 + $0xab8] sm:$0xff]  ;;  %v4375_v38 = vcombine.low %v539_v26, %v543_v27  ;;  %v4384_v41 = vcombine.high %v547_v34, %v551_v35 }
 0x1a0   : > { %v4386_v42 = vcombine.high %v548_v36, %v552_v37  ;;  %v4385_v47 = vcombine.low %v548_v36, %v552_v37  ;;  %v611_v37 = vld [vmem:[%s4661_s19 + $0xc90] sm:$0xff] }
 0x1a2   : > { %3738 = vmatpush1.bf16.msra.mxu0 %v4319_v29  ;;  %3902 = vmatpush1.bf16.msra.mxu1 %v4321_v43  ;;  %v559_v29 = vld [vmem:[%s4661_s19 + $0xaf0] sm:$0xff]  ;;  %v556_v43 = vld [vmem:[%s4661_s19 + $0xad8] sm:$0xff] }
 0x1a3   : > { %3739 = vmatprep.subr.bf16.mxu0 %v4328_v45  ;;  %3903 = vmatprep.subr.bf16.mxu1 %v4330_v46  ;;  %v560_v45 = vld [vmem:[%s4661_s19 + $0xaf8] sm:$0xff]  ;;  %v4383_v46 = vcombine.low %v547_v34, %v551_v35  ;;  %v4392_v48 = vcombine.high %v555_v30, %v559_v29 }
 0x1a4   : > { %v4394_v49 = vcombine.high %v556_v43, %v560_v45  ;;  %v4393_v55 = vcombine.low %v556_v43, %v560_v45  ;;  %v619_v45 = vld [vmem:[%s4661_s19 + $0xcd0] sm:$0xff] }
 0x1a6   : > { %3740 = vmatpush1.bf16.msra.mxu0 %v4327_v51  ;;  %3904 = vmatpush1.bf16.msra.mxu1 %v4329_v40  ;;  %v567_v51 = vld [vmem:[%s4661_s19 + $0xb30] sm:$0xff]  ;;  %v564_v40 = vld [vmem:[%s4661_s19 + $0xb18] sm:$0xff] }
 0x1a7   : > { %3741 = vmatprep.subr.bf16.mxu0 %v4336_v52  ;;  %3905 = vmatprep.subr.bf16.mxu1 %v4338_v53  ;;  %v568_v52 = vld [vmem:[%s4661_s19 + $0xb38] sm:$0xff]  ;;  %v4391_v53 = vcombine.low %v555_v30, %v559_v29  ;;  %v4400_v56 = vcombine.high %v563_v50, %v567_v51 }
 0x1a8   : > { %v4402_v57 = vcombine.high %v564_v40, %v568_v52  ;;  %v4401_v0 = vcombine.low %v564_v40, %v568_v52  ;;  %v627_v52 = vld [vmem:[%s4661_s19 + $0xd10] sm:$0xff] }
 0x1aa   : > { %3742 = vmatpush1.bf16.msra.mxu0 %v4335_v59  ;;  %3906 = vmatpush1.bf16.msra.mxu1 %v4337_v60  ;;  %v575_v59 = vld [vmem:[%s4661_s19 + $0xb70] sm:$0xff]  ;;  %v572_v60 = vld [vmem:[%s4661_s19 + $0xb58] sm:$0xff] }
 0x1ab   : > { %3743 = vmatprep.subr.bf16.mxu0 %v4344_v61  ;;  %3907 = vmatprep.subr.bf16.mxu1 %v4346_v63  ;;  %v576_v61 = vld [vmem:[%s4661_s19 + $0xb78] sm:$0xff]  ;;  %v4399_v63 = vcombine.low %v563_v50, %v567_v51  ;;  %v4408_v2 = vcombine.high %v571_v58, %v575_v59 }
 0x1ac   : > { %v4410_v3 = vcombine.high %v572_v60, %v576_v61  ;;  %v4409_v9 = vcombine.low %v572_v60, %v576_v61  ;;  %v635_v61 = vld [vmem:[%s4661_s19 + $0xd50] sm:$0xff] }
 0x1ae   : > { %3744 = vmatpush1.bf16.msra.mxu0 %v4343_v5  ;;  %3908 = vmatpush1.bf16.msra.mxu1 %v4345_v6  ;;  %v583_v5 = vld [vmem:[%s4661_s19 + $0xbb0] sm:$0xff]  ;;  %v580_v6 = vld [vmem:[%s4661_s19 + $0xb98] sm:$0xff] }
 0x1af   : > { %3745 = vmatprep.subr.bf16.mxu0 %v4352_v7  ;;  %3909 = vmatprep.subr.bf16.mxu1 %v4354_v8  ;;  %v584_v7 = vld [vmem:[%s4661_s19 + $0xbb8] sm:$0xff]  ;;  %v4407_v8 = vcombine.low %v571_v58, %v575_v59  ;;  %v4416_v10 = vcombine.high %v579_v4, %v583_v5 }
 0x1b0   : > { %v4418_v11 = vcombine.high %v580_v6, %v584_v7  ;;  %v4417_v17 = vcombine.low %v580_v6, %v584_v7 }
 0x1b2   : > { %3746 = vmatpush1.bf16.msra.mxu0 %v4351_v13  ;;  %3910 = vmatpush1.bf16.msra.mxu1 %v4353_v14  ;;  %v591_v13 = vld [vmem:[%s4661_s19 + $0xbf0] sm:$0xff]  ;;  %v588_v14 = vld [vmem:[%s4661_s19 + $0xbd8] sm:$0xff] }
 0x1b3   : > { %3747 = vmatprep.subr.bf16.mxu0 %v4360_v15  ;;  %3911 = vmatprep.subr.bf16.mxu1 %v4362_v16  ;;  %v592_v15 = vld [vmem:[%s4661_s19 + $0xbf8] sm:$0xff]  ;;  %v4415_v16 = vcombine.low %v579_v4, %v583_v5  ;;  %v4424_v18 = vcombine.high %v587_v12, %v591_v13  ;;  %v5262_v5 = vld [vmem:[%s4666_s22] sm:$0xff] }
 0x1b4   : > { %v4426_v19 = vcombine.high %v588_v14, %v592_v15  ;;  %v4425_v26 = vcombine.low %v588_v14, %v592_v15  ;;  %v644_v15 = vld [vmem:[%s4661_s19 + $0xd98] sm:$0xff] }
 0x1b6   : > { %3748 = vmatpush1.bf16.msra.mxu0 %v4359_v22  ;;  %3912 = vmatpush1.bf16.msra.mxu1 %v4361_v23  ;;  %v599_v22 = vld [vmem:[%s4661_s19 + $0xc30] sm:$0xff]  ;;  %v596_v23 = vld [vmem:[%s4661_s19 + $0xc18] sm:$0xff] }
 0x1b7   : > { %3749 = vmatprep.subr.bf16.mxu0 %v4368_v24  ;;  %3913 = vmatprep.subr.bf16.mxu1 %v4370_v25  ;;  %v600_v24 = vld [vmem:[%s4661_s19 + $0xc38] sm:$0xff]  ;;  %v4423_v25 = vcombine.low %v587_v12, %v591_v13  ;;  %v4432_v27 = vcombine.high %v595_v21, %v599_v22  ;;  %v643_v12 = vld [vmem:[%s4661_s19 + $0xd90] sm:$0xff] }
 0x1b8   : > { %v4434_v1 = vcombine.high %v596_v23, %v600_v24  ;;  %v4433_v34 = vcombine.low %v596_v23, %v600_v24  ;;  %v647_v13 = vld [vmem:[%s4661_s19 + $0xdb0] sm:$0xff] }
 0x1b9   : > { %v4480_v23 = vcombine.high %v643_v12, %v647_v13 }
 0x1ba   : > { %3750 = vmatpush1.bf16.msra.mxu0 %v4367_v31  ;;  %3914 = vmatpush1.bf16.msra.mxu1 %v4369_v32  ;;  %v607_v31 = vld [vmem:[%s4661_s19 + $0xc70] sm:$0xff]  ;;  %v604_v32 = vld [vmem:[%s4661_s19 + $0xc58] sm:$0xff] }
 0x1bb   : > { %3751 = vmatprep.subr.bf16.mxu0 %v4376_v33  ;;  %3915 = vmatprep.subr.bf16.mxu1 %v4378_v20  ;;  %v608_v33 = vld [vmem:[%s4661_s19 + $0xc78] sm:$0xff]  ;;  %v4431_v20 = vcombine.low %v595_v21, %v599_v22  ;;  %v4440_v35 = vcombine.high %v603_v28, %v607_v31 }
 0x1bc   : > { %v4442_v36 = vcombine.high %v604_v32, %v608_v33  ;;  %v4441_v30 = vcombine.low %v604_v32, %v608_v33  ;;  %v652_v32 = vld [vmem:[%s4661_s19 + $0xdd8] sm:$0xff] }
 0x1bd   : > { %v656_v33 = vld [vmem:[%s4661_s19 + $0xdf8] sm:$0xff] }
 0x1be   : > { %3752 = vmatpush1.bf16.msra.mxu0 %v4375_v38  ;;  %3916 = vmatpush1.bf16.msra.mxu1 %v4377_v39  ;;  %v615_v38 = vld [vmem:[%s4661_s19 + $0xcb0] sm:$0xff]  ;;  %v612_v39 = vld [vmem:[%s4661_s19 + $0xc98] sm:$0xff] }
 0x1bf   : > { %3753 = vmatprep.subr.bf16.mxu0 %v4384_v41  ;;  %3917 = vmatprep.subr.bf16.mxu1 %v4386_v42  ;;  %v616_v41 = vld [vmem:[%s4661_s19 + $0xcb8] sm:$0xff]  ;;  %v4439_v42 = vcombine.low %v603_v28, %v607_v31  ;;  %v4448_v29 = vcombine.high %v611_v37, %v615_v38 }
 0x1c0   : > { %v4450_v43 = vcombine.high %v612_v39, %v616_v41  ;;  %v4449_v50 = vcombine.low %v612_v39, %v616_v41 }
 0x1c2   : > { %3754 = vmatpush1.bf16.msra.mxu0 %v4383_v46  ;;  %3918 = vmatpush1.bf16.msra.mxu1 %v4385_v47  ;;  %v623_v46 = vld [vmem:[%s4661_s19 + $0xcf0] sm:$0xff]  ;;  %v620_v47 = vld [vmem:[%s4661_s19 + $0xcd8] sm:$0xff] }
 0x1c3   : > { %3755 = vmatprep.subr.bf16.mxu0 %v4392_v48  ;;  %3919 = vmatprep.subr.bf16.mxu1 %v4394_v49  ;;  %v624_v48 = vld [vmem:[%s4661_s19 + $0xcf8] sm:$0xff]  ;;  %v723_v49 = vlaneseq  ;;  %v4456_v51 = vcombine.high %v619_v45, %v623_v46 }
 0x1c4   : > { %v4458_v40 = vcombine.high %v620_v47, %v624_v48  ;;  %v4457_v58 = vcombine.low %v620_v47, %v624_v48  ;;  %v4490_v47 = vcombine.high %v652_v32, %v656_v33  ;;  %v659_v48 = vld [vmem:[%s4661_s19 + $0xe10] sm:$0xff] }
 0x1c6   : > { %3756 = vmatpush1.bf16.msra.mxu0 %v4391_v53  ;;  %3920 = vmatpush1.bf16.msra.mxu1 %v4393_v55  ;;  %v631_v53 = vld [vmem:[%s4661_s19 + $0xd30] sm:$0xff]  ;;  %v628_v55 = vld [vmem:[%s4661_s19 + $0xd18] sm:$0xff] }
 0x1c7   : > { %3757 = vmatprep.subr.bf16.mxu0 %v4400_v56  ;;  %3921 = vmatprep.subr.bf16.mxu1 %v4402_v57  ;;  %v632_v56 = vld [vmem:[%s4661_s19 + $0xd38] sm:$0xff]  ;;  %v5254_v57 = vshrl.u32 %v723_v49, 7  ;;  %v4464_v59 = vcombine.high %v627_v52, %v631_v53  ;;  %v4463_v4 = vcombine.low %v627_v52, %v631_v53  ;;  %v663_v49 = vld [vmem:[%s4661_s19 + $0xe30] sm:$0xff]  ;;  %v4489_v52 = vcombine.low %v652_v32, %v656_v33 }
 0x1c8   : > { %v4466_v60 = vcombine.high %v628_v55, %v632_v56  ;;  %v4496_v53 = vcombine.high %v659_v48, %v663_v49  ;;  %v704_v32 = vld [vmem:[%s4661_s19 + $0xf78] sm:$0xff] }
 0x1c9   : > { %v733_v6 = vsub.s32 2, %v5254_v57  ;;  %v729_v7 = vsub.s32 1, %v5254_v57 }
 0x1ca   : > { %3758 = vmatpush1.bf16.msra.mxu0 %v4399_v63  ;;  %3922 = vmatpush1.bf16.msra.mxu1 %v4401_v0  ;;  %v639_v63 = vld [vmem:[%s4661_s19 + $0xd70] sm:$0xff]  ;;  %v725_v0 = vsub.s32 0, %v5254_v57 }
 0x1cb   : > { %3759 = vmatprep.subr.bf16.mxu0 %v4408_v2  ;;  %3923 = vmatprep.subr.bf16.mxu1 %v4410_v3  ;;  %v636_v2 = vld [vmem:[%s4661_s19 + $0xd58] sm:$0xff] }
 0x1cc   : > { %v640_v3 = vld [vmem:[%s4661_s19 + $0xd78] sm:$0xff]  ;;  %v726_v14 = vrot.slane %v5262_v5, %v725_v0 }
 0x1cd   : > { %v4473_v22 = vcombine.low %v636_v2, %v640_v3 }
 0x1ce   : > { %3760 = vmatpush1.bf16.msra.mxu0 %v4407_v8  ;;  %3924 = vmatpush1.bf16.msra.mxu1 %v4409_v9  ;;  %v4465_v8 = vcombine.low %v628_v55, %v632_v56  ;;  %v737_v9 = vsub.s32 3, %v5254_v57  ;;  %v667_v56 = vld [vmem:[%s4661_s19 + $0xe50] sm:$0xff] }
 0x1cf   : > { %3761 = vmatprep.subr.bf16.mxu0 %v4416_v10  ;;  %3925 = vmatprep.subr.bf16.mxu1 %v4418_v11  ;;  %v4472_v10 = vcombine.high %v635_v61, %v639_v63  ;;  %v4474_v11 = vcombine.high %v636_v2, %v640_v3  ;;  %v675_v2 = vld [vmem:[%s4661_s19 + $0xe90] sm:$0xff] }
 0x1d0   : > { %v738_v21 = vrot.slane %v5262_v5, %v737_v9  ;;  %v679_v3 = vld [vmem:[%s4661_s19 + $0xeb0] sm:$0xff] }
 0x1d1   : > { %v4512_v9 = vcombine.high %v675_v2, %v679_v3 }
 0x1d2   : > { %3762 = vmatpush1.bf16.msra.mxu0 %v4415_v16  ;;  %3926 = vmatpush1.bf16.msra.mxu1 %v4417_v17  ;;  %v648_v16 = vld [vmem:[%s4661_s19 + $0xdb8] sm:$0xff]  ;;  %v734_v17 = vrot.slane %v5262_v5, %v733_v6 }
 0x1d3   : > { %3763 = vmatprep.subr.bf16.mxu0 %v4424_v18  ;;  %3927 = vmatprep.subr.bf16.mxu1 %v4426_v19  ;;  %v730_v18 = vrot.slane %v5262_v5, %v729_v7  ;;  %v4471_v19 = vcombine.low %v635_v61, %v639_v63  ;;  %v680_v6 = vld [vmem:[%s4661_s19 + $0xeb8] sm:$0xff] }
 0x1d6   : > { %3764 = vmatpush1.bf16.msra.mxu0 %v4423_v25  ;;  %3928 = vmatpush1.bf16.msra.mxu1 %v4425_v26  ;;  %v4482_v25 = vcombine.high %v644_v15, %v648_v16  ;;  %v651_v26 = vld [vmem:[%s4661_s19 + $0xdd0] sm:$0xff] }
 0x1d7   : > { %3774 = vmatprep.subr.bf16.mxu0 %v4432_v27  ;;  %3938 = vmatprep.subr.bf16.mxu1 %v4434_v1  ;;  %v655_v27 = vld [vmem:[%s4661_s19 + $0xdf0] sm:$0xff] }
 0x1d9   : > { %3766 = vmatmul.mubr.bf16.vlgmr.msra.gmra.mrb[4].mxu0 %v4952_v44  ;;  %3930 = vmatmul.mubr.bf16.vlgmr.msra.gmra.mrb[4].mxu1 %v4952_v44  ;;  %v4447_v44 = vcombine.low %v611_v37, %v615_v38  ;;  %v4479_v37 = vcombine.low %v643_v12, %v647_v13  ;;  %v687_v12 = vld [vmem:[%s4661_s19 + $0xef0] sm:$0xff]  ;;  %v684_v13 = vld [vmem:[%s4661_s19 + $0xed8] sm:$0xff] }
 0x1da   : > { %3775 = vmatpush1.bf16.msra.mxu0 %v4431_v20  ;;  %3939 = vmatpush1.bf16.msra.mxu1 %v4433_v34 }
 0x1db   : > { %3776 = vmatprep.subr.bf16.mxu0 %v4440_v35  ;;  %3940 = vmatprep.subr.bf16.mxu1 %v4442_v36 }
 0x1dc   : > { %3806 = vmatprep.mubr.bf16.mxu0 %v4961_v54  ;;  %3970 = vmatprep.mubr.bf16.mxu1 %v4961_v54  ;;  %v4455_v54 = vcombine.low %v619_v45, %v623_v46 }
 0x1de   : > { %3777 = vmatpush1.bf16.msra.mxu0 %v4439_v42  ;;  %3941 = vmatpush1.bf16.msra.mxu1 %v4441_v30  ;;  %v4481_v30 = vcombine.low %v644_v15, %v648_v16  ;;  %v4511_v15 = vcombine.low %v675_v2, %v679_v3 }
 0x1df   : > { %3778 = vmatprep.subr.bf16.mxu0 %v4448_v29  ;;  %3942 = vmatprep.subr.bf16.mxu1 %v4450_v43  ;;  %v4488_v29 = vcombine.high %v651_v26, %v655_v27 }
 0x1e2   : > { %3779 = vmatpush1.bf16.msra.mxu0 %v4447_v44  ;;  %3943 = vmatpush1.bf16.msra.mxu1 %v4449_v50  ;;  %v660_v50 = vld [vmem:[%s4661_s19 + $0xe18] sm:$0xff] }
 0x1e3   : > { %3780 = vmatprep.subr.bf16.mxu0 %v4456_v51  ;;  %3944 = vmatprep.subr.bf16.mxu1 %v4458_v40  ;;  %v664_v51 = vld [vmem:[%s4661_s19 + $0xe38] sm:$0xff]  ;;  %v4487_v40 = vcombine.low %v651_v26, %v655_v27 }
 0x1e4   : > { %v4498_v55 = vcombine.high %v660_v50, %v664_v51  ;;  %v4497_v61 = vcombine.low %v660_v50, %v664_v51 }
 0x1e6   : > { %3781 = vmatpush1.bf16.msra.mxu0 %v4455_v54  ;;  %3945 = vmatpush1.bf16.msra.mxu1 %v4457_v58  ;;  %v671_v54 = vld [vmem:[%s4661_s19 + $0xe70] sm:$0xff]  ;;  %v668_v58 = vld [vmem:[%s4661_s19 + $0xe58] sm:$0xff] }
 0x1e7   : > { %3782 = vmatprep.subr.bf16.mxu0 %v4464_v59  ;;  %3946 = vmatprep.subr.bf16.mxu1 %v4466_v60  ;;  %v672_v59 = vld [vmem:[%s4661_s19 + $0xe78] sm:$0xff]  ;;  %v4495_v60 = vcombine.low %v659_v48, %v663_v49  ;;  %v4504_v63 = vcombine.high %v667_v56, %v671_v54  ;;  %v4503_v7 = vcombine.low %v667_v56, %v671_v54  ;;  %v753_v56 = vsub.s32 7, %v5254_v57 }
 0x1e8   : > { %v4506_v0 = vcombine.high %v668_v58, %v672_v59 }
 0x1ea   : > { %3783 = vmatpush1.bf16.msra.mxu0 %v4463_v4  ;;  %3947 = vmatpush1.bf16.msra.mxu1 %v4465_v8  ;;  %v676_v4 = vld [vmem:[%s4661_s19 + $0xe98] sm:$0xff]  ;;  %v4505_v8 = vcombine.low %v668_v58, %v672_v59 }
 0x1eb   : > { %3784 = vmatprep.subr.bf16.mxu0 %v4472_v10  ;;  %3948 = vmatprep.subr.bf16.mxu1 %v4474_v11  ;;  %v4514_v10 = vcombine.high %v676_v4, %v680_v6  ;;  %v683_v11 = vld [vmem:[%s4661_s19 + $0xed0] sm:$0xff]  ;;  %v4513_v16 = vcombine.low %v676_v4, %v680_v6 }
 0x1ec   : > { %v3480_v24 = vpop.f32.mrb[0].mxu0  ;;  %v3644_v28 = vpop.f32.mrb[0].mxu1 }
 0x1ed   : > { %v4558_v1 = vadd.f32 %v3480_v24, %v726_v14  ;;  %v3482_v31 = vpop.f32.mrb[1].mxu0  ;;  %v4560_v20 = vadd.f32 %v3644_v28, %v734_v17  ;;  %v3646_v35 = vpop.f32.mrb[1].mxu1  ;;  %v688_v14 = vld [vmem:[%s4661_s19 + $0xef8] sm:$0xff]  ;;  %v4520_v17 = vcombine.high %v683_v11, %v687_v12  ;;  %v4519_v24 = vcombine.low %v683_v11, %v687_v12  ;;  %v703_v28 = vld [vmem:[%s4661_s19 + $0xf70] sm:$0xff] }
 0x1ee   : > { %v4559_v34 = vadd.f32 %v3482_v31, %v730_v18  ;;  %v3484_v36 = vpop.f32.mrb[2].mxu0  ;;  %3785 = vmatpush1.bf16.msra.mxu0 %v4471_v19  ;;  %v4561_v39 = vadd.f32 %v3646_v35, %v738_v21  ;;  %v3648_v41 = vpop.f32.mrb[2].mxu1  ;;  %3949 = vmatpush1.bf16.msra.mxu1 %v4473_v22  ;;  %v4522_v18 = vcombine.high %v684_v13, %v688_v14  ;;  %v691_v19 = vld [vmem:[%s4661_s19 + $0xf10] sm:$0xff]  ;;  %v692_v22 = vld [vmem:[%s4661_s19 + $0xf18] sm:$0xff] }
 0x1ef   : > { %v3979_v38 = vmax.f32 %v4558_v1, 0.0  ;;  %v3485_v42 = vpop.f32.mrb[3].mxu0  ;;  %3786 = vmatprep.subr.bf16.mxu0 %v4480_v23  ;;  %v3981_v43 = vmax.f32 %v4560_v20, 0.0  ;;  %v3649_v46 = vpop.f32.mrb[3].mxu1  ;;  %3950 = vmatprep.subr.bf16.mxu1 %v4482_v25  ;;  %v695_v21 = vld [vmem:[%s4661_s19 + $0xf30] sm:$0xff]  ;;  %v696_v23 = vld [vmem:[%s4661_s19 + $0xf38] sm:$0xff]  ;;  %v4521_v25 = vcombine.low %v684_v13, %v688_v14 }
 0x1f0   : > { %v3980_v45 = vmax.f32 %v4559_v34, 0.0  ;;  %v3982_v44 = vmax.f32 %v4561_v39, 0.0  ;;  %v4528_v26 = vcombine.high %v691_v19, %v695_v21  ;;  %v4530_v27 = vcombine.high %v692_v22, %v696_v23  ;;  %v699_v1 = vld [vmem:[%s4661_s19 + $0xf50] sm:$0xff]  ;;  %v700_v31 = vld [vmem:[%s4661_s19 + $0xf58] sm:$0xff] }
 0x1f1   : > { %3987 = vst [vmem:[%s5351_s3] sm:$0xff] %v3979_v38  ;;  %3989 = vst [vmem:[%s5351_s3 + $0x10] sm:$0xff] %v3981_v43  ;;  %v4527_v33 = vcombine.low %v691_v19, %v695_v21  ;;  %v4529_v20 = vcombine.low %v692_v22, %v696_v23  ;;  %v4536_v34 = vcombine.high %v699_v1, %v703_v28  ;;  %v707_v36 = vld [vmem:[%s4661_s19 + $0xf90] sm:$0xff]  ;;  %v708_v38 = vld [vmem:[%s4661_s19 + $0xf98] sm:$0xff] }
 0x1f2   : > { %3988 = vst [vmem:[%s5351_s3 + $0x8] sm:$0xff] %v3980_v45  ;;  %3787 = vmatpush1.bf16.msra.mxu0 %v4479_v37  ;;  %3990 = vst [vmem:[%s5351_s3 + $0x18] sm:$0xff] %v3982_v44  ;;  %3951 = vmatpush1.bf16.msra.mxu1 %v4481_v30  ;;  %v4538_v35 = vcombine.high %v700_v31, %v704_v32  ;;  %v711_v37 = vld [vmem:[%s4661_s19 + $0xfb0] sm:$0xff]  ;;  %v712_v39 = vld [vmem:[%s4661_s19 + $0xfb8] sm:$0xff]  ;;  %v4535_v41 = vcombine.low %v699_v1, %v703_v28 }
 0x1f3   : > { %3788 = vmatprep.subr.bf16.mxu0 %v4488_v29  ;;  %3952 = vmatprep.subr.bf16.mxu1 %v4490_v47  ;;  %v4537_v42 = vcombine.low %v700_v31, %v704_v32  ;;  %v4544_v30 = vcombine.high %v707_v36, %v711_v37  ;;  %v4546_v29 = vcombine.high %v708_v38, %v712_v39  ;;  %v715_v43 = vld [vmem:[%s4661_s19 + $0xfd0] sm:$0xff]  ;;  %v716_v46 = vld [vmem:[%s4661_s19 + $0xfd8] sm:$0xff] }
 0x1f4   : > { %v719_v45 = vld [vmem:[%s4661_s19 + $0xff0] sm:$0xff]  ;;  %v720_v47 = vld [vmem:[%s4661_s19 + $0xff8] sm:$0xff]  ;;  %v4543_v48 = vcombine.low %v707_v36, %v711_v37  ;;  %v4545_v49 = vcombine.low %v708_v38, %v712_v39 }
 0x1f5   : > { %v4552_v44 = vcombine.high %v715_v43, %v719_v45  ;;  %v4554_v50 = vcombine.high %v716_v46, %v720_v47  ;;  %v4551_v51 = vcombine.low %v715_v43, %v719_v45 }
 0x1f6   : > { %3789 = vmatpush1.bf16.msra.mxu0 %v4487_v40  ;;  %3953 = vmatpush1.bf16.msra.mxu1 %v4489_v52  ;;  %v4553_v40 = vcombine.low %v716_v46, %v720_v47  ;;  %v741_v52 = vsub.s32 4, %v5254_v57 }
 0x1f7   : > { %3790 = vmatprep.subr.bf16.mxu0 %v4496_v53  ;;  %3954 = vmatprep.subr.bf16.mxu1 %v4498_v55  ;;  %v749_v53 = vsub.s32 6, %v5254_v57  ;;  %v745_v55 = vsub.s32 5, %v5254_v57 }
 0x1f8   : > { %v742_v54 = vrot.slane %v5262_v5, %v741_v52 }
 0x1f9   : > { %v750_v58 = vrot.slane %v5262_v5, %v749_v53  ;;  %v746_v59 = vrot.slane %v5262_v5, %v745_v55 }
 0x1fa   : > { %3791 = vmatpush1.bf16.msra.mxu0 %v4495_v60  ;;  %3955 = vmatpush1.bf16.msra.mxu1 %v4497_v61  ;;  %v754_v60 = vrot.slane %v5262_v5, %v753_v56 }
 0x1fb   : > { %3792 = vmatprep.subr.bf16.mxu0 %v4504_v63  ;;  %3956 = vmatprep.subr.bf16.mxu1 %v4506_v0 }
 0x1fe   : > { %3793 = vmatpush1.bf16.msra.mxu0 %v4503_v7  ;;  %3957 = vmatpush1.bf16.msra.mxu1 %v4505_v8 }
 0x1ff   : > { %3794 = vmatprep.subr.bf16.mxu0 %v4512_v9  ;;  %3958 = vmatprep.subr.bf16.mxu1 %v4514_v10 }
 0x202   : > { %3795 = vmatpush1.bf16.msra.mxu0 %v4511_v15  ;;  %3959 = vmatpush1.bf16.msra.mxu1 %v4513_v16 }
 0x203   : > { %3796 = vmatprep.subr.bf16.mxu0 %v4520_v17  ;;  %3960 = vmatprep.subr.bf16.mxu1 %v4522_v18 }
 0x206   : > { %3797 = vmatpush1.bf16.msra.mxu0 %v4519_v24  ;;  %3961 = vmatpush1.bf16.msra.mxu1 %v4521_v25 }
 0x207   : > { %3798 = vmatprep.subr.bf16.mxu0 %v4528_v26  ;;  %3962 = vmatprep.subr.bf16.mxu1 %v4530_v27 }
 0x20a   : > { %3799 = vmatpush1.bf16.msra.mxu0 %v4527_v33  ;;  %3963 = vmatpush1.bf16.msra.mxu1 %v4529_v20 }
 0x20b   : > { %3800 = vmatprep.subr.bf16.mxu0 %v4536_v34  ;;  %3964 = vmatprep.subr.bf16.mxu1 %v4538_v35 }
 0x20e   : > { %3801 = vmatpush1.bf16.msra.mxu0 %v4535_v41  ;;  %3965 = vmatpush1.bf16.msra.mxu1 %v4537_v42 }
 0x20f   : > { %3802 = vmatprep.subr.bf16.mxu0 %v4544_v30  ;;  %3966 = vmatprep.subr.bf16.mxu1 %v4546_v29 }
 0x212   : > { %3803 = vmatpush1.bf16.msra.mxu0 %v4543_v48  ;;  %3967 = vmatpush1.bf16.msra.mxu1 %v4545_v49 }
 0x213   : > { %3804 = vmatprep.subr.bf16.mxu0 %v4552_v44  ;;  %3968 = vmatprep.subr.bf16.mxu1 %v4554_v50 }
 0x216   : > { %3805 = vmatpush1.bf16.msra.mxu0 %v4551_v51  ;;  %3969 = vmatpush1.bf16.msra.mxu1 %v4553_v40 }
 0x219   : > { %3807 = vmatmul.mubr.bf16.vlgmr.msra.gmra.mrb[4].mxu0 %v5030_v62  ;;  %3971 = vmatmul.mubr.bf16.vlgmr.msra.gmra.mrb[4].mxu1 %v5030_v62 }
 0x2ec   : > { %v3808_v61 = vpop.f32.mrb[4].mxu0  ;;  %v3972_v0 = vpop.f32.mrb[4].mxu1 }
 0x2ed   : > { %v4562_v63 = vadd.f32 %v3808_v61, %v742_v54  ;;  %v3810_v62 = vpop.f32.mrb[5].mxu0  ;;  %v4564_v2 = vadd.f32 %v3972_v0, %v750_v58  ;;  %v3974_v4 = vpop.f32.mrb[5].mxu1 }
 0x2ee   : > { %v4563_v3 = vadd.f32 %v3810_v62, %v746_v59  ;;  %v3812_v6 = vpop.f32.mrb[6].mxu0  ;;  %v4565_v8 = vadd.f32 %v3974_v4, %v754_v60  ;;  %v3976_v9 = vpop.f32.mrb[6].mxu1 }
 0x2ef   : > { %v3983_v7 = vmax.f32 %v4562_v63, 0.0  ;;  %v3813_v57 = vpop.f32.mrb[7].mxu0  ;;  %v3985_v10 = vmax.f32 %v4564_v2, 0.0  ;;  %v3977_v12 = vpop.f32.mrb[7].mxu1 }
 0x2f0   : > { %v3984_v11 = vmax.f32 %v4563_v3, 0.0  ;;  %v3986_v5 = vmax.f32 %v4565_v8, 0.0 }
 0x2f1   : > { %3991 = vst [vmem:[%s5351_s3 + $0x20] sm:$0xff] %v3983_v7  ;;  %3993 = vst [vmem:[%s5351_s3 + $0x30] sm:$0xff] %v3985_v10 }
 0x2f2   : > { %3992 = vst [vmem:[%s5351_s3 + $0x28] sm:$0xff] %v3984_v11  ;;  %3994 = vst [vmem:[%s5351_s3 + $0x38] sm:$0xff] %v3986_v5 }
 0x2f3 PF: > { %s13_s12 = sadd.s32 1, %s4628_s12  }
 0x2f4   : > { %p10_p5 = scmp.ge.s32.totalorder %s13_s12, 11  }
 0x2f6   :  { %12 = sbr.rel (!%p10_p5) target bundleno = 1 (0x1), region = 65 }

// kernel: acbase_forward.17
= control target key start
LH: loop header
LB: loop body
LE: loop exit
PB: predicated region body
PF: predicated region fallthrough
CT: control target
= control target key end

     0   :  { %v111_v6 = vmov 0   ;;  %v112_v8 = vmov 2   ;;  %v113_v9 = vmov 1   ;;  %v114_v10 = vmov 3   ;;  %s175_s0 = inlined_call_operand.vmem [shape: f32[8,128], index: 0, kind: input, shape index: {}]   ;;  %s176_s1 = inlined_call_operand.vmem [shape: f32[8,128], index: 1, kind: input, shape index: {}]   ;;  %s177_s3 = inlined_call_operand.vmem [shape: s32[8,4], index: 3, kind: input, shape index: {}]   ;;  %s178_s2 = inlined_call_operand.vmem [shape: f32[8,128], index: 2, kind: input, shape index: {}]   ;;  %s179_s5 = inlined_call_operand.vmem [shape: f32[8,1], index: 5, kind: output, shape index: {1}]   ;;  %s180_s4 = inlined_call_operand.vmem [shape: f32[8,4], index: 4, kind: output, shape index: {0}]  }
   0x1   :  { %v19_v0 = vld [vmem:[%s175_s0] sm:$0xff]  ;;  %102 = vset.pattern.permute.xlu1 %v111_v6  ;;  %104 = vset.pattern.permute.xlu0 %v112_v8  ;;  %vm48_vm0 = vcmask 7168   ;;  %v37_v18 = vlaneseq  ;;  %v115_v25 = vmov 0.0   ;;  %vm59_vm5 = vcmask 15368  }
   0x2   :  { %v20_v1 = vld [vmem:[%s176_s1] sm:$0xff]  ;;  %vm70_vm6 = vcmask 23568   ;;  %vm81_vm7 = vcmask 31768  }
   0x3   :  { %v21_v2 = vmul.f32 %v20_v1, %v19_v0  ;;  %v22_v3 = vsub.f32 1.0, %v20_v1  ;;  %v36_v7 = vld [vmem:[%s177_s3] sm:$0xff]  ;;  %v38_v20 = vand.u32 127, %v37_v18 }
   0x4   :  { %40 = vperm.xlu1 %102, %v36_v7   ;;  %v83_v15 = vld [vmem:[%s178_s2] sm:$0xff] }
   0x5   :  { %v23_v4 = vmul.f32 -1e+08, %v22_v3  ;;  %84 = vst.msk [vmem:[%s179_s5] sm:$0xff] %vm48_vm0, %v83_v15 }
   0x7   :  { %v24_v5 = vadd.f32 %v23_v4, %v21_v2 }
   0x8   :  { %103 = vset.pattern.permute.xlu1 %v113_v9 }
   0x9   :  { %25 = vmax.xlane.f32.xlu0 %v24_v5  ;;  %51 = vperm.xlu1 %103, %v36_v7  }
   0xd   :  { %105 = vset.pattern.permute.xlu1 %v114_v10 }
   0xe   :  { %73 = vperm.xlu1 %105, %v36_v7  }
  0x83   :  { %v41_v17 = vpop.permute.xlu1 %40 }
  0x84   :  { %vm42_vm2 = vcmp.eq.s32.totalorder %v38_v20, %v41_v17 }
  0x85   :  { %v93_v28 = vsel %vm42_vm2, 1.0, %v115_v25 }
  0x88   :  { %v52_v22 = vpop.permute.xlu1 %51 }
  0x89   :  { %vm53_vm3 = vcmp.eq.s32.totalorder %v38_v20, %v52_v22 }
  0x8a   :  { %v94_v32 = vsel %vm53_vm3, 1.0, %v115_v25 }
  0x8d   :  { %v74_v29 = vpop.permute.xlu1 %73 }
  0x8e   :  { %vm75_vm4 = vcmp.eq.s32.totalorder %v38_v20, %v74_v29 }
  0x8f   :  { %v96_v34 = vsel %vm75_vm4, 1.0, %v115_v25 }
  0x96   :  { %v26_v11 = vpop.xlane.xlu0 %25 }
  0x97   :  { %v27_v12 = vsub.f32 %v24_v5, %v26_v11 }
  0x99   :  { %v28_v13 = vmul.f32 1.442695, %v27_v12 }
  0x9b   :  { %107 = vpow2.f32 %v28_v13 }
  0xa5   :  { %v108_v14 = vpop.eup %107 }
  0xa6   :  { %30 = vadd.xlane.f32.xlu0 %v108_v14 }
  0xbc   :  { %62 = vperm.xlu0 %104, %v36_v7  }
  0xc0   :  { %106 = vset.pattern.permute.xlu0 %v114_v10 }
 0x133   :  { %v31_v16 = vpop.xlane.xlu0 %30 }
 0x134   :  { %109 = vlog2.f32 %v31_v16 }
 0x13b   :  { %v63_v19 = vpop.permute.xlu0 %62 }
 0x13c   :  { %vm64_vm1 = vcmp.eq.s32.totalorder %v38_v20, %v63_v19 }
 0x13d   :  { %v95_v26 = vsel %vm64_vm1, 1.0, %v115_v25 }
 0x13e   :  { %v110_v21 = vpop.eup %109 }
 0x13f   :  { %v33_v23 = vmul.f32 0.6931472, %v110_v21 }
 0x141   :  { %v34_v24 = vadd.f32 %v33_v23, %v26_v11 }
 0x143   :  { %v35_v27 = vsub.f32 %v24_v5, %v34_v24 }
 0x145   :  { %v45_v30 = vmul.f32 %v93_v28, %v35_v27  ;;  %v67_v31 = vmul.f32 %v95_v26, %v35_v27  ;;  %v56_v33 = vmul.f32 %v94_v32, %v35_v27  ;;  %v78_v35 = vmul.f32 %v96_v34, %v35_v27 }
 0x147   :  { %46 = vadd.xlane.f32.xlu1 %v45_v30  ;;  %68 = vadd.xlane.f32.xlu0 %v67_v31 }
 0x14b   :  { %57 = vadd.xlane.f32.xlu1 %v56_v33 }
 0x14f   :  { %79 = vadd.xlane.f32.xlu1 %v78_v35 }
 0x1d4   :  { %v47_v36 = vpop.xlane.xlu1 %46  ;;  %v69_v38 = vpop.xlane.xlu0 %68 }
 0x1d5   :  { %49 = vst.msk [vmem:[%s180_s4] sm:$0xff] %vm48_vm0, %v47_v36 }
 0x1d8   :  { %v58_v37 = vpop.xlane.xlu1 %57 }
 0x1d9   :  { %60 = vst.msk [vmem:[%s180_s4] sm:$0xff] %vm59_vm5, %v58_v37 }
 0x1da   :  { %71 = vst.msk [vmem:[%s180_s4] sm:$0xff] %vm70_vm6, %v69_v38 }
 0x1dc   :  { %v80_v39 = vpop.xlane.xlu1 %79 }
 0x1dd   :  { %82 = vst.msk [vmem:[%s180_s4] sm:$0xff] %vm81_vm7, %v80_v39 }

</bundles_post_ra>
